<compile_context>
chip_gen: v7x
topology: tpu7x:2x2x1
jax: 0.10.0
libtpu: 0.0.40
codegen_flags: <defaults>
</compile_context>

<pallas_src>
import functools

import jax
import jax.numpy as jnp
from jax.experimental import pallas as pl
from jax.experimental.pallas import tpu as pltpu


def _round_up(x, m):
    return (x + m - 1) // m * m


# -----------------------------------------------------------------------------
# Fixed geometry of this decoder (spatial sizes are architecture constants).
# -----------------------------------------------------------------------------
_K = 4                               # ConvTranspose kernel size (all layers)
_HI = 7                              # proj output spatial
_H1 = _HI + _K - 1                   # 10 : layer-1 output spatial
_WG = _H1 + _K - 1                   # 13 : layer-2 output == shared canvas geom
_HWG = _WG * _WG                     # 169
_HWGP = _round_up(_HWG, 128)         # 256 : lane-padded per-image flat spatial
_WO3 = (_WG - 1) * 2 + _K            # 28 : layer-3 output spatial (stride 2)
_HW3 = _WO3 * _WO3                   # 784
_HW3P = _round_up(_HW3, 128)         # 896

_MAXSHIFT_G = (_K - 1) * _WG + (_K - 1)     # 42 : max tap shift, 13-geometry
_MAXSHIFT_3 = (_K - 1) * _WO3 + (_K - 1)    # 87 : max tap shift, 28-geometry

# Static correctness conditions (review "correctness_concerns"):
#  - circular pltpu.roll wrap-around must only fold in zero-padded lanes, and
#  - the pre-BN accumulator must be exactly zero on every padded lane so the
#    whole-lane BN sums divided by the true count are exact batch statistics.
assert _HWGP - _HWG >= _MAXSHIFT_G, "lane pad too small for 13x13 canvas rolls"
assert _HW3P - _HW3 >= _MAXSHIFT_3, "lane pad too small for 28x28 canvas rolls"
assert _H1 == (_HI - 1) * 1 + _K and _WG == (_H1 - 1) * 1 + _K
assert _WO3 == (_WG - 1) * 2 + _K


# -----------------------------------------------------------------------------
# Host-side (run-once) parameter packing into kernel layouts.
# -----------------------------------------------------------------------------
def _pack_proj(proj_w, proj_b, d8):
    """Linear(n_z, d8*7*7) weight/bias laid out directly as the layer-1 canvas.

    w1c[k, c, m] = proj_w[k, c*49 + i*7 + j]  at m = i*13 + j  (zeros elsewhere)
    b1c[c, m]    = proj_b[c*49 + i*7 + j]     likewise.
    """
    nz = proj_w.shape[0]
    w = proj_w.reshape(nz, d8, _HI, _HI).astype(jnp.float32)
    w = jnp.pad(w, ((0, 0), (0, 0), (0, _WG - _HI), (0, _WG - _HI)))
    w = w.reshape(nz, d8, _HWG)
    w = jnp.pad(w, ((0, 0), (0, 0), (0, _HWGP - _HWG)))
    b = proj_b.reshape(d8, _HI, _HI).astype(jnp.float32)
    b = jnp.pad(b, ((0, 0), (0, _WG - _HI), (0, _WG - _HI))).reshape(d8, _HWG)
    b = jnp.pad(b, ((0, 0), (0, _HWGP - _HWG)))
    return w, b


def _pack_convt(w, cout_pad, dtype):
    """ConvTranspose2d weight (Cin,Cout,K,K) -> kh-folded stacked-tap matrix.

    out[kw*cout_pad + co, kh*cin + ci] = w[ci, co, kh, kw]
    (contraction axis = (kh, ci); matmul M axis = (kw, co))
    """
    cin, cout, k, _ = w.shape
    wt = jnp.transpose(w, (3, 1, 2, 0)).reshape(k, cout, k * cin)
    wt = jnp.pad(wt, ((0, 0), (0, cout_pad - cout), (0, 0)))
    return wt.reshape(k * cout_pad, k * cin).astype(dtype)


def _layer1_valid_mask():
    """(1, HWGP) mask of layer-1's valid 10x10 output inside the 13x13 canvas."""
    m = jnp.arange(_HWGP)
    ok = (m < _HWG) & ((m // _WG) < _H1) & ((m % _WG) < _H1)
    return ok.astype(jnp.float32).reshape(1, _HWGP)


def _upsample_matrix():
    """0/1 matrix embedding a 13x13 image at stride 2 into a 28x28 canvas."""
    rows = jnp.arange(_HWG)
    cols = (rows // _WG) * (2 * _WO3) + (rows % _WG) * 2
    e = jnp.zeros((_HWGP, _HW3P), jnp.float32).at[rows, cols].set(1.0)
    return e.astype(jnp.bfloat16)           # values are 0/1: exact in bf16


def pack_decoder_params(params, dim_h):
    d8, d4, d2 = dim_h * 8, dim_h * 4, dim_h * 2
    assert d2 % 8 == 0, "dim_h must be a multiple of 4 for 8-row channel tiles"
    w1c, b1c = _pack_proj(params["proj_w"], params["proj_b"], d8)
    # ConvT biases before BatchNorm cancel exactly under training-mode BN and
    # are therefore not packed (ct1_b / ct2_b unused); ct3_b IS applied.
    return dict(
        w1c=w1c,
        b1c=b1c,
        w1s=_pack_convt(params["ct1_w"], d4, jnp.bfloat16),
        g1=params["bn1_g"].astype(jnp.float32).reshape(d4, 1),
        bt1=params["bn1_b"].astype(jnp.float32).reshape(d4, 1),
        w2s=_pack_convt(params["ct2_w"], d2, jnp.bfloat16),
        g2=params["bn2_g"].astype(jnp.float32).reshape(d2, 1),
        bt2=params["bn2_b"].astype(jnp.float32).reshape(d2, 1),
        mask=_layer1_valid_mask(),
        eup=_upsample_matrix(),
        w3s=_pack_convt(params["ct3_w"], 8, jnp.float32),     # f32 final layer
        b3=jnp.pad(params["ct3_b"].astype(jnp.float32), (0, 7)).reshape(8, 1),
    )


# -----------------------------------------------------------------------------
# The single fused decoder kernel.
# -----------------------------------------------------------------------------
def _decoder_kernel(z_ref, w1c_ref, b1c_ref, w1s_ref, g1_ref, bt1_ref,
                    w2s_ref, g2_ref, bt2_ref, mask_ref, eup_ref, w3s_ref,
                    b3_ref, o_ref, acc1_buf, acc2_buf, *,
                    batch, nz, d4, d2, eps):
    k = _K

    def conv_taps(canvas, w_ref, cout, wo):
        """kh-folded stacked-tap ConvTranspose: one matmul + 2*(K-1) rolls.

        canvas : (Cin, HWp) f32, input embedded in the OUTPUT geometry (row
                 stride `wo`), zero outside the input footprint and on pad
                 lanes.  Circular roll wrap-around only touches zero lanes
                 (guaranteed by the module-level static asserts).
        """
        op_dtype = w_ref.dtype
        parts = [canvas.astype(op_dtype)]
        for kh in range(1, k):
            parts.append(
                pltpu.roll(canvas, shift=kh * wo, axis=1).astype(op_dtype))
        stack = jnp.concatenate(parts, axis=0)                  # (K*Cin, HWp)
        q = jnp.dot(w_ref[...], stack,
                    preferred_element_type=jnp.float32)         # (K*Cout, HWp)
        acc = q[:cout]
        for kw in range(1, k):
            acc = acc + pltpu.roll(q[kw * cout:(kw + 1) * cout], shift=kw,
                                   axis=1)
        return acc

    # ---- stage 1: proj(z)+ReLU as the layer-1 canvas, ConvT(d8->d4),
    #               accumulate BN1 batch statistics --------------------------
    s1 = jnp.zeros((d4, 1), jnp.float32)
    t1 = jnp.zeros((d4, 1), jnp.float32)
    b1c = b1c_ref[...]
    for bi in range(batch):
        cv = b1c
        for kk in range(nz):                      # nz scalar * matrix FMAs
            cv = cv + w1c_ref[kk] * z_ref[bi, kk]
        cv = jnp.maximum(cv, 0.0)                 # (d8, HWGP) layer-1 canvas
        acc = conv_taps(cv, w1s_ref, d4, _WG)     # 13-geometry output
        acc1_buf[bi] = acc
        s1 = s1 + jnp.sum(acc, axis=1, keepdims=True)
        t1 = t1 + jnp.sum(acc * acc, axis=1, keepdims=True)
    n1 = float(batch * _H1 * _H1)                 # valid layer-1 positions
    mean1 = s1 * (1.0 / n1)
    var1 = t1 * (1.0 / n1) - mean1 * mean1
    sc1 = g1_ref[...] * jax.lax.rsqrt(var1 + eps)
    of1 = bt1_ref[...] - mean1 * sc1              # BN folded into one FMA

    # ---- stage 2: BN1+ReLU (+valid-region mask) -> ConvT(d4->d2), BN2 stats
    s2 = jnp.zeros((d2, 1), jnp.float32)
    t2 = jnp.zeros((d2, 1), jnp.float32)
    msk = mask_ref[...]                           # (1, HWGP)
    for bi in range(batch):
        y1 = jnp.maximum(acc1_buf[bi] * sc1 + of1, 0.0) * msk
        acc = conv_taps(y1, w2s_ref, d2, _WG)
        acc2_buf[bi] = acc
        s2 = s2 + jnp.sum(acc, axis=1, keepdims=True)
        t2 = t2 + jnp.sum(acc * acc, axis=1, keepdims=True)
    n2 = float(batch * _HWG)                      # all 13x13 positions valid
    mean2 = s2 * (1.0 / n2)
    var2 = t2 * (1.0 / n2) - mean2 * mean2
    sc2 = g2_ref[...] * jax.lax.rsqrt(var2 + eps)
    of2 = bt2_ref[...] - mean2 * sc2

    # ---- stage 3: BN2+ReLU -> stride-2 embed (MXU) -> ConvT(d2->1)
    #               + bias + Sigmoid -----------------------------------------
    eup = eup_ref[...]
    for bi in range(batch):
        y2 = jnp.maximum(acc2_buf[bi] * sc2 + of2, 0.0)
        cv3 = jnp.dot(y2.astype(jnp.bfloat16), eup,
                      preferred_element_type=jnp.float32)       # (d2, HW3P)
        acc = conv_taps(cv3, w3s_ref, 8, _WO3)                  # f32 matmul
        o_ref[bi] = jax.nn.sigmoid(acc + b3_ref[...]).astype(o_ref.dtype)


# -----------------------------------------------------------------------------
# Decoder forward (one pallas_call + a tiny output slice/reshape).
# -----------------------------------------------------------------------------
def decoder_forward(z, packed, dim_h):
    batch, nz = z.shape
    d4, d2 = dim_h * 4, dim_h * 2
    # Whole-batch-in-VMEM design; roughly ~80 KiB of VMEM per sample.
    # TODO(synk): lane-tile the spatial axis (pl.Buffered) with partial BN
    #             sums + a finalize pass before batch grows past ~64.
    assert batch <= 64, "re-tile the kernel for large batches"

    kernel = functools.partial(_decoder_kernel, batch=batch, nz=nz,
                               d4=d4, d2=d2, eps=1e-5)
    vmem = pl.BlockSpec(memory_space=pltpu.MemorySpace.VMEM)
    smem = pl.BlockSpec(memory_space=pltpu.MemorySpace.SMEM)

    out = pl.pallas_call(
        kernel,
        out_shape=jax.ShapeDtypeStruct((batch, 8, _HW3P), jnp.float32),
        in_specs=[smem] + [vmem] * 12,
        out_specs=vmem,
        scratch_shapes=[
            pltpu.VMEM((batch, d4, _HWGP), jnp.float32),   # layer-1 pre-BN acc
            pltpu.VMEM((batch, d2, _HWGP), jnp.float32),   # layer-2 pre-BN acc
        ],
    )(z.astype(jnp.float32), packed["w1c"], packed["b1c"], packed["w1s"],
      packed["g1"], packed["bt1"], packed["w2s"], packed["g2"], packed["bt2"],
      packed["mask"], packed["eup"], packed["w3s"], packed["b3"])

    return out[:, 0, :_HW3].reshape(batch, 1, _WO3, _WO3)      # NCHW


# -----------------------------------------------------------------------------
# Pure-XLA f32 reference (textbook ConvTranspose2d / training-mode BN).
# -----------------------------------------------------------------------------
def _ref_convtranspose(x, w, bias, stride):
    bsz, cin, h, ww = x.shape
    _, cout, kk, _ = w.shape
    ho, wo = (h - 1) * stride + kk, (ww - 1) * stride + kk
    out = jnp.zeros((bsz, cout, ho, wo), jnp.float32)
    for kh in range(kk):
        for kw in range(kk):
            contrib = jnp.einsum("bchw,cd->bdhw", x, w[:, :, kh, kw])
            out = out.at[:, :, kh:kh + (h - 1) * stride + 1:stride,
                               kw:kw + (ww - 1) * stride + 1:stride].add(contrib)
    return out + bias[None, :, None, None]


def _ref_bn_relu(x, g, bb, eps=1e-5):
    mean = jnp.mean(x, axis=(0, 2, 3), keepdims=True)
    var = jnp.mean(jnp.square(x - mean), axis=(0, 2, 3), keepdims=True)
    y = (x - mean) * jax.lax.rsqrt(var + eps)
    return jnp.maximum(y * g[None, :, None, None] + bb[None, :, None, None], 0.0)


def decoder_reference(z, params, dim_h):
    d8 = dim_h * 8
    h = jnp.maximum(z @ params["proj_w"] + params["proj_b"], 0.0)
    x = h.reshape(-1, d8, 7, 7)
    x = _ref_convtranspose(x, params["ct1_w"], params["ct1_b"], 1)
    x = _ref_bn_relu(x, params["bn1_g"], params["bn1_b"])
    x = _ref_convtranspose(x, params["ct2_w"], params["ct2_b"], 1)
    x = _ref_bn_relu(x, params["bn2_g"], params["bn2_b"])
    x = _ref_convtranspose(x, params["ct3_w"], params["ct3_b"], 2)
    return jax.nn.sigmoid(x)


# -----------------------------------------------------------------------------
# Deterministic parameter initialization (shapes per Decoder.__init__)
# -----------------------------------------------------------------------------
def init_params(key, n_z, dim_h):
    ks = jax.random.split(key, 12)
    s = 0.05
    d8, d4, d2 = dim_h * 8, dim_h * 4, dim_h * 2
    return {
        "proj_w": s * jax.random.normal(ks[0], (n_z, d8 * 7 * 7), jnp.float32),
        "proj_b": s * jax.random.normal(ks[1], (d8 * 7 * 7,), jnp.float32),
        "ct1_w": s * jax.random.normal(ks[2], (d8, d4, 4, 4), jnp.float32),
        "ct1_b": s * jax.random.normal(ks[3], (d4,), jnp.float32),
        "bn1_g": 1.0 + 0.1 * jax.random.normal(ks[4], (d4,), jnp.float32),
        "bn1_b": 0.1 * jax.random.normal(ks[5], (d4,), jnp.float32),
        "ct2_w": s * jax.random.normal(ks[6], (d4, d2, 4, 4), jnp.float32),
        "ct2_b": s * jax.random.normal(ks[7], (d2,), jnp.float32),
        "bn2_g": 1.0 + 0.1 * jax.random.normal(ks[8], (d2,), jnp.float32),
        "bn2_b": 0.1 * jax.random.normal(ks[9], (d2,), jnp.float32),
        "ct3_w": s * jax.random.normal(ks[10], (d2, 1, 4, 4), jnp.float32),
        "ct3_b": s * jax.random.normal(ks[11], (1,), jnp.float32),
    }


if __name__ == "__main__":
    # small, forward-consistent shapes: args.n_z=8, args.dim_h=8, args.n_channel=1
    n_z, dim_h, batch = 8, 8, 2

    key = jax.random.PRNGKey(0)
    k_z, k_p = jax.random.split(key)
    z = jax.random.normal(k_z, (batch, n_z), jnp.float32)
    params = init_params(k_p, n_z, dim_h)

    packed = pack_decoder_params(params, dim_h)        # run-once weight packing
    fwd = jax.jit(functools.partial(decoder_forward, dim_h=dim_h))
    out = jax.block_until_ready(fwd(z, packed))

    assert out.shape == (batch, 1, 28, 28), out.shape
    assert bool(jnp.all(jnp.isfinite(out)))
    assert bool(jnp.all((out >= 0.0) & (out <= 1.0)))          # sigmoid range

    # numerics vs f32 XLA reference (layers 1-2 use bf16 MXU operands; the
    # proj and the final 1-channel layer stay on the f32 path)
    ref = decoder_reference(z, params, dim_h)
    max_err = float(jnp.max(jnp.abs(out - ref)))
    assert max_err < 0.08, f"mismatch vs reference: {max_err}"

    print("KERNEL_OK")
</pallas_src>

<mosaic_0001>
module attributes {stable_mosaic.version = 11 : i64} {
  func.func @_decoder_kernel(%arg0: memref<2x8xf32, #tpu.memory_space<smem>>, %arg1: memref<8x64x256xf32, #tpu.memory_space<vmem>>, %arg2: memref<64x256xf32, #tpu.memory_space<vmem>>, %arg3: memref<128x256xbf16, #tpu.memory_space<vmem>>, %arg4: memref<32x1xf32, #tpu.memory_space<vmem>>, %arg5: memref<32x1xf32, #tpu.memory_space<vmem>>, %arg6: memref<64x128xbf16, #tpu.memory_space<vmem>>, %arg7: memref<16x1xf32, #tpu.memory_space<vmem>>, %arg8: memref<16x1xf32, #tpu.memory_space<vmem>>, %arg9: memref<1x256xf32, #tpu.memory_space<vmem>>, %arg10: memref<256x896xbf16, #tpu.memory_space<vmem>>, %arg11: memref<32x64xf32, #tpu.memory_space<vmem>>, %arg12: memref<8x1xf32, #tpu.memory_space<vmem>>, %arg13: memref<2x8x896xf32, #tpu.memory_space<vmem>>, %arg14: memref<2x32x256xf32, #tpu.memory_space<vmem>>, %arg15: memref<2x16x256xf32, #tpu.memory_space<vmem>>) attributes {dimension_semantics = [], scalar_prefetch = 0 : i64, scratch_operands = 2 : i64, tpu.core_type = #tpu.core_type<tc>} {
    %cst = arith.constant 0.000000e+00 : f32
    %0 = vector.broadcast %cst : f32 to vector<32x1xf32>
    %cst_0 = arith.constant 0.000000e+00 : f32
    %1 = vector.broadcast %cst_0 : f32 to vector<32x1xf32>
    %c0 = arith.constant 0 : index
    %c0_1 = arith.constant 0 : index
    %2 = vector.load %arg2[%c0, %c0_1] : memref<64x256xf32, #tpu.memory_space<vmem>>, vector<64x256xf32>
    %c0_2 = arith.constant 0 : index
    %c0_3 = arith.constant 0 : index
    %c0_4 = arith.constant 0 : index
    %3 = vector.load %arg1[%c0_2, %c0_3, %c0_4] : memref<8x64x256xf32, #tpu.memory_space<vmem>>, vector<1x64x256xf32>
    %4 = vector.shape_cast %3 : vector<1x64x256xf32> to vector<64x256xf32>
    %c0_5 = arith.constant 0 : index
    %c0_6 = arith.constant 0 : index
    %5 = memref.load %arg0[%c0_5, %c0_6] : memref<2x8xf32, #tpu.memory_space<smem>>
    %6 = vector.broadcast %5 : f32 to vector<64x256xf32>
    %7 = arith.mulf %4, %6 : vector<64x256xf32>
    %8 = arith.addf %2, %7 : vector<64x256xf32>
    %c1 = arith.constant 1 : index
    %c0_7 = arith.constant 0 : index
    %c0_8 = arith.constant 0 : index
    %9 = vector.load %arg1[%c1, %c0_7, %c0_8] : memref<8x64x256xf32, #tpu.memory_space<vmem>>, vector<1x64x256xf32>
    %10 = vector.shape_cast %9 : vector<1x64x256xf32> to vector<64x256xf32>
    %c0_9 = arith.constant 0 : index
    %c1_10 = arith.constant 1 : index
    %11 = memref.load %arg0[%c0_9, %c1_10] : memref<2x8xf32, #tpu.memory_space<smem>>
    %12 = vector.broadcast %11 : f32 to vector<64x256xf32>
    %13 = arith.mulf %10, %12 : vector<64x256xf32>
    %14 = arith.addf %8, %13 : vector<64x256xf32>
    %c2 = arith.constant 2 : index
    %c0_11 = arith.constant 0 : index
    %c0_12 = arith.constant 0 : index
    %15 = vector.load %arg1[%c2, %c0_11, %c0_12] : memref<8x64x256xf32, #tpu.memory_space<vmem>>, vector<1x64x256xf32>
    %16 = vector.shape_cast %15 : vector<1x64x256xf32> to vector<64x256xf32>
    %c0_13 = arith.constant 0 : index
    %c2_14 = arith.constant 2 : index
    %17 = memref.load %arg0[%c0_13, %c2_14] : memref<2x8xf32, #tpu.memory_space<smem>>
    %18 = vector.broadcast %17 : f32 to vector<64x256xf32>
    %19 = arith.mulf %16, %18 : vector<64x256xf32>
    %20 = arith.addf %14, %19 : vector<64x256xf32>
    %c3 = arith.constant 3 : index
    %c0_15 = arith.constant 0 : index
    %c0_16 = arith.constant 0 : index
    %21 = vector.load %arg1[%c3, %c0_15, %c0_16] : memref<8x64x256xf32, #tpu.memory_space<vmem>>, vector<1x64x256xf32>
    %22 = vector.shape_cast %21 : vector<1x64x256xf32> to vector<64x256xf32>
    %c0_17 = arith.constant 0 : index
    %c3_18 = arith.constant 3 : index
    %23 = memref.load %arg0[%c0_17, %c3_18] : memref<2x8xf32, #tpu.memory_space<smem>>
    %24 = vector.broadcast %23 : f32 to vector<64x256xf32>
    %25 = arith.mulf %22, %24 : vector<64x256xf32>
    %26 = arith.addf %20, %25 : vector<64x256xf32>
    %c4 = arith.constant 4 : index
    %c0_19 = arith.constant 0 : index
    %c0_20 = arith.constant 0 : index
    %27 = vector.load %arg1[%c4, %c0_19, %c0_20] : memref<8x64x256xf32, #tpu.memory_space<vmem>>, vector<1x64x256xf32>
    %28 = vector.shape_cast %27 : vector<1x64x256xf32> to vector<64x256xf32>
    %c0_21 = arith.constant 0 : index
    %c4_22 = arith.constant 4 : index
    %29 = memref.load %arg0[%c0_21, %c4_22] : memref<2x8xf32, #tpu.memory_space<smem>>
    %30 = vector.broadcast %29 : f32 to vector<64x256xf32>
    %31 = arith.mulf %28, %30 : vector<64x256xf32>
    %32 = arith.addf %26, %31 : vector<64x256xf32>
    %c5 = arith.constant 5 : index
    %c0_23 = arith.constant 0 : index
    %c0_24 = arith.constant 0 : index
    %33 = vector.load %arg1[%c5, %c0_23, %c0_24] : memref<8x64x256xf32, #tpu.memory_space<vmem>>, vector<1x64x256xf32>
    %34 = vector.shape_cast %33 : vector<1x64x256xf32> to vector<64x256xf32>
    %c0_25 = arith.constant 0 : index
    %c5_26 = arith.constant 5 : index
    %35 = memref.load %arg0[%c0_25, %c5_26] : memref<2x8xf32, #tpu.memory_space<smem>>
    %36 = vector.broadcast %35 : f32 to vector<64x256xf32>
    %37 = arith.mulf %34, %36 : vector<64x256xf32>
    %38 = arith.addf %32, %37 : vector<64x256xf32>
    %c6 = arith.constant 6 : index
    %c0_27 = arith.constant 0 : index
    %c0_28 = arith.constant 0 : index
    %39 = vector.load %arg1[%c6, %c0_27, %c0_28] : memref<8x64x256xf32, #tpu.memory_space<vmem>>, vector<1x64x256xf32>
    %40 = vector.shape_cast %39 : vector<1x64x256xf32> to vector<64x256xf32>
    %c0_29 = arith.constant 0 : index
    %c6_30 = arith.constant 6 : index
    %41 = memref.load %arg0[%c0_29, %c6_30] : memref<2x8xf32, #tpu.memory_space<smem>>
    %42 = vector.broadcast %41 : f32 to vector<64x256xf32>
    %43 = arith.mulf %40, %42 : vector<64x256xf32>
    %44 = arith.addf %38, %43 : vector<64x256xf32>
    %c7 = arith.constant 7 : index
    %c0_31 = arith.constant 0 : index
    %c0_32 = arith.constant 0 : index
    %45 = vector.load %arg1[%c7, %c0_31, %c0_32] : memref<8x64x256xf32, #tpu.memory_space<vmem>>, vector<1x64x256xf32>
    %46 = vector.shape_cast %45 : vector<1x64x256xf32> to vector<64x256xf32>
    %c0_33 = arith.constant 0 : index
    %c7_34 = arith.constant 7 : index
    %47 = memref.load %arg0[%c0_33, %c7_34] : memref<2x8xf32, #tpu.memory_space<smem>>
    %48 = vector.broadcast %47 : f32 to vector<64x256xf32>
    %49 = arith.mulf %46, %48 : vector<64x256xf32>
    %50 = arith.addf %44, %49 : vector<64x256xf32>
    %cst_35 = arith.constant 0.000000e+00 : f32
    %51 = vector.broadcast %cst_35 : f32 to vector<64x256xf32>
    %52 = arith.maximumf %50, %51 : vector<64x256xf32>
    %53 = arith.truncf %52 : vector<64x256xf32> to vector<64x256xbf16>
    %c13_i32 = arith.constant 13 : i32
    %54 = tpu.dynamic_rotate %52 by %c13_i32 dim 1 : vector<64x256xf32>, i32 -> vector<64x256xf32>
    %55 = arith.truncf %54 : vector<64x256xf32> to vector<64x256xbf16>
    %c26_i32 = arith.constant 26 : i32
    %56 = tpu.dynamic_rotate %52 by %c26_i32 dim 1 : vector<64x256xf32>, i32 -> vector<64x256xf32>
    %57 = arith.truncf %56 : vector<64x256xf32> to vector<64x256xbf16>
    %c39_i32 = arith.constant 39 : i32
    %58 = tpu.dynamic_rotate %52 by %c39_i32 dim 1 : vector<64x256xf32>, i32 -> vector<64x256xf32>
    %59 = arith.truncf %58 : vector<64x256xf32> to vector<64x256xbf16>
    %60 = tpu.concatenate %53, %55, %57, %59 in 0 : vector<64x256xbf16>, vector<64x256xbf16>, vector<64x256xbf16>, vector<64x256xbf16> -> vector<256x256xbf16>
    %c0_36 = arith.constant 0 : index
    %c0_37 = arith.constant 0 : index
    %61 = vector.load %arg3[%c0_36, %c0_37] : memref<128x256xbf16, #tpu.memory_space<vmem>>, vector<128x256xbf16>
    %cst_38 = arith.constant dense<0.000000e+00> : vector<128x256xf32>
    %62 = tpu.matmul %61, %60, %cst_38 {dimension_numbers = #tpu.dot_dimension_numbers<[1], [0], [0], [1], [0, 0, 1, 1], [], []>} : vector<128x256xbf16>, vector<256x256xbf16>, vector<128x256xf32> -> vector<128x256xf32>
    %63 = vector.extract_strided_slice %62 {offsets = [0, 0], sizes = [32, 256], strides = [1, 1]} : vector<128x256xf32> to vector<32x256xf32>
    %64 = vector.extract_strided_slice %62 {offsets = [32, 0], sizes = [32, 256], strides = [1, 1]} : vector<128x256xf32> to vector<32x256xf32>
    %c1_i32 = arith.constant 1 : i32
    %65 = tpu.dynamic_rotate %64 by %c1_i32 dim 1 : vector<32x256xf32>, i32 -> vector<32x256xf32>
    %66 = arith.addf %63, %65 : vector<32x256xf32>
    %67 = vector.extract_strided_slice %62 {offsets = [64, 0], sizes = [32, 256], strides = [1, 1]} : vector<128x256xf32> to vector<32x256xf32>
    %c2_i32 = arith.constant 2 : i32
    %68 = tpu.dynamic_rotate %67 by %c2_i32 dim 1 : vector<32x256xf32>, i32 -> vector<32x256xf32>
    %69 = arith.addf %66, %68 : vector<32x256xf32>
    %70 = vector.extract_strided_slice %62 {offsets = [96, 0], sizes = [32, 256], strides = [1, 1]} : vector<128x256xf32> to vector<32x256xf32>
    %c3_i32 = arith.constant 3 : i32
    %71 = tpu.dynamic_rotate %70 by %c3_i32 dim 1 : vector<32x256xf32>, i32 -> vector<32x256xf32>
    %72 = arith.addf %69, %71 : vector<32x256xf32>
    %c0_39 = arith.constant 0 : index
    %c0_40 = arith.constant 0 : index
    %c0_41 = arith.constant 0 : index
    %73 = vector.load %arg14[%c0_39, %c0_40, %c0_41] : memref<2x32x256xf32, #tpu.memory_space<vmem>>, vector<1x32x256xf32>
    %74 = vector.shape_cast %73 : vector<1x32x256xf32> to vector<32x256xf32>
    %75 = vector.shape_cast %72 : vector<32x256xf32> to vector<1x32x256xf32>
    tpu.vector_store %arg14[%c0_39, %c0_40, %c0_41], %75 {strides = array<i32>} : memref<2x32x256xf32, #tpu.memory_space<vmem>>, vector<1x32x256xf32>,
    %cst_42 = arith.constant dense<0.000000e+00> : vector<32xf32>
    %76 = vector.multi_reduction <add>, %72, %cst_42 [1] : vector<32x256xf32> to vector<32xf32>
    %77 = vector.shape_cast %76 : vector<32xf32> to vector<32x1xf32>
    %78 = arith.addf %0, %77 : vector<32x1xf32>
    %79 = arith.mulf %72, %72 : vector<32x256xf32>
    %cst_43 = arith.constant dense<0.000000e+00> : vector<32xf32>
    %80 = vector.multi_reduction <add>, %79, %cst_43 [1] : vector<32x256xf32> to vector<32xf32>
    %81 = vector.shape_cast %80 : vector<32xf32> to vector<32x1xf32>
    %82 = arith.addf %1, %81 : vector<32x1xf32>
    %c0_44 = arith.constant 0 : index
    %c0_45 = arith.constant 0 : index
    %c0_46 = arith.constant 0 : index
    %83 = vector.load %arg1[%c0_44, %c0_45, %c0_46] : memref<8x64x256xf32, #tpu.memory_space<vmem>>, vector<1x64x256xf32>
    %84 = vector.shape_cast %83 : vector<1x64x256xf32> to vector<64x256xf32>
    %c1_47 = arith.constant 1 : index
    %c0_48 = arith.constant 0 : index
    %85 = memref.load %arg0[%c1_47, %c0_48] : memref<2x8xf32, #tpu.memory_space<smem>>
    %86 = vector.broadcast %85 : f32 to vector<64x256xf32>
    %87 = arith.mulf %84, %86 : vector<64x256xf32>
    %88 = arith.addf %2, %87 : vector<64x256xf32>
    %c1_49 = arith.constant 1 : index
    %c0_50 = arith.constant 0 : index
    %c0_51 = arith.constant 0 : index
    %89 = vector.load %arg1[%c1_49, %c0_50, %c0_51] : memref<8x64x256xf32, #tpu.memory_space<vmem>>, vector<1x64x256xf32>
    %90 = vector.shape_cast %89 : vector<1x64x256xf32> to vector<64x256xf32>
    %c1_52 = arith.constant 1 : index
    %c1_53 = arith.constant 1 : index
    %91 = memref.load %arg0[%c1_52, %c1_53] : memref<2x8xf32, #tpu.memory_space<smem>>
    %92 = vector.broadcast %91 : f32 to vector<64x256xf32>
    %93 = arith.mulf %90, %92 : vector<64x256xf32>
    %94 = arith.addf %88, %93 : vector<64x256xf32>
    %c2_54 = arith.constant 2 : index
    %c0_55 = arith.constant 0 : index
    %c0_56 = arith.constant 0 : index
    %95 = vector.load %arg1[%c2_54, %c0_55, %c0_56] : memref<8x64x256xf32, #tpu.memory_space<vmem>>, vector<1x64x256xf32>
    %96 = vector.shape_cast %95 : vector<1x64x256xf32> to vector<64x256xf32>
    %c1_57 = arith.constant 1 : index
    %c2_58 = arith.constant 2 : index
    %97 = memref.load %arg0[%c1_57, %c2_58] : memref<2x8xf32, #tpu.memory_space<smem>>
    %98 = vector.broadcast %97 : f32 to vector<64x256xf32>
    %99 = arith.mulf %96, %98 : vector<64x256xf32>
    %100 = arith.addf %94, %99 : vector<64x256xf32>
    %c3_59 = arith.constant 3 : index
    %c0_60 = arith.constant 0 : index
    %c0_61 = arith.constant 0 : index
    %101 = vector.load %arg1[%c3_59, %c0_60, %c0_61] : memref<8x64x256xf32, #tpu.memory_space<vmem>>, vector<1x64x256xf32>
    %102 = vector.shape_cast %101 : vector<1x64x256xf32> to vector<64x256xf32>
    %c1_62 = arith.constant 1 : index
    %c3_63 = arith.constant 3 : index
    %103 = memref.load %arg0[%c1_62, %c3_63] : memref<2x8xf32, #tpu.memory_space<smem>>
    %104 = vector.broadcast %103 : f32 to vector<64x256xf32>
    %105 = arith.mulf %102, %104 : vector<64x256xf32>
    %106 = arith.addf %100, %105 : vector<64x256xf32>
    %c4_64 = arith.constant 4 : index
    %c0_65 = arith.constant 0 : index
    %c0_66 = arith.constant 0 : index
    %107 = vector.load %arg1[%c4_64, %c0_65, %c0_66] : memref<8x64x256xf32, #tpu.memory_space<vmem>>, vector<1x64x256xf32>
    %108 = vector.shape_cast %107 : vector<1x64x256xf32> to vector<64x256xf32>
    %c1_67 = arith.constant 1 : index
    %c4_68 = arith.constant 4 : index
    %109 = memref.load %arg0[%c1_67, %c4_68] : memref<2x8xf32, #tpu.memory_space<smem>>
    %110 = vector.broadcast %109 : f32 to vector<64x256xf32>
    %111 = arith.mulf %108, %110 : vector<64x256xf32>
    %112 = arith.addf %106, %111 : vector<64x256xf32>
    %c5_69 = arith.constant 5 : index
    %c0_70 = arith.constant 0 : index
    %c0_71 = arith.constant 0 : index
    %113 = vector.load %arg1[%c5_69, %c0_70, %c0_71] : memref<8x64x256xf32, #tpu.memory_space<vmem>>, vector<1x64x256xf32>
    %114 = vector.shape_cast %113 : vector<1x64x256xf32> to vector<64x256xf32>
    %c1_72 = arith.constant 1 : index
    %c5_73 = arith.constant 5 : index
    %115 = memref.load %arg0[%c1_72, %c5_73] : memref<2x8xf32, #tpu.memory_space<smem>>
    %116 = vector.broadcast %115 : f32 to vector<64x256xf32>
    %117 = arith.mulf %114, %116 : vector<64x256xf32>
    %118 = arith.addf %112, %117 : vector<64x256xf32>
    %c6_74 = arith.constant 6 : index
    %c0_75 = arith.constant 0 : index
    %c0_76 = arith.constant 0 : index
    %119 = vector.load %arg1[%c6_74, %c0_75, %c0_76] : memref<8x64x256xf32, #tpu.memory_space<vmem>>, vector<1x64x256xf32>
    %120 = vector.shape_cast %119 : vector<1x64x256xf32> to vector<64x256xf32>
    %c1_77 = arith.constant 1 : index
    %c6_78 = arith.constant 6 : index
    %121 = memref.load %arg0[%c1_77, %c6_78] : memref<2x8xf32, #tpu.memory_space<smem>>
    %122 = vector.broadcast %121 : f32 to vector<64x256xf32>
    %123 = arith.mulf %120, %122 : vector<64x256xf32>
    %124 = arith.addf %118, %123 : vector<64x256xf32>
    %c7_79 = arith.constant 7 : index
    %c0_80 = arith.constant 0 : index
    %c0_81 = arith.constant 0 : index
    %125 = vector.load %arg1[%c7_79, %c0_80, %c0_81] : memref<8x64x256xf32, #tpu.memory_space<vmem>>, vector<1x64x256xf32>
    %126 = vector.shape_cast %125 : vector<1x64x256xf32> to vector<64x256xf32>
    %c1_82 = arith.constant 1 : index
    %c7_83 = arith.constant 7 : index
    %127 = memref.load %arg0[%c1_82, %c7_83] : memref<2x8xf32, #tpu.memory_space<smem>>
    %128 = vector.broadcast %127 : f32 to vector<64x256xf32>
    %129 = arith.mulf %126, %128 : vector<64x256xf32>
    %130 = arith.addf %124, %129 : vector<64x256xf32>
    %cst_84 = arith.constant 0.000000e+00 : f32
    %131 = vector.broadcast %cst_84 : f32 to vector<64x256xf32>
    %132 = arith.maximumf %130, %131 : vector<64x256xf32>
    %133 = arith.truncf %132 : vector<64x256xf32> to vector<64x256xbf16>
    %c13_i32_85 = arith.constant 13 : i32
    %134 = tpu.dynamic_rotate %132 by %c13_i32_85 dim 1 : vector<64x256xf32>, i32 -> vector<64x256xf32>
    %135 = arith.truncf %134 : vector<64x256xf32> to vector<64x256xbf16>
    %c26_i32_86 = arith.constant 26 : i32
    %136 = tpu.dynamic_rotate %132 by %c26_i32_86 dim 1 : vector<64x256xf32>, i32 -> vector<64x256xf32>
    %137 = arith.truncf %136 : vector<64x256xf32> to vector<64x256xbf16>
    %c39_i32_87 = arith.constant 39 : i32
    %138 = tpu.dynamic_rotate %132 by %c39_i32_87 dim 1 : vector<64x256xf32>, i32 -> vector<64x256xf32>
    %139 = arith.truncf %138 : vector<64x256xf32> to vector<64x256xbf16>
    %140 = tpu.concatenate %133, %135, %137, %139 in 0 : vector<64x256xbf16>, vector<64x256xbf16>, vector<64x256xbf16>, vector<64x256xbf16> -> vector<256x256xbf16>
    %c0_88 = arith.constant 0 : index
    %c0_89 = arith.constant 0 : index
    %141 = vector.load %arg3[%c0_88, %c0_89] : memref<128x256xbf16, #tpu.memory_space<vmem>>, vector<128x256xbf16>
    %cst_90 = arith.constant dense<0.000000e+00> : vector<128x256xf32>
    %142 = tpu.matmul %141, %140, %cst_90 {dimension_numbers = #tpu.dot_dimension_numbers<[1], [0], [0], [1], [0, 0, 1, 1], [], []>} : vector<128x256xbf16>, vector<256x256xbf16>, vector<128x256xf32> -> vector<128x256xf32>
    %143 = vector.extract_strided_slice %142 {offsets = [0, 0], sizes = [32, 256], strides = [1, 1]} : vector<128x256xf32> to vector<32x256xf32>
    %144 = vector.extract_strided_slice %142 {offsets = [32, 0], sizes = [32, 256], strides = [1, 1]} : vector<128x256xf32> to vector<32x256xf32>
    %c1_i32_91 = arith.constant 1 : i32
    %145 = tpu.dynamic_rotate %144 by %c1_i32_91 dim 1 : vector<32x256xf32>, i32 -> vector<32x256xf32>
    %146 = arith.addf %143, %145 : vector<32x256xf32>
    %147 = vector.extract_strided_slice %142 {offsets = [64, 0], sizes = [32, 256], strides = [1, 1]} : vector<128x256xf32> to vector<32x256xf32>
    %c2_i32_92 = arith.constant 2 : i32
    %148 = tpu.dynamic_rotate %147 by %c2_i32_92 dim 1 : vector<32x256xf32>, i32 -> vector<32x256xf32>
    %149 = arith.addf %146, %148 : vector<32x256xf32>
    %150 = vector.extract_strided_slice %142 {offsets = [96, 0], sizes = [32, 256], strides = [1, 1]} : vector<128x256xf32> to vector<32x256xf32>
    %c3_i32_93 = arith.constant 3 : i32
    %151 = tpu.dynamic_rotate %150 by %c3_i32_93 dim 1 : vector<32x256xf32>, i32 -> vector<32x256xf32>
    %152 = arith.addf %149, %151 : vector<32x256xf32>
    %c1_94 = arith.constant 1 : index
    %c0_95 = arith.constant 0 : index
    %c0_96 = arith.constant 0 : index
    %153 = vector.load %arg14[%c1_94, %c0_95, %c0_96] : memref<2x32x256xf32, #tpu.memory_space<vmem>>, vector<1x32x256xf32>
    %154 = vector.shape_cast %153 : vector<1x32x256xf32> to vector<32x256xf32>
    %155 = vector.shape_cast %152 : vector<32x256xf32> to vector<1x32x256xf32>
    tpu.vector_store %arg14[%c1_94, %c0_95, %c0_96], %155 {strides = array<i32>} : memref<2x32x256xf32, #tpu.memory_space<vmem>>, vector<1x32x256xf32>,
    %cst_97 = arith.constant dense<0.000000e+00> : vector<32xf32>
    %156 = vector.multi_reduction <add>, %152, %cst_97 [1] : vector<32x256xf32> to vector<32xf32>
    %157 = vector.shape_cast %156 : vector<32xf32> to vector<32x1xf32>
    %158 = arith.addf %78, %157 : vector<32x1xf32>
    %159 = arith.mulf %152, %152 : vector<32x256xf32>
    %cst_98 = arith.constant dense<0.000000e+00> : vector<32xf32>
    %160 = vector.multi_reduction <add>, %159, %cst_98 [1] : vector<32x256xf32> to vector<32xf32>
    %161 = vector.shape_cast %160 : vector<32xf32> to vector<32x1xf32>
    %162 = arith.addf %82, %161 : vector<32x1xf32>
    %cst_99 = arith.constant 5.000000e-03 : f32
    %163 = vector.broadcast %cst_99 : f32 to vector<32x1xf32>
    %164 = arith.mulf %158, %163 : vector<32x1xf32>
    %cst_100 = arith.constant 5.000000e-03 : f32
    %165 = vector.broadcast %cst_100 : f32 to vector<32x1xf32>
    %166 = arith.mulf %162, %165 : vector<32x1xf32>
    %167 = arith.mulf %164, %164 : vector<32x1xf32>
    %168 = arith.subf %166, %167 : vector<32x1xf32>
    %c0_101 = arith.constant 0 : index
    %c0_102 = arith.constant 0 : index
    %169 = vector.load %arg4[%c0_101, %c0_102] : memref<32x1xf32, #tpu.memory_space<vmem>>, vector<32x1xf32>
    %cst_103 = arith.constant 9.99999974E-6 : f32
    %170 = vector.broadcast %cst_103 : f32 to vector<32x1xf32>
    %171 = arith.addf %168, %170 : vector<32x1xf32>
    %172 = math.rsqrt %171 : vector<32x1xf32>
    %173 = arith.mulf %169, %172 : vector<32x1xf32>
    %c0_104 = arith.constant 0 : index
    %c0_105 = arith.constant 0 : index
    %174 = vector.load %arg5[%c0_104, %c0_105] : memref<32x1xf32, #tpu.memory_space<vmem>>, vector<32x1xf32>
    %175 = arith.mulf %164, %173 : vector<32x1xf32>
    %176 = arith.subf %174, %175 : vector<32x1xf32>
    %cst_106 = arith.constant 0.000000e+00 : f32
    %177 = vector.broadcast %cst_106 : f32 to vector<16x1xf32>
    %cst_107 = arith.constant 0.000000e+00 : f32
    %178 = vector.broadcast %cst_107 : f32 to vector<16x1xf32>
    %c0_108 = arith.constant 0 : index
    %c0_109 = arith.constant 0 : index
    %179 = vector.load %arg9[%c0_108, %c0_109] : memref<1x256xf32, #tpu.memory_space<vmem>>, vector<1x256xf32>
    %c0_110 = arith.constant 0 : index
    %c0_111 = arith.constant 0 : index
    %c0_112 = arith.constant 0 : index
    %180 = vector.load %arg14[%c0_110, %c0_111, %c0_112] : memref<2x32x256xf32, #tpu.memory_space<vmem>>, vector<1x32x256xf32>
    %181 = vector.shape_cast %180 : vector<1x32x256xf32> to vector<32x256xf32>
    %182 = vector.broadcast %173 : vector<32x1xf32> to vector<32x256xf32>
    %183 = arith.mulf %181, %182 : vector<32x256xf32>
    %184 = vector.broadcast %176 : vector<32x1xf32> to vector<32x256xf32>
    %185 = arith.addf %183, %184 : vector<32x256xf32>
    %cst_113 = arith.constant 0.000000e+00 : f32
    %186 = vector.broadcast %cst_113 : f32 to vector<32x256xf32>
    %187 = arith.maximumf %185, %186 : vector<32x256xf32>
    %188 = vector.broadcast %179 : vector<1x256xf32> to vector<32x256xf32>
    %189 = arith.mulf %187, %188 : vector<32x256xf32>
    %190 = arith.truncf %189 : vector<32x256xf32> to vector<32x256xbf16>
    %c13_i32_114 = arith.constant 13 : i32
    %191 = tpu.dynamic_rotate %189 by %c13_i32_114 dim 1 : vector<32x256xf32>, i32 -> vector<32x256xf32>
    %192 = arith.truncf %191 : vector<32x256xf32> to vector<32x256xbf16>
    %c26_i32_115 = arith.constant 26 : i32
    %193 = tpu.dynamic_rotate %189 by %c26_i32_115 dim 1 : vector<32x256xf32>, i32 -> vector<32x256xf32>
    %194 = arith.truncf %193 : vector<32x256xf32> to vector<32x256xbf16>
    %c39_i32_116 = arith.constant 39 : i32
    %195 = tpu.dynamic_rotate %189 by %c39_i32_116 dim 1 : vector<32x256xf32>, i32 -> vector<32x256xf32>
    %196 = arith.truncf %195 : vector<32x256xf32> to vector<32x256xbf16>
    %197 = tpu.concatenate %190, %192, %194, %196 in 0 : vector<32x256xbf16>, vector<32x256xbf16>, vector<32x256xbf16>, vector<32x256xbf16> -> vector<128x256xbf16>
    %c0_117 = arith.constant 0 : index
    %c0_118 = arith.constant 0 : index
    %198 = vector.load %arg6[%c0_117, %c0_118] : memref<64x128xbf16, #tpu.memory_space<vmem>>, vector<64x128xbf16>
    %cst_119 = arith.constant dense<0.000000e+00> : vector<64x256xf32>
    %199 = tpu.matmul %198, %197, %cst_119 {dimension_numbers = #tpu.dot_dimension_numbers<[1], [0], [0], [1], [0, 0, 1, 1], [], []>} : vector<64x128xbf16>, vector<128x256xbf16>, vector<64x256xf32> -> vector<64x256xf32>
    %200 = vector.extract_strided_slice %199 {offsets = [0, 0], sizes = [16, 256], strides = [1, 1]} : vector<64x256xf32> to vector<16x256xf32>
    %201 = vector.extract_strided_slice %199 {offsets = [16, 0], sizes = [16, 256], strides = [1, 1]} : vector<64x256xf32> to vector<16x256xf32>
    %c1_i32_120 = arith.constant 1 : i32
    %202 = tpu.dynamic_rotate %201 by %c1_i32_120 dim 1 : vector<16x256xf32>, i32 -> vector<16x256xf32>
    %203 = arith.addf %200, %202 : vector<16x256xf32>
    %204 = vector.extract_strided_slice %199 {offsets = [32, 0], sizes = [16, 256], strides = [1, 1]} : vector<64x256xf32> to vector<16x256xf32>
    %c2_i32_121 = arith.constant 2 : i32
    %205 = tpu.dynamic_rotate %204 by %c2_i32_121 dim 1 : vector<16x256xf32>, i32 -> vector<16x256xf32>
    %206 = arith.addf %203, %205 : vector<16x256xf32>
    %207 = vector.extract_strided_slice %199 {offsets = [48, 0], sizes = [16, 256], strides = [1, 1]} : vector<64x256xf32> to vector<16x256xf32>
    %c3_i32_122 = arith.constant 3 : i32
    %208 = tpu.dynamic_rotate %207 by %c3_i32_122 dim 1 : vector<16x256xf32>, i32 -> vector<16x256xf32>
    %209 = arith.addf %206, %208 : vector<16x256xf32>
    %c0_123 = arith.constant 0 : index
    %c0_124 = arith.constant 0 : index
    %c0_125 = arith.constant 0 : index
    %210 = vector.load %arg15[%c0_123, %c0_124, %c0_125] : memref<2x16x256xf32, #tpu.memory_space<vmem>>, vector<1x16x256xf32>
    %211 = vector.shape_cast %210 : vector<1x16x256xf32> to vector<16x256xf32>
    %212 = vector.shape_cast %209 : vector<16x256xf32> to vector<1x16x256xf32>
    tpu.vector_store %arg15[%c0_123, %c0_124, %c0_125], %212 {strides = array<i32>} : memref<2x16x256xf32, #tpu.memory_space<vmem>>, vector<1x16x256xf32>,
    %cst_126 = arith.constant dense<0.000000e+00> : vector<16xf32>
    %213 = vector.multi_reduction <add>, %209, %cst_126 [1] : vector<16x256xf32> to vector<16xf32>
    %214 = vector.shape_cast %213 : vector<16xf32> to vector<16x1xf32>
    %215 = arith.addf %177, %214 : vector<16x1xf32>
    %216 = arith.mulf %209, %209 : vector<16x256xf32>
    %cst_127 = arith.constant dense<0.000000e+00> : vector<16xf32>
    %217 = vector.multi_reduction <add>, %216, %cst_127 [1] : vector<16x256xf32> to vector<16xf32>
    %218 = vector.shape_cast %217 : vector<16xf32> to vector<16x1xf32>
    %219 = arith.addf %178, %218 : vector<16x1xf32>
    %c1_128 = arith.constant 1 : index
    %c0_129 = arith.constant 0 : index
    %c0_130 = arith.constant 0 : index
    %220 = vector.load %arg14[%c1_128, %c0_129, %c0_130] : memref<2x32x256xf32, #tpu.memory_space<vmem>>, vector<1x32x256xf32>
    %221 = vector.shape_cast %220 : vector<1x32x256xf32> to vector<32x256xf32>
    %222 = vector.broadcast %173 : vector<32x1xf32> to vector<32x256xf32>
    %223 = arith.mulf %221, %222 : vector<32x256xf32>
    %224 = vector.broadcast %176 : vector<32x1xf32> to vector<32x256xf32>
    %225 = arith.addf %223, %224 : vector<32x256xf32>
    %cst_131 = arith.constant 0.000000e+00 : f32
    %226 = vector.broadcast %cst_131 : f32 to vector<32x256xf32>
    %227 = arith.maximumf %225, %226 : vector<32x256xf32>
    %228 = vector.broadcast %179 : vector<1x256xf32> to vector<32x256xf32>
    %229 = arith.mulf %227, %228 : vector<32x256xf32>
    %230 = arith.truncf %229 : vector<32x256xf32> to vector<32x256xbf16>
    %c13_i32_132 = arith.constant 13 : i32
    %231 = tpu.dynamic_rotate %229 by %c13_i32_132 dim 1 : vector<32x256xf32>, i32 -> vector<32x256xf32>
    %232 = arith.truncf %231 : vector<32x256xf32> to vector<32x256xbf16>
    %c26_i32_133 = arith.constant 26 : i32
    %233 = tpu.dynamic_rotate %229 by %c26_i32_133 dim 1 : vector<32x256xf32>, i32 -> vector<32x256xf32>
    %234 = arith.truncf %233 : vector<32x256xf32> to vector<32x256xbf16>
    %c39_i32_134 = arith.constant 39 : i32
    %235 = tpu.dynamic_rotate %229 by %c39_i32_134 dim 1 : vector<32x256xf32>, i32 -> vector<32x256xf32>
    %236 = arith.truncf %235 : vector<32x256xf32> to vector<32x256xbf16>
    %237 = tpu.concatenate %230, %232, %234, %236 in 0 : vector<32x256xbf16>, vector<32x256xbf16>, vector<32x256xbf16>, vector<32x256xbf16> -> vector<128x256xbf16>
    %c0_135 = arith.constant 0 : index
    %c0_136 = arith.constant 0 : index
    %238 = vector.load %arg6[%c0_135, %c0_136] : memref<64x128xbf16, #tpu.memory_space<vmem>>, vector<64x128xbf16>
    %cst_137 = arith.constant dense<0.000000e+00> : vector<64x256xf32>
    %239 = tpu.matmul %238, %237, %cst_137 {dimension_numbers = #tpu.dot_dimension_numbers<[1], [0], [0], [1], [0, 0, 1, 1], [], []>} : vector<64x128xbf16>, vector<128x256xbf16>, vector<64x256xf32> -> vector<64x256xf32>
    %240 = vector.extract_strided_slice %239 {offsets = [0, 0], sizes = [16, 256], strides = [1, 1]} : vector<64x256xf32> to vector<16x256xf32>
    %241 = vector.extract_strided_slice %239 {offsets = [16, 0], sizes = [16, 256], strides = [1, 1]} : vector<64x256xf32> to vector<16x256xf32>
    %c1_i32_138 = arith.constant 1 : i32
    %242 = tpu.dynamic_rotate %241 by %c1_i32_138 dim 1 : vector<16x256xf32>, i32 -> vector<16x256xf32>
    %243 = arith.addf %240, %242 : vector<16x256xf32>
    %244 = vector.extract_strided_slice %239 {offsets = [32, 0], sizes = [16, 256], strides = [1, 1]} : vector<64x256xf32> to vector<16x256xf32>
    %c2_i32_139 = arith.constant 2 : i32
    %245 = tpu.dynamic_rotate %244 by %c2_i32_139 dim 1 : vector<16x256xf32>, i32 -> vector<16x256xf32>
    %246 = arith.addf %243, %245 : vector<16x256xf32>
    %247 = vector.extract_strided_slice %239 {offsets = [48, 0], sizes = [16, 256], strides = [1, 1]} : vector<64x256xf32> to vector<16x256xf32>
    %c3_i32_140 = arith.constant 3 : i32
    %248 = tpu.dynamic_rotate %247 by %c3_i32_140 dim 1 : vector<16x256xf32>, i32 -> vector<16x256xf32>
    %249 = arith.addf %246, %248 : vector<16x256xf32>
    %c1_141 = arith.constant 1 : index
    %c0_142 = arith.constant 0 : index
    %c0_143 = arith.constant 0 : index
    %250 = vector.load %arg15[%c1_141, %c0_142, %c0_143] : memref<2x16x256xf32, #tpu.memory_space<vmem>>, vector<1x16x256xf32>
    %251 = vector.shape_cast %250 : vector<1x16x256xf32> to vector<16x256xf32>
    %252 = vector.shape_cast %249 : vector<16x256xf32> to vector<1x16x256xf32>
    tpu.vector_store %arg15[%c1_141, %c0_142, %c0_143], %252 {strides = array<i32>} : memref<2x16x256xf32, #tpu.memory_space<vmem>>, vector<1x16x256xf32>,
    %cst_144 = arith.constant dense<0.000000e+00> : vector<16xf32>
    %253 = vector.multi_reduction <add>, %249, %cst_144 [1] : vector<16x256xf32> to vector<16xf32>
    %254 = vector.shape_cast %253 : vector<16xf32> to vector<16x1xf32>
    %255 = arith.addf %215, %254 : vector<16x1xf32>
    %256 = arith.mulf %249, %249 : vector<16x256xf32>
    %cst_145 = arith.constant dense<0.000000e+00> : vector<16xf32>
    %257 = vector.multi_reduction <add>, %256, %cst_145 [1] : vector<16x256xf32> to vector<16xf32>
    %258 = vector.shape_cast %257 : vector<16xf32> to vector<16x1xf32>
    %259 = arith.addf %219, %258 : vector<16x1xf32>
    %cst_146 = arith.constant 2.958580e-03 : f32
    %260 = vector.broadcast %cst_146 : f32 to vector<16x1xf32>
    %261 = arith.mulf %255, %260 : vector<16x1xf32>
    %cst_147 = arith.constant 2.958580e-03 : f32
    %262 = vector.broadcast %cst_147 : f32 to vector<16x1xf32>
    %263 = arith.mulf %259, %262 : vector<16x1xf32>
    %264 = arith.mulf %261, %261 : vector<16x1xf32>
    %265 = arith.subf %263, %264 : vector<16x1xf32>
    %c0_148 = arith.constant 0 : index
    %c0_149 = arith.constant 0 : index
    %266 = vector.load %arg7[%c0_148, %c0_149] : memref<16x1xf32, #tpu.memory_space<vmem>>, vector<16x1xf32>
    %cst_150 = arith.constant 9.99999974E-6 : f32
    %267 = vector.broadcast %cst_150 : f32 to vector<16x1xf32>
    %268 = arith.addf %265, %267 : vector<16x1xf32>
    %269 = math.rsqrt %268 : vector<16x1xf32>
    %270 = arith.mulf %266, %269 : vector<16x1xf32>
    %c0_151 = arith.constant 0 : index
    %c0_152 = arith.constant 0 : index
    %271 = vector.load %arg8[%c0_151, %c0_152] : memref<16x1xf32, #tpu.memory_space<vmem>>, vector<16x1xf32>
    %272 = arith.mulf %261, %270 : vector<16x1xf32>
    %273 = arith.subf %271, %272 : vector<16x1xf32>
    %c0_153 = arith.constant 0 : index
    %c0_154 = arith.constant 0 : index
    %274 = vector.load %arg10[%c0_153, %c0_154] : memref<256x896xbf16, #tpu.memory_space<vmem>>, vector<256x896xbf16>
    %c0_155 = arith.constant 0 : index
    %c0_156 = arith.constant 0 : index
    %c0_157 = arith.constant 0 : index
    %275 = vector.load %arg15[%c0_155, %c0_156, %c0_157] : memref<2x16x256xf32, #tpu.memory_space<vmem>>, vector<1x16x256xf32>
    %276 = vector.shape_cast %275 : vector<1x16x256xf32> to vector<16x256xf32>
    %277 = vector.broadcast %270 : vector<16x1xf32> to vector<16x256xf32>
    %278 = arith.mulf %276, %277 : vector<16x256xf32>
    %279 = vector.broadcast %273 : vector<16x1xf32> to vector<16x256xf32>
    %280 = arith.addf %278, %279 : vector<16x256xf32>
    %cst_158 = arith.constant 0.000000e+00 : f32
    %281 = vector.broadcast %cst_158 : f32 to vector<16x256xf32>
    %282 = arith.maximumf %280, %281 : vector<16x256xf32>
    %283 = arith.truncf %282 : vector<16x256xf32> to vector<16x256xbf16>
    %cst_159 = arith.constant dense<0.000000e+00> : vector<16x896xf32>
    %284 = tpu.matmul %283, %274, %cst_159 {dimension_numbers = #tpu.dot_dimension_numbers<[1], [0], [0], [1], [0, 0, 1, 1], [], []>} : vector<16x256xbf16>, vector<256x896xbf16>, vector<16x896xf32> -> vector<16x896xf32>
    %c28_i32 = arith.constant 28 : i32
    %285 = tpu.dynamic_rotate %284 by %c28_i32 dim 1 : vector<16x896xf32>, i32 -> vector<16x896xf32>
    %c56_i32 = arith.constant 56 : i32
    %286 = tpu.dynamic_rotate %284 by %c56_i32 dim 1 : vector<16x896xf32>, i32 -> vector<16x896xf32>
    %c84_i32 = arith.constant 84 : i32
    %287 = tpu.dynamic_rotate %284 by %c84_i32 dim 1 : vector<16x896xf32>, i32 -> vector<16x896xf32>
    %288 = tpu.concatenate %284, %285, %286, %287 in 0 : vector<16x896xf32>, vector<16x896xf32>, vector<16x896xf32>, vector<16x896xf32> -> vector<64x896xf32>
    %c0_160 = arith.constant 0 : index
    %c0_161 = arith.constant 0 : index
    %289 = vector.load %arg11[%c0_160, %c0_161] : memref<32x64xf32, #tpu.memory_space<vmem>>, vector<32x64xf32>
    %cst_162 = arith.constant dense<0.000000e+00> : vector<32x896xf32>
    %290 = tpu.matmul %289, %288, %cst_162 {dimension_numbers = #tpu.dot_dimension_numbers<[1], [0], [0], [1], [0, 0, 1, 1], [], []>} : vector<32x64xf32>, vector<64x896xf32>, vector<32x896xf32> -> vector<32x896xf32>
    %291 = vector.extract_strided_slice %290 {offsets = [0, 0], sizes = [8, 896], strides = [1, 1]} : vector<32x896xf32> to vector<8x896xf32>
    %292 = vector.extract_strided_slice %290 {offsets = [8, 0], sizes = [8, 896], strides = [1, 1]} : vector<32x896xf32> to vector<8x896xf32>
    %c1_i32_163 = arith.constant 1 : i32
    %293 = tpu.dynamic_rotate %292 by %c1_i32_163 dim 1 : vector<8x896xf32>, i32 -> vector<8x896xf32>
    %294 = arith.addf %291, %293 : vector<8x896xf32>
    %295 = vector.extract_strided_slice %290 {offsets = [16, 0], sizes = [8, 896], strides = [1, 1]} : vector<32x896xf32> to vector<8x896xf32>
    %c2_i32_164 = arith.constant 2 : i32
    %296 = tpu.dynamic_rotate %295 by %c2_i32_164 dim 1 : vector<8x896xf32>, i32 -> vector<8x896xf32>
    %297 = arith.addf %294, %296 : vector<8x896xf32>
    %298 = vector.extract_strided_slice %290 {offsets = [24, 0], sizes = [8, 896], strides = [1, 1]} : vector<32x896xf32> to vector<8x896xf32>
    %c3_i32_165 = arith.constant 3 : i32
    %299 = tpu.dynamic_rotate %298 by %c3_i32_165 dim 1 : vector<8x896xf32>, i32 -> vector<8x896xf32>
    %300 = arith.addf %297, %299 : vector<8x896xf32>
    %c0_166 = arith.constant 0 : index
    %c0_167 = arith.constant 0 : index
    %301 = vector.load %arg12[%c0_166, %c0_167] : memref<8x1xf32, #tpu.memory_space<vmem>>, vector<8x1xf32>
    %302 = vector.broadcast %301 : vector<8x1xf32> to vector<8x896xf32>
    %303 = arith.addf %300, %302 : vector<8x896xf32>
    %304 = arith.negf %303 : vector<8x896xf32>
    %305 = math.exp %304 : vector<8x896xf32>
    %cst_168 = arith.constant 1.000000e+00 : f32
    %306 = vector.broadcast %cst_168 : f32 to vector<8x896xf32>
    %307 = arith.addf %306, %305 : vector<8x896xf32>
    %308 = arith.divf %306, %307 : vector<8x896xf32>
    %c0_169 = arith.constant 0 : index
    %c0_170 = arith.constant 0 : index
    %c0_171 = arith.constant 0 : index
    %309 = vector.load %arg13[%c0_169, %c0_170, %c0_171] : memref<2x8x896xf32, #tpu.memory_space<vmem>>, vector<1x8x896xf32>
    %310 = vector.shape_cast %309 : vector<1x8x896xf32> to vector<8x896xf32>
    %311 = vector.shape_cast %308 : vector<8x896xf32> to vector<1x8x896xf32>
    tpu.vector_store %arg13[%c0_169, %c0_170, %c0_171], %311 {strides = array<i32>} : memref<2x8x896xf32, #tpu.memory_space<vmem>>, vector<1x8x896xf32>,
    %c1_172 = arith.constant 1 : index
    %c0_173 = arith.constant 0 : index
    %c0_174 = arith.constant 0 : index
    %312 = vector.load %arg15[%c1_172, %c0_173, %c0_174] : memref<2x16x256xf32, #tpu.memory_space<vmem>>, vector<1x16x256xf32>
    %313 = vector.shape_cast %312 : vector<1x16x256xf32> to vector<16x256xf32>
    %314 = vector.broadcast %270 : vector<16x1xf32> to vector<16x256xf32>
    %315 = arith.mulf %313, %314 : vector<16x256xf32>
    %316 = vector.broadcast %273 : vector<16x1xf32> to vector<16x256xf32>
    %317 = arith.addf %315, %316 : vector<16x256xf32>
    %cst_175 = arith.constant 0.000000e+00 : f32
    %318 = vector.broadcast %cst_175 : f32 to vector<16x256xf32>
    %319 = arith.maximumf %317, %318 : vector<16x256xf32>
    %320 = arith.truncf %319 : vector<16x256xf32> to vector<16x256xbf16>
    %cst_176 = arith.constant dense<0.000000e+00> : vector<16x896xf32>
    %321 = tpu.matmul %320, %274, %cst_176 {dimension_numbers = #tpu.dot_dimension_numbers<[1], [0], [0], [1], [0, 0, 1, 1], [], []>} : vector<16x256xbf16>, vector<256x896xbf16>, vector<16x896xf32> -> vector<16x896xf32>
    %c28_i32_177 = arith.constant 28 : i32
    %322 = tpu.dynamic_rotate %321 by %c28_i32_177 dim 1 : vector<16x896xf32>, i32 -> vector<16x896xf32>
    %c56_i32_178 = arith.constant 56 : i32
    %323 = tpu.dynamic_rotate %321 by %c56_i32_178 dim 1 : vector<16x896xf32>, i32 -> vector<16x896xf32>
    %c84_i32_179 = arith.constant 84 : i32
    %324 = tpu.dynamic_rotate %321 by %c84_i32_179 dim 1 : vector<16x896xf32>, i32 -> vector<16x896xf32>
    %325 = tpu.concatenate %321, %322, %323, %324 in 0 : vector<16x896xf32>, vector<16x896xf32>, vector<16x896xf32>, vector<16x896xf32> -> vector<64x896xf32>
    %c0_180 = arith.constant 0 : index
    %c0_181 = arith.constant 0 : index
    %326 = vector.load %arg11[%c0_180, %c0_181] : memref<32x64xf32, #tpu.memory_space<vmem>>, vector<32x64xf32>
    %cst_182 = arith.constant dense<0.000000e+00> : vector<32x896xf32>
    %327 = tpu.matmul %326, %325, %cst_182 {dimension_numbers = #tpu.dot_dimension_numbers<[1], [0], [0], [1], [0, 0, 1, 1], [], []>} : vector<32x64xf32>, vector<64x896xf32>, vector<32x896xf32> -> vector<32x896xf32>
    %328 = vector.extract_strided_slice %327 {offsets = [0, 0], sizes = [8, 896], strides = [1, 1]} : vector<32x896xf32> to vector<8x896xf32>
    %329 = vector.extract_strided_slice %327 {offsets = [8, 0], sizes = [8, 896], strides = [1, 1]} : vector<32x896xf32> to vector<8x896xf32>
    %c1_i32_183 = arith.constant 1 : i32
    %330 = tpu.dynamic_rotate %329 by %c1_i32_183 dim 1 : vector<8x896xf32>, i32 -> vector<8x896xf32>
    %331 = arith.addf %328, %330 : vector<8x896xf32>
    %332 = vector.extract_strided_slice %327 {offsets = [16, 0], sizes = [8, 896], strides = [1, 1]} : vector<32x896xf32> to vector<8x896xf32>
    %c2_i32_184 = arith.constant 2 : i32
    %333 = tpu.dynamic_rotate %332 by %c2_i32_184 dim 1 : vector<8x896xf32>, i32 -> vector<8x896xf32>
    %334 = arith.addf %331, %333 : vector<8x896xf32>
    %335 = vector.extract_strided_slice %327 {offsets = [24, 0], sizes = [8, 896], strides = [1, 1]} : vector<32x896xf32> to vector<8x896xf32>
    %c3_i32_185 = arith.constant 3 : i32
    %336 = tpu.dynamic_rotate %335 by %c3_i32_185 dim 1 : vector<8x896xf32>, i32 -> vector<8x896xf32>
    %337 = arith.addf %334, %336 : vector<8x896xf32>
    %c0_186 = arith.constant 0 : index
    %c0_187 = arith.constant 0 : index
    %338 = vector.load %arg12[%c0_186, %c0_187] : memref<8x1xf32, #tpu.memory_space<vmem>>, vector<8x1xf32>
    %339 = vector.broadcast %338 : vector<8x1xf32> to vector<8x896xf32>
    %340 = arith.addf %337, %339 : vector<8x896xf32>
    %341 = arith.negf %340 : vector<8x896xf32>
    %342 = math.exp %341 : vector<8x896xf32>
    %cst_188 = arith.constant 1.000000e+00 : f32
    %343 = vector.broadcast %cst_188 : f32 to vector<8x896xf32>
    %344 = arith.addf %343, %342 : vector<8x896xf32>
    %345 = arith.divf %343, %344 : vector<8x896xf32>
    %c1_189 = arith.constant 1 : index
    %c0_190 = arith.constant 0 : index
    %c0_191 = arith.constant 0 : index
    %346 = vector.load %arg13[%c1_189, %c0_190, %c0_191] : memref<2x8x896xf32, #tpu.memory_space<vmem>>, vector<1x8x896xf32>
    %347 = vector.shape_cast %346 : vector<1x8x896xf32> to vector<8x896xf32>
    %348 = vector.shape_cast %345 : vector<8x896xf32> to vector<1x8x896xf32>
    tpu.vector_store %arg13[%c1_189, %c0_190, %c0_191], %348 {strides = array<i32>} : memref<2x8x896xf32, #tpu.memory_space<vmem>>, vector<1x8x896xf32>,
    return
  }
}

</mosaic_0001>

<bundles_post_ra>
// kernel: squeeze.0
= control target key start
LH: loop header
LB: loop body
LE: loop exit
PB: predicated region body
PF: predicated region fallthrough
CT: control target
= control target key end

     0   :  { %vm231_vm0 = vcmask 850944   ;;  %vm266_vm1 = vcmask 916480   ;;  %s913_s0 = inlined_call_operand.vmem [shape: f32[2,784], index: 0, kind: input, shape index: {}]   ;;  %s914_s1 = inlined_call_operand.hbm [shape: f32[2,1,28,28], index: 1, kind: output, shape index: {}]  }
   0x1   :  { %v739_v0 = vld [vmem:[%s913_s0 + $0xa] sm:$0x3]  ;;  %v740_v1 = vld [vmem:[%s913_s0 + $0x8] sm:$0x3]  ;;  %v743_v2 = vld [vmem:[%s913_s0 + $0x2] sm:$0x3] }
   0x2   :  { %14 = vst [vmem:[#allocation3 + $0x28] sm:$0x3] %v739_v0  ;;  %19 = vst [vmem:[#allocation3 + $0x20] sm:$0x3] %v740_v1  ;;  %v34_v3 = vld [vmem:[%s913_s0] sm:$0x3] }
   0x3   :  { %33 = vst [vmem:[#allocation3 + $0x8] sm:$0x3] %v743_v2  ;;  %35 = vst [vmem:[#allocation3] sm:$0x3] %v34_v3  ;;  %v741_v4 = vld [vmem:[%s913_s0 + $0x6] sm:$0x3] }
   0x4   :  { %v742_v5 = vld [vmem:[%s913_s0 + $0x4] sm:$0x3]  ;;  %24 = vst [vmem:[#allocation3 + $0x18] sm:$0x3] %v741_v4  ;;  %v738_v6 = vld [vmem:[%s913_s0 + $0xc] sm:$0x3] }
   0x5   :  { %29 = vst [vmem:[#allocation3 + $0x10] sm:$0x3] %v742_v5  ;;  %9 = vst [vmem:[#allocation3 + $0x30] sm:$0x3] %v738_v6 }
   0x6   :  { %2 = vsyncpa [#allocation1], 0  ;;  %vm249_vm2 = vcmask 883712   ;;  %vm284_vm3 = vcmask 949248   ;;  %s796_s0 = smov 24   ;;  %s797_s20 = smov 16  }
   0x7   :  { %vm302_vm4 = vcmask 982016   ;;  %vm320_vm5 = vcmask 1014784   ;;  %s798_s21 = smov 20   ;;  %s799_s22 = smov 12   ;;  %vm37_vm6 = vcmask 228352   ;;  %vm235_vm7 = vcmask 195584  }
   0x8   :  { %s800_s23 = smov 8   ;;  %s801_s24 = smov 4   ;;  %vm240_vm8 = vcmask 228544   ;;  %vm270_vm9 = vcmask 130048   ;;  %vm275_vm10 = vcmask 228480   ;;  %vm253_vm11 = vcmask 162816  }
   0x9   :  { %v228_v7 = vld [vmem:[#allocation3 + $0x20] sm:$0x3]   ;;  %v230_v8 = vld [vmem:[#allocation3 + $0x28] sm:$0x3]   ;;  %s802_s25 = smov 124   ;;  %s803_s26 = smov 120  }
   0xa   :  { %v232_v9 = vsel %vm231_vm0, %v230_v8, %v228_v7  ;;  %v263_v10 = vld [vmem:[#allocation3] sm:$0x3]   ;;  %v265_v11 = vld [vmem:[#allocation3 + $0x8] sm:$0x3]   ;;  %s804_s27 = smov 116   ;;  %s805_s28 = smov 108  }
   0xb   :  { %v281_v12 = vld [vmem:[#allocation3 + $0x28] sm:$0x3]   ;;  %233 = vrot.lane.b32.xlu0 %v232_v9, %s796_s0  ;;  %v267_v13 = vsel %vm266_vm1, %v265_v11, %v263_v10  ;;  %v248_v15 = vld [vmem:[#allocation3 + $0x18] sm:$0x3]   ;;  %v301_v20 = vld [vmem:[#allocation3 + $0x20] sm:$0x3]  }
   0xc   :  { %v246_v14 = vld [vmem:[#allocation3 + $0x10] sm:$0x3]   ;;  %268 = vrot.lane.b32.xlu1 %v267_v13, %s797_s20  ;;  %v299_v19 = vld [vmem:[#allocation3 + $0x18] sm:$0x3]   ;;  %v317_v21 = vld [vmem:[#allocation3 + $0x8] sm:$0x3]  }
   0xd   :  { %v250_v16 = vsel %vm249_vm2, %v248_v15, %v246_v14  ;;  %v283_v17 = vld [vmem:[#allocation3 + $0x30] sm:$0x3]   ;;  %v303_v23 = vsel %vm302_vm4, %v301_v20, %v299_v19  ;;  %v36_v25 = vld [vmem:[#allocation3] sm:$0x3]   ;;  %v42_v26 = vld [vmem:[#allocation3 + $0x28] sm:$0x3]  }
   0xe   :  { %v285_v18 = vsel %vm284_vm3, %v283_v17, %v281_v12  ;;  %v319_v22 = vld [vmem:[#allocation3 + $0x10] sm:$0x3]   ;;  %38 = vst.msk [vmem:[#allocation2] sm:$0x1] %vm37_vm6, %v36_v25   ;;  %40 = vst.msk [vmem:[#allocation2 + $0xdf] sm:$0x2] %vm37_vm6, %v36_v25  }
   0xf   :  { %251 = vrot.lane.b32.xlu0 %v250_v16, %s798_s21  ;;  %v321_v24 = vsel %vm320_vm5, %v319_v22, %v317_v21  ;;  %v51_v27 = vld [vmem:[#allocation3 + $0x18] sm:$0x3]   ;;  %v60_v28 = vld [vmem:[#allocation3 + $0x8] sm:$0x3]   ;;  %v69_v29 = vld [vmem:[#allocation3 + $0x20] sm:$0x3]  }
  0x10   :  { %286 = vrot.lane.b32.xlu1 %v285_v18, %s799_s22  ;;  %v78_v32 = vld [vmem:[#allocation3 + $0x10] sm:$0x3]   ;;  %v86_v33 = vld [vmem:[#allocation3] sm:$0x3]   ;;  %s806_s29 = smov 104   ;;  %s807_s30 = smov 100  }
  0x11   :  { %v95_v34 = vld [vmem:[#allocation3 + $0x28] sm:$0x3]   ;;  %v104_v35 = vld [vmem:[#allocation3 + $0x18] sm:$0x3]   ;;  %s808_s2 = smov 96   ;;  %s809_s3 = smov 92  }
  0x12   :  { %v113_v36 = vld [vmem:[#allocation3 + $0x8] sm:$0x3]   ;;  %v122_v37 = vld [vmem:[#allocation3 + $0x20] sm:$0x3]   ;;  %s810_s4 = smov 88   ;;  %s811_s5 = smov 80  }
  0x13   :  { %304 = vrot.lane.b32.xlu0 %v303_v23, %s800_s23  ;;  %v131_v38 = vld [vmem:[#allocation3 + $0x10] sm:$0x3]   ;;  %v139_v39 = vld [vmem:[#allocation3] sm:$0x3]   ;;  %s812_s6 = smov 76   ;;  %s813_s7 = smov 72  }
  0x14   :  { %322 = vrot.lane.b32.xlu1 %v321_v24, %s801_s24  ;;  %v148_v40 = vld [vmem:[#allocation3 + $0x28] sm:$0x3]   ;;  %v157_v41 = vld [vmem:[#allocation3 + $0x18] sm:$0x3]   ;;  %s814_s8 = smov 68   ;;  %s815_s9 = smov 64  }
  0x15   :  { %v337_v30 = vld [vmem:[#allocation2] sm:$0x1]  ;;  %v166_v42 = vld [vmem:[#allocation3 + $0x8] sm:$0x3]   ;;  %s816_s10 = smov 60   ;;  %s817_s11 = smov 52  }
  0x16   :  { %v502_v31 = vld [vmem:[#allocation2 + $0xe0] sm:$0x1]  ;;  %339 = vst [vmem:[#allocation0] sm:$0x1] %v337_v30  ;;  %v184_v44 = vld [vmem:[#allocation3 + $0x10] sm:$0x3]  }
  0x17   :  { %43 = vrot.lane.b32.xlu0 %v42_v26, %s802_s25  ;;  %506 = vst [vmem:[#allocation0 + $0x1c] sm:$0x1] %v502_v31  ;;  %v175_v43 = vld [vmem:[#allocation3 + $0x20] sm:$0x3]   ;;  %s818_s12 = smov 48   ;;  %s819_s13 = smov 44  }
  0x18   :  { %52 = vrot.lane.b32.xlu1 %v51_v27, %s803_s26  ;;  %v192_v45 = vld [vmem:[#allocation3] sm:$0x3]   ;;  %v201_v46 = vld [vmem:[#allocation3 + $0x28] sm:$0x3]   ;;  %v210_v47 = vld [vmem:[#allocation3 + $0x18] sm:$0x3]  }
  0x19   :  { %s820_s14 = smov 40   ;;  %v219_v48 = vld [vmem:[#allocation3 + $0x8] sm:$0x3]   ;;  %s821_s15 = smov 36   ;;  %vm258_vm12 = vcmask 228512   ;;  %vm288_vm13 = vcmask 97280  }
  0x1a   :  { %s822_s16 = smov 32   ;;  %vm293_vm14 = vcmask 228448   ;;  %vm306_vm15 = vcmask 64512   ;;  %vm311_vm0 = vcmask 228416   ;;  %vm324_vm1 = vcmask 31744   ;;  %s823_s17 = smov [#allocation0]  }
  0x1b   :  { %61 = vrot.lane.b32.xlu0 %v60_v28, %s804_s27  ;;  %vm329_vm2 = vcmask 228384   ;;  %s673_s18 = sshll.u32 %s823_s17, 4  ;;  %s674_s18 = int_to_ptr.vmem [resolvable:$true] %s673_s18 }
  0x1c   :  { %70 = vrot.lane.b32.xlu1 %v69_v29, %s805_s28  ;;  %s772_s19 = scalar_lea.vmem %s674_s18, 896  ;;  %p777_p1 = scmp.lt.s32.totalorder %s674_s18, %s674_s18 }
  0x1d   :  { %p773_p0 = scmp.ne.s32.totalorder %s674_s18, %s772_s19  ;;  %p778_p2 = scmp.lt.s32.totalorder %s772_s19, %s772_s19 }
  0x1f   :  { %79 = vrot.lane.b32.xlu0 %v78_v32, %s806_s29  ;;  %p779_p3 = por %p778_p2, %p777_p1 }
  0x20   :  { %87 = vrot.lane.b32.xlu1 %v86_v33, %s807_s30 }
  0x21   :  { %p780_p4 = pnand %p779_p3, %p773_p0 }
  0x23   :  { %96 = vrot.lane.b32.xlu0 %v95_v34, %s808_s2 }
  0x24   :  { %105 = vrot.lane.b32.xlu1 %v104_v35, %s809_s3 }
  0x27   :  { %114 = vrot.lane.b32.xlu0 %v113_v36, %s810_s4 }
  0x28   :  { %123 = vrot.lane.b32.xlu1 %v122_v37, %s811_s5 }
  0x2b   :  { %132 = vrot.lane.b32.xlu0 %v131_v38, %s812_s6 }
  0x2c   :  { %140 = vrot.lane.b32.xlu1 %v139_v39, %s813_s7 }
  0x2f   :  { %149 = vrot.lane.b32.xlu0 %v148_v40, %s814_s8 }
  0x30   :  { %158 = vrot.lane.b32.xlu1 %v157_v41, %s815_s9 }
  0x33   :  { %167 = vrot.lane.b32.xlu0 %v166_v42, %s816_s10 }
  0x34   :  { %176 = vrot.lane.b32.xlu1 %v175_v43, %s817_s11 }
  0x37   :  { %185 = vrot.lane.b32.xlu0 %v184_v44, %s818_s12 }
  0x38   :  { %193 = vrot.lane.b32.xlu1 %v192_v45, %s819_s13 }
  0x3b   :  { %202 = vrot.lane.b32.xlu0 %v201_v46, %s820_s14 }
  0x3c   :  { %211 = vrot.lane.b32.xlu1 %v210_v47, %s821_s15 }
  0x3f   :  { %220 = vrot.lane.b32.xlu0 %v219_v48, %s822_s16 }
  0x7d   :  { %v234_v49 = vpop.permute.xlu0 %233  }
  0x7e   :  { %237 = vst.msk [vmem:[#allocation2 + $0xb0] sm:$0x1] %vm235_vm7, %v234_v49   ;;  %239 = vst.msk [vmem:[#allocation2 + $0x18f] sm:$0x2] %vm235_vm7, %v234_v49   ;;  %v269_v50 = vpop.permute.xlu1 %268  }
  0x7f   :  { %242 = vst.msk [vmem:[#allocation2 + $0xb0] sm:$0x1] %vm240_vm8, %v234_v49   ;;  %244 = vst.msk [vmem:[#allocation2 + $0x18f] sm:$0x2] %vm240_vm8, %v234_v49  }
  0x80   :  { %272 = vst.msk [vmem:[#allocation2 + $0x20] sm:$0x1] %vm270_vm9, %v269_v50   ;;  %274 = vst.msk [vmem:[#allocation2 + $0xff] sm:$0x2] %vm270_vm9, %v269_v50  }
  0x81   :  { %277 = vst.msk [vmem:[#allocation2 + $0x20] sm:$0x1] %vm275_vm10, %v269_v50   ;;  %279 = vst.msk [vmem:[#allocation2 + $0xff] sm:$0x2] %vm275_vm10, %v269_v50   ;;  %v252_v51 = vpop.permute.xlu0 %251  }
  0x82   :  { %255 = vst.msk [vmem:[#allocation2 + $0x68] sm:$0x1] %vm253_vm11, %v252_v51   ;;  %257 = vst.msk [vmem:[#allocation2 + $0x147] sm:$0x2] %vm253_vm11, %v252_v51   ;;  %v287_v52 = vpop.permute.xlu1 %286  }
  0x83   :  { %260 = vst.msk [vmem:[#allocation2 + $0x68] sm:$0x1] %vm258_vm12, %v252_v51   ;;  %262 = vst.msk [vmem:[#allocation2 + $0x147] sm:$0x2] %vm258_vm12, %v252_v51  }
  0x84   :  { %290 = vst.msk [vmem:[#allocation2 + $0xd8] sm:$0x1] %vm288_vm13, %v287_v52   ;;  %292 = vst.msk [vmem:[#allocation2 + $0x1b7] sm:$0x2] %vm288_vm13, %v287_v52  }
  0x85   :  { %295 = vst.msk [vmem:[#allocation2 + $0xd8] sm:$0x1] %vm293_vm14, %v287_v52   ;;  %297 = vst.msk [vmem:[#allocation2 + $0x1b7] sm:$0x2] %vm293_vm14, %v287_v52   ;;  %v305_v53 = vpop.permute.xlu0 %304  }
  0x86   :  { %v466_v54 = vld [vmem:[#allocation2 + $0xb0] sm:$0x1]  ;;  %308 = vst.msk [vmem:[#allocation2 + $0x90] sm:$0x1] %vm306_vm15, %v305_v53   ;;  %310 = vst.msk [vmem:[#allocation2 + $0x16f] sm:$0x2] %vm306_vm15, %v305_v53   ;;  %v323_v56 = vpop.permute.xlu1 %322  }
  0x87   :  { %v634_v55 = vld [vmem:[#allocation2 + $0x190] sm:$0x1]  ;;  %470 = vst [vmem:[#allocation0 + $0x16] sm:$0x1] %v466_v54  ;;  %313 = vst.msk [vmem:[#allocation2 + $0x90] sm:$0x1] %vm311_vm0, %v305_v53  }
  0x88   :  { %638 = vst [vmem:[#allocation0 + $0x32] sm:$0x1] %v634_v55  ;;  %v358_v57 = vld [vmem:[#allocation2 + $0x20] sm:$0x1]  ;;  %315 = vst.msk [vmem:[#allocation2 + $0x16f] sm:$0x2] %vm311_vm0, %v305_v53  }
  0x89   :  { %v526_v58 = vld [vmem:[#allocation2 + $0x100] sm:$0x1]  ;;  %326 = vst.msk [vmem:[#allocation2 + $0x48] sm:$0x1] %vm324_vm1, %v323_v56   ;;  %328 = vst.msk [vmem:[#allocation2 + $0x127] sm:$0x2] %vm324_vm1, %v323_v56   ;;  %v44_v59 = vpop.permute.xlu0 %43  }
  0x8a   :  { %362 = vst [vmem:[#allocation0 + $0x4] sm:$0x1] %v358_v57  ;;  %530 = vst [vmem:[#allocation0 + $0x20] sm:$0x1] %v526_v58  ;;  %v412_v60 = vld [vmem:[#allocation2 + $0x68] sm:$0x1]  ;;  %v53_v62 = vpop.permute.xlu1 %52  }
  0x8b   :  { %331 = vst.msk [vmem:[#allocation2 + $0x48] sm:$0x1] %vm329_vm2, %v323_v56   ;;  %333 = vst.msk [vmem:[#allocation2 + $0x127] sm:$0x2] %vm329_vm2, %v323_v56   ;;  %v580_v61 = vld [vmem:[#allocation2 + $0x148] sm:$0x1] }
  0x8c   :  { %47 = vst.msk [vmem:[#allocation2 + $0xb8] sm:$0x1] %vm37_vm6, %v44_v59   ;;  %49 = vst.msk [vmem:[#allocation2 + $0x197] sm:$0x2] %vm37_vm6, %v44_v59   ;;  %v496_v63 = vld [vmem:[#allocation2 + $0xd8] sm:$0x1] }
  0x8d   :  { %416 = vst [vmem:[#allocation0 + $0xd] sm:$0x1] %v412_v60  ;;  %584 = vst [vmem:[#allocation0 + $0x29] sm:$0x1] %v580_v61  ;;  %v664_v0 = vld [vmem:[#allocation2 + $0x1b8] sm:$0x1]  ;;  %v62_v1 = vpop.permute.xlu0 %61  }
  0x8e   :  { %56 = vst.msk [vmem:[#allocation2 + $0x70] sm:$0x1] %vm37_vm6, %v53_v62   ;;  %58 = vst.msk [vmem:[#allocation2 + $0x14f] sm:$0x2] %vm37_vm6, %v53_v62   ;;  %v442_v2 = vld [vmem:[#allocation2 + $0x90] sm:$0x1]  ;;  %v71_v4 = vpop.permute.xlu1 %70  }
  0x8f   :  { %500 = vst [vmem:[#allocation0 + $0x1b] sm:$0x1] %v496_v63  ;;  %668 = vst [vmem:[#allocation0 + $0x37] sm:$0x1] %v664_v0  ;;  %v610_v3 = vld [vmem:[#allocation2 + $0x170] sm:$0x1] }
  0x90   :  { %65 = vst.msk [vmem:[#allocation2 + $0x28] sm:$0x1] %vm37_vm6, %v62_v1   ;;  %67 = vst.msk [vmem:[#allocation2 + $0x107] sm:$0x2] %vm37_vm6, %v62_v1  }
  0x91   :  { %446 = vst [vmem:[#allocation0 + $0x12] sm:$0x1] %v442_v2  ;;  %614 = vst [vmem:[#allocation0 + $0x2e] sm:$0x1] %v610_v3  ;;  %v80_v9 = vpop.permute.xlu0 %79  }
  0x92   :  { %v388_v5 = vld [vmem:[#allocation2 + $0x48] sm:$0x1]  ;;  %74 = vst.msk [vmem:[#allocation2 + $0x98] sm:$0x1] %vm37_vm6, %v71_v4   ;;  %76 = vst.msk [vmem:[#allocation2 + $0x177] sm:$0x2] %vm37_vm6, %v71_v4   ;;  %v88_v12 = vpop.permute.xlu1 %87  }
  0x93   :  { %v556_v6 = vld [vmem:[#allocation2 + $0x128] sm:$0x1]  ;;  %392 = vst [vmem:[#allocation0 + $0x9] sm:$0x1] %v388_v5  ;;  %v472_v7 = vld [vmem:[#allocation2 + $0xb8] sm:$0x1] }
  0x94   :  { %560 = vst [vmem:[#allocation0 + $0x25] sm:$0x1] %v556_v6  ;;  %v640_v8 = vld [vmem:[#allocation2 + $0x198] sm:$0x1]  ;;  %476 = vst [vmem:[#allocation0 + $0x17] sm:$0x1] %v472_v7 }
  0x95   :  { %644 = vst [vmem:[#allocation0 + $0x33] sm:$0x1] %v640_v8  ;;  %v418_v10 = vld [vmem:[#allocation2 + $0x70] sm:$0x1]  ;;  %83 = vst.msk [vmem:[#allocation2 + $0x50] sm:$0x1] %vm37_vm6, %v80_v9   ;;  %v97_v15 = vpop.permute.xlu0 %96  }
  0x96   :  { %v586_v11 = vld [vmem:[#allocation2 + $0x150] sm:$0x1]  ;;  %85 = vst.msk [vmem:[#allocation2 + $0x12f] sm:$0x2] %vm37_vm6, %v80_v9   ;;  %422 = vst [vmem:[#allocation0 + $0xe] sm:$0x1] %v418_v10  ;;  %v106_v18 = vpop.permute.xlu1 %105  }
  0x97   :  { %590 = vst [vmem:[#allocation0 + $0x2a] sm:$0x1] %v586_v11  ;;  %91 = vst.msk [vmem:[#allocation2 + $0x8] sm:$0x1] %vm37_vm6, %v88_v12   ;;  %v364_v13 = vld [vmem:[#allocation2 + $0x28] sm:$0x1] }
  0x98   :  { %93 = vst.msk [vmem:[#allocation2 + $0xe7] sm:$0x2] %vm37_vm6, %v88_v12   ;;  %v532_v14 = vld [vmem:[#allocation2 + $0x108] sm:$0x1]  ;;  %368 = vst [vmem:[#allocation0 + $0x5] sm:$0x1] %v364_v13 }
  0x99   :  { %536 = vst [vmem:[#allocation0 + $0x21] sm:$0x1] %v532_v14  ;;  %v448_v16 = vld [vmem:[#allocation2 + $0x98] sm:$0x1]  ;;  %100 = vst.msk [vmem:[#allocation2 + $0xc0] sm:$0x1] %vm37_vm6, %v97_v15   ;;  %v115_v21 = vpop.permute.xlu0 %114  }
  0x9a   :  { %v616_v17 = vld [vmem:[#allocation2 + $0x178] sm:$0x1]  ;;  %102 = vst.msk [vmem:[#allocation2 + $0x19f] sm:$0x2] %vm37_vm6, %v97_v15   ;;  %452 = vst [vmem:[#allocation0 + $0x13] sm:$0x1] %v448_v16  ;;  %v124_v24 = vpop.permute.xlu1 %123  }
  0x9b   :  { %620 = vst [vmem:[#allocation0 + $0x2f] sm:$0x1] %v616_v17  ;;  %109 = vst.msk [vmem:[#allocation2 + $0x78] sm:$0x1] %vm37_vm6, %v106_v18  }
  0x9c   :  { %111 = vst.msk [vmem:[#allocation2 + $0x157] sm:$0x2] %vm37_vm6, %v106_v18   ;;  %v394_v19 = vld [vmem:[#allocation2 + $0x50] sm:$0x1]  ;;  %118 = vst.msk [vmem:[#allocation2 + $0x30] sm:$0x1] %vm37_vm6, %v115_v21  }
  0x9d   :  { %v562_v20 = vld [vmem:[#allocation2 + $0x130] sm:$0x1]  ;;  %398 = vst [vmem:[#allocation0 + $0xa] sm:$0x1] %v394_v19  ;;  %120 = vst.msk [vmem:[#allocation2 + $0x10f] sm:$0x2] %vm37_vm6, %v115_v21   ;;  %v133_v27 = vpop.permute.xlu0 %132  }
  0x9e   :  { %566 = vst [vmem:[#allocation0 + $0x26] sm:$0x1] %v562_v20  ;;  %v341_v22 = vld [vmem:[#allocation2 + $0x8] sm:$0x1]  ;;  %127 = vst.msk [vmem:[#allocation2 + $0xa0] sm:$0x1] %vm37_vm6, %v124_v24   ;;  %v141_v30 = vpop.permute.xlu1 %140  }
  0x9f   :  { %v508_v23 = vld [vmem:[#allocation2 + $0xe8] sm:$0x1]  ;;  %344 = vst [vmem:[#allocation0 + $0x1] sm:$0x1] %v341_v22  ;;  %129 = vst.msk [vmem:[#allocation2 + $0x17f] sm:$0x2] %vm37_vm6, %v124_v24  }
  0xa0   :  { %512 = vst [vmem:[#allocation0 + $0x1d] sm:$0x1] %v508_v23  ;;  %v478_v25 = vld [vmem:[#allocation2 + $0xc0] sm:$0x1]  ;;  %136 = vst.msk [vmem:[#allocation2 + $0x58] sm:$0x1] %vm37_vm6, %v133_v27  }
  0xa1   :  { %v646_v26 = vld [vmem:[#allocation2 + $0x1a0] sm:$0x1]  ;;  %482 = vst [vmem:[#allocation0 + $0x18] sm:$0x1] %v478_v25  ;;  %138 = vst.msk [vmem:[#allocation2 + $0x137] sm:$0x2] %vm37_vm6, %v133_v27   ;;  %v150_v33 = vpop.permute.xlu0 %149  }
  0xa2   :  { %650 = vst [vmem:[#allocation0 + $0x34] sm:$0x1] %v646_v26  ;;  %v424_v28 = vld [vmem:[#allocation2 + $0x78] sm:$0x1]  ;;  %144 = vst.msk [vmem:[#allocation2 + $0x10] sm:$0x1] %vm37_vm6, %v141_v30   ;;  %v159_v36 = vpop.permute.xlu1 %158  }
  0xa3   :  { %v592_v29 = vld [vmem:[#allocation2 + $0x158] sm:$0x1]  ;;  %428 = vst [vmem:[#allocation0 + $0xf] sm:$0x1] %v424_v28  ;;  %146 = vst.msk [vmem:[#allocation2 + $0xef] sm:$0x2] %vm37_vm6, %v141_v30  }
  0xa4   :  { %596 = vst [vmem:[#allocation0 + $0x2b] sm:$0x1] %v592_v29  ;;  %v370_v31 = vld [vmem:[#allocation2 + $0x30] sm:$0x1]  ;;  %153 = vst.msk [vmem:[#allocation2 + $0xc8] sm:$0x1] %vm37_vm6, %v150_v33  }
  0xa5   :  { %v538_v32 = vld [vmem:[#allocation2 + $0x110] sm:$0x1]  ;;  %374 = vst [vmem:[#allocation0 + $0x6] sm:$0x1] %v370_v31  ;;  %v454_v34 = vld [vmem:[#allocation2 + $0xa0] sm:$0x1]  ;;  %v168_v39 = vpop.permute.xlu0 %167  }
  0xa6   :  { %542 = vst [vmem:[#allocation0 + $0x22] sm:$0x1] %v538_v32  ;;  %v622_v35 = vld [vmem:[#allocation2 + $0x180] sm:$0x1]  ;;  %155 = vst.msk [vmem:[#allocation2 + $0x1a7] sm:$0x2] %vm37_vm6, %v150_v33   ;;  %v177_v42 = vpop.permute.xlu1 %176  }
  0xa7   :  { %458 = vst [vmem:[#allocation0 + $0x14] sm:$0x1] %v454_v34  ;;  %626 = vst [vmem:[#allocation0 + $0x30] sm:$0x1] %v622_v35  ;;  %v400_v37 = vld [vmem:[#allocation2 + $0x58] sm:$0x1] }
  0xa8   :  { %162 = vst.msk [vmem:[#allocation2 + $0x80] sm:$0x1] %vm37_vm6, %v159_v36   ;;  %164 = vst.msk [vmem:[#allocation2 + $0x15f] sm:$0x2] %vm37_vm6, %v159_v36   ;;  %v568_v38 = vld [vmem:[#allocation2 + $0x138] sm:$0x1] }
  0xa9   :  { %404 = vst [vmem:[#allocation0 + $0xb] sm:$0x1] %v400_v37  ;;  %572 = vst [vmem:[#allocation0 + $0x27] sm:$0x1] %v568_v38  ;;  %v346_v40 = vld [vmem:[#allocation2 + $0x10] sm:$0x1]  ;;  %v186_v45 = vpop.permute.xlu0 %185  }
  0xaa   :  { %v514_v41 = vld [vmem:[#allocation2 + $0xf0] sm:$0x1]  ;;  %171 = vst.msk [vmem:[#allocation2 + $0x38] sm:$0x1] %vm37_vm6, %v168_v39   ;;  %173 = vst.msk [vmem:[#allocation2 + $0x117] sm:$0x2] %vm37_vm6, %v168_v39   ;;  %v194_v48 = vpop.permute.xlu1 %193  }
  0xab   :  { %350 = vst [vmem:[#allocation0 + $0x2] sm:$0x1] %v346_v40  ;;  %518 = vst [vmem:[#allocation0 + $0x1e] sm:$0x1] %v514_v41  ;;  %v484_v43 = vld [vmem:[#allocation2 + $0xc8] sm:$0x1] }
  0xac   :  { %180 = vst.msk [vmem:[#allocation2 + $0xa8] sm:$0x1] %vm37_vm6, %v177_v42   ;;  %182 = vst.msk [vmem:[#allocation2 + $0x187] sm:$0x2] %vm37_vm6, %v177_v42  }
  0xad   :  { %v652_v44 = vld [vmem:[#allocation2 + $0x1a8] sm:$0x1]  ;;  %488 = vst [vmem:[#allocation0 + $0x19] sm:$0x1] %v484_v43  ;;  %189 = vst.msk [vmem:[#allocation2 + $0x60] sm:$0x1] %vm37_vm6, %v186_v45   ;;  %v203_v51 = vpop.permute.xlu0 %202  }
  0xae   :  { %656 = vst [vmem:[#allocation0 + $0x35] sm:$0x1] %v652_v44  ;;  %191 = vst.msk [vmem:[#allocation2 + $0x13f] sm:$0x2] %vm37_vm6, %v186_v45   ;;  %v212_v54 = vpop.permute.xlu1 %211  }
  0xaf   :  { %v430_v46 = vld [vmem:[#allocation2 + $0x80] sm:$0x1]  ;;  %197 = vst.msk [vmem:[#allocation2 + $0x18] sm:$0x1] %vm37_vm6, %v194_v48   ;;  %199 = vst.msk [vmem:[#allocation2 + $0xf7] sm:$0x2] %vm37_vm6, %v194_v48  }
  0xb0   :  { %v598_v47 = vld [vmem:[#allocation2 + $0x160] sm:$0x1]  ;;  %434 = vst [vmem:[#allocation0 + $0x10] sm:$0x1] %v430_v46  ;;  %206 = vst.msk [vmem:[#allocation2 + $0xd0] sm:$0x1] %vm37_vm6, %v203_v51  }
  0xb1   :  { %602 = vst [vmem:[#allocation0 + $0x2c] sm:$0x1] %v598_v47  ;;  %v376_v49 = vld [vmem:[#allocation2 + $0x38] sm:$0x1]  ;;  %208 = vst.msk [vmem:[#allocation2 + $0x1af] sm:$0x2] %vm37_vm6, %v203_v51   ;;  %v221_v57 = vpop.permute.xlu0 %220  }
  0xb2   :  { %v544_v50 = vld [vmem:[#allocation2 + $0x118] sm:$0x1]  ;;  %380 = vst [vmem:[#allocation0 + $0x7] sm:$0x1] %v376_v49  ;;  %215 = vst.msk [vmem:[#allocation2 + $0x88] sm:$0x1] %vm37_vm6, %v212_v54  }
  0xb3   :  { %548 = vst [vmem:[#allocation0 + $0x23] sm:$0x1] %v544_v50  ;;  %v460_v52 = vld [vmem:[#allocation2 + $0xa8] sm:$0x1]  ;;  %217 = vst.msk [vmem:[#allocation2 + $0x167] sm:$0x2] %vm37_vm6, %v212_v54  }
  0xb4   :  { %v628_v53 = vld [vmem:[#allocation2 + $0x188] sm:$0x1]  ;;  %464 = vst [vmem:[#allocation0 + $0x15] sm:$0x1] %v460_v52  ;;  %v406_v55 = vld [vmem:[#allocation2 + $0x60] sm:$0x1] }
  0xb5   :  { %632 = vst [vmem:[#allocation0 + $0x31] sm:$0x1] %v628_v53  ;;  %v574_v56 = vld [vmem:[#allocation2 + $0x140] sm:$0x1]  ;;  %410 = vst [vmem:[#allocation0 + $0xc] sm:$0x1] %v406_v55 }
  0xb6   :  { %578 = vst [vmem:[#allocation0 + $0x28] sm:$0x1] %v574_v56  ;;  %v352_v58 = vld [vmem:[#allocation2 + $0x18] sm:$0x1]  ;;  %224 = vst.msk [vmem:[#allocation2 + $0x40] sm:$0x1] %vm37_vm6, %v221_v57  }
  0xb7   :  { %v520_v59 = vld [vmem:[#allocation2 + $0xf8] sm:$0x1]  ;;  %226 = vst.msk [vmem:[#allocation2 + $0x11f] sm:$0x2] %vm37_vm6, %v221_v57   ;;  %356 = vst [vmem:[#allocation0 + $0x3] sm:$0x1] %v352_v58 }
  0xb8   :  { %524 = vst [vmem:[#allocation0 + $0x1f] sm:$0x1] %v520_v59  ;;  %v490_v60 = vld [vmem:[#allocation2 + $0xd0] sm:$0x1] }
  0xb9   :  { %v658_v61 = vld [vmem:[#allocation2 + $0x1b0] sm:$0x1]  ;;  %494 = vst [vmem:[#allocation0 + $0x1a] sm:$0x1] %v490_v60  ;;  %v436_v62 = vld [vmem:[#allocation2 + $0x88] sm:$0x1] }
  0xba   :  { %662 = vst [vmem:[#allocation0 + $0x36] sm:$0x1] %v658_v61  ;;  %v604_v63 = vld [vmem:[#allocation2 + $0x168] sm:$0x1]  ;;  %440 = vst [vmem:[#allocation0 + $0x11] sm:$0x1] %v436_v62 }
  0xbb   :  { %608 = vst [vmem:[#allocation0 + $0x2d] sm:$0x1] %v604_v63 }
  0xbd   :  { %v382_v0 = vld [vmem:[#allocation2 + $0x40] sm:$0x1] }
  0xbe   :  { %v550_v1 = vld [vmem:[#allocation2 + $0x120] sm:$0x1]  ;;  %386 = vst [vmem:[#allocation0 + $0x8] sm:$0x1] %v382_v0 }
  0xbf   :  { %554 = vst [vmem:[#allocation0 + $0x24] sm:$0x1] %v550_v1 }
  0xc0   :  { %783 = shalt.err (!%p780_p4)
}
  0xc1   :  { %s784_s21 = scalar_lea.hbm %s914_s1, 896 }
  0xc2   :  { %p785_p5 = scmp.ne.s32.totalorder %s914_s1, %s784_s21  ;;  %p788_p6 = scmp.lt.u32.totalorder %s784_s21, %s914_s1 }
  0xc4   :  { %p790_p7 = pnand %p788_p6, %p785_p5 }
  0xc6   :  { %793 = shalt.err (!%p790_p7)
}
  0xc7   :  { %676 = dma.vmem_to_hbm [thread:$0]  %s674_s18, 896, %s914_s1, [#allocation1]  }
  0xc8   :  { %794 = dma.done.wait [#allocation1], 896  }
  0xc9   :  { %795 = vsyncadd [#allocation1], 4294966400 }
  0xca   :  { %678 = vsyncpa [#allocation1], 1 }

// kernel: decoder_forward.1
= control target key start
LH: loop header
LB: loop body
LE: loop exit
PB: predicated region body
PF: predicated region fallthrough
CT: control target
= control target key end

     0   :  { %18 = vsyncpa [#allocation6], 0  ;;  %s10060_s0 = inlined_call_operand.vmem [shape: f32[2,8], index: 0, kind: input, shape index: {}]   ;;  %s10061_s1 = inlined_call_operand.hbm [shape: f32[8,64,256], index: 1, kind: input, shape index: {}]   ;;  %s10062_s2 = inlined_call_operand.hbm [shape: f32[64,256], index: 2, kind: input, shape index: {}]   ;;  %s10063_s3 = inlined_call_operand.vmem [shape: bf16[128,256], index: 3, kind: input, shape index: {}]   ;;  %s10064_s4 = inlined_call_operand.vmem [shape: f32[32,1], index: 4, kind: input, shape index: {}]   ;;  %s10065_s5 = inlined_call_operand.vmem [shape: f32[32,1], index: 5, kind: input, shape index: {}]   ;;  %s10066_s6 = inlined_call_operand.hbm [shape: bf16[64,128], index: 6, kind: input, shape index: {}]   ;;  %s10067_s7 = inlined_call_operand.vmem [shape: f32[16,1], index: 7, kind: input, shape index: {}]   ;;  %s10068_s8 = inlined_call_operand.vmem [shape: f32[16,1], index: 8, kind: input, shape index: {}]   ;;  %s10069_s9 = inlined_call_operand.vmem [shape: f32[1,256], index: 9, kind: input, shape index: {}]   ;;  %s10070_s10 = inlined_call_operand.hbm [shape: bf16[256,896], index: 10, kind: input, shape index: {}]   ;;  %s10071_s11 = inlined_call_operand.hbm [shape: f32[32,64], index: 11, kind: input, shape index: {}]   ;;  %s10072_s12 = inlined_call_operand.vmem [shape: f32[8,1], index: 12, kind: input, shape index: {}]   ;;  %s10073_s13 = inlined_call_operand.vmem [shape: f32[2,8,896], index: 13, kind: output, shape index: {}]  }
   0x1   :  { %19 = vsyncpa [#allocation5], 0 }
   0x2   :  { %20 = vsyncpa [#allocation9], 0 }
   0x3   :  { %21 = vsyncpa [#allocation12], 0  ;;  %s6668_s25 = smov [#allocation8]   ;;  %s6669_s27 = smov [#allocation11]  }
   0x4   :  { %s49_s26 = sshll.u32 %s6668_s25, 4  ;;  %s85_s28 = sshll.u32 %s6669_s27, 4  ;;  %s50_s26 = int_to_ptr.vmem [resolvable:$true] %s49_s26  ;;  %s6762_s28 = int_to_ptr.vmem [resolvable:$true] %s85_s28 }
   0x5   :  { %s6538_s14 = scalar_lea.hbm %s10062_s2, 2048 }
   0x6   :  { %p6539_p0 = scmp.ne.s32.totalorder %s10062_s2, %s6538_s14  ;;  %p6542_p1 = scmp.lt.u32.totalorder %s6538_s14, %s10062_s2 }
   0x8   :  { %p6544_p2 = pnand %p6542_p1, %p6539_p0 }
   0xa   :  { %6547 = shalt.err (!%p6544_p2)
}
   0xb   :  { %s6548_s19 = scalar_lea.vmem %s50_s26, 2048  ;;  %p6553_p4 = scmp.lt.s32.totalorder %s50_s26, %s50_s26 }
   0xc   :  { %p6549_p3 = scmp.ne.s32.totalorder %s50_s26, %s6548_s19  ;;  %p6554_p5 = scmp.lt.s32.totalorder %s6548_s19, %s6548_s19 }
   0xe   :  { %p6555_p6 = por %p6554_p5, %p6553_p4 }
  0x10   :  { %p6556_p7 = pnand %p6555_p6, %p6549_p3 }
  0x12   :  { %6559 = shalt.err (!%p6556_p7)
}
  0x13   :  { %s6670_s20 = smov 256   ;;  %s6671_s21 = smov 16  }
  0x14   :  { %55 = dma.hbm_to_vmem [thread:$0]  %s10062_s2, 2048, %s50_s26, [#allocation9], %s6670_s20, %s6670_s20, %s6671_s21  }
  0x15   :  { %s6560_s27 = scalar_lea.hbm %s10070_s10, 14336 }
  0x16   :  { %p6561_p8 = scmp.ne.s32.totalorder %s10070_s10, %s6560_s27  ;;  %p6564_p9 = scmp.lt.u32.totalorder %s6560_s27, %s10070_s10 }
  0x18   :  { %p6566_p10 = pnand %p6564_p9, %p6561_p8 }
  0x1a   :  { %6569 = shalt.err (!%p6566_p10)
}
  0x1b   :  { %s6570_s16 = scalar_lea.vmem %s6762_s28, 14336  ;;  %p6575_p12 = scmp.lt.s32.totalorder %s6762_s28, %s6762_s28 }
  0x1c   :  { %p6571_p11 = scmp.ne.s32.totalorder %s6762_s28, %s6570_s16  ;;  %p6576_p13 = scmp.lt.s32.totalorder %s6570_s16, %s6570_s16 }
  0x1e   :  { %p6577_p0 = por %p6576_p13, %p6575_p12 }
  0x20   :  { %p6578_p1 = pnand %p6577_p0, %p6571_p11 }
  0x22   :  { %6581 = shalt.err (!%p6578_p1)
}
  0x23   :  { %s6672_s2 = smov 448   ;;  %s6673_s26 = smov 28  }
  0x24   :  { %91 = dma.hbm_to_vmem [thread:$0]  %s10070_s10, 14336, %s6762_s28, [#allocation12], %s6672_s2, %s6672_s2, %s6673_s26  }
  0x25   :  { %s28_s23 = sshll.u32 %s10060_s0, 4  ;;  %s29_s23 = int_to_ptr.vmem [resolvable:$true] %s28_s23 }
  0x26   :  { %s6582_s24 = scalar_lea.vmem %s29_s23, 32  ;;  %p6587_p3 = scmp.lt.s32.totalorder %s29_s23, %s29_s23 }
  0x27   :  { %p6583_p2 = scmp.ne.s32.totalorder %s29_s23, %s6582_s24  ;;  %p6588_p4 = scmp.lt.s32.totalorder %s6582_s24, %s6582_s24 }
  0x29   :  { %p6589_p5 = por %p6588_p4, %p6587_p3 }
  0x2b   :  { %p6590_p6 = pnand %p6589_p5, %p6583_p2 }
  0x2d   :  { %6593 = shalt.err (!%p6590_p6)
}
  0x2e   :  { %s6674_s25 = smov [#allocation4]   ;;  %s6675_s27 = smov [#allocation7]  }
  0x2f   :  { %31 = dma.vmem_to_smem %s29_s23, 32, %s6674_s25, [#allocation6]  }
  0x30   :  { %s37_s29 = sshll.u32 %s6675_s27, 4  ;;  %s6676_s30 = smov [#allocation10]   ;;  %s38_s29 = int_to_ptr.vmem [resolvable:$true] %s37_s29 }
  0x31   :  { %s67_s14 = sshll.u32 %s6676_s30, 4  ;;  %s6594_s15 = scalar_lea.hbm %s10061_s1, 16384  ;;  %s68_s14 = int_to_ptr.vmem [resolvable:$true] %s67_s14 }
  0x32   :  { %p6595_p7 = scmp.ne.s32.totalorder %s10061_s1, %s6594_s15  ;;  %p6598_p8 = scmp.lt.u32.totalorder %s6594_s15, %s10061_s1 }
  0x34   :  { %p6600_p9 = pnand %p6598_p8, %p6595_p7 }
  0x36   :  { %6603 = shalt.err (!%p6600_p9)
}
  0x37   :  { %s6604_s18 = scalar_lea.vmem %s38_s29, 16384  ;;  %p6609_p11 = scmp.lt.s32.totalorder %s38_s29, %s38_s29 }
  0x38   :  { %p6605_p10 = scmp.ne.s32.totalorder %s38_s29, %s6604_s18  ;;  %p6610_p12 = scmp.lt.s32.totalorder %s6604_s18, %s6604_s18 }
  0x3a   :  { %p6611_p13 = por %p6610_p12, %p6609_p11 }
  0x3c   :  { %p6612_p0 = pnand %p6611_p13, %p6605_p10 }
  0x3e   :  { %6615 = shalt.err (!%p6612_p0)
}
  0x3f   :  { %43 = dma.hbm_to_vmem [thread:$0]  %s10061_s1, 16384, %s38_s29, [#allocation5], %s6670_s20, %s6670_s20, %s6671_s21  }
  0x40   :  { %s6616_s25 = scalar_lea.hbm %s10066_s6, 512 }
  0x41   :  { %p6617_p1 = scmp.ne.s32.totalorder %s10066_s6, %s6616_s25  ;;  %p6620_p2 = scmp.lt.u32.totalorder %s6616_s25, %s10066_s6 }
  0x43   :  { %p6622_p3 = pnand %p6620_p2, %p6617_p1 }
  0x45   :  { %6625 = shalt.err (!%p6622_p3)
}
  0x46   :  { %s6626_s15 = scalar_lea.vmem %s68_s14, 512  ;;  %p6631_p5 = scmp.lt.s32.totalorder %s68_s14, %s68_s14 }
  0x47   :  { %p6627_p4 = scmp.ne.s32.totalorder %s68_s14, %s6626_s15  ;;  %p6632_p6 = scmp.lt.s32.totalorder %s6626_s15, %s6626_s15 }
  0x49   :  { %p6633_p7 = por %p6632_p6, %p6631_p5 }
  0x4b   :  { %p6634_p8 = pnand %p6633_p7, %p6627_p4 }
  0x4d   :  { %6637 = shalt.err (!%p6634_p8)
}
  0x4e   :  { %s6677_s1 = smov 64   ;;  %s6678_s20 = smov 4  }
  0x4f   :  { %73 = dma.hbm_to_vmem [thread:$0]  %s10066_s6, 512, %s68_s14, [#allocation9], %s6677_s1, %s6677_s1, %s6678_s20  }
  0x50   :  { %s6679_s0 = smov [#allocation13]   ;;  %s6638_s18 = scalar_lea.hbm %s10071_s11, 512 }
  0x51   :  { %s97_s16 = sshll.u32 %s6679_s0, 4  ;;  %p6639_p9 = scmp.ne.s32.totalorder %s10071_s11, %s6638_s18  ;;  %s98_s16 = int_to_ptr.vmem [resolvable:$true] %s97_s16 }
  0x52   :  { %p6642_p10 = scmp.lt.u32.totalorder %s6638_s18, %s10071_s11 }
  0x54   :  { %p6644_p11 = pnand %p6642_p10, %p6639_p9 }
  0x56   :  { %6647 = shalt.err (!%p6644_p11)
}
  0x57   :  { %s6648_s25 = scalar_lea.vmem %s98_s16, 512  ;;  %p6653_p13 = scmp.lt.s32.totalorder %s98_s16, %s98_s16 }
  0x58   :  { %p6649_p12 = scmp.ne.s32.totalorder %s98_s16, %s6648_s25  ;;  %p6654_p0 = scmp.lt.s32.totalorder %s6648_s25, %s6648_s25 }
  0x5a   :  { %p6655_p1 = por %p6654_p0, %p6653_p13 }
  0x5c   :  { %p6656_p2 = pnand %p6655_p1, %p6649_p12 }
  0x5e   :  { %6659 = shalt.err (!%p6656_p2)
}
  0x5f   :  { %s6680_s6 = smov 128   ;;  %s6681_s14 = smov 8  }
  0x60   :  { %103 = dma.hbm_to_vmem [thread:$0]  %s10071_s11, 512, %s98_s16, [#allocation12], %s6680_s6, %s6680_s6, %s6681_s14  }
  0x61   :  { %6660 = dma.done.wait [#allocation6], 32  }
  0x62   :  { %6661 = vsyncadd [#allocation6], 4294967264 }
  0x63   :  { %6662 = dma.done.wait [#allocation5], 16384  }
  0x64   :  { %6663 = vsyncadd [#allocation5], 4294950912 }
  0x65   :  { %6664 = dma.done.wait [#allocation9], 2560  }
  0x66   :  { %6665 = vsyncadd [#allocation9], 4294964736 }
  0x67   :  { %6666 = dma.done.wait [#allocation12], 14848  }
  0x68   :  { %6667 = vsyncadd [#allocation12], 4294952448 }
  0x69   :  { %124 = sfence }
  0x6a   :  { %s5193_s10 = sld [smem:[#allocation4 + $0x80]]  ;;  %s5194_s28 = sld [smem:[#allocation4 + $0x81]]  ;;  %v6841_v0 = vld [vmem:[#allocation8] sm:$0xff]  ;;  %v6845_v2 = vld [vmem:[#allocation7 + $0x10] sm:$0xff]  ;;  %v6881_v14 = vld [vmem:[#allocation7 + $0x8] sm:$0xff]  ;;  %vm3822_vm9 = vcmask 523264  }
  0x6b   :  { %s5195_s15 = sld [smem:[#allocation4 + $0x82]]  ;;  %s6839_s1 = sld [smem:[#allocation4 + $0x83]]  ;;  %v6843_v1 = vld [vmem:[#allocation7] sm:$0xff]  ;;  %v6851_v3 = vld [vmem:[#allocation8 + $0x10] sm:$0xff]  ;;  %v6893_v20 = vld [vmem:[#allocation7 + $0x18] sm:$0xff] }
  0x6c   :  { %s6847_s11 = sld [smem:[#allocation4 + $0x84]]  ;;  %s6849_s20 = sld [smem:[#allocation4 + $0x85]]  ;;  %v6853_v4 = vld [vmem:[#allocation7 + $0x80] sm:$0xff]  ;;  %v6855_v5 = vld [vmem:[#allocation7 + $0x90] sm:$0xff] }
  0x6d   :  { %s6857_s21 = sld [smem:[#allocation4 + $0x86]]  ;;  %v6861_v7 = vld [vmem:[#allocation7 + $0x100] sm:$0xff]  ;;  %v6863_v8 = vld [vmem:[#allocation7 + $0x110] sm:$0xff]  ;;  %s6867_s29 = sld [smem:[#allocation4 + $0x87]] }
  0x6e   :  { %v6865_v9 = vld [vmem:[#allocation7 + $0x180] sm:$0xff]  ;;  %v6875_v13 = vld [vmem:[#allocation7 + $0x190] sm:$0xff]  ;;  %s6877_s0 = sld [smem:[#allocation4]]  ;;  %s6879_s16 = sld [smem:[#allocation4 + $0x1]] }
  0x6f   :  { %v6889_v18 = vld [vmem:[#allocation7 + $0x200] sm:$0xff]  ;;  %v6891_v19 = vld [vmem:[#allocation7 + $0x210] sm:$0xff]  ;;  %s6905_s2 = sld [smem:[#allocation4 + $0x2]]  ;;  %s6907_s17 = sld [smem:[#allocation4 + $0x3]] }
  0x70   :  { %v6859_v6 = vstv %s5193_s10  ;;  %v6873_v12 = vstv %s5194_s28  ;;  %v1352_v26 = vld [vmem:[#allocation7 + $0x280] sm:$0xff]  ;;  %v1354_v27 = vld [vmem:[#allocation7 + $0x290] sm:$0xff]  ;;  %s6938_s18 = sld [smem:[#allocation4 + $0x4]]  ;;  %s6940_s19 = sld [smem:[#allocation4 + $0x5]] }
  0x71   :  { %v1120_v10 = vmul.f32 %v6859_v6, %v6843_v1  ;;  %v1122_v11 = vmul.f32 %v6859_v6, %v6845_v2  ;;  %v1170_v15 = vmul.f32 %v6873_v12, %v6853_v4  ;;  %v1172_v16 = vmul.f32 %v6873_v12, %v6855_v5  ;;  %v6918_v31 = vld [vmem:[#allocation7 + $0x300] sm:$0xff]  ;;  %v1404_v37 = vld [vmem:[#allocation7 + $0x310] sm:$0xff]  ;;  %s6961_s22 = sld [smem:[#allocation4 + $0x6]]  ;;  %s6963_s23 = sld [smem:[#allocation4 + $0x7]] }
  0x72   :  { %v6887_v17 = vstv %s5195_s15  ;;  %v6897_v21 = vmul.f32 %v6859_v6, %v6881_v14  ;;  %v6910_v28 = vstv %s6839_s1  ;;  %v6913_v29 = vstv %s6847_s11  ;;  %v6928_v38 = vld [vmem:[#allocation7 + $0x380] sm:$0xff]  ;;  %v6930_v39 = vld [vmem:[#allocation7 + $0x390] sm:$0xff]  ;;  %s6682_s24 = smov 13   ;;  %s6683_s25 = smov 26  }
  0x73   :  { %v1136_v22 = vadd.f32 %v1120_v10, %v6841_v0  ;;  %v1138_v23 = vadd.f32 %v1122_v11, %v6851_v3  ;;  %v1220_v24 = vmul.f32 %v6887_v17, %v6861_v7  ;;  %v1222_v25 = vmul.f32 %v6887_v17, %v6863_v8  ;;  %s6684_s6 = smov 39  }
  0x74   :  { %v6916_v30 = vstv %s6849_s20  ;;  %v6922_v32 = vmul.f32 %v6859_v6, %v6893_v20  ;;  %v1270_v35 = vmul.f32 %v6910_v28, %v6865_v9  ;;  %v1272_v36 = vmul.f32 %v6910_v28, %v6875_v13 }
  0x75   :  { %v1186_v33 = vadd.f32 %v1170_v15, %v1136_v22  ;;  %v1188_v34 = vadd.f32 %v1172_v16, %v1138_v23  ;;  %v1320_v40 = vmul.f32 %v6913_v29, %v6889_v18  ;;  %v1322_v41 = vmul.f32 %v6913_v29, %v6891_v19 }
  0x76   :  { %v1370_v42 = vmul.f32 %v6916_v30, %v1352_v26  ;;  %v1372_v43 = vmul.f32 %v6916_v30, %v1354_v27  ;;  %v6943_v46 = vstv %s6857_s21  ;;  %v6946_v47 = vstv %s6867_s29 }
  0x77   :  { %v1236_v44 = vadd.f32 %v1220_v24, %v1186_v33  ;;  %v1238_v45 = vadd.f32 %v1222_v25, %v1188_v34  ;;  %10227 = vst [vmem:[#allocation18_spill] sm:$0xff] %v6946_v47  ;;  %v1420_v48 = vmul.f32 %v6943_v46, %v6918_v31  ;;  %v1422_v49 = vmul.f32 %v6943_v46, %v1404_v37 }
  0x78   :  { %v1470_v50 = vmul.f32 %v6946_v47, %v6928_v38  ;;  %v1472_v51 = vmul.f32 %v6946_v47, %v6930_v39  ;;  %v6956_v54 = vstv %s6877_s0  ;;  %v6959_v55 = vstv %s6879_s16 }
  0x79   :  { %v1286_v52 = vadd.f32 %v1270_v35, %v1236_v44  ;;  %v1288_v53 = vadd.f32 %v1272_v36, %v1238_v45  ;;  %10228 = vst [vmem:[#allocation19_spill] sm:$0xff] %v6956_v54  ;;  %10229 = vst [vmem:[#allocation20_spill] sm:$0xff] %v6959_v55  ;;  %v160_v56 = vmul.f32 %v6843_v1, %v6956_v54  ;;  %v6974_v62 = vstv %s6905_s2  ;;  %v1155_v45 = vld [vmem:[#allocation7 + $0x98] sm:$0xff]  ;;  %s6686_s2 = smov 2  }
  0x7a   :  { %v162_v57 = vmul.f32 %v6845_v2, %v6956_v54  ;;  %v211_v58 = vmul.f32 %v6853_v4, %v6959_v55  ;;  %v213_v59 = vmul.f32 %v6855_v5, %v6959_v55  ;;  %v6977_v63 = vstv %s6907_s17  ;;  %s6687_s17 = smov 3  }
  0x7b   :  { %v1336_v60 = vadd.f32 %v1320_v40, %v1286_v52  ;;  %v1338_v61 = vadd.f32 %v1322_v41, %v1288_v53  ;;  %v176_v10 = vadd.f32 %v160_v56, %v6841_v0  ;;  %v262_v2 = vmul.f32 %v6861_v7, %v6974_v62  ;;  %v1205_v53 = vld [vmem:[#allocation7 + $0x118] sm:$0xff]  ;;  %v1253_v56 = vld [vmem:[#allocation7 + $0x188] sm:$0xff] }
  0x7c   :  { %v178_v1 = vadd.f32 %v162_v57, %v6851_v3  ;;  %v264_v4 = vmul.f32 %v6863_v8, %v6974_v62  ;;  %v313_v5 = vmul.f32 %v6865_v9, %v6977_v63  ;;  %v315_v16 = vmul.f32 %v6875_v13, %v6977_v63 }
  0x7d   :  { %v1386_v11 = vadd.f32 %v1370_v42, %v1336_v60  ;;  %v1388_v15 = vadd.f32 %v1372_v43, %v1338_v61  ;;  %v227_v22 = vadd.f32 %v211_v58, %v176_v10  ;;  %v6990_v23 = vstv %s6938_s18  ;;  %v7011_v42 = vld [vmem:[#allocation8 + $0x8] sm:$0xff] }
  0x7e   :  { %v229_v0 = vadd.f32 %v213_v59, %v178_v1  ;;  %v6993_v3 = vstv %s6940_s19  ;;  %v364_v8 = vmul.f32 %v6889_v18, %v6990_v23  ;;  %v366_v25 = vmul.f32 %v6891_v19, %v6990_v23  ;;  %v7013_v18 = vld [vmem:[#allocation8 + $0x18] sm:$0xff]  ;;  %v1303_v60 = vld [vmem:[#allocation7 + $0x208] sm:$0xff] }
  0x7f   :  { %v1436_v7 = vadd.f32 %v1420_v48, %v1386_v11  ;;  %v1438_v24 = vadd.f32 %v1422_v49, %v1388_v15  ;;  %v278_v9 = vadd.f32 %v262_v2, %v227_v22  ;;  %v415_v34 = vmul.f32 %v1352_v26, %v6993_v3  ;;  %v1203_v48 = vld [vmem:[#allocation7 + $0x108] sm:$0xff]  ;;  %v1255_v59 = vld [vmem:[#allocation7 + $0x198] sm:$0xff] }
  0x80   :  { %v280_v33 = vadd.f32 %v264_v4, %v229_v0  ;;  %v417_v13 = vmul.f32 %v1354_v27, %v6993_v3  ;;  %v7006_v40 = vstv %s6961_s22  ;;  %v7009_v41 = vstv %s6963_s23  ;;  %v1153_v27 = vld [vmem:[#allocation7 + $0x88] sm:$0xff]  ;;  %v1305_v1 = vld [vmem:[#allocation7 + $0x218] sm:$0xff] }
  0x81   :  { %v7001_v35 = vadd.f32 %v1470_v50, %v1436_v7  ;;  %v7003_v36 = vadd.f32 %v1472_v51, %v1438_v24  ;;  %v329_v43 = vadd.f32 %v313_v5, %v278_v9  ;;  %v466_v44 = vmul.f32 %v6918_v31, %v7006_v40  ;;  %v1353_v2 = vld [vmem:[#allocation7 + $0x288] sm:$0xff]  ;;  %v1355_v15 = vld [vmem:[#allocation7 + $0x298] sm:$0xff] }
  0x82   :  { %v331_v19 = vadd.f32 %v315_v16, %v280_v33  ;;  %v468_v26 = vmul.f32 %v1404_v37, %v7006_v40  ;;  %v517_v51 = vmul.f32 %v6928_v38, %v7009_v41  ;;  %v519_v52 = vmul.f32 %v6930_v39, %v7009_v41  ;;  %v1403_v5 = vld [vmem:[#allocation7 + $0x308] sm:$0xff]  ;;  %v1405_v24 = vld [vmem:[#allocation7 + $0x318] sm:$0xff] }
  0x83   :  { %10230 = vst [vmem:[#allocation21_spill] sm:$0xff] %v7001_v35  ;;  %10231 = vst [vmem:[#allocation22_spill] sm:$0xff] %v7003_v36  ;;  %v10075_v49 = vmax.f32 %v7001_v35, 0.0  ;;  %v10074_v50 = vmax.f32 %v7003_v36, 0.0  ;;  %v380_v57 = vadd.f32 %v364_v8, %v329_v43  ;;  %v1137_v31 = vadd.f32 %v6897_v21, %v7011_v42  ;;  %v1453_v8 = vld [vmem:[#allocation7 + $0x388] sm:$0xff] }
  0x84   :  { %v382_v58 = vadd.f32 %v366_v25, %v331_v19  ;;  %v1139_v37 = vadd.f32 %v6922_v32, %v7013_v18  ;;  %v1171_v39 = vmul.f32 %v6873_v12, %v1153_v27  ;;  %v1173_v61 = vmul.f32 %v6873_v12, %v1155_v45 }
  0x85   :  { %v7032_v38 = vpack.i.bf16 %v10074_v50, %v10075_v49  ;;  %v1221_v10 = vmul.f32 %v6887_v17, %v1203_v48  ;;  %v431_v21 = vadd.f32 %v415_v34, %v380_v57  ;;  %v1223_v32 = vmul.f32 %v6887_v17, %v1205_v53  ;;  %v7140_v50 = vld [vmem:[#allocation7 + $0x328] sm:$0xff]  ;;  %v7142_v49 = vld [vmem:[#allocation7 + $0x338] sm:$0xff] }
  0x86   :  { %v433_v4 = vadd.f32 %v417_v13, %v382_v58  ;;  %v1271_v11 = vmul.f32 %v6910_v28, %v1253_v56  ;;  %v1187_v16 = vadd.f32 %v1171_v39, %v1137_v31  ;;  %v1189_v22 = vadd.f32 %v1173_v61, %v1139_v37  ;;  %v1455_v13 = vld [vmem:[#allocation7 + $0x398] sm:$0xff] }
  0x87   :  { %10232 = vst [vmem:[#allocation23_spill] sm:$0xff] %v7032_v38  ;;  %5665 = vrot.lane.b32.xlu1 %v7032_v38, %s6682_s24  ;;  %v1273_v0 = vmul.f32 %v6910_v28, %v1255_v59  ;;  %v1321_v7 = vmul.f32 %v6913_v29, %v1303_v60  ;;  %v482_v25 = vadd.f32 %v466_v44, %v431_v21  ;;  %v7166_v38 = vld [vmem:[#allocation7 + $0xa0] sm:$0xff] }
  0x88   :  { %v484_v9 = vadd.f32 %v468_v26, %v433_v4  ;;  %v1323_v33 = vmul.f32 %v6913_v29, %v1305_v1  ;;  %v1371_v34 = vmul.f32 %v6916_v30, %v1353_v2  ;;  %v1237_v43 = vadd.f32 %v1221_v10, %v1187_v16  ;;  %10245 = vst [vmem:[#allocation36_spill] sm:$0xff] %v7166_v38 }
  0x89   :  { %v1239_v19 = vadd.f32 %v1223_v32, %v1189_v22  ;;  %v1373_v57 = vmul.f32 %v6916_v30, %v1355_v15  ;;  %v1421_v58 = vmul.f32 %v6943_v46, %v1403_v5  ;;  %v7047_v31 = vadd.f32 %v517_v51, %v482_v25 }
  0x8a   :  { %v7049_v37 = vadd.f32 %v519_v52, %v484_v9  ;;  %v1423_v39 = vmul.f32 %v6943_v46, %v1405_v24  ;;  %v1471_v44 = vmul.f32 %v6946_v47, %v1453_v8  ;;  %v1287_v26 = vadd.f32 %v1271_v11, %v1237_v43 }
  0x8b   :  { %10233 = vst [vmem:[#allocation24_spill] sm:$0xff] %v7047_v31  ;;  %v1289_v61 = vadd.f32 %v1273_v0, %v1239_v19  ;;  %v1473_v21 = vmul.f32 %v6946_v47, %v1455_v13  ;;  %v161_v10 = vmul.f32 %v6881_v14, %v6956_v54  ;;  %v10077_v4 = vmax.f32 %v7047_v31, 0.0  ;;  %v7204_v47 = vld [vmem:[#allocation7 + $0x2a0] sm:$0xff] }
  0x8c   :  { %10234 = vst [vmem:[#allocation25_spill] sm:$0xff] %v7049_v37  ;;  %v10076_v32 = vmax.f32 %v7049_v37, 0.0  ;;  %v163_v51 = vmul.f32 %v6893_v20, %v6956_v54  ;;  %v212_v52 = vmul.f32 %v1153_v27, %v6959_v55  ;;  %v1337_v16 = vadd.f32 %v1321_v7, %v1287_v26  ;;  %v7188_v37 = vld [vmem:[#allocation7 + $0x1b0] sm:$0xff] }
  0x8d   :  { %v1339_v22 = vadd.f32 %v1323_v33, %v1289_v61  ;;  %v177_v25 = vadd.f32 %v161_v10, %v7011_v42  ;;  %v214_v11 = vmul.f32 %v1155_v45, %v6959_v55  ;;  %v263_v9 = vmul.f32 %v1203_v48, %v6974_v62 }
  0x8e   :  { %v7067_v14 = vpack.i.bf16 %v10076_v32, %v10077_v4  ;;  %v179_v0 = vadd.f32 %v163_v51, %v7013_v18  ;;  %v265_v20 = vmul.f32 %v1205_v53, %v6974_v62  ;;  %v1387_v43 = vadd.f32 %v1371_v34, %v1337_v16  ;;  %v7079_v34 = vld [vmem:[#allocation7 + $0x28] sm:$0xff]  ;;  %v7095_v16 = vld [vmem:[#allocation8 + $0x38] sm:$0xff] }
  0x8f   :  { %v1389_v27 = vadd.f32 %v1373_v57, %v1339_v22  ;;  %v228_v7 = vadd.f32 %v212_v52, %v177_v25  ;;  %v314_v33 = vmul.f32 %v1253_v56, %v6977_v63  ;;  %v316_v45 = vmul.f32 %v1255_v59, %v6977_v63  ;;  %v7081_v57 = vld [vmem:[#allocation7 + $0x38] sm:$0xff]  ;;  %v7086_v52 = vld [vmem:[#allocation7 + $0xa8] sm:$0xff] }
  0x90   :  { %10235 = vst [vmem:[#allocation26_spill] sm:$0xff] %v7067_v14  ;;  %5655 = vrot.lane.b32.xlu0 %v7067_v14, %s6682_s24  ;;  %v230_v42 = vadd.f32 %v214_v11, %v179_v0  ;;  %v365_v19 = vmul.f32 %v1303_v60, %v6990_v23  ;;  %v367_v26 = vmul.f32 %v1305_v1, %v6990_v23  ;;  %v7097_v22 = vld [vmem:[#allocation7 + $0xb8] sm:$0xff]  ;;  %v7168_v14 = vld [vmem:[#allocation7 + $0xb0] sm:$0xff] }
  0x91   :  { %v1437_v18 = vadd.f32 %v1421_v58, %v1387_v43  ;;  %v1439_v61 = vadd.f32 %v1423_v39, %v1389_v27  ;;  %v279_v48 = vadd.f32 %v263_v9, %v228_v7  ;;  %v416_v53 = vmul.f32 %v1353_v2, %v6993_v3  ;;  %v7093_v39 = vld [vmem:[#allocation8 + $0x28] sm:$0xff]  ;;  %v7106_v25 = vld [vmem:[#allocation7 + $0x138] sm:$0xff]  ;;  %10246 = vst [vmem:[#allocation37_spill] sm:$0xff] %v7168_v14 }
  0x92   :  { %v281_v56 = vadd.f32 %v265_v20, %v230_v42  ;;  %v418_v10 = vmul.f32 %v1355_v15, %v6993_v3  ;;  %v467_v51 = vmul.f32 %v1403_v5, %v7006_v40  ;;  %v469_v59 = vmul.f32 %v1405_v24, %v7006_v40  ;;  %v7112_v20 = vld [vmem:[#allocation7 + $0x1a8] sm:$0xff] }
  0x93   :  { %v7088_v60 = vadd.f32 %v1471_v44, %v1437_v18  ;;  %v7090_v1 = vadd.f32 %v1473_v21, %v1439_v61  ;;  %v330_v58 = vadd.f32 %v314_v33, %v279_v48  ;;  %v518_v2 = vmul.f32 %v1453_v8, %v7009_v41  ;;  %v7104_v21 = vld [vmem:[#allocation7 + $0x128] sm:$0xff]  ;;  %v7118_v33 = vld [vmem:[#allocation7 + $0x1b8] sm:$0xff] }
  0x94   :  { %v332_v15 = vadd.f32 %v316_v45, %v281_v56  ;;  %v520_v5 = vmul.f32 %v1455_v13, %v7009_v41  ;;  %v165_v24 = vmul.f32 %v6956_v54, %v7079_v34  ;;  %v167_v44 = vmul.f32 %v6956_v54, %v7081_v57  ;;  %v7120_v42 = vld [vmem:[#allocation7 + $0x228] sm:$0xff]  ;;  %v7122_v45 = vld [vmem:[#allocation7 + $0x238] sm:$0xff] }
  0x95   :  { %10236 = vst [vmem:[#allocation27_spill] sm:$0xff] %v7088_v60  ;;  %10237 = vst [vmem:[#allocation28_spill] sm:$0xff] %v7090_v1  ;;  %v10079_v8 = vmax.f32 %v7088_v60, 0.0  ;;  %v10078_v11 = vmax.f32 %v7090_v1, 0.0  ;;  %v381_v0 = vadd.f32 %v365_v19, %v330_v58  ;;  %v216_v9 = vmul.f32 %v6959_v55, %v7086_v52  ;;  %v7134_v48 = vld [vmem:[#allocation7 + $0x2a8] sm:$0xff] }
  0x96   :  { %v383_v13 = vadd.f32 %v367_v26, %v332_v15  ;;  %v181_v43 = vadd.f32 %v165_v24, %v7093_v39  ;;  %v183_v27 = vadd.f32 %v167_v44, %v7095_v16  ;;  %v218_v7 = vmul.f32 %v6959_v55, %v7097_v22  ;;  %v7138_v44 = vld [vmem:[#allocation7 + $0x2b8] sm:$0xff] }
  0x97   :  { %v7128_v19 = vpack.i.bf16 %v10078_v11, %v10079_v8  ;;  %v432_v26 = vadd.f32 %v416_v53, %v381_v0  ;;  %v267_v18 = vmul.f32 %v6974_v62, %v7104_v21  ;;  %v269_v61 = vmul.f32 %v6974_v62, %v7106_v25  ;;  %v7162_v11 = vld [vmem:[#allocation8 + $0x30] sm:$0xff] }
  0x98   :  { %v434_v56 = vadd.f32 %v418_v10, %v383_v13  ;;  %v232_v58 = vadd.f32 %v216_v9, %v181_v43  ;;  %v234_v15 = vadd.f32 %v218_v7, %v183_v27  ;;  %v318_v24 = vmul.f32 %v6977_v63, %v7112_v20  ;;  %v7152_v13 = vld [vmem:[#allocation7 + $0x3a8] sm:$0xff]  ;;  %v7154_v43 = vld [vmem:[#allocation7 + $0x3b8] sm:$0xff]  ;;  %v7156_v27 = vld [vmem:[#allocation7 + $0x20] sm:$0xff]  ;;  %10243 = vst [vmem:[#allocation34_spill] sm:$0xff] %v7162_v11 }
  0x99   :  { %10238 = vst [vmem:[#allocation29_spill] sm:$0xff] %v7128_v19  ;;  %5670 = vrot.lane.b32.xlu1 %v7128_v19, %s6682_s24  ;;  %v483_v53 = vadd.f32 %v467_v51, %v432_v26  ;;  %v320_v0 = vmul.f32 %v6977_v63, %v7118_v33  ;;  %v369_v10 = vmul.f32 %v6990_v23, %v7120_v42  ;;  %10239 = vst [vmem:[#allocation30_spill] sm:$0xff] %v7152_v13  ;;  %v7160_v26 = vld [vmem:[#allocation8 + $0x20] sm:$0xff]  ;;  %v7164_v8 = vld [vmem:[#allocation7 + $0x30] sm:$0xff] }
  0x9a   :  { %v371_v9 = vmul.f32 %v6990_v23, %v7122_v45  ;;  %10240 = vst [vmem:[#allocation31_spill] sm:$0xff] %v7154_v43  ;;  %10241 = vst [vmem:[#allocation32_spill] sm:$0xff] %v7156_v27  ;;  %v485_v7 = vadd.f32 %v469_v59, %v434_v56  ;;  %v283_v32 = vadd.f32 %v267_v18, %v232_v58  ;;  %v7178_v56 = vld [vmem:[#allocation7 + $0x120] sm:$0xff]  ;;  %v7180_v58 = vld [vmem:[#allocation7 + $0x130] sm:$0xff] }
  0x9b   :  { %v285_v4 = vadd.f32 %v269_v61, %v234_v15  ;;  %v420_v51 = vmul.f32 %v6993_v3, %v7134_v48  ;;  %10242 = vst [vmem:[#allocation33_spill] sm:$0xff] %v7160_v26  ;;  %10244 = vst [vmem:[#allocation35_spill] sm:$0xff] %v7164_v8  ;;  %v7170_v19 = vadd.f32 %v518_v2, %v483_v53  ;;  %v7186_v53 = vld [vmem:[#allocation7 + $0x1a0] sm:$0xff] }
  0x9c   :  { %v422_v59 = vmul.f32 %v6993_v3, %v7138_v44  ;;  %v471_v18 = vmul.f32 %v7006_v40, %v7140_v50  ;;  %v473_v61 = vmul.f32 %v7006_v40, %v7142_v49  ;;  %10248 = vst [vmem:[#allocation39_spill] sm:$0xff] %v7178_v56  ;;  %v7182_v15 = vadd.f32 %v520_v5, %v485_v7 }
  0x9d   :  { %10247 = vst [vmem:[#allocation38_spill] sm:$0xff] %v7170_v19  ;;  %v334_v36 = vadd.f32 %v318_v24, %v283_v32  ;;  %v336_v35 = vadd.f32 %v320_v0, %v285_v4  ;;  %v522_v2 = vmul.f32 %v7009_v41, %v7152_v13  ;;  %v524_v1 = vmul.f32 %v7009_v41, %v7154_v43  ;;  %v7197_v32 = vld [vmem:[#allocation7 + $0x220] sm:$0xff]  ;;  %v7199_v4 = vld [vmem:[#allocation7 + $0x230] sm:$0xff] }
  0x9e   :  { %10249 = vst [vmem:[#allocation40_spill] sm:$0xff] %v7182_v15  ;;  %v164_v60 = vmul.f32 %v6956_v54, %v7156_v27  ;;  %v166_v5 = vmul.f32 %v6956_v54, %v7164_v8  ;;  %v215_v31 = vmul.f32 %v6959_v55, %v7166_v38  ;;  %v7206_v43 = vld [vmem:[#allocation7 + $0x2b0] sm:$0xff]  ;;  %v217_v54 = vmul.f32 %v6959_v55, %v7168_v14  ;;  %v7214_v24 = vld [vmem:[#allocation7 + $0x320] sm:$0xff] }
  0x9f   :  { %v385_v0 = vadd.f32 %v369_v10, %v334_v36  ;;  %v387_v7 = vadd.f32 %v371_v9, %v336_v35  ;;  %v266_v8 = vmul.f32 %v6974_v62, %v7178_v56  ;;  %v7216_v35 = vld [vmem:[#allocation7 + $0x330] sm:$0xff]  ;;  %v10250_v36 = vmax.f32 %v7170_v19, 0.0 }
  0xa0   :  { %v180_v27 = vadd.f32 %v164_v60, %v7160_v26  ;;  %v182_v13 = vadd.f32 %v166_v5, %v7162_v11  ;;  %v10251_v10 = vmax.f32 %v7182_v15, 0.0  ;;  %v268_v5 = vmul.f32 %v6974_v62, %v7180_v58  ;;  %v7226_v11 = vld [vmem:[#allocation7 + $0x3a0] sm:$0xff]  ;;  %v7228_v55 = vld [vmem:[#allocation7 + $0x3b0] sm:$0xff] }
  0xa1   :  { %v436_v38 = vadd.f32 %v420_v51, %v385_v0  ;;  %v438_v60 = vadd.f32 %v422_v59, %v387_v7  ;;  %v317_v26 = vmul.f32 %v6977_v63, %v7186_v53  ;;  %v319_v19 = vmul.f32 %v6977_v63, %v7188_v37 }
  0xa2   :  { %v7222_v9 = vpack.i.bf16 %v10251_v10, %v10250_v36  ;;  %v231_v56 = vadd.f32 %v215_v31, %v180_v27  ;;  %v233_v14 = vadd.f32 %v217_v54, %v182_v13  ;;  %v368_v0 = vmul.f32 %v6990_v23, %v7197_v32 }
  0xa3   :  { %v487_v51 = vadd.f32 %v471_v18, %v436_v38  ;;  %v489_v59 = vadd.f32 %v473_v61, %v438_v60  ;;  %v370_v7 = vmul.f32 %v6990_v23, %v7199_v4  ;;  %v419_v54 = vmul.f32 %v6993_v3, %v7204_v47 }
  0xa4   :  { %10252 = vst [vmem:[#allocation41_spill] sm:$0xff] %v7222_v9  ;;  %5660 = vrot.lane.b32.xlu0 %v7222_v9, %s6682_s24  ;;  %v282_v36 = vadd.f32 %v266_v8, %v231_v56  ;;  %v284_v31 = vadd.f32 %v268_v5, %v233_v14  ;;  %v421_v13 = vmul.f32 %v6993_v3, %v7206_v43  ;;  %v7412_v9 = vld [vmem:[#allocation7 + $0x40] sm:$0xff] }
  0xa5   :  { %v7244_v27 = vadd.f32 %v522_v2, %v487_v51  ;;  %v7246_v10 = vadd.f32 %v524_v1, %v489_v59  ;;  %v470_v38 = vmul.f32 %v7006_v40, %v7214_v24  ;;  %v472_v18 = vmul.f32 %v7006_v40, %v7216_v35 }
  0xa6   :  { %v333_v61 = vadd.f32 %v317_v26, %v282_v36  ;;  %v335_v60 = vadd.f32 %v319_v19, %v284_v31  ;;  %v521_v14 = vmul.f32 %v7009_v41, %v7226_v11  ;;  %v523_v8 = vmul.f32 %v7009_v41, %v7228_v55 }
  0xa7   :  { %10253 = vst [vmem:[#allocation42_spill] sm:$0xff] %v7244_v27  ;;  %10254 = vst [vmem:[#allocation43_spill] sm:$0xff] %v7246_v10  ;;  %v10111_v56 = vmax.f32 %v7244_v27, 0.0  ;;  %v10110_v2 = vmax.f32 %v7246_v10, 0.0  ;;  %v1125_v1 = vmul.f32 %v6859_v6, %v7079_v34  ;;  %v1127_v5 = vmul.f32 %v6859_v6, %v7081_v57 }
  0xa8   :  { %v384_v51 = vadd.f32 %v368_v0, %v333_v61  ;;  %v386_v59 = vadd.f32 %v370_v7, %v335_v60  ;;  %v1175_v19 = vmul.f32 %v6873_v12, %v7086_v52  ;;  %v1177_v26 = vmul.f32 %v6873_v12, %v7097_v22 }
  0xa9   :  { %v7270_v36 = vpack.i.bf16 %v10110_v2, %v10111_v56  ;;  %v1141_v31 = vadd.f32 %v1125_v1, %v7093_v39  ;;  %v1143_v34 = vadd.f32 %v1127_v5, %v7095_v16  ;;  %v1225_v57 = vmul.f32 %v6887_v17, %v7104_v21 }
  0xaa   :  { %v435_v0 = vadd.f32 %v419_v54, %v384_v51  ;;  %v437_v7 = vadd.f32 %v421_v13, %v386_v59  ;;  %v1227_v52 = vmul.f32 %v6887_v17, %v7106_v25  ;;  %v1275_v22 = vmul.f32 %v6910_v28, %v7112_v20 }
  0xab   :  { %10255 = vst [vmem:[#allocation44_spill] sm:$0xff] %v7270_v36  ;;  %5680 = vrot.lane.b32.xlu1 %v7270_v36, %s6682_s24  ;;  %v1191_v61 = vadd.f32 %v1175_v19, %v1141_v31  ;;  %v1193_v60 = vadd.f32 %v1177_v26, %v1143_v34  ;;  %v1277_v39 = vmul.f32 %v6910_v28, %v7118_v33  ;;  %v10260_v26 = vld [vmem:[#allocation31_spill] sm:$0xff]  ;;  %v10261_v34 = vld [vmem:[#allocation32_spill] sm:$0xff]  ;;  %v7410_v36 = vld [vmem:[#allocation7 + $0x3d8] sm:$0xff] }
  0xac   :  { %v1325_v16 = vmul.f32 %v6913_v29, %v7120_v42  ;;  %v486_v21 = vadd.f32 %v470_v38, %v435_v0  ;;  %v488_v54 = vadd.f32 %v472_v18, %v437_v7  ;;  %v1327_v13 = vmul.f32 %v6913_v29, %v7122_v45  ;;  %v10258_v38 = vld [vmem:[#allocation30_spill] sm:$0xff]  ;;  %v10263_v0 = vld [vmem:[#allocation36_spill] sm:$0xff] }
  0xad   :  { %v1375_v25 = vmul.f32 %v6916_v30, %v7134_v48  ;;  %v1241_v20 = vadd.f32 %v1225_v57, %v1191_v61  ;;  %v1243_v1 = vadd.f32 %v1227_v52, %v1193_v60  ;;  %v1377_v5 = vmul.f32 %v6916_v30, %v7138_v44  ;;  %v10259_v45 = vld [vmem:[#allocation18_spill] sm:$0xff]  ;;  %v10265_v60 = vld [vmem:[#allocation37_spill] sm:$0xff] }
  0xae   :  { %v1425_v51 = vmul.f32 %v6943_v46, %v7140_v50  ;;  %v7294_v33 = vadd.f32 %v521_v14, %v486_v21  ;;  %v7296_v59 = vadd.f32 %v523_v8, %v488_v54  ;;  %v1427_v42 = vmul.f32 %v6943_v46, %v7142_v49  ;;  %v10262_v8 = vld [vmem:[#allocation35_spill] sm:$0xff]  ;;  %v10267_v54 = vld [vmem:[#allocation34_spill] sm:$0xff]  ;;  %10276 = vst [vmem:[#allocation37_spill] sm:$0xff] %v7412_v9 }
  0xaf   :  { %v1475_v18 = vmul.f32 %v10259_v45, %v10258_v38  ;;  %v1291_v19 = vadd.f32 %v1275_v22, %v1241_v20  ;;  %v1293_v48 = vadd.f32 %v1277_v39, %v1243_v1  ;;  %v1477_v31 = vmul.f32 %v10259_v45, %v10260_v26  ;;  %v10264_v22 = vld [vmem:[#allocation33_spill] sm:$0xff]  ;;  %v10268_v1 = vld [vmem:[#allocation39_spill] sm:$0xff] }
  0xb0   :  { %10256 = vst [vmem:[#allocation45_spill] sm:$0xff] %v7294_v33  ;;  %10257 = vst [vmem:[#allocation46_spill] sm:$0xff] %v7296_v59  ;;  %v1124_v44 = vmul.f32 %v6859_v6, %v10261_v34  ;;  %v10109_v50 = vmax.f32 %v7294_v33, 0.0  ;;  %v10108_v14 = vmax.f32 %v7296_v59, 0.0  ;;  %v1126_v57 = vmul.f32 %v6859_v6, %v10262_v8  ;;  %v7328_v34 = vld [vmem:[#allocation7 + $0x48] sm:$0xff]  ;;  %v7428_v59 = vld [vmem:[#allocation8 + $0x40] sm:$0xff] }
  0xb1   :  { %v1174_v49 = vmul.f32 %v6873_v12, %v10263_v0  ;;  %v1341_v7 = vadd.f32 %v1325_v16, %v1291_v19  ;;  %v1343_v52 = vadd.f32 %v1327_v13, %v1293_v48  ;;  %v1176_v39 = vmul.f32 %v6873_v12, %v10265_v60  ;;  %v7358_v60 = vld [vmem:[#allocation7 + $0x158] sm:$0xff]  ;;  %10275 = vst [vmem:[#allocation33_spill] sm:$0xff] %v7410_v36 }
  0xb2   :  { %v1140_v61 = vadd.f32 %v1124_v44, %v10264_v22  ;;  %v7319_v21 = vpack.i.bf16 %v10108_v14, %v10109_v50  ;;  %v1142_v20 = vadd.f32 %v1126_v57, %v10267_v54  ;;  %v1224_v38 = vmul.f32 %v6887_v17, %v10268_v1  ;;  %v7330_v44 = vld [vmem:[#allocation7 + $0x58] sm:$0xff]  ;;  %v7366_v1 = vld [vmem:[#allocation7 + $0x1c8] sm:$0xff]  ;;  %10279 = vst [vmem:[#allocation47_spill] sm:$0xff] %v7428_v59 }
  0xb3   :  { %v1226_v16 = vmul.f32 %v6887_v17, %v7180_v58  ;;  %v1391_v13 = vadd.f32 %v1375_v25, %v1341_v7  ;;  %v1393_v19 = vadd.f32 %v1377_v5, %v1343_v52  ;;  %v1274_v26 = vmul.f32 %v6910_v28, %v7186_v53  ;;  %v7340_v5 = vld [vmem:[#allocation7 + $0xc8] sm:$0xff]  ;;  %v7346_v22 = vld [vmem:[#allocation8 + $0x58] sm:$0xff] }
  0xb4   :  { %10266 = vst [vmem:[#allocation30_spill] sm:$0xff] %v7319_v21  ;;  %v1190_v48 = vadd.f32 %v1174_v49, %v1140_v61  ;;  %5675 = vrot.lane.b32.xlu0 %v7319_v21, %s6682_s24  ;;  %v1192_v8 = vadd.f32 %v1176_v39, %v1142_v20  ;;  %v1276_v57 = vmul.f32 %v6910_v28, %v7188_v37  ;;  %v7344_v52 = vld [vmem:[#allocation8 + $0x48] sm:$0xff]  ;;  %v7348_v61 = vld [vmem:[#allocation7 + $0xd8] sm:$0xff] }
  0xb5   :  { %v1324_v58 = vmul.f32 %v6913_v29, %v7197_v32  ;;  %v1326_v25 = vmul.f32 %v6913_v29, %v7199_v4  ;;  %v1441_v53 = vadd.f32 %v1425_v51, %v1391_v13  ;;  %v1443_v0 = vadd.f32 %v1427_v42, %v1393_v19  ;;  %v7356_v42 = vld [vmem:[#allocation7 + $0x148] sm:$0xff]  ;;  %v7378_v13 = vld [vmem:[#allocation7 + $0x258] sm:$0xff] }
  0xb6   :  { %v1240_v49 = vadd.f32 %v1224_v38, %v1190_v48  ;;  %v1374_v7 = vmul.f32 %v6916_v30, %v7204_v47  ;;  %v1242_v37 = vadd.f32 %v1226_v16, %v1192_v8  ;;  %v1376_v32 = vmul.f32 %v6916_v30, %v7206_v43  ;;  %v7384_v8 = vld [vmem:[#allocation7 + $0x2c8] sm:$0xff]  ;;  %v7394_v50 = vld [vmem:[#allocation7 + $0x358] sm:$0xff] }
  0xb7   :  { %v1424_v4 = vmul.f32 %v6943_v46, %v7214_v24  ;;  %v1426_v51 = vmul.f32 %v6943_v46, %v7216_v35  ;;  %v7360_v47 = vadd.f32 %v1475_v18, %v1441_v53  ;;  %v7362_v39 = vadd.f32 %v1477_v31, %v1443_v0  ;;  %v10271_v35 = vld [vmem:[#allocation19_spill] sm:$0xff]  ;;  %v7374_v18 = vld [vmem:[#allocation7 + $0x1d8] sm:$0xff] }
  0xb8   :  { %v1290_v54 = vadd.f32 %v1274_v26, %v1240_v49  ;;  %v1474_v20 = vmul.f32 %v10259_v45, %v7226_v11  ;;  %v1292_v43 = vadd.f32 %v1276_v57, %v1242_v37  ;;  %v1476_v24 = vmul.f32 %v10259_v45, %v7228_v55  ;;  %v7376_v31 = vld [vmem:[#allocation7 + $0x248] sm:$0xff]  ;;  %v10272_v26 = vld [vmem:[#allocation20_spill] sm:$0xff]  ;;  %v7390_v37 = vld [vmem:[#allocation7 + $0x2d8] sm:$0xff] }
  0xb9   :  { %10269 = vst [vmem:[#allocation31_spill] sm:$0xff] %v7360_v47  ;;  %10270 = vst [vmem:[#allocation32_spill] sm:$0xff] %v7362_v39  ;;  %v169_v38 = vmul.f32 %v10271_v35, %v7328_v34  ;;  %v171_v16 = vmul.f32 %v10271_v35, %v7330_v44  ;;  %v10119_v11 = vmax.f32 %v7360_v47, 0.0  ;;  %v10118_v19 = vmax.f32 %v7362_v39, 0.0  ;;  %v7392_v14 = vld [vmem:[#allocation7 + $0x348] sm:$0xff]  ;;  %v7468_v45 = vld [vmem:[#allocation7 + $0x2c0] sm:$0xff] }
  0xba   :  { %v1340_v48 = vadd.f32 %v1324_v58, %v1290_v54  ;;  %v220_v55 = vmul.f32 %v10272_v26, %v7340_v5  ;;  %v1342_v57 = vadd.f32 %v1326_v25, %v1292_v43  ;;  %v222_v49 = vmul.f32 %v10272_v26, %v7348_v61 }
  0xbb   :  { %v185_v53 = vadd.f32 %v169_v38, %v7344_v52  ;;  %v187_v0 = vadd.f32 %v171_v16, %v7346_v22  ;;  %v7400_v58 = vpack.i.bf16 %v10118_v19, %v10119_v11  ;;  %v271_v54 = vmul.f32 %v6974_v62, %v7356_v42  ;;  %v7406_v38 = vld [vmem:[#allocation7 + $0x3c8] sm:$0xff]  ;;  %v7414_v19 = vld [vmem:[#allocation7 + $0x50] sm:$0xff] }
  0xbc   :  { %v1390_v25 = vadd.f32 %v1374_v7, %v1340_v48  ;;  %v273_v43 = vmul.f32 %v6974_v62, %v7358_v60  ;;  %10274 = vst [vmem:[#allocation36_spill] sm:$0xff] %v7406_v38  ;;  %v1392_v16 = vadd.f32 %v1376_v32, %v1342_v57  ;;  %v322_v21 = vmul.f32 %v6977_v63, %v7366_v1  ;;  %v7424_v57 = vld [vmem:[#allocation7 + $0xc0] sm:$0xff] }
  0xbd   :  { %10273 = vst [vmem:[#allocation35_spill] sm:$0xff] %v7400_v58  ;;  %v236_v2 = vadd.f32 %v220_v55, %v185_v53  ;;  %v238_v56 = vadd.f32 %v222_v49, %v187_v0  ;;  %10277 = vst [vmem:[#allocation34_spill] sm:$0xff] %v7414_v19  ;;  %5690 = vrot.lane.b32.xlu1 %v7400_v58, %s6682_s24  ;;  %v324_v48 = vmul.f32 %v6977_v63, %v7374_v18  ;;  %v7434_v58 = vld [vmem:[#allocation7 + $0x140] sm:$0xff] }
  0xbe   :  { %v1440_v7 = vadd.f32 %v1424_v4, %v1390_v25  ;;  %v373_v32 = vmul.f32 %v6990_v23, %v7376_v31  ;;  %v375_v55 = vmul.f32 %v6990_v23, %v7378_v13  ;;  %10278 = vst [vmem:[#allocation39_spill] sm:$0xff] %v7424_v57  ;;  %v1442_v53 = vadd.f32 %v1426_v51, %v1392_v16  ;;  %v7430_v4 = vld [vmem:[#allocation8 + $0x50] sm:$0xff] }
  0xbf   :  { %v287_v0 = vadd.f32 %v271_v54, %v236_v2  ;;  %v289_v49 = vadd.f32 %v273_v43, %v238_v56  ;;  %v424_v11 = vmul.f32 %v6993_v3, %v7384_v8  ;;  %10280 = vst [vmem:[#allocation48_spill] sm:$0xff] %v7430_v4  ;;  %v7432_v25 = vld [vmem:[#allocation7 + $0xd0] sm:$0xff]  ;;  %10282 = vst [vmem:[#allocation50_spill] sm:$0xff] %v7434_v58 }
  0xc0   :  { %10281 = vst [vmem:[#allocation49_spill] sm:$0xff] %v7432_v25  ;;  %v7436_v33 = vadd.f32 %v1474_v20, %v1440_v7  ;;  %v426_v39 = vmul.f32 %v6993_v3, %v7390_v37  ;;  %v475_v2 = vmul.f32 %v7006_v40, %v7392_v14  ;;  %v477_v56 = vmul.f32 %v7006_v40, %v7394_v50  ;;  %v7444_v51 = vld [vmem:[#allocation7 + $0x150] sm:$0xff]  ;;  %v7450_v20 = vld [vmem:[#allocation7 + $0x1c0] sm:$0xff] }
  0xc1   :  { %v7446_v54 = vadd.f32 %v1476_v24, %v1442_v53  ;;  %v338_v43 = vadd.f32 %v322_v21, %v287_v0  ;;  %v340_v16 = vadd.f32 %v324_v48, %v289_v49  ;;  %v526_v47 = vmul.f32 %v7009_v41, %v7406_v38  ;;  %v7452_v7 = vld [vmem:[#allocation7 + $0x1d0] sm:$0xff]  ;;  %v7461_v21 = vld [vmem:[#allocation7 + $0x240] sm:$0xff] }
  0xc2   :  { %10283 = vst [vmem:[#allocation51_spill] sm:$0xff] %v7436_v33  ;;  %v528_v27 = vmul.f32 %v7009_v41, %v7410_v36  ;;  %v168_v15 = vmul.f32 %v10271_v35, %v7412_v9  ;;  %v170_v24 = vmul.f32 %v10271_v35, %v7414_v19  ;;  %v7463_v48 = vld [vmem:[#allocation7 + $0x250] sm:$0xff]  ;;  %v219_v10 = vmul.f32 %v10272_v26, %v7424_v57  ;;  %v7478_v53 = vld [vmem:[#allocation7 + $0x340] sm:$0xff] }
  0xc3   :  { %10284 = vst [vmem:[#allocation52_spill] sm:$0xff] %v7446_v54  ;;  %v389_v0 = vadd.f32 %v373_v32, %v338_v43  ;;  %v391_v49 = vadd.f32 %v375_v55, %v340_v16  ;;  %v7470_v36 = vld [vmem:[#allocation7 + $0x2d0] sm:$0xff]  ;;  %v221_v35 = vmul.f32 %v10272_v26, %v7432_v25  ;;  %v270_v19 = vmul.f32 %v6974_v62, %v7434_v58 }
  0xc4   :  { %v184_v9 = vadd.f32 %v168_v15, %v7428_v59  ;;  %v186_v38 = vadd.f32 %v170_v24, %v7430_v4  ;;  %v7480_v32 = vld [vmem:[#allocation7 + $0x350] sm:$0xff]  ;;  %v10285_v55 = vmax.f32 %v7436_v33, 0.0  ;;  %v10286_v43 = vmax.f32 %v7446_v54, 0.0  ;;  %v7490_v4 = vld [vmem:[#allocation7 + $0x3c0] sm:$0xff] }
  0xc5   :  { %v440_v57 = vadd.f32 %v424_v11, %v389_v0  ;;  %v442_v15 = vadd.f32 %v426_v39, %v391_v49  ;;  %v272_v24 = vmul.f32 %v6974_v62, %v7444_v51  ;;  %v7492_v26 = vld [vmem:[#allocation7 + $0x3d0] sm:$0xff]  ;;  %v321_v59 = vmul.f32 %v6977_v63, %v7450_v20 }
  0xc6   :  { %v7486_v16 = vpack.i.bf16 %v10286_v43, %v10285_v55  ;;  %v235_v58 = vadd.f32 %v219_v10, %v184_v9  ;;  %v237_v25 = vadd.f32 %v221_v35, %v186_v38  ;;  %v323_v33 = vmul.f32 %v6977_v63, %v7452_v7 }
  0xc7   :  { %v491_v11 = vadd.f32 %v475_v2, %v440_v57  ;;  %v493_v39 = vadd.f32 %v477_v56, %v442_v15  ;;  %v372_v0 = vmul.f32 %v6990_v23, %v7461_v21  ;;  %v374_v49 = vmul.f32 %v6990_v23, %v7463_v48 }
  0xc8   :  { %10287 = vst [vmem:[#allocation53_spill] sm:$0xff] %v7486_v16  ;;  %5685 = vrot.lane.b32.xlu0 %v7486_v16, %s6682_s24  ;;  %v286_v55 = vadd.f32 %v270_v19, %v235_v58  ;;  %v288_v9 = vadd.f32 %v272_v24, %v237_v25  ;;  %v423_v10 = vmul.f32 %v6993_v3, %v7468_v45 }
  0xc9   :  { %v425_v35 = vmul.f32 %v6993_v3, %v7470_v36  ;;  %v7508_v38 = vadd.f32 %v526_v47, %v491_v11  ;;  %v7510_v43 = vadd.f32 %v528_v27, %v493_v39  ;;  %v474_v57 = vmul.f32 %v7006_v40, %v7478_v53 }
  0xca   :  { %v476_v2 = vmul.f32 %v7006_v40, %v7480_v32  ;;  %v337_v56 = vadd.f32 %v321_v59, %v286_v55  ;;  %v339_v15 = vadd.f32 %v323_v33, %v288_v9  ;;  %v525_v19 = vmul.f32 %v7009_v41, %v7490_v4 }
  0xcb   :  { %10288 = vst [vmem:[#allocation54_spill] sm:$0xff] %v7508_v38  ;;  %10289 = vst [vmem:[#allocation55_spill] sm:$0xff] %v7510_v43  ;;  %v527_v58 = vmul.f32 %v7009_v41, %v7492_v26  ;;  %v10147_v25 = vmax.f32 %v7508_v38, 0.0  ;;  %v10144_v47 = vmax.f32 %v7510_v43, 0.0  ;;  %v1129_v27 = vmul.f32 %v6859_v6, %v7328_v34  ;;  %v7724_v43 = vld [vmem:[#allocation7 + $0x1e0] sm:$0xff] }
  0xcc   :  { %v1131_v24 = vmul.f32 %v6859_v6, %v7330_v44  ;;  %v388_v11 = vadd.f32 %v372_v0, %v337_v56  ;;  %v390_v39 = vadd.f32 %v374_v49, %v339_v15  ;;  %v1179_v33 = vmul.f32 %v6873_v12, %v7340_v5 }
  0xcd   :  { %v1181_v59 = vmul.f32 %v6873_v12, %v7348_v61  ;;  %v7534_v55 = vpack.i.bf16 %v10144_v47, %v10147_v25  ;;  %v1145_v9 = vadd.f32 %v1129_v27, %v7344_v52  ;;  %v1229_v44 = vmul.f32 %v6887_v17, %v7356_v42  ;;  %v7668_v47 = vld [vmem:[#allocation7 + $0x368] sm:$0xff]  ;;  %v7684_v25 = vld [vmem:[#allocation7 + $0x3f8] sm:$0xff] }
  0xce   :  { %v1147_v34 = vadd.f32 %v1131_v24, %v7346_v22  ;;  %v439_v0 = vadd.f32 %v423_v10, %v388_v11  ;;  %v441_v49 = vadd.f32 %v425_v35, %v390_v39  ;;  %v1231_v5 = vmul.f32 %v6887_v17, %v7358_v60 }
  0xcf   :  { %10290 = vst [vmem:[#allocation56_spill] sm:$0xff] %v7534_v55  ;;  %v1279_v61 = vmul.f32 %v6910_v28, %v7366_v1  ;;  %5700 = vrot.lane.b32.xlu1 %v7534_v55, %s6682_s24  ;;  %v1195_v56 = vadd.f32 %v1179_v33, %v1145_v9  ;;  %v1281_v52 = vmul.f32 %v6910_v28, %v7374_v18  ;;  %v7708_v55 = vld [vmem:[#allocation7 + $0xf0] sm:$0xff] }
  0xd0   :  { %v1197_v15 = vadd.f32 %v1181_v59, %v1147_v34  ;;  %v1329_v22 = vmul.f32 %v6913_v29, %v7376_v31  ;;  %v490_v42 = vadd.f32 %v474_v57, %v439_v0  ;;  %v492_v10 = vadd.f32 %v476_v2, %v441_v49  ;;  %v10293_v57 = vld [vmem:[#allocation36_spill] sm:$0xff]  ;;  %v10295_v59 = vld [vmem:[#allocation33_spill] sm:$0xff]  ;;  %v10298_v0 = vld [vmem:[#allocation39_spill] sm:$0xff] }
  0xd1   :  { %v1331_v35 = vmul.f32 %v6913_v29, %v7378_v13  ;;  %v1379_v60 = vmul.f32 %v6916_v30, %v7384_v8  ;;  %v1245_v1 = vadd.f32 %v1229_v44, %v1195_v56  ;;  %v1381_v24 = vmul.f32 %v6916_v30, %v7390_v37  ;;  %v10294_v13 = vld [vmem:[#allocation18_spill] sm:$0xff]  ;;  %v10296_v34 = vld [vmem:[#allocation37_spill] sm:$0xff] }
  0xd2   :  { %v1247_v27 = vadd.f32 %v1231_v5, %v1197_v15  ;;  %v1429_v11 = vmul.f32 %v6943_v46, %v7392_v14  ;;  %v7558_v18 = vadd.f32 %v525_v19, %v490_v42  ;;  %v7560_v39 = vadd.f32 %v527_v58, %v492_v10  ;;  %v10297_v58 = vld [vmem:[#allocation34_spill] sm:$0xff]  ;;  %v10300_v15 = vld [vmem:[#allocation49_spill] sm:$0xff]  ;;  %v10302_v10 = vld [vmem:[#allocation48_spill] sm:$0xff] }
  0xd3   :  { %v1431_v31 = vmul.f32 %v6943_v46, %v7394_v50  ;;  %v1479_v2 = vmul.f32 %v10294_v13, %v10293_v57  ;;  %v1295_v33 = vadd.f32 %v1279_v61, %v1245_v1  ;;  %v1481_v9 = vmul.f32 %v10294_v13, %v10295_v59  ;;  %v10299_v61 = vld [vmem:[#allocation47_spill] sm:$0xff] }
  0xd4   :  { %10291 = vst [vmem:[#allocation57_spill] sm:$0xff] %v7558_v18  ;;  %10292 = vst [vmem:[#allocation58_spill] sm:$0xff] %v7560_v39  ;;  %v1297_v8 = vadd.f32 %v1281_v52, %v1247_v27  ;;  %v1128_v37 = vmul.f32 %v6859_v6, %v10296_v34  ;;  %v10143_v14 = vmax.f32 %v7558_v18, 0.0  ;;  %v10142_v19 = vmax.f32 %v7560_v39, 0.0  ;;  %v10303_v27 = vld [vmem:[#allocation50_spill] sm:$0xff]  ;;  %v7726_v18 = vld [vmem:[#allocation7 + $0x1f0] sm:$0xff] }
  0xd5   :  { %v1130_v44 = vmul.f32 %v6859_v6, %v10297_v58  ;;  %v1178_v50 = vmul.f32 %v6873_v12, %v10298_v0  ;;  %v1345_v49 = vadd.f32 %v1329_v22, %v1295_v33  ;;  %v1180_v52 = vmul.f32 %v6873_v12, %v10300_v15  ;;  %v7622_v15 = vld [vmem:[#allocation8 + $0x78] sm:$0xff]  ;;  %v7710_v39 = vld [vmem:[#allocation7 + $0x160] sm:$0xff] }
  0xd6   :  { %v1347_v5 = vadd.f32 %v1331_v35, %v1297_v8  ;;  %v1144_v56 = vadd.f32 %v1128_v37, %v10299_v61  ;;  %v7583_v42 = vpack.i.bf16 %v10142_v19, %v10143_v14  ;;  %v1228_v57 = vmul.f32 %v6887_v17, %v10303_v27  ;;  %v7666_v14 = vld [vmem:[#allocation7 + $0x2f8] sm:$0xff] }
  0xd7   :  { %v1146_v1 = vadd.f32 %v1130_v44, %v10302_v10  ;;  %v1230_v22 = vmul.f32 %v6887_v17, %v7444_v51  ;;  %v1395_v35 = vadd.f32 %v1379_v60, %v1345_v49  ;;  %v1278_v59 = vmul.f32 %v6910_v28, %v7450_v20  ;;  %v7602_v20 = vld [vmem:[#allocation7 + $0x68] sm:$0xff] }
  0xd8   :  { %10301 = vst [vmem:[#allocation36_spill] sm:$0xff] %v7583_v42  ;;  %v1397_v33 = vadd.f32 %v1381_v24, %v1347_v5  ;;  %v1194_v8 = vadd.f32 %v1178_v50, %v1144_v56  ;;  %5695 = vrot.lane.b32.xlu0 %v7583_v42, %s6682_s24  ;;  %v1280_v37 = vmul.f32 %v6910_v28, %v7452_v7  ;;  %v7604_v50 = vld [vmem:[#allocation7 + $0x78] sm:$0xff]  ;;  %v7620_v56 = vld [vmem:[#allocation8 + $0x68] sm:$0xff] }
  0xd9   :  { %v1196_v34 = vadd.f32 %v1180_v52, %v1146_v1  ;;  %v1328_v58 = vmul.f32 %v6913_v29, %v7461_v21  ;;  %v1330_v44 = vmul.f32 %v6913_v29, %v7463_v48  ;;  %v1445_v51 = vadd.f32 %v1429_v11, %v1395_v35  ;;  %v7612_v11 = vld [vmem:[#allocation7 + $0xe8] sm:$0xff]  ;;  %v7634_v1 = vld [vmem:[#allocation7 + $0x178] sm:$0xff] }
  0xda   :  { %v1447_v60 = vadd.f32 %v1431_v31, %v1397_v33  ;;  %v1244_v24 = vadd.f32 %v1228_v57, %v1194_v8  ;;  %v1378_v0 = vmul.f32 %v6916_v30, %v7468_v45  ;;  %v1380_v7 = vmul.f32 %v6916_v30, %v7470_v36  ;;  %v7624_v36 = vld [vmem:[#allocation7 + $0xf8] sm:$0xff]  ;;  %v10306_v52 = vld [vmem:[#allocation19_spill] sm:$0xff] }
  0xdb   :  { %v1246_v49 = vadd.f32 %v1230_v22, %v1196_v34  ;;  %v1428_v21 = vmul.f32 %v6943_v46, %v7478_v53  ;;  %v1430_v48 = vmul.f32 %v6943_v46, %v7480_v32  ;;  %v7614_v31 = vadd.f32 %v1479_v2, %v1445_v51  ;;  %v7632_v10 = vld [vmem:[#allocation7 + $0x168] sm:$0xff]  ;;  %v10307_v22 = vld [vmem:[#allocation20_spill] sm:$0xff]  ;;  %10315 = vst [vmem:[#allocation19_spill] sm:$0xff] %v7708_v55 }
  0xdc   :  { %v7616_v5 = vadd.f32 %v1481_v9, %v1447_v60  ;;  %v1294_v45 = vadd.f32 %v1278_v59, %v1244_v24  ;;  %v1478_v61 = vmul.f32 %v10294_v13, %v7490_v4  ;;  %v1480_v32 = vmul.f32 %v10294_v13, %v7492_v26  ;;  %v7640_v33 = vld [vmem:[#allocation7 + $0x1e8] sm:$0xff]  ;;  %v7650_v60 = vld [vmem:[#allocation7 + $0x278] sm:$0xff]  ;;  %10316 = vst [vmem:[#allocation20_spill] sm:$0xff] %v7710_v39 }
  0xdd   :  { %10304 = vst [vmem:[#allocation18_spill] sm:$0xff] %v7614_v31  ;;  %v1296_v53 = vadd.f32 %v1280_v37, %v1246_v49  ;;  %v173_v2 = vmul.f32 %v10306_v52, %v7602_v20  ;;  %v175_v9 = vmul.f32 %v10306_v52, %v7604_v50  ;;  %v10146_v4 = vmax.f32 %v7614_v31, 0.0  ;;  %v7646_v37 = vld [vmem:[#allocation7 + $0x1f8] sm:$0xff]  ;;  %v7648_v51 = vld [vmem:[#allocation7 + $0x268] sm:$0xff] }
  0xde   :  { %10305 = vst [vmem:[#allocation33_spill] sm:$0xff] %v7616_v5  ;;  %v10145_v27 = vmax.f32 %v7616_v5, 0.0  ;;  %v1344_v57 = vadd.f32 %v1328_v58, %v1294_v45  ;;  %v224_v35 = vmul.f32 %v10307_v22, %v7612_v11  ;;  %v226_v34 = vmul.f32 %v10307_v22, %v7624_v36  ;;  %v7662_v45 = vld [vmem:[#allocation7 + $0x2e8] sm:$0xff] }
  0xdf   :  { %v1346_v26 = vadd.f32 %v1330_v44, %v1296_v53  ;;  %v189_v8 = vadd.f32 %v173_v2, %v7620_v56  ;;  %v191_v59 = vadd.f32 %v175_v9, %v7622_v15  ;;  %v275_v24 = vmul.f32 %v6974_v62, %v7632_v10 }
  0xe0   :  { %v7656_v58 = vpack.i.bf16 %v10145_v27, %v10146_v4  ;;  %v1394_v44 = vadd.f32 %v1378_v0, %v1344_v57  ;;  %v277_v49 = vmul.f32 %v6974_v62, %v7634_v1  ;;  %v326_v19 = vmul.f32 %v6977_v63, %v7640_v33  ;;  %v7670_v27 = vld [vmem:[#allocation7 + $0x378] sm:$0xff] }
  0xe1   :  { %v1396_v53 = vadd.f32 %v1380_v7, %v1346_v26  ;;  %v240_v2 = vadd.f32 %v224_v35, %v189_v8  ;;  %v242_v9 = vadd.f32 %v226_v34, %v191_v59  ;;  %v328_v57 = vmul.f32 %v6977_v63, %v7646_v37  ;;  %v7680_v26 = vld [vmem:[#allocation7 + $0x3e8] sm:$0xff] }
  0xe2   :  { %10308 = vst [vmem:[#allocation37_spill] sm:$0xff] %v7656_v58  ;;  %5710 = vrot.lane.b32.xlu1 %v7656_v58, %s6682_s24  ;;  %v1444_v0 = vadd.f32 %v1428_v21, %v1394_v44  ;;  %v377_v7 = vmul.f32 %v6990_v23, %v7648_v51  ;;  %v379_v35 = vmul.f32 %v6990_v23, %v7650_v60  ;;  %v7686_v21 = vld [vmem:[#allocation7 + $0x60] sm:$0xff]  ;;  %v7688_v44 = vld [vmem:[#allocation7 + $0x70] sm:$0xff] }
  0xe3   :  { %v1446_v8 = vadd.f32 %v1430_v48, %v1396_v53  ;;  %v291_v59 = vadd.f32 %v275_v24, %v240_v2  ;;  %v293_v34 = vadd.f32 %v277_v49, %v242_v9  ;;  %v428_v4 = vmul.f32 %v6993_v3, %v7662_v45  ;;  %10309 = vst [vmem:[#allocation34_spill] sm:$0xff] %v7688_v44  ;;  %v7698_v24 = vld [vmem:[#allocation8 + $0x60] sm:$0xff] }
  0xe4   :  { %v7690_v42 = vadd.f32 %v1478_v61, %v1444_v0  ;;  %v430_v16 = vmul.f32 %v6993_v3, %v7666_v14  ;;  %v479_v58 = vmul.f32 %v7006_v40, %v7668_v47  ;;  %v481_v48 = vmul.f32 %v7006_v40, %v7670_v27  ;;  %10311 = vst [vmem:[#allocation47_spill] sm:$0xff] %v7698_v24  ;;  %v7700_v49 = vld [vmem:[#allocation7 + $0xe0] sm:$0xff]  ;;  %v7706_v0 = vld [vmem:[#allocation8 + $0x70] sm:$0xff] }
  0xe5   :  { %10312 = vst [vmem:[#allocation49_spill] sm:$0xff] %v7700_v49  ;;  %v7702_v53 = vadd.f32 %v1480_v32, %v1446_v8  ;;  %v342_v2 = vadd.f32 %v326_v19, %v291_v59  ;;  %v344_v9 = vadd.f32 %v328_v57, %v293_v34  ;;  %v530_v61 = vmul.f32 %v7009_v41, %v7680_v26  ;;  %v7719_v57 = vld [vmem:[#allocation7 + $0x170] sm:$0xff]  ;;  %v7734_v8 = vld [vmem:[#allocation7 + $0x260] sm:$0xff] }
  0xe6   :  { %10310 = vst [vmem:[#allocation39_spill] sm:$0xff] %v7690_v42  ;;  %10314 = vst [vmem:[#allocation50_spill] sm:$0xff] %v7706_v0  ;;  %v532_v5 = vmul.f32 %v7009_v41, %v7684_v25  ;;  %v172_v32 = vmul.f32 %v10306_v52, %v7686_v21  ;;  %v174_v19 = vmul.f32 %v10306_v52, %v7688_v44 }
  0xe7   :  { %10313 = vst [vmem:[#allocation48_spill] sm:$0xff] %v7702_v53  ;;  %v393_v59 = vadd.f32 %v377_v7, %v342_v2  ;;  %v395_v34 = vadd.f32 %v379_v35, %v344_v9  ;;  %v223_v31 = vmul.f32 %v10307_v22, %v7700_v49  ;;  %v225_v52 = vmul.f32 %v10307_v22, %v7708_v55  ;;  %v7736_v7 = vld [vmem:[#allocation7 + $0x270] sm:$0xff] }
  0xe8   :  { %v188_v38 = vadd.f32 %v172_v32, %v7698_v24  ;;  %v190_v54 = vadd.f32 %v174_v19, %v7706_v0  ;;  %v274_v44 = vmul.f32 %v6974_v62, %v7710_v39  ;;  %v10317_v35 = vmax.f32 %v7690_v42, 0.0  ;;  %v7746_v0 = vld [vmem:[#allocation7 + $0x2e0] sm:$0xff]  ;;  %v7748_v22 = vld [vmem:[#allocation7 + $0x2f0] sm:$0xff] }
  0xe9   :  { %v10318_v2 = vmax.f32 %v7702_v53, 0.0  ;;  %v444_v49 = vadd.f32 %v428_v4, %v393_v59  ;;  %v446_v32 = vadd.f32 %v430_v16, %v395_v34  ;;  %v276_v19 = vmul.f32 %v6974_v62, %v7719_v57  ;;  %v7754_v53 = vld [vmem:[#allocation7 + $0x360] sm:$0xff] }
  0xea   :  { %v239_v39 = vadd.f32 %v223_v31, %v188_v38  ;;  %v241_v55 = vadd.f32 %v225_v52, %v190_v54  ;;  %v325_v24 = vmul.f32 %v6977_v63, %v7724_v43  ;;  %v327_v42 = vmul.f32 %v6977_v63, %v7726_v18  ;;  %v7764_v38 = vld [vmem:[#allocation7 + $0x3e0] sm:$0xff]  ;;  %v7766_v31 = vld [vmem:[#allocation7 + $0x3f0] sm:$0xff] }
  0xeb   :  { %v7742_v9 = vpack.i.bf16 %v10318_v2, %v10317_v35  ;;  %v7756_v35 = vld [vmem:[#allocation7 + $0x370] sm:$0xff]  ;;  %v495_v62 = vadd.f32 %v479_v58, %v444_v49  ;;  %v497_v16 = vadd.f32 %v481_v48, %v446_v32  ;;  %v376_v4 = vmul.f32 %v6990_v23, %v7734_v8 }
  0xec   :  { %v378_v54 = vmul.f32 %v6990_v23, %v7736_v7  ;;  %v290_v63 = vadd.f32 %v274_v44, %v239_v39  ;;  %v292_v59 = vadd.f32 %v276_v19, %v241_v55  ;;  %v427_v34 = vmul.f32 %v6993_v3, %v7746_v0 }
  0xed   :  { %5705 = vrot.lane.b32.xlu0 %v7742_v9, %s6682_s24  ;;  %v429_v52 = vmul.f32 %v6993_v3, %v7748_v22  ;;  %v7772_v58 = vadd.f32 %v530_v61, %v495_v62  ;;  %v7774_v48 = vadd.f32 %v532_v5, %v497_v16  ;;  %v478_v49 = vmul.f32 %v7006_v40, %v7754_v53 }
  0xee   :  { %v480_v23 = vmul.f32 %v7006_v40, %v7756_v35  ;;  %v341_v2 = vadd.f32 %v325_v24, %v290_v63  ;;  %v343_v32 = vadd.f32 %v327_v42, %v292_v59  ;;  %v529_v55 = vmul.f32 %v7009_v41, %v7764_v38 }
  0xef   :  { %v531_v39 = vmul.f32 %v7009_v41, %v7766_v31  ;;  %v562_v3 = vmax.f32 %v7772_v58, 0.0  ;;  %v564_v44 = vmax.f32 %v7774_v48, 0.0  ;;  %v1133_v5 = vmul.f32 %v6859_v6, %v7602_v20 }
  0xf0   :  { %v1135_v61 = vmul.f32 %v6859_v6, %v7604_v50  ;;  %v392_v19 = vadd.f32 %v376_v4, %v341_v2  ;;  %v394_v40 = vadd.f32 %v378_v54, %v343_v32  ;;  %v1183_v42 = vmul.f32 %v6873_v12, %v7612_v11 }
  0xf1   :  { %v1185_v24 = vmul.f32 %v6873_v12, %v7624_v36  ;;  %v7798_v41 = vpack.i.bf16 %v564_v44, %v562_v3  ;;  %v1149_v62 = vadd.f32 %v1133_v5, %v7620_v56  ;;  %v1233_v50 = vmul.f32 %v6887_v17, %v7632_v10 }
  0xf2   :  { %v1151_v20 = vadd.f32 %v1135_v61, %v7622_v15  ;;  %v443_v16 = vadd.f32 %v427_v34, %v392_v19  ;;  %v445_v4 = vadd.f32 %v429_v52, %v394_v40  ;;  %v1235_v11 = vmul.f32 %v6887_v17, %v7634_v1  ;;  %v10320_v19 = vld [vmem:[#allocation49_spill] sm:$0xff] }
  0xf3   :  { %v1283_v36 = vmul.f32 %v6910_v28, %v7640_v33  ;;  %5720 = vrot.lane.b32.xlu1 %v7798_v41, %s6682_s24  ;;  %v1199_v54 = vadd.f32 %v1183_v42, %v1149_v62  ;;  %v1285_v56 = vmul.f32 %v6910_v28, %v7646_v37  ;;  %v1333_v15 = vmul.f32 %v6913_v29, %v7648_v51  ;;  %v10321_v42 = vld [vmem:[#allocation47_spill] sm:$0xff] }
  0xf4   :  { %v1201_v63 = vadd.f32 %v1185_v24, %v1151_v20  ;;  %v494_v10 = vadd.f32 %v478_v49, %v443_v16  ;;  %v496_v59 = vadd.f32 %v480_v23, %v445_v4  ;;  %v1335_v34 = vmul.f32 %v6913_v29, %v7650_v60  ;;  %v10322_v62 = vld [vmem:[#allocation19_spill] sm:$0xff]  ;;  %v10323_v20 = vld [vmem:[#allocation50_spill] sm:$0xff]  ;;  %v10324_v16 = vld [vmem:[#allocation20_spill] sm:$0xff] }
  0xf5   :  { %v1383_v1 = vmul.f32 %v6916_v30, %v7662_v45  ;;  %v1249_v33 = vadd.f32 %v1233_v50, %v1199_v54  ;;  %v1385_v2 = vmul.f32 %v6916_v30, %v7666_v14  ;;  %v1433_v32 = vmul.f32 %v6943_v46, %v7668_v47 }
  0xf6   :  { %v1251_v52 = vadd.f32 %v1235_v11, %v1201_v63  ;;  %v7822_v37 = vadd.f32 %v529_v55, %v494_v10  ;;  %v7824_v5 = vadd.f32 %v531_v39, %v496_v59  ;;  %v1435_v51 = vmul.f32 %v6943_v46, %v7670_v27  ;;  %v10319_v39 = vld [vmem:[#allocation34_spill] sm:$0xff] }
  0xf7   :  { %v1483_v60 = vmul.f32 %v10294_v13, %v7680_v26  ;;  %v1299_v49 = vadd.f32 %v1283_v36, %v1249_v33  ;;  %v1485_v23 = vmul.f32 %v10294_v13, %v7684_v25  ;;  %v1132_v14 = vmul.f32 %v6859_v6, %v7686_v21 }
  0xf8   :  { %v1301_v45 = vadd.f32 %v1285_v56, %v1251_v52  ;;  %v561_v47 = vmax.f32 %v7822_v37, 0.0  ;;  %v563_v55 = vmax.f32 %v7824_v5, 0.0  ;;  %v1134_v61 = vmul.f32 %v6859_v6, %v10319_v39 }
  0xf9   :  { %v1182_v27 = vmul.f32 %v6873_v12, %v10320_v19  ;;  %v1349_v40 = vadd.f32 %v1333_v15, %v1299_v49  ;;  %v1148_v24 = vadd.f32 %v1132_v14, %v10321_v42  ;;  %v1184_v25 = vmul.f32 %v6873_v12, %v10322_v62  ;;  %v10339_v62 = vld [vmem:[#allocation22_spill] sm:$0xff] }
  0xfa   :  { %v1351_v26 = vadd.f32 %v1335_v34, %v1301_v45  ;;  %v7847_v21 = vpack.i.bf16 %v563_v55, %v561_v47  ;;  %v1150_v50 = vadd.f32 %v1134_v61, %v10323_v20  ;;  %v1232_v6 = vmul.f32 %v6887_v17, %v10324_v16  ;;  %v10341_v16 = vld [vmem:[#allocation42_spill] sm:$0xff] }
  0xfb   :  { %v1234_v4 = vmul.f32 %v6887_v17, %v7719_v57  ;;  %v1399_v11 = vadd.f32 %v1383_v1, %v1349_v40  ;;  %v1198_v54 = vadd.f32 %v1182_v27, %v1148_v24  ;;  %v1282_v12 = vmul.f32 %v6910_v28, %v7724_v43  ;;  %v10331_v27 = vld [vmem:[#allocation28_spill] sm:$0xff] }
  0xfc   :  { %v1401_v36 = vadd.f32 %v1385_v2, %v1351_v26  ;;  %5715 = vrot.lane.b32.xlu0 %v7847_v21, %s6682_s24  ;;  %v1200_v63 = vadd.f32 %v1184_v25, %v1150_v50  ;;  %v1284_v56 = vmul.f32 %v6910_v28, %v7726_v18  ;;  %v1332_v34 = vmul.f32 %v6913_v29, %v7734_v8 }
  0xfd   :  { %v1449_v15 = vadd.f32 %v1433_v32, %v1399_v11  ;;  %v1248_v59 = vadd.f32 %v1232_v6, %v1198_v54  ;;  %v1334_v57 = vmul.f32 %v6913_v29, %v7736_v7  ;;  %v1382_v52 = vmul.f32 %v6916_v30, %v7746_v0  ;;  %v10345_v54 = vld [vmem:[#allocation31_spill] sm:$0xff] }
  0xfe   :  { %v1451_v10 = vadd.f32 %v1435_v51, %v1401_v36  ;;  %v1250_v17 = vadd.f32 %v1234_v4, %v1200_v63  ;;  %v1384_v28 = vmul.f32 %v6916_v30, %v7748_v22  ;;  %v1432_v8 = vmul.f32 %v6943_v46, %v7754_v53  ;;  %v10325_v30 = vld [vmem:[#allocation38_spill] sm:$0xff]  ;;  %v10329_v53 = vld [vmem:[#allocation27_spill] sm:$0xff]  ;;  %v10347_v63 = vld [vmem:[#allocation32_spill] sm:$0xff] }
  0xff   :  { %v1499_v1 = vadd.f32 %v1483_v60, %v1449_v15  ;;  %v1298_v43 = vadd.f32 %v1282_v12, %v1248_v59  ;;  %v1434_v29 = vmul.f32 %v6943_v46, %v7756_v35  ;;  %v1482_v7 = vmul.f32 %v10294_v13, %v7764_v38  ;;  %v10333_v35 = vld [vmem:[#allocation24_spill] sm:$0xff]  ;;  %v10335_v38 = vld [vmem:[#allocation25_spill] sm:$0xff]  ;;  %v10343_v4 = vld [vmem:[#allocation43_spill] sm:$0xff] }
 0x100   :  { %v1501_v33 = vadd.f32 %v1485_v23, %v1451_v10  ;;  %v1300_v2 = vadd.f32 %v1284_v56, %v1250_v17  ;;  %v1484_v0 = vmul.f32 %v10294_v13, %v7766_v31  ;;  %v10326_v22 = vmax.f32 %v10325_v30, 0.0  ;;  %v10327_v23 = vld [vmem:[#allocation40_spill] sm:$0xff]  ;;  %v10337_v13 = vld [vmem:[#allocation21_spill] sm:$0xff]  ;;  %v10351_v17 = vld [vmem:[#allocation46_spill] sm:$0xff] }
 0x101   :  { %v1515_v18 = vmax.f32 %v1499_v1, 0.0  ;;  %v1348_v51 = vadd.f32 %v1332_v34, %v1298_v43  ;;  %v10328_v14 = vmax.f32 %v10327_v23, 0.0  ;;  %v10330_v19 = vmax.f32 %v10329_v53, 0.0  ;;  %v10349_v59 = vld [vmem:[#allocation45_spill] sm:$0xff]  ;;  %v5666_v23 = vpop.permute.xlu1 %5665 }
 0x102   :  { %v1517_v32 = vmax.f32 %v1501_v33, 0.0  ;;  %v1350_v49 = vadd.f32 %v1334_v57, %v1300_v2  ;;  %v10332_v40 = vmax.f32 %v10331_v27, 0.0  ;;  %v10334_v26 = vmax.f32 %v10333_v35, 0.0  ;;  %v10353_v33 = vld [vmem:[#allocation51_spill] sm:$0xff] }
 0x103   :  { %v1398_v45 = vadd.f32 %v1382_v52, %v1348_v51  ;;  %v566_v39 = vpack.c.bf16 %v10328_v14, %v10326_v22  ;;  %v10336_v42 = vmax.f32 %v10335_v38, 0.0  ;;  %v10338_v31 = vmax.f32 %v10337_v13, 0.0  ;;  %v10355_v52 = vld [vmem:[#allocation52_spill] sm:$0xff]  ;;  %v10361_v14 = vld [vmem:[#allocation18_spill] sm:$0xff] }
 0x104   :  { %v7876_v60 = vpack.i.bf16 %v1517_v32, %v1515_v18  ;;  %v1400_v61 = vadd.f32 %v1384_v28, %v1350_v49  ;;  %v1519_v46 = vpack.c.bf16 %v10332_v40, %v10330_v19  ;;  %v10340_v25 = vmax.f32 %v10339_v62, 0.0  ;;  %v10365_v40 = vld [vmem:[#allocation41_spill] sm:$0xff] }
 0x105   :  { %v565_v24 = vpack.c.bf16 %v10336_v42, %v10334_v26  ;;  %v1448_v50 = vadd.f32 %v1432_v8, %v1398_v45  ;;  %842 = vmatprep.subr.bf16.mxu0 %v566_v39  ;;  %v10342_v6 = vmax.f32 %v10341_v16, 0.0  ;;  %v10344_v11 = vmax.f32 %v10343_v4, 0.0  ;;  %v10357_v8 = vld [vmem:[#allocation54_spill] sm:$0xff]  ;;  %v10359_v45 = vld [vmem:[#allocation55_spill] sm:$0xff]  ;;  %v10374_v4 = vld [vmem:[#allocation29_spill] sm:$0xff] }
 0x106   :  { %v1518_v20 = vpack.c.bf16 %v10340_v25, %v10338_v31  ;;  %5730 = vrot.lane.b32.xlu1 %v7876_v60, %s6682_s24  ;;  %v10346_v12 = vmax.f32 %v10345_v54, 0.0  ;;  %v10348_v56 = vmax.f32 %v10347_v63, 0.0  ;;  %v1450_v10 = vadd.f32 %v1434_v29, %v1400_v61  ;;  %1790 = vmatprep.subr.bf16.mxu1 %v1519_v46  ;;  %v10363_v61 = vld [vmem:[#allocation33_spill] sm:$0xff]  ;;  %v10368_v26 = vld [vmem:[#allocation58_spill] sm:$0xff]  ;;  %v10372_v31 = vld [vmem:[#allocation48_spill] sm:$0xff]  ;;  %v5656_v54 = vpop.permute.xlu0 %5655 }
 0x107   :  { %v568_v36 = vpack.c.bf16 %v10344_v11, %v10342_v6  ;;  %843 = vmatpush1.bf16.msra.mxu0 %v565_v24  ;;  %v10350_v34 = vmax.f32 %v10349_v59, 0.0  ;;  %v10352_v57 = vmax.f32 %v10351_v17, 0.0  ;;  %v10354_v43 = vmax.f32 %v10353_v33, 0.0  ;;  %v10366_v46 = vld [vmem:[#allocation57_spill] sm:$0xff]  ;;  %v10370_v24 = vld [vmem:[#allocation39_spill] sm:$0xff]  ;;  %v10379_v33 = vld [vmem:[#allocation56_spill] sm:$0xff] }
 0x108   :  { %v1521_v15 = vpack.c.bf16 %v10348_v56, %v10346_v12  ;;  %v10356_v2 = vmax.f32 %v10355_v52, 0.0  ;;  %v1498_v51 = vadd.f32 %v1482_v7, %v1448_v50  ;;  %1791 = vmatpush1.bf16.msra.mxu1 %v1518_v20  ;;  %v10358_v49 = vmax.f32 %v10357_v8, 0.0 }
 0x109   :  { %v567_v1 = vpack.c.bf16 %v10352_v57, %v10350_v34  ;;  %844 = vmatprep.subr.bf16.mxu0 %v568_v36  ;;  %v10360_v30 = vmax.f32 %v10359_v45, 0.0  ;;  %v1500_v22 = vadd.f32 %v1484_v0, %v1450_v10  ;;  %v10362_v39 = vmax.f32 %v10361_v14, 0.0  ;;  %v10378_v10 = vld [vmem:[#allocation23_spill] sm:$0xff]  ;;  %v10381_v45 = vld [vmem:[#allocation37_spill] sm:$0xff] }
 0x10a   :  { %v1520_v28 = vpack.c.bf16 %v10356_v2, %v10354_v43  ;;  %1792 = vmatprep.subr.bf16.mxu1 %v1521_v15  ;;  %v10364_v53 = vmax.f32 %v10363_v61, 0.0  ;;  %v1514_v27 = vmax.f32 %v1498_v51, 0.0  ;;  %5740 = vrot.lane.b32.xlu1 %v10365_v40, %s6683_s25  ;;  %v10367_v35 = vmax.f32 %v10366_v46, 0.0  ;;  %v10377_v15 = vld [vmem:[#allocation35_spill] sm:$0xff]  ;;  %v10380_v43 = vld [vmem:[#allocation30_spill] sm:$0xff] }
 0x10b   :  { %v570_v29 = vpack.c.bf16 %v10360_v30, %v10358_v49  ;;  %v1516_v7 = vmax.f32 %v1500_v22, 0.0  ;;  %845 = vmatpush1.bf16.msra.mxu0 %v567_v1  ;;  %v10369_v38 = vmax.f32 %v10368_v26, 0.0  ;;  %v605_v0 = vlaneseq  ;;  %v5671_v36 = vpop.permute.xlu1 %5670  ;;  %v10382_v30 = vld [vmem:[#allocation53_spill] sm:$0xff] }
 0x10c   :  { %v1523_v19 = vpack.c.bf16 %v10364_v53, %v10362_v39  ;;  %1793 = vmatpush1.bf16.msra.mxu1 %v1520_v28  ;;  %v10371_v13 = vmax.f32 %v10370_v24, 0.0  ;;  %v10373_v62 = vmax.f32 %v10372_v31, 0.0  ;;  %v572_v20 = vpack.c.bf16 %v564_v44, %v562_v3 }
 0x10d   :  { %v569_v42 = vpack.c.bf16 %v10369_v38, %v10367_v35  ;;  %846 = vmatprep.subr.bf16.mxu0 %v570_v29  ;;  %v7934_v50 = vpack.i.bf16 %v1516_v7, %v1514_v27  ;;  %v1525_v16 = vpack.c.bf16 %v1517_v32, %v1515_v18  ;;  %v7937_v6 = vand.u32 127, %v605_v0  ;;  %v10375_v32 = vld [vmem:[#allocation44_spill] sm:$0xff] }
 0x10e   :  { %v1522_v25 = vpack.c.bf16 %v10373_v62, %v10371_v13  ;;  %1794 = vmatprep.subr.bf16.mxu1 %v1523_v19  ;;  %5750 = vrot.lane.b32.xlu1 %v10374_v4, %s6683_s25  ;;  %v5668_v11 = vunpack.i.h.bf16 %v5666_v23  ;;  %v571_v58 = vpack.c.bf16 %v563_v55, %v561_v47  ;;  %v5667_v48 = vunpack.i.l.bf16 %v5666_v23  ;;  %v10376_v55 = vld [vmem:[#allocation26_spill] sm:$0xff]  ;;  %v10383_v29 = vld [vmem:[#allocation36_spill] sm:$0xff] }
 0x10f   :  { %5725 = vrot.lane.b32.xlu0 %v7934_v50, %s6682_s24  ;;  %847 = vmatpush1.bf16.msra.mxu0 %v569_v42  ;;  %vm607_vm0 = vcmp.lt.s32.totalorder %v7937_v6, 13  ;;  %v5673_v3 = vunpack.i.h.bf16 %v5671_v36  ;;  %v5672_v44 = vunpack.i.l.bf16 %v5671_v36  ;;  %v1524_v18 = vpack.c.bf16 %v1516_v7, %v1514_v27  ;;  %v6228_v36 = vld [vmem:[%s10063_s3 + $0x4] ss:$8 sps:$4 sm:$0xff]  }
 0x110   :  { %1795 = vmatpush1.bf16.msra.mxu1 %v1522_v25  ;;  %848 = vmatprep.subr.bf16.mxu0 %v572_v20  ;;  %v5658_v34 = vunpack.i.h.bf16 %v5656_v54  ;;  %v5657_v17 = vunpack.i.l.bf16 %v5656_v54  ;;  %vm664_vm1 = vcmp.lt.s32.totalorder %v7937_v6, 26  ;;  %vm721_vm2 = vcmp.lt.s32.totalorder %v7937_v6, 39 }
 0x111   :  { %1796 = vmatprep.subr.bf16.mxu1 %v1525_v16  ;;  %v1558_v12 = vsel %vm607_vm0, %v5667_v48, %v5672_v44  ;;  %v1559_v37 = vsel %vm607_vm0, %v5668_v11, %v5673_v3  ;;  %v1566_v5 = vsel %vm607_vm0, %v5672_v44, %v5667_v48  ;;  %v1567_v47 = vsel %vm607_vm0, %v5673_v3, %v5668_v11 }
 0x112   :  { %5760 = vrot.lane.b32.xlu1 %v10375_v32, %s6683_s25  ;;  %v1575_v63 = vpack.c.bf16 %v1559_v37, %v1558_v12  ;;  %v1574_v56 = vpack.c.bf16 %v1567_v47, %v1566_v5  ;;  %874 = vmatprep.mubr.bf16.mxu0 %v6228_v36  ;;  %vm971_vm3 = vcmp.lt.s32.totalorder %v7937_v6, 1  ;;  %vm1004_vm4 = vcmp.lt.s32.totalorder %v7937_v6, 2 }
 0x113   :  { %5735 = vrot.lane.b32.xlu0 %v10376_v55, %s6683_s25  ;;  %849 = vmatpush1.bf16.msra.mxu0 %v571_v58  ;;  %vm1037_vm5 = vcmp.lt.s32.totalorder %v7937_v6, 3  ;;  %vm3717_vm6 = vcmp.lt.s32.totalorder %v7937_v6, 28  ;;  %vm3760_vm7 = vcmp.lt.s32.totalorder %v7937_v6, 56  ;;  %vm3803_vm8 = vcmp.lt.s32.totalorder %v7937_v6, 84 }
 0x114   :  { %1797 = vmatpush1.bf16.msra.mxu1 %v1524_v18  ;;  %1822 = vmatprep.mubr.bf16.mxu1 %v6228_v36 }
 0x115   :  { %1798 = vmatprep.subr.bf16.mxu1 %v1575_v63 }
 0x116   :  { %5770 = vrot.lane.b32.xlu1 %v10377_v15, %s6683_s25  ;;  %v5661_v59 = vpop.permute.xlu0 %5660 }
 0x117   :  { %5745 = vrot.lane.b32.xlu0 %v10378_v10, %s6683_s25  ;;  %v5663_v57 = vunpack.i.h.bf16 %v5661_v59  ;;  %v5662_v1 = vunpack.i.l.bf16 %v5661_v59 }
 0x118   :  { %1799 = vmatpush1.bf16.msra.mxu1 %v1574_v56 }
 0x119   :  { %v608_v52 = vsel %vm607_vm0, %v5657_v17, %v5662_v1  ;;  %v609_v2 = vsel %vm607_vm0, %v5658_v34, %v5663_v57  ;;  %v616_v28 = vsel %vm607_vm0, %v5662_v1, %v5657_v17  ;;  %v617_v51 = vsel %vm607_vm0, %v5663_v57, %v5658_v34 }
 0x11a   :  { %5780 = vrot.lane.b32.xlu1 %v10379_v33, %s6683_s25  ;;  %v625_v8 = vpack.c.bf16 %v609_v2, %v608_v52  ;;  %v624_v49 = vpack.c.bf16 %v617_v51, %v616_v28 }
 0x11b   :  { %5755 = vrot.lane.b32.xlu0 %v10380_v43, %s6683_s25 }
 0x11c   :  { %850 = vmatprep.subr.bf16.mxu0 %v625_v8 }
 0x11d   :  { %851 = vmatpush1.bf16.msra.mxu0 %v624_v49  ;;  %v5681_v22 = vpop.permute.xlu1 %5680 }
 0x11e   :  { %5790 = vrot.lane.b32.xlu1 %v10381_v45, %s6683_s25  ;;  %v5683_v23 = vunpack.i.h.bf16 %v5681_v22  ;;  %v5682_v14 = vunpack.i.l.bf16 %v5681_v22 }
 0x11f   :  { %5765 = vrot.lane.b32.xlu0 %v10382_v30, %s6683_s25 }
 0x122   :  { %5800 = vrot.lane.b32.xlu1 %v7798_v41, %s6683_s25 }
 0x123   :  { %5775 = vrot.lane.b32.xlu0 %v10383_v29, %s6683_s25 }
 0x126   :  { %5810 = vrot.lane.b32.xlu1 %v7876_v60, %s6683_s25  ;;  %v5676_v39 = vpop.permute.xlu0 %5675 }
 0x127   :  { %5785 = vrot.lane.b32.xlu0 %v7742_v9, %s6683_s25  ;;  %v5678_v61 = vunpack.i.h.bf16 %v5676_v39  ;;  %v5677_v53 = vunpack.i.l.bf16 %v5676_v39 }
 0x129   :  { %v610_v19 = vsel %vm607_vm0, %v5677_v53, %v5682_v14  ;;  %v611_v27 = vsel %vm607_vm0, %v5678_v61, %v5683_v23  ;;  %v618_v7 = vsel %vm607_vm0, %v5682_v14, %v5677_v53  ;;  %v619_v46 = vsel %vm607_vm0, %v5683_v23, %v5678_v61 }
 0x12a   :  { %5820 = vrot.lane.b32.xlu1 %v10365_v40, %s6684_s6  ;;  %v627_v35 = vpack.c.bf16 %v611_v27, %v610_v19  ;;  %v626_v26 = vpack.c.bf16 %v619_v46, %v618_v7 }
 0x12b   :  { %5795 = vrot.lane.b32.xlu0 %v7847_v21, %s6683_s25 }
 0x12c   :  { %852 = vmatprep.subr.bf16.mxu0 %v627_v35 }
 0x12d   :  { %853 = vmatpush1.bf16.msra.mxu0 %v626_v26 }
 0x12e   :  { %5830 = vrot.lane.b32.xlu1 %v10374_v4, %s6684_s6 }
 0x12f   :  { %5805 = vrot.lane.b32.xlu0 %v7934_v50, %s6683_s25  ;;  %v5691_v40 = vpop.permute.xlu1 %5690 }
 0x130   :  { %v5693_v38 = vunpack.i.h.bf16 %v5691_v40  ;;  %v5692_v42 = vunpack.i.l.bf16 %v5691_v40 }
 0x132   :  { %5840 = vrot.lane.b32.xlu1 %v10375_v32, %s6684_s6 }
 0x133   :  { %5815 = vrot.lane.b32.xlu0 %v10376_v55, %s6684_s6 }
 0x136   :  { %5850 = vrot.lane.b32.xlu1 %v10377_v15, %s6684_s6 }
 0x137   :  { %5825 = vrot.lane.b32.xlu0 %v10378_v10, %s6684_s6 }
 0x13a   :  { %5860 = vrot.lane.b32.xlu1 %v10379_v33, %s6684_s6  ;;  %v5686_v24 = vpop.permute.xlu0 %5685 }
 0x13b   :  { %5835 = vrot.lane.b32.xlu0 %v10380_v43, %s6684_s6  ;;  %v5688_v13 = vunpack.i.h.bf16 %v5686_v24  ;;  %v5687_v31 = vunpack.i.l.bf16 %v5686_v24 }
 0x13d   :  { %v1560_v62 = vsel %vm607_vm0, %v5687_v31, %v5692_v42  ;;  %v1561_v25 = vsel %vm607_vm0, %v5688_v13, %v5693_v38  ;;  %v1568_v20 = vsel %vm607_vm0, %v5692_v42, %v5687_v31  ;;  %v1569_v16 = vsel %vm607_vm0, %v5693_v38, %v5688_v13 }
 0x13e   :  { %5870 = vrot.lane.b32.xlu1 %v10381_v45, %s6684_s6  ;;  %v1577_v4 = vpack.c.bf16 %v1561_v25, %v1560_v62  ;;  %v1576_v11 = vpack.c.bf16 %v1569_v16, %v1568_v20 }
 0x13f   :  { %5845 = vrot.lane.b32.xlu0 %v10382_v30, %s6684_s6 }
 0x140   :  { %1800 = vmatprep.subr.bf16.mxu1 %v1577_v4 }
 0x141   :  { %1801 = vmatpush1.bf16.msra.mxu1 %v1576_v11  ;;  %v5701_v58 = vpop.permute.xlu1 %5700 }
 0x142   :  { %5880 = vrot.lane.b32.xlu1 %v7798_v41, %s6684_s6  ;;  %v5703_v41 = vunpack.i.h.bf16 %v5701_v58  ;;  %v5702_v48 = vunpack.i.l.bf16 %v5701_v58 }
 0x143   :  { %5855 = vrot.lane.b32.xlu0 %v10383_v29, %s6684_s6 }
 0x146   :  { %5890 = vrot.lane.b32.xlu1 %v7876_v60, %s6684_s6 }
 0x147   :  { %5865 = vrot.lane.b32.xlu0 %v7742_v9, %s6684_s6 }
 0x14a   :  { %v5696_v3 = vpop.permute.xlu0 %5695 }
 0x14b   :  { %5875 = vrot.lane.b32.xlu0 %v7847_v21, %s6684_s6  ;;  %v5698_v44 = vunpack.i.h.bf16 %v5696_v3  ;;  %v5697_v18 = vunpack.i.l.bf16 %v5696_v3 }
 0x14d   :  { %v612_v60 = vsel %vm607_vm0, %v5697_v18, %v5702_v48  ;;  %v613_v32 = vsel %vm607_vm0, %v5698_v44, %v5703_v41  ;;  %v620_v9 = vsel %vm607_vm0, %v5702_v48, %v5697_v18  ;;  %v621_v21 = vsel %vm607_vm0, %v5703_v41, %v5698_v44 }
 0x14e   :  { %v629_v54 = vpack.c.bf16 %v613_v32, %v612_v60  ;;  %v628_v12 = vpack.c.bf16 %v621_v21, %v620_v9 }
 0x14f   :  { %5885 = vrot.lane.b32.xlu0 %v7934_v50, %s6684_s6 }
 0x150   :  { %854 = vmatprep.subr.bf16.mxu0 %v629_v54 }
 0x151   :  { %855 = vmatpush1.bf16.msra.mxu0 %v628_v12 }
 0x154   :  { %v5711_v37 = vpop.permute.xlu1 %5710 }
 0x155   :  { %v5713_v5 = vunpack.i.h.bf16 %v5711_v37  ;;  %v5712_v47 = vunpack.i.l.bf16 %v5711_v37 }
 0x15f   :  { %v5706_v50 = vpop.permute.xlu0 %5705 }
 0x160   :  { %v5708_v55 = vunpack.i.h.bf16 %v5706_v50  ;;  %v5707_v63 = vunpack.i.l.bf16 %v5706_v50 }
 0x162   :  { %v1562_v56 = vsel %vm607_vm0, %v5707_v63, %v5712_v47  ;;  %v1563_v15 = vsel %vm607_vm0, %v5708_v55, %v5713_v5  ;;  %v1570_v10 = vsel %vm607_vm0, %v5712_v47, %v5707_v63  ;;  %v1571_v59 = vsel %vm607_vm0, %v5713_v5, %v5708_v55 }
 0x163   :  { %v1579_v34 = vpack.c.bf16 %v1563_v15, %v1562_v56  ;;  %v1578_v17 = vpack.c.bf16 %v1571_v59, %v1570_v10 }
 0x165   :  { %1802 = vmatprep.subr.bf16.mxu1 %v1579_v34  ;;  %v5721_v57 = vpop.permute.xlu1 %5720 }
 0x166   :  { %1803 = vmatpush1.bf16.msra.mxu1 %v1578_v17  ;;  %v5723_v1 = vunpack.i.h.bf16 %v5721_v57  ;;  %v5722_v33 = vunpack.i.l.bf16 %v5721_v57 }
 0x16e   :  { %v5716_v43 = vpop.permute.xlu0 %5715 }
 0x16f   :  { %v5718_v52 = vunpack.i.h.bf16 %v5716_v43  ;;  %v5717_v2 = vunpack.i.l.bf16 %v5716_v43 }
 0x171   :  { %v614_v28 = vsel %vm607_vm0, %v5717_v2, %v5722_v33  ;;  %v615_v51 = vsel %vm607_vm0, %v5718_v52, %v5723_v1  ;;  %v622_v8 = vsel %vm607_vm0, %v5722_v33, %v5717_v2  ;;  %v623_v49 = vsel %vm607_vm0, %v5723_v1, %v5718_v52 }
 0x172   :  { %v631_v45 = vpack.c.bf16 %v615_v51, %v614_v28  ;;  %v630_v30 = vpack.c.bf16 %v623_v49, %v622_v8 }
 0x174   :  { %856 = vmatprep.subr.bf16.mxu0 %v631_v45 }
 0x175   :  { %857 = vmatpush1.bf16.msra.mxu0 %v630_v30 }
 0x178   :  { %v5731_v29 = vpop.permute.xlu1 %5730 }
 0x179   :  { %v5733_v23 = vunpack.i.h.bf16 %v5731_v29  ;;  %v5732_v14 = vunpack.i.l.bf16 %v5731_v29 }
 0x17c   :  { %v5741_v22 = vpop.permute.xlu1 %5740 }
 0x17d   :  { %v5743_v27 = vunpack.i.h.bf16 %v5741_v22  ;;  %v5742_v7 = vunpack.i.l.bf16 %v5741_v22 }
 0x180   :  { %v5751_v39 = vpop.permute.xlu1 %5750 }
 0x181   :  { %v5726_v61 = vpop.permute.xlu0 %5725  ;;  %v5753_v25 = vunpack.i.h.bf16 %v5751_v39  ;;  %v5752_v20 = vunpack.i.l.bf16 %v5751_v39 }
 0x182   :  { %v5728_v53 = vunpack.i.h.bf16 %v5726_v61  ;;  %v5727_v19 = vunpack.i.l.bf16 %v5726_v61 }
 0x184   :  { %v1564_v46 = vsel %vm607_vm0, %v5727_v19, %v5732_v14  ;;  %v1565_v35 = vsel %vm607_vm0, %v5728_v53, %v5733_v23  ;;  %v1572_v26 = vsel %vm607_vm0, %v5732_v14, %v5727_v19  ;;  %v1573_v40 = vsel %vm607_vm0, %v5733_v23, %v5728_v53  ;;  %v5761_v38 = vpop.permute.xlu1 %5760 }
 0x185   :  { %v5736_v42 = vpop.permute.xlu0 %5735  ;;  %v1581_v24 = vpack.c.bf16 %v1565_v35, %v1564_v46  ;;  %v1580_v13 = vpack.c.bf16 %v1573_v40, %v1572_v26  ;;  %v5763_v60 = vunpack.i.h.bf16 %v5761_v38  ;;  %v5762_v32 = vunpack.i.l.bf16 %v5761_v38 }
 0x186   :  { %v5738_v31 = vunpack.i.h.bf16 %v5736_v42  ;;  %v5737_v62 = vunpack.i.l.bf16 %v5736_v42 }
 0x187   :  { %1804 = vmatprep.subr.bf16.mxu1 %v1581_v24 }
 0x188   :  { %1805 = vmatpush1.bf16.msra.mxu1 %v1580_v13  ;;  %v665_v16 = vsel %vm664_vm1, %v5737_v62, %v5742_v7  ;;  %v666_v4 = vsel %vm664_vm1, %v5738_v31, %v5743_v27  ;;  %v673_v11 = vsel %vm664_vm1, %v5742_v7, %v5737_v62  ;;  %v674_v36 = vsel %vm664_vm1, %v5743_v27, %v5738_v31  ;;  %v5771_v58 = vpop.permute.xlu1 %5770 }
 0x189   :  { %v5746_v41 = vpop.permute.xlu0 %5745  ;;  %v682_v48 = vpack.c.bf16 %v666_v4, %v665_v16  ;;  %v681_v3 = vpack.c.bf16 %v674_v36, %v673_v11  ;;  %v5773_v56 = vunpack.i.h.bf16 %v5771_v58  ;;  %v5772_v15 = vunpack.i.l.bf16 %v5771_v58 }
 0x18a   :  { %v5748_v44 = vunpack.i.h.bf16 %v5746_v41  ;;  %v5747_v18 = vunpack.i.l.bf16 %v5746_v41 }
 0x18b   :  { %858 = vmatprep.subr.bf16.mxu0 %v682_v48 }
 0x18c   :  { %859 = vmatpush1.bf16.msra.mxu0 %v681_v3  ;;  %v1614_v9 = vsel %vm664_vm1, %v5747_v18, %v5752_v20  ;;  %v1615_v21 = vsel %vm664_vm1, %v5748_v44, %v5753_v25  ;;  %v1622_v54 = vsel %vm664_vm1, %v5752_v20, %v5747_v18  ;;  %v1623_v12 = vsel %vm664_vm1, %v5753_v25, %v5748_v44  ;;  %v5781_v37 = vpop.permute.xlu1 %5780 }
 0x18d   :  { %v5756_v5 = vpop.permute.xlu0 %5755  ;;  %v1631_v47 = vpack.c.bf16 %v1615_v21, %v1614_v9  ;;  %v1630_v50 = vpack.c.bf16 %v1623_v12, %v1622_v54  ;;  %v5783_v28 = vunpack.i.h.bf16 %v5781_v37  ;;  %v5782_v51 = vunpack.i.l.bf16 %v5781_v37 }
 0x18e   :  { %v5758_v55 = vunpack.i.h.bf16 %v5756_v5  ;;  %v5757_v63 = vunpack.i.l.bf16 %v5756_v5 }
 0x18f   :  { %1806 = vmatprep.subr.bf16.mxu1 %v1631_v47 }
 0x190   :  { %1807 = vmatpush1.bf16.msra.mxu1 %v1630_v50  ;;  %v667_v10 = vsel %vm664_vm1, %v5757_v63, %v5762_v32  ;;  %v668_v59 = vsel %vm664_vm1, %v5758_v55, %v5763_v60  ;;  %v675_v34 = vsel %vm664_vm1, %v5762_v32, %v5757_v63  ;;  %v676_v17 = vsel %vm664_vm1, %v5763_v60, %v5758_v55  ;;  %v5791_v57 = vpop.permute.xlu1 %5790 }
 0x191   :  { %v5766_v1 = vpop.permute.xlu0 %5765  ;;  %v684_v33 = vpack.c.bf16 %v668_v59, %v667_v10  ;;  %v683_v43 = vpack.c.bf16 %v676_v17, %v675_v34  ;;  %v5793_v53 = vunpack.i.h.bf16 %v5791_v57  ;;  %v5792_v19 = vunpack.i.l.bf16 %v5791_v57 }
 0x192   :  { %v5768_v52 = vunpack.i.h.bf16 %v5766_v1  ;;  %v5767_v2 = vunpack.i.l.bf16 %v5766_v1 }
 0x193   :  { %860 = vmatprep.subr.bf16.mxu0 %v684_v33 }
 0x194   :  { %861 = vmatpush1.bf16.msra.mxu0 %v683_v43  ;;  %v1616_v8 = vsel %vm664_vm1, %v5767_v2, %v5772_v15  ;;  %v1617_v49 = vsel %vm664_vm1, %v5768_v52, %v5773_v56  ;;  %v1624_v45 = vsel %vm664_vm1, %v5772_v15, %v5767_v2  ;;  %v1625_v30 = vsel %vm664_vm1, %v5773_v56, %v5768_v52  ;;  %v5801_v29 = vpop.permute.xlu1 %5800 }
 0x195   :  { %v5776_v22 = vpop.permute.xlu0 %5775  ;;  %v1633_v23 = vpack.c.bf16 %v1617_v49, %v1616_v8  ;;  %v1632_v14 = vpack.c.bf16 %v1625_v30, %v1624_v45  ;;  %v5803_v31 = vunpack.i.h.bf16 %v5801_v29  ;;  %v5802_v62 = vunpack.i.l.bf16 %v5801_v29 }
 0x196   :  { %v5778_v39 = vunpack.i.h.bf16 %v5776_v22  ;;  %v5777_v61 = vunpack.i.l.bf16 %v5776_v22 }
 0x197   :  { %1808 = vmatprep.subr.bf16.mxu1 %v1633_v23 }
 0x198   :  { %1809 = vmatpush1.bf16.msra.mxu1 %v1632_v14  ;;  %v669_v27 = vsel %vm664_vm1, %v5777_v61, %v5782_v51  ;;  %v670_v7 = vsel %vm664_vm1, %v5778_v39, %v5783_v28  ;;  %v677_v46 = vsel %vm664_vm1, %v5782_v51, %v5777_v61  ;;  %v678_v35 = vsel %vm664_vm1, %v5783_v28, %v5778_v39  ;;  %v5811_v26 = vpop.permute.xlu1 %5810 }
 0x199   :  { %v5786_v40 = vpop.permute.xlu0 %5785  ;;  %v686_v38 = vpack.c.bf16 %v670_v7, %v669_v27  ;;  %v685_v42 = vpack.c.bf16 %v678_v35, %v677_v46  ;;  %v5813_v44 = vunpack.i.h.bf16 %v5811_v26  ;;  %v5812_v18 = vunpack.i.l.bf16 %v5811_v26 }
 0x19a   :  { %v5788_v24 = vunpack.i.h.bf16 %v5786_v40  ;;  %v5787_v13 = vunpack.i.l.bf16 %v5786_v40 }
 0x19b   :  { %862 = vmatprep.subr.bf16.mxu0 %v686_v38 }
 0x19c   :  { %863 = vmatpush1.bf16.msra.mxu0 %v685_v42  ;;  %v1618_v25 = vsel %vm664_vm1, %v5787_v13, %v5792_v19  ;;  %v1619_v20 = vsel %vm664_vm1, %v5788_v24, %v5793_v53  ;;  %v1626_v16 = vsel %vm664_vm1, %v5792_v19, %v5787_v13  ;;  %v1627_v4 = vsel %vm664_vm1, %v5793_v53, %v5788_v24  ;;  %v5821_v11 = vpop.permute.xlu1 %5820 }
 0x19d   :  { %v5796_v36 = vpop.permute.xlu0 %5795  ;;  %v1635_v58 = vpack.c.bf16 %v1619_v20, %v1618_v25  ;;  %v1634_v41 = vpack.c.bf16 %v1627_v4, %v1626_v16  ;;  %v5823_v55 = vunpack.i.h.bf16 %v5821_v11  ;;  %v5822_v63 = vunpack.i.l.bf16 %v5821_v11 }
 0x19e   :  { %v5798_v48 = vunpack.i.h.bf16 %v5796_v36  ;;  %v5797_v3 = vunpack.i.l.bf16 %v5796_v36 }
 0x19f   :  { %1810 = vmatprep.subr.bf16.mxu1 %v1635_v58 }
 0x1a0   :  { %1811 = vmatpush1.bf16.msra.mxu1 %v1634_v41  ;;  %v671_v60 = vsel %vm664_vm1, %v5797_v3, %v5802_v62  ;;  %v672_v32 = vsel %vm664_vm1, %v5798_v48, %v5803_v31  ;;  %v679_v9 = vsel %vm664_vm1, %v5802_v62, %v5797_v3  ;;  %v680_v21 = vsel %vm664_vm1, %v5803_v31, %v5798_v48  ;;  %v5831_v54 = vpop.permute.xlu1 %5830 }
 0x1a1   :  { %v5806_v12 = vpop.permute.xlu0 %5805  ;;  %v688_v37 = vpack.c.bf16 %v672_v32, %v671_v60  ;;  %v687_v5 = vpack.c.bf16 %v680_v21, %v679_v9  ;;  %v5833_v52 = vunpack.i.h.bf16 %v5831_v54  ;;  %v5832_v2 = vunpack.i.l.bf16 %v5831_v54 }
 0x1a2   :  { %v5808_v47 = vunpack.i.h.bf16 %v5806_v12  ;;  %v5807_v50 = vunpack.i.l.bf16 %v5806_v12 }
 0x1a3   :  { %864 = vmatprep.subr.bf16.mxu0 %v688_v37 }
 0x1a4   :  { %865 = vmatpush1.bf16.msra.mxu0 %v687_v5  ;;  %v1620_v56 = vsel %vm664_vm1, %v5807_v50, %v5812_v18  ;;  %v1621_v15 = vsel %vm664_vm1, %v5808_v47, %v5813_v44  ;;  %v1628_v10 = vsel %vm664_vm1, %v5812_v18, %v5807_v50  ;;  %v1629_v59 = vsel %vm664_vm1, %v5813_v44, %v5808_v47  ;;  %v5841_v34 = vpop.permute.xlu1 %5840 }
 0x1a5   :  { %v5816_v17 = vpop.permute.xlu0 %5815  ;;  %v1637_v57 = vpack.c.bf16 %v1621_v15, %v1620_v56  ;;  %v1636_v1 = vpack.c.bf16 %v1629_v59, %v1628_v10  ;;  %v5843_v39 = vunpack.i.h.bf16 %v5841_v34  ;;  %v5842_v61 = vunpack.i.l.bf16 %v5841_v34 }
 0x1a6   :  { %v5818_v33 = vunpack.i.h.bf16 %v5816_v17  ;;  %v5817_v43 = vunpack.i.l.bf16 %v5816_v17 }
 0x1a7   :  { %1812 = vmatprep.subr.bf16.mxu1 %v1637_v57 }
 0x1a8   :  { %1813 = vmatpush1.bf16.msra.mxu1 %v1636_v1  ;;  %v722_v28 = vsel %vm721_vm2, %v5817_v43, %v5822_v63  ;;  %v723_v51 = vsel %vm721_vm2, %v5818_v33, %v5823_v55  ;;  %v730_v8 = vsel %vm721_vm2, %v5822_v63, %v5817_v43  ;;  %v731_v49 = vsel %vm721_vm2, %v5823_v55, %v5818_v33  ;;  %v5851_v45 = vpop.permute.xlu1 %5850 }
 0x1a9   :  { %v5826_v30 = vpop.permute.xlu0 %5825  ;;  %v739_v29 = vpack.c.bf16 %v723_v51, %v722_v28  ;;  %v738_v22 = vpack.c.bf16 %v731_v49, %v730_v8  ;;  %v5853_v24 = vunpack.i.h.bf16 %v5851_v45  ;;  %v5852_v13 = vunpack.i.l.bf16 %v5851_v45 }
 0x1aa   :  { %v5828_v23 = vunpack.i.h.bf16 %v5826_v30  ;;  %v5827_v14 = vunpack.i.l.bf16 %v5826_v30 }
 0x1ab   :  { %866 = vmatprep.subr.bf16.mxu0 %v739_v29 }
 0x1ac   :  { %867 = vmatpush1.bf16.msra.mxu0 %v738_v22  ;;  %v1670_v53 = vsel %vm721_vm2, %v5827_v14, %v5832_v2  ;;  %v1671_v19 = vsel %vm721_vm2, %v5828_v23, %v5833_v52  ;;  %v1678_v27 = vsel %vm721_vm2, %v5832_v2, %v5827_v14  ;;  %v1679_v7 = vsel %vm721_vm2, %v5833_v52, %v5828_v23  ;;  %v5861_v46 = vpop.permute.xlu1 %5860 }
 0x1ad   :  { %v5836_v35 = vpop.permute.xlu0 %5835  ;;  %v1687_v26 = vpack.c.bf16 %v1671_v19, %v1670_v53  ;;  %v1686_v40 = vpack.c.bf16 %v1679_v7, %v1678_v27  ;;  %v5863_v48 = vunpack.i.h.bf16 %v5861_v46  ;;  %v5862_v3 = vunpack.i.l.bf16 %v5861_v46 }
 0x1ae   :  { %v5838_v38 = vunpack.i.h.bf16 %v5836_v35  ;;  %v5837_v42 = vunpack.i.l.bf16 %v5836_v35 }
 0x1af   :  { %1814 = vmatprep.subr.bf16.mxu1 %v1687_v26  ;;  %v6226_v26 = vld [vmem:[%s10063_s3] ss:$8 sps:$4 sm:$0xff]  }
 0x1b0   :  { %1815 = vmatpush1.bf16.msra.mxu1 %v1686_v40  ;;  %v724_v31 = vsel %vm721_vm2, %v5837_v42, %v5842_v61  ;;  %v725_v62 = vsel %vm721_vm2, %v5838_v38, %v5843_v39  ;;  %v732_v25 = vsel %vm721_vm2, %v5842_v61, %v5837_v42  ;;  %v733_v20 = vsel %vm721_vm2, %v5843_v39, %v5838_v38  ;;  %v5871_v16 = vpop.permute.xlu1 %5870 }
 0x1b1   :  { %v5846_v4 = vpop.permute.xlu0 %5845  ;;  %v741_v11 = vpack.c.bf16 %v725_v62, %v724_v31  ;;  %v740_v36 = vpack.c.bf16 %v733_v20, %v732_v25  ;;  %v5873_v47 = vunpack.i.h.bf16 %v5871_v16  ;;  %v5872_v50 = vunpack.i.l.bf16 %v5871_v16  ;;  %v6231_v25 = vld [vmem:[%s10063_s3 + $0x10] ss:$8 sps:$4 sm:$0xff]   ;;  %v6232_v20 = vld [vmem:[%s10063_s3 + $0x24] ss:$8 sps:$4 sm:$0xff]   ;;  %v6234_v16 = vld [vmem:[%s10063_s3 + $0x20] ss:$8 sps:$4 sm:$0xff]  }
 0x1b2   :  { %v5848_v58 = vunpack.i.h.bf16 %v5846_v4  ;;  %v5847_v41 = vunpack.i.l.bf16 %v5846_v4  ;;  %v6235_v4 = vld [vmem:[%s10063_s3 + $0x34] ss:$8 sps:$4 sm:$0xff]  }
 0x1b3   :  { %868 = vmatprep.subr.bf16.mxu0 %v741_v11  ;;  %v6237_v11 = vld [vmem:[%s10063_s3 + $0x30] ss:$8 sps:$4 sm:$0xff]  }
 0x1b4   :  { %869 = vmatpush1.bf16.msra.mxu0 %v740_v36  ;;  %v1672_v44 = vsel %vm721_vm2, %v5847_v41, %v5852_v13  ;;  %v1673_v18 = vsel %vm721_vm2, %v5848_v58, %v5853_v24  ;;  %v1680_v60 = vsel %vm721_vm2, %v5852_v13, %v5847_v41  ;;  %v1681_v32 = vsel %vm721_vm2, %v5853_v24, %v5848_v58  ;;  %v5881_v5 = vpop.permute.xlu1 %5880  ;;  %v6229_v13 = vld [vmem:[%s10063_s3 + $0x14] ss:$8 sps:$4 sm:$0xff]   ;;  %v6238_v36 = vld [vmem:[%s10063_s3 + $0x44] ss:$8 sps:$4 sm:$0xff]   ;;  %v6240_v58 = vld [vmem:[%s10063_s3 + $0x40] ss:$8 sps:$4 sm:$0xff]  }
 0x1b5   :  { %v5856_v9 = vpop.permute.xlu0 %5855  ;;  %v1689_v21 = vpack.c.bf16 %v1673_v18, %v1672_v44  ;;  %v1688_v54 = vpack.c.bf16 %v1681_v32, %v1680_v60  ;;  %v5883_v1 = vunpack.i.h.bf16 %v5881_v5  ;;  %v5882_v33 = vunpack.i.l.bf16 %v5881_v5  ;;  %v6241_v41 = vld [vmem:[%s10063_s3 + $0x54] ss:$8 sps:$4 sm:$0xff]   ;;  %v6246_v44 = vld [vmem:[%s10063_s3 + $0x60] ss:$8 sps:$4 sm:$0xff]   ;;  %v6249_v60 = vld [vmem:[%s10063_s3 + $0x70] ss:$8 sps:$4 sm:$0xff]  }
 0x1b6   :  { %v5858_v12 = vunpack.i.h.bf16 %v5856_v9  ;;  %v5857_v37 = vunpack.i.l.bf16 %v5856_v9  ;;  %v6247_v18 = vld [vmem:[%s10063_s3 + $0x74] ss:$8 sps:$4 sm:$0xff]  }
 0x1b7   :  { %1816 = vmatprep.subr.bf16.mxu1 %v1689_v21 }
 0x1b8   :  { %1817 = vmatpush1.bf16.msra.mxu1 %v1688_v54  ;;  %v726_v55 = vsel %vm721_vm2, %v5857_v37, %v5862_v3  ;;  %v727_v63 = vsel %vm721_vm2, %v5858_v12, %v5863_v48  ;;  %v734_v56 = vsel %vm721_vm2, %v5862_v3, %v5857_v37  ;;  %v735_v15 = vsel %vm721_vm2, %v5863_v48, %v5858_v12  ;;  %v5891_v51 = vpop.permute.xlu1 %5890  ;;  %v6243_v48 = vld [vmem:[%s10063_s3 + $0x50] ss:$8 sps:$4 sm:$0xff]   ;;  %v6244_v3 = vld [vmem:[%s10063_s3 + $0x64] ss:$8 sps:$4 sm:$0xff]   ;;  %s6685_s3 = smov 1  }
 0x1b9   :  { %v5866_v10 = vpop.permute.xlu0 %5865  ;;  %v743_v59 = vpack.c.bf16 %v727_v63, %v726_v55  ;;  %v742_v34 = vpack.c.bf16 %v735_v15, %v734_v56  ;;  %v5893_v22 = vunpack.i.h.bf16 %v5891_v51  ;;  %v5892_v23 = vunpack.i.l.bf16 %v5891_v51 }
 0x1ba   :  { %v5868_v17 = vunpack.i.h.bf16 %v5866_v10  ;;  %v5867_v57 = vunpack.i.l.bf16 %v5866_v10 }
 0x1bb   :  { %870 = vmatprep.subr.bf16.mxu0 %v743_v59 }
 0x1bc   :  { %871 = vmatpush1.bf16.msra.mxu0 %v742_v34  ;;  %v1674_v43 = vsel %vm721_vm2, %v5867_v57, %v5872_v50  ;;  %v1675_v52 = vsel %vm721_vm2, %v5868_v17, %v5873_v47  ;;  %v1682_v2 = vsel %vm721_vm2, %v5872_v50, %v5867_v57  ;;  %v1683_v28 = vsel %vm721_vm2, %v5873_v47, %v5868_v17 }
 0x1bd   :  { %v5876_v8 = vpop.permute.xlu0 %5875  ;;  %v1691_v49 = vpack.c.bf16 %v1675_v52, %v1674_v43  ;;  %v1690_v45 = vpack.c.bf16 %v1683_v28, %v1682_v2 }
 0x1be   :  { %v5878_v30 = vunpack.i.h.bf16 %v5876_v8  ;;  %v5877_v29 = vunpack.i.l.bf16 %v5876_v8 }
 0x1bf   :  { %1818 = vmatprep.subr.bf16.mxu1 %v1691_v49 }
 0x1c0   :  { %1819 = vmatpush1.bf16.msra.mxu1 %v1690_v45  ;;  %v728_v14 = vsel %vm721_vm2, %v5877_v29, %v5882_v33  ;;  %v729_v39 = vsel %vm721_vm2, %v5878_v30, %v5883_v1  ;;  %v736_v61 = vsel %vm721_vm2, %v5882_v33, %v5877_v29  ;;  %v737_v53 = vsel %vm721_vm2, %v5883_v1, %v5878_v30 }
 0x1c1   :  { %v5886_v19 = vpop.permute.xlu0 %5885  ;;  %v745_v27 = vpack.c.bf16 %v729_v39, %v728_v14  ;;  %v744_v7 = vpack.c.bf16 %v737_v53, %v736_v61 }
 0x1c2   :  { %v5888_v46 = vunpack.i.h.bf16 %v5886_v19  ;;  %v5887_v35 = vunpack.i.l.bf16 %v5886_v19 }
 0x1c3   :  { %872 = vmatprep.subr.bf16.mxu0 %v745_v27 }
 0x1c4   :  { %873 = vmatpush1.bf16.msra.mxu0 %v744_v7  ;;  %v1676_v40 = vsel %vm721_vm2, %v5887_v35, %v5892_v23  ;;  %v1677_v38 = vsel %vm721_vm2, %v5888_v46, %v5893_v22  ;;  %v1684_v42 = vsel %vm721_vm2, %v5892_v23, %v5887_v35  ;;  %v1685_v24 = vsel %vm721_vm2, %v5893_v22, %v5888_v46 }
 0x1c5   :  { %v1693_v31 = vpack.c.bf16 %v1677_v38, %v1676_v40  ;;  %v1692_v62 = vpack.c.bf16 %v1685_v24, %v1684_v42 }
 0x1c7   :  { %875 = vmatmul.mubr.bf16.vlgmr.msra.gmra.mrb[0].mxu0 %v6226_v26  ;;  %1820 = vmatprep.subr.bf16.mxu1 %v1693_v31 }
 0x1c8   :  { %1821 = vmatpush1.bf16.msra.mxu1 %v1692_v62  ;;  %884 = vmatprep.mubr.bf16.mxu0 %v6229_v13 }
 0x1cb   :  { %1823 = vmatmul.mubr.bf16.vlgmr.msra.gmra.mrb[0].mxu1 %v6226_v26 }
 0x1cc   :  { %1832 = vmatprep.mubr.bf16.mxu1 %v6229_v13 }
 0x1cf   :  { %885 = vmatmul.mubr.bf16.gmra.mrb[4].mxu0 %v6231_v25 }
 0x1d0   :  { %894 = vmatprep.mubr.bf16.mxu0 %v6232_v20 }
 0x1d3   :  { %1833 = vmatmul.mubr.bf16.gmra.mrb[4].mxu1 %v6231_v25 }
 0x1d4   :  { %1842 = vmatprep.mubr.bf16.mxu1 %v6232_v20 }
 0x1d7   :  { %895 = vmatmul.mubr.bf16.gmra.mrb[8].mxu0 %v6234_v16 }
 0x1d8   :  { %904 = vmatprep.mubr.bf16.mxu0 %v6235_v4 }
 0x1db   :  { %1843 = vmatmul.mubr.bf16.gmra.mrb[8].mxu1 %v6234_v16 }
 0x1dc   :  { %1852 = vmatprep.mubr.bf16.mxu1 %v6235_v4 }
 0x1df   :  { %905 = vmatmul.mubr.bf16.gmra.mrb[12].mxu0 %v6237_v11 }
 0x1e0   :  { %914 = vmatprep.mubr.bf16.mxu0 %v6238_v36 }
 0x1e3   :  { %1853 = vmatmul.mubr.bf16.gmra.mrb[12].mxu1 %v6237_v11 }
 0x1e4   :  { %1862 = vmatprep.mubr.bf16.mxu1 %v6238_v36 }
 0x1e7   :  { %915 = vmatmul.mubr.bf16.gmra.mrb[16].mxu0 %v6240_v58 }
 0x1e8   :  { %924 = vmatprep.mubr.bf16.mxu0 %v6241_v41 }
 0x1eb   :  { %1863 = vmatmul.mubr.bf16.gmra.mrb[16].mxu1 %v6240_v58 }
 0x1ec   :  { %1872 = vmatprep.mubr.bf16.mxu1 %v6241_v41 }
 0x1ef   :  { %925 = vmatmul.mubr.bf16.gmra.mrb[20].mxu0 %v6243_v48 }
 0x1f0   :  { %934 = vmatprep.mubr.bf16.mxu0 %v6244_v3 }
 0x1f3   :  { %1873 = vmatmul.mubr.bf16.gmra.mrb[20].mxu1 %v6243_v48 }
 0x1f4   :  { %1882 = vmatprep.mubr.bf16.mxu1 %v6244_v3 }
 0x1f7   :  { %935 = vmatmul.mubr.bf16.gmra.mrb[24].mxu0 %v6246_v44 }
 0x1f8   :  { %944 = vmatprep.mubr.bf16.mxu0 %v6247_v18 }
 0x1fb   :  { %1883 = vmatmul.mubr.bf16.gmra.mrb[24].mxu1 %v6246_v44 }
 0x1fc   :  { %1892 = vmatprep.mubr.bf16.mxu1 %v6247_v18 }
 0x1ff   :  { %945 = vmatmul.mubr.bf16.gmra.mrb[28].mxu0 %v6249_v60 }
 0x203   :  { %1893 = vmatmul.mubr.bf16.gmra.mrb[28].mxu1 %v6249_v60 }
 0x29a   :  { %v8250_v32 = vpop.f32.mrb[0].mxu0 }
 0x29b   :  { %v8252_v9 = vpop.f32.mrb[1].mxu0 }
 0x29c   :  { %v8254_v21 = vpop.f32.mrb[2].mxu0 }
 0x29d   :  { %v8256_v54 = vpop.f32.mrb[3].mxu0 }
 0x29e   :  { %v8258_v12 = vpop.f32.mrb[0].mxu1 }
 0x29f   :  { %v8260_v37 = vpop.f32.mrb[1].mxu1 }
 0x2a0   :  { %v8262_v5 = vpop.f32.mrb[2].mxu1 }
 0x2a1   :  { %v8264_v47 = vpop.f32.mrb[3].mxu1 }
 0x2a2   :  { %v8266_v50 = vpop.f32.mrb[4].mxu0 }
 0x2a3   :  { %v8268_v55 = vpop.f32.mrb[5].mxu0 }
 0x2a4   :  { %v8270_v63 = vpop.f32.mrb[6].mxu0 }
 0x2a5   :  { %v8272_v56 = vpop.f32.mrb[7].mxu0 }
 0x2a6   :  { %v8274_v15 = vpop.f32.mrb[4].mxu1 }
 0x2a7   :  { %v8276_v10 = vpop.f32.mrb[5].mxu1 }
 0x2a8   :  { %v8278_v59 = vpop.f32.mrb[6].mxu1 }
 0x2a9   :  { %v8280_v34 = vpop.f32.mrb[7].mxu1 }
 0x2aa   :  { %v896_v17 = vpop.f32.mrb[8].mxu0 }
 0x2ab   :  { %955 = vrot.lane.b32.xlu0 %v896_v17, %s6685_s3  ;;  %v898_v57 = vpop.f32.mrb[9].mxu0 }
 0x2ac   :  { %v900_v1 = vpop.f32.mrb[10].mxu0 }
 0x2ad   :  { %957 = vrot.lane.b32.xlu1 %v900_v1, %s6685_s3  ;;  %v902_v33 = vpop.f32.mrb[11].mxu0 }
 0x2ae   :  { %v1844_v43 = vpop.f32.mrb[8].mxu1 }
 0x2af   :  { %v1846_v52 = vpop.f32.mrb[9].mxu1  ;;  %1903 = vrot.lane.b32.xlu0 %v1844_v43, %s6685_s3 }
 0x2b0   :  { %v1848_v2 = vpop.f32.mrb[10].mxu1 }
 0x2b1   :  { %v1850_v28 = vpop.f32.mrb[11].mxu1  ;;  %1905 = vrot.lane.b32.xlu1 %v1848_v2, %s6685_s3 }
 0x2b2   :  { %v906_v51 = vpop.f32.mrb[12].mxu0 }
 0x2b3   :  { %963 = vrot.lane.b32.xlu0 %v898_v57, %s6685_s3  ;;  %v908_v8 = vpop.f32.mrb[13].mxu0 }
 0x2b4   :  { %v910_v49 = vpop.f32.mrb[14].mxu0 }
 0x2b5   :  { %965 = vrot.lane.b32.xlu1 %v902_v33, %s6685_s3  ;;  %v912_v45 = vpop.f32.mrb[15].mxu0 }
 0x2b6   :  { %v1854_v30 = vpop.f32.mrb[12].mxu1 }
 0x2b7   :  { %1911 = vrot.lane.b32.xlu0 %v1846_v52, %s6685_s3  ;;  %v1856_v29 = vpop.f32.mrb[13].mxu1 }
 0x2b8   :  { %v1858_v22 = vpop.f32.mrb[14].mxu1 }
 0x2b9   :  { %1913 = vrot.lane.b32.xlu1 %v1850_v28, %s6685_s3  ;;  %v1860_v23 = vpop.f32.mrb[15].mxu1 }
 0x2ba   :  { %v916_v14 = vpop.f32.mrb[16].mxu0 }
 0x2bb   :  { %959 = vrot.lane.b32.xlu0 %v906_v51, %s6685_s3  ;;  %v918_v39 = vpop.f32.mrb[17].mxu0 }
 0x2bc   :  { %v920_v61 = vpop.f32.mrb[18].mxu0 }
 0x2bd   :  { %961 = vrot.lane.b32.xlu1 %v910_v49, %s6685_s3  ;;  %v922_v53 = vpop.f32.mrb[19].mxu0 }
 0x2be   :  { %v1864_v19 = vpop.f32.mrb[16].mxu1 }
 0x2bf   :  { %1907 = vrot.lane.b32.xlu0 %v1854_v30, %s6685_s3  ;;  %v1866_v27 = vpop.f32.mrb[17].mxu1 }
 0x2c0   :  { %v1868_v7 = vpop.f32.mrb[18].mxu1 }
 0x2c1   :  { %1909 = vrot.lane.b32.xlu1 %v1858_v22, %s6685_s3  ;;  %v1870_v46 = vpop.f32.mrb[19].mxu1 }
 0x2c2   :  { %v926_v35 = vpop.f32.mrb[20].mxu0 }
 0x2c3   :  { %967 = vrot.lane.b32.xlu0 %v908_v8, %s6685_s3  ;;  %v928_v26 = vpop.f32.mrb[21].mxu0 }
 0x2c4   :  { %v930_v40 = vpop.f32.mrb[22].mxu0 }
 0x2c5   :  { %969 = vrot.lane.b32.xlu1 %v912_v45, %s6685_s3  ;;  %v932_v38 = vpop.f32.mrb[23].mxu0 }
 0x2c6   :  { %v1874_v42 = vpop.f32.mrb[20].mxu1 }
 0x2c7   :  { %1915 = vrot.lane.b32.xlu0 %v1856_v29, %s6685_s3  ;;  %v1876_v24 = vpop.f32.mrb[21].mxu1 }
 0x2c8   :  { %v1878_v13 = vpop.f32.mrb[22].mxu1 }
 0x2c9   :  { %1917 = vrot.lane.b32.xlu1 %v1860_v23, %s6685_s3  ;;  %v1880_v31 = vpop.f32.mrb[23].mxu1 }
 0x2ca   :  { %v936_v62 = vpop.f32.mrb[24].mxu0 }
 0x2cb   :  { %988 = vrot.lane.b32.xlu0 %v916_v14, %s6686_s2  ;;  %v938_v25 = vpop.f32.mrb[25].mxu0 }
 0x2cc   :  { %v940_v20 = vpop.f32.mrb[26].mxu0 }
 0x2cd   :  { %990 = vrot.lane.b32.xlu1 %v920_v61, %s6686_s2  ;;  %v942_v16 = vpop.f32.mrb[27].mxu0 }
 0x2ce   :  { %v1884_v4 = vpop.f32.mrb[24].mxu1 }
 0x2cf   :  { %1935 = vrot.lane.b32.xlu0 %v1864_v19, %s6686_s2  ;;  %v1886_v11 = vpop.f32.mrb[25].mxu1 }
 0x2d0   :  { %v1888_v36 = vpop.f32.mrb[26].mxu1 }
 0x2d1   :  { %1937 = vrot.lane.b32.xlu1 %v1868_v7, %s6686_s2  ;;  %v1890_v58 = vpop.f32.mrb[27].mxu1 }
 0x2d2   :  { %v946_v41 = vpop.f32.mrb[28].mxu0 }
 0x2d3   :  { %996 = vrot.lane.b32.xlu0 %v918_v39, %s6686_s2  ;;  %v948_v48 = vpop.f32.mrb[29].mxu0 }
 0x2d4   :  { %v950_v3 = vpop.f32.mrb[30].mxu0 }
 0x2d5   :  { %998 = vrot.lane.b32.xlu1 %v922_v53, %s6686_s2  ;;  %v952_v44 = vpop.f32.mrb[31].mxu0 }
 0x2d6   :  { %v1894_v18 = vpop.f32.mrb[28].mxu1 }
 0x2d7   :  { %1943 = vrot.lane.b32.xlu0 %v1866_v27, %s6686_s2  ;;  %v1896_v60 = vpop.f32.mrb[29].mxu1 }
 0x2d8   :  { %v1898_v17 = vpop.f32.mrb[30].mxu1 }
 0x2d9   :  { %1945 = vrot.lane.b32.xlu1 %v1870_v46, %s6686_s2  ;;  %v1900_v57 = vpop.f32.mrb[31].mxu1 }
 0x2db   :  { %992 = vrot.lane.b32.xlu0 %v926_v35, %s6686_s2 }
 0x2dd   :  { %994 = vrot.lane.b32.xlu1 %v930_v40, %s6686_s2 }
 0x2df   :  { %1939 = vrot.lane.b32.xlu0 %v1874_v42, %s6686_s2 }
 0x2e1   :  { %1941 = vrot.lane.b32.xlu1 %v1878_v13, %s6686_s2 }
 0x2e3   :  { %1000 = vrot.lane.b32.xlu0 %v928_v26, %s6686_s2 }
 0x2e5   :  { %1002 = vrot.lane.b32.xlu1 %v932_v38, %s6686_s2 }
 0x2e7   :  { %1947 = vrot.lane.b32.xlu0 %v1876_v24, %s6686_s2 }
 0x2e9   :  { %1949 = vrot.lane.b32.xlu1 %v1880_v31, %s6686_s2 }
 0x2eb   :  { %1021 = vrot.lane.b32.xlu0 %v936_v62, %s6687_s17 }
 0x2ed   :  { %1023 = vrot.lane.b32.xlu1 %v940_v20, %s6687_s17 }
 0x2ef   :  { %1967 = vrot.lane.b32.xlu0 %v1884_v4, %s6687_s17 }
 0x2f1   :  { %1969 = vrot.lane.b32.xlu1 %v1888_v36, %s6687_s17 }
 0x2f3   :  { %1029 = vrot.lane.b32.xlu0 %v938_v25, %s6687_s17 }
 0x2f5   :  { %1031 = vrot.lane.b32.xlu1 %v942_v16, %s6687_s17 }
 0x2f7   :  { %1975 = vrot.lane.b32.xlu0 %v1886_v11, %s6687_s17 }
 0x2f9   :  { %1977 = vrot.lane.b32.xlu1 %v1890_v58, %s6687_s17 }
 0x2fb   :  { %1025 = vrot.lane.b32.xlu0 %v946_v41, %s6687_s17 }
 0x2fd   :  { %1027 = vrot.lane.b32.xlu1 %v950_v3, %s6687_s17 }
 0x2ff   :  { %1971 = vrot.lane.b32.xlu0 %v1894_v18, %s6687_s17 }
 0x301   :  { %1973 = vrot.lane.b32.xlu1 %v1898_v17, %s6687_s17 }
 0x303   :  { %1033 = vrot.lane.b32.xlu0 %v948_v48, %s6687_s17 }
 0x305   :  { %1035 = vrot.lane.b32.xlu1 %v952_v44, %s6687_s17 }
 0x307   :  { %1979 = vrot.lane.b32.xlu0 %v1896_v60, %s6687_s17 }
 0x309   :  { %1981 = vrot.lane.b32.xlu1 %v1900_v57, %s6687_s17 }
 0x31d   :  { %v956_v1 = vpop.permute.xlu0 %955 }
 0x31f   :  { %v958_v33 = vpop.permute.xlu1 %957 }
 0x321   :  { %v1904_v43 = vpop.permute.xlu0 %1903 }
 0x323   :  { %v1906_v52 = vpop.permute.xlu1 %1905 }
 0x325   :  { %v964_v2 = vpop.permute.xlu0 %963 }
 0x326   :  { %v976_v16 = vsel %vm971_vm3, %v964_v2, %v956_v1  ;;  %v972_v4 = vsel %vm971_vm3, %v956_v1, %v964_v2 }
 0x327   :  { %v966_v28 = vpop.permute.xlu1 %965  ;;  %v980_v3 = vadd.f32 %v976_v16, %v8250_v32  ;;  %v981_v17 = vadd.f32 %v972_v4, %v8252_v9 }
 0x328   :  { %v977_v11 = vsel %vm971_vm3, %v966_v28, %v958_v33  ;;  %v973_v58 = vsel %vm971_vm3, %v958_v33, %v966_v28 }
 0x329   :  { %v1912_v51 = vpop.permute.xlu0 %1911  ;;  %v982_v57 = vadd.f32 %v977_v11, %v8254_v21  ;;  %v983_v32 = vadd.f32 %v973_v58, %v8256_v54 }
 0x32a   :  { %v1919_v41 = vsel %vm971_vm3, %v1904_v43, %v1912_v51  ;;  %v1923_v48 = vsel %vm971_vm3, %v1912_v51, %v1904_v43 }
 0x32b   :  { %v1914_v8 = vpop.permute.xlu1 %1913  ;;  %v1927_v43 = vadd.f32 %v1923_v48, %v8258_v12  ;;  %v1928_v2 = vadd.f32 %v1919_v41, %v8260_v37 }
 0x32c   :  { %v1920_v44 = vsel %vm971_vm3, %v1906_v52, %v1914_v8  ;;  %v1924_v18 = vsel %vm971_vm3, %v1914_v8, %v1906_v52 }
 0x32d   :  { %v8330_v49 = vpop.permute.xlu0 %959  ;;  %v1929_v9 = vadd.f32 %v1924_v18, %v8262_v5  ;;  %v1930_v21 = vadd.f32 %v1920_v44, %v8264_v47 }
 0x32f   :  { %v8332_v45 = vpop.permute.xlu1 %961 }
 0x331   :  { %v8334_v30 = vpop.permute.xlu0 %1907 }
 0x333   :  { %v8336_v29 = vpop.permute.xlu1 %1909 }
 0x335   :  { %v8338_v22 = vpop.permute.xlu0 %967 }
 0x336   :  { %v978_v51 = vsel %vm971_vm3, %v8338_v22, %v8330_v49 }
 0x337   :  { %v8340_v23 = vpop.permute.xlu1 %969 }
 0x339   :  { %v8342_v14 = vpop.permute.xlu0 %1915 }
 0x33b   :  { %v8344_v39 = vpop.permute.xlu1 %1917 }
 0x33d   :  { %v989_v61 = vpop.permute.xlu0 %988 }
 0x33f   :  { %v991_v53 = vpop.permute.xlu1 %990 }
 0x341   :  { %v1936_v19 = vpop.permute.xlu0 %1935 }
 0x343   :  { %v1938_v27 = vpop.permute.xlu1 %1937 }
 0x345   :  { %v997_v7 = vpop.permute.xlu0 %996 }
 0x346   :  { %v1005_v1 = vsel %vm1004_vm4, %v989_v61, %v997_v7  ;;  %v1009_v33 = vsel %vm1004_vm4, %v997_v7, %v989_v61 }
 0x347   :  { %v999_v46 = vpop.permute.xlu1 %998  ;;  %v1013_v8 = vadd.f32 %v1009_v33, %v980_v3  ;;  %v1014_v12 = vadd.f32 %v1005_v1, %v981_v17 }
 0x348   :  { %v1010_v52 = vsel %vm1004_vm4, %v999_v46, %v991_v53  ;;  %v1006_v54 = vsel %vm1004_vm4, %v991_v53, %v999_v46 }
 0x349   :  { %v1944_v35 = vpop.permute.xlu0 %1943  ;;  %v1015_v5 = vadd.f32 %v1010_v52, %v982_v57  ;;  %v1016_v53 = vadd.f32 %v1006_v54, %v983_v32 }
 0x34a   :  { %v1951_v37 = vsel %vm1004_vm4, %v1936_v19, %v1944_v35  ;;  %v1955_v61 = vsel %vm1004_vm4, %v1944_v35, %v1936_v19 }
 0x34b   :  { %v1946_v26 = vpop.permute.xlu1 %1945  ;;  %v1959_v35 = vadd.f32 %v1955_v61, %v1927_v43  ;;  %v1960_v41 = vadd.f32 %v1951_v37, %v1928_v2  ;;  %v984_v61 = vadd.f32 %v978_v51, %v8266_v50  ;;  %v1925_v50 = vsel %vm971_vm3, %v8342_v14, %v8334_v30 }
 0x34c   :  { %v1956_v47 = vsel %vm1004_vm4, %v1946_v26, %v1938_v27  ;;  %v1952_v46 = vsel %vm1004_vm4, %v1938_v27, %v1946_v26 }
 0x34d   :  { %v8346_v40 = vpop.permute.xlu0 %992  ;;  %v1961_v44 = vadd.f32 %v1956_v47, %v1929_v9  ;;  %v1962_v26 = vadd.f32 %v1952_v46, %v1930_v21  ;;  %v974_v21 = vsel %vm971_vm3, %v8330_v49, %v8338_v22  ;;  %v979_v49 = vsel %vm971_vm3, %v8340_v23, %v8332_v45 }
 0x34e   :  { %v1921_v22 = vsel %vm971_vm3, %v8334_v30, %v8342_v14  ;;  %v1926_v30 = vsel %vm971_vm3, %v8344_v39, %v8336_v29 }
 0x34f   :  { %v8348_v38 = vpop.permute.xlu1 %994 }
 0x351   :  { %v8350_v42 = vpop.permute.xlu0 %1939 }
 0x353   :  { %v8352_v24 = vpop.permute.xlu1 %1941 }
 0x355   :  { %v8354_v13 = vpop.permute.xlu0 %1000 }
 0x356   :  { %v1007_v14 = vsel %vm1004_vm4, %v8346_v40, %v8354_v13 }
 0x357   :  { %v8356_v31 = vpop.permute.xlu1 %1002 }
 0x359   :  { %v8358_v62 = vpop.permute.xlu0 %1947 }
 0x35b   :  { %v8361_v25 = vpop.permute.xlu1 %1949 }
 0x35d   :  { %v1022_v20 = vpop.permute.xlu0 %1021 }
 0x35f   :  { %v1024_v36 = vpop.permute.xlu1 %1023 }
 0x361   :  { %v1968_v60 = vpop.permute.xlu0 %1967 }
 0x363   :  { %v1970_v28 = vpop.permute.xlu1 %1969 }
 0x365   :  { %v1030_v7 = vpop.permute.xlu0 %1029 }
 0x366   :  { %v1038_v16 = vsel %vm1037_vm5, %v1022_v20, %v1030_v7  ;;  %v1042_v4 = vsel %vm1037_vm5, %v1030_v7, %v1022_v20 }
 0x367   :  { %v8413_v11 = vadd.f32 %v1042_v4, %v1013_v8  ;;  %v8415_v58 = vadd.f32 %v1038_v16, %v1014_v12  ;;  %v1032_v19 = vpop.permute.xlu1 %1031 }
 0x368   :  { %v1039_v48 = vsel %vm1037_vm5, %v1024_v36, %v1032_v19  ;;  %v1043_v3 = vsel %vm1037_vm5, %v1032_v19, %v1024_v36  ;;  %v1931_v19 = vadd.f32 %v1925_v50, %v8274_v15 }
 0x369   :  { %v8421_v18 = vadd.f32 %v1043_v3, %v1015_v5  ;;  %v8423_v20 = vadd.f32 %v1039_v48, %v1016_v53  ;;  %v1976_v17 = vpop.permute.xlu0 %1975  ;;  %v1062_v27 = vadd.f32 %v8415_v58, %v8413_v11  ;;  %v1078_v33 = vmul.f32 %v8413_v11, %v8413_v11 }
 0x36a   :  { %v1983_v57 = vsel %vm1037_vm5, %v1968_v60, %v1976_v17  ;;  %v1987_v1 = vsel %vm1037_vm5, %v1976_v17, %v1968_v60  ;;  %v1079_v52 = vmul.f32 %v8415_v58, %v8415_v58 }
 0x36b   :  { %v8433_v36 = vadd.f32 %v1987_v1, %v1959_v35  ;;  %v8435_v32 = vadd.f32 %v1983_v57, %v1960_v41  ;;  %v1978_v43 = vpop.permute.xlu1 %1977  ;;  %1063 = vadd.xlane.f32.xlu0 %v1062_v27  ;;  %v1065_v2 = vadd.f32 %v8423_v20, %v8421_v18  ;;  %v1080_v53 = vmul.f32 %v8421_v18, %v8421_v18 }
 0x36c   :  { %v1984_v9 = vsel %vm1037_vm5, %v1970_v28, %v1978_v43  ;;  %v1988_v60 = vsel %vm1037_vm5, %v1978_v43, %v1970_v28  ;;  %v975_v28 = vsel %vm971_vm3, %v8332_v45, %v8340_v23  ;;  %v1086_v7 = vadd.f32 %v1079_v52, %v1078_v33 }
 0x36d   :  { %v8449_v54 = vadd.f32 %v1988_v60, %v1961_v44  ;;  %v8451_v8 = vadd.f32 %v1984_v9, %v1962_v26  ;;  %v1026_v12 = vpop.permute.xlu0 %1025  ;;  %1066 = vadd.xlane.f32.xlu1 %v1065_v2  ;;  %v2008_v37 = vadd.f32 %v8435_v32, %v8433_v36  ;;  %v2024_v5 = vmul.f32 %v8433_v36, %v8433_v36 }
 0x36e   :  { %v2025_v47 = vmul.f32 %v8435_v32, %v8435_v32  ;;  %v985_v45 = vadd.f32 %v974_v21, %v8268_v55  ;;  %v1922_v23 = vsel %vm971_vm3, %v8336_v29, %v8344_v39  ;;  %v1011_v55 = vsel %vm1004_vm4, %v8354_v13, %v8346_v40 }
 0x36f   :  { %2009 = vadd.xlane.f32.xlu0 %v2008_v37  ;;  %v1028_v51 = vpop.permute.xlu1 %1027  ;;  %v2011_v4 = vadd.f32 %v8451_v8, %v8449_v54  ;;  %v1081_v29 = vmul.f32 %v8423_v20, %v8423_v20  ;;  %v986_v39 = vadd.f32 %v979_v49, %v8270_v63  ;;  %v987_v46 = vadd.f32 %v975_v28, %v8272_v56 }
 0x370   :  { %v1932_v35 = vadd.f32 %v1921_v22, %v8276_v10  ;;  %v1933_v40 = vadd.f32 %v1926_v30, %v8278_v59  ;;  %v1008_v13 = vsel %vm1004_vm4, %v8348_v38, %v8356_v31  ;;  %v1012_v41 = vsel %vm1004_vm4, %v8356_v31, %v8348_v38 }
 0x371   :  { %v1972_v16 = vpop.permute.xlu0 %1971  ;;  %1087 = vadd.xlane.f32.xlu1 %v1086_v7  ;;  %v2032_v48 = vadd.f32 %v2025_v47, %v2024_v5  ;;  %v1934_v56 = vadd.f32 %v1922_v23, %v8280_v34  ;;  %v1017_v15 = vadd.f32 %v1011_v55, %v984_v61  ;;  %v1018_v3 = vadd.f32 %v1007_v14, %v985_v45 }
 0x372   :  { %v1957_v10 = vsel %vm1004_vm4, %v8358_v62, %v8350_v42  ;;  %v1953_v59 = vsel %vm1004_vm4, %v8350_v42, %v8358_v62  ;;  %v1089_v38 = vadd.f32 %v1081_v29, %v1080_v53  ;;  %v2026_v31 = vmul.f32 %v8449_v54, %v8449_v54 }
 0x373   :  { %2012 = vadd.xlane.f32.xlu0 %v2011_v4  ;;  %v1974_v63 = vpop.permute.xlu1 %1973  ;;  %v2027_v34 = vmul.f32 %v8451_v8, %v8451_v8  ;;  %v1019_v17 = vadd.f32 %v1012_v41, %v986_v39  ;;  %v1020_v27 = vadd.f32 %v1008_v13, %v987_v46  ;;  %v1963_v1 = vadd.f32 %v1957_v10, %v1931_v19 }
 0x374   :  { %v1958_v42 = vsel %vm1004_vm4, %v8361_v25, %v8352_v24  ;;  %v1964_v2 = vadd.f32 %v1953_v59, %v1932_v35  ;;  %v1954_v52 = vsel %vm1004_vm4, %v8352_v24, %v8361_v25 }
 0x375   :  { %v1034_v44 = vpop.permute.xlu0 %1033  ;;  %2033 = vadd.xlane.f32.xlu1 %v2032_v48  ;;  %v2035_v61 = vadd.f32 %v2027_v34, %v2026_v31  ;;  %v1965_v49 = vadd.f32 %v1958_v42, %v1933_v40  ;;  %v1966_v25 = vadd.f32 %v1954_v52, %v1934_v56  ;;  %v6688_v48 = vmov 0  }
 0x376   :  { %v1040_v26 = vsel %vm1037_vm5, %v1026_v12, %v1034_v44  ;;  %v1044_v57 = vsel %vm1037_vm5, %v1034_v44, %v1026_v12  ;;  %5894 = vset.pattern.permute.xlu1 %v6688_v48  ;;  %5895 = vset.pattern.permute.xlu0 %v6688_v48 }
 0x377   :  { %v8533_v62 = vadd.f32 %v1044_v57, %v1017_v15  ;;  %v8535_v33 = vadd.f32 %v1040_v26, %v1018_v3  ;;  %1090 = vadd.xlane.f32.xlu0 %v1089_v38  ;;  %v1036_v43 = vpop.permute.xlu1 %1035  ;;  %2336 = vmatprep.mubr.bf16.mxu0 %v6688_v48 }
 0x378   :  { %v1041_v9 = vsel %vm1037_vm5, %v1028_v51, %v1036_v43  ;;  %v1045_v60 = vsel %vm1037_vm5, %v1036_v43, %v1028_v51  ;;  %2641 = vmatprep.mubr.bf16.mxu1 %v6688_v48 }
 0x379   :  { %v8545_v21 = vadd.f32 %v1045_v60, %v1019_v17  ;;  %v8547_v12 = vadd.f32 %v1041_v9, %v1020_v27  ;;  %v1980_v37 = vpop.permute.xlu0 %1979  ;;  %v1068_v28 = vadd.f32 %v8535_v33, %v8533_v62  ;;  %v1082_v45 = vmul.f32 %v8533_v62, %v8533_v62 }
 0x37a   :  { %v1985_v22 = vsel %vm1037_vm5, %v1972_v16, %v1980_v37  ;;  %v1989_v24 = vsel %vm1037_vm5, %v1980_v37, %v1972_v16  ;;  %v1083_v23 = vmul.f32 %v8535_v33, %v8535_v33 }
 0x37b   :  { %v8555_v50 = vadd.f32 %v1989_v24, %v1963_v1  ;;  %v8557_v51 = vadd.f32 %v1985_v22, %v1964_v2  ;;  %2036 = vadd.xlane.f32.xlu0 %v2035_v61  ;;  %1069 = vadd.xlane.f32.xlu1 %v1068_v28  ;;  %v1982_v7 = vpop.permute.xlu1 %1981  ;;  %v1071_v16 = vadd.f32 %v8547_v12, %v8545_v21 }
 0x37c   :  { %v1986_v5 = vsel %vm1037_vm5, %v1974_v63, %v1982_v7  ;;  %v1990_v47 = vsel %vm1037_vm5, %v1982_v7, %v1974_v63  ;;  %v1092_v4 = vadd.f32 %v1083_v23, %v1082_v45  ;;  %v1084_v53 = vmul.f32 %v8545_v21, %v8545_v21  ;;  %v2064_v45 = vld [vmem:[%s10064_s4] sm:$0xff] }
 0x37d   :  { %v8567_v30 = vadd.f32 %v1990_v47, %v1965_v49  ;;  %v8569_v14 = vadd.f32 %v1986_v5, %v1966_v25  ;;  %v2014_v55 = vadd.f32 %v8557_v51, %v8555_v50  ;;  %v2028_v39 = vmul.f32 %v8555_v50, %v8555_v50 }
 0x37e   :  { %v2029_v46 = vmul.f32 %v8557_v51, %v8557_v51  ;;  %v1085_v19 = vmul.f32 %v8547_v12, %v8547_v12 }
 0x37f   :  { %2015 = vadd.xlane.f32.xlu1 %v2014_v55  ;;  %1072 = vadd.xlane.f32.xlu0 %v1071_v16  ;;  %v2017_v29 = vadd.f32 %v8569_v14, %v8567_v30  ;;  %v2030_v13 = vmul.f32 %v8567_v30, %v8567_v30  ;;  %v2031_v41 = vmul.f32 %v8569_v14, %v8569_v14 }
 0x380   :  { %v2038_v35 = vadd.f32 %v2029_v46, %v2028_v39  ;;  %v1095_v40 = vadd.f32 %v1085_v19, %v1084_v53  ;;  %v2080_v19 = vld [vmem:[%s10065_s5] sm:$0xff] }
 0x381   :  { %v2041_v63 = vadd.f32 %v2031_v41, %v2030_v13 }
 0x383   :  { %1093 = vadd.xlane.f32.xlu1 %v1092_v4  ;;  %2018 = vadd.xlane.f32.xlu0 %v2017_v29 }
 0x387   :  { %2039 = vadd.xlane.f32.xlu1 %v2038_v35  ;;  %1096 = vadd.xlane.f32.xlu0 %v1095_v40 }
 0x38b   :  { %2042 = vadd.xlane.f32.xlu0 %v2041_v63  ;;  %v2065_v63 = vld [vmem:[%s10064_s4 + $0x8] sm:$0xff] }
 0x3f8   :  { %v1064_v56 = vpop.xlane.xlu0 %1063 }
 0x3fa   :  { %v1067_v15 = vpop.xlane.xlu1 %1066 }
 0x3fc   :  { %v2010_v3 = vpop.xlane.xlu0 %2009 }
 0x3fd   :  { %v2020_v10 = vadd.f32 %v2010_v3, %v1064_v56 }
 0x3fe   :  { %v1088_v59 = vpop.xlane.xlu1 %1087 }
 0x3ff   :  { %v2048_v38 = vmul.f32 0.005, %v2020_v10 }
 0x400   :  { %v2013_v44 = vpop.xlane.xlu0 %2012 }
 0x401   :  { %v2021_v34 = vadd.f32 %v2013_v44, %v1067_v15  ;;  %v2056_v26 = vmul.f32 %v2048_v38, %v2048_v38 }
 0x402   :  { %v2034_v31 = vpop.xlane.xlu1 %2033 }
 0x403   :  { %v2044_v17 = vadd.f32 %v2034_v31, %v1088_v59  ;;  %v2049_v1 = vmul.f32 0.005, %v2021_v34  ;;  %v2081_v34 = vld [vmem:[%s10065_s5 + $0x8] sm:$0xff] }
 0x404   :  { %v1091_v27 = vpop.xlane.xlu0 %1090 }
 0x405   :  { %v2052_v57 = vmul.f32 0.005, %v2044_v17  ;;  %v2057_v60 = vmul.f32 %v2049_v1, %v2049_v1 }
 0x407   :  { %v2060_v42 = vsub.f32 %v2052_v57, %v2056_v26  ;;  %v2066_v26 = vld [vmem:[%s10064_s4 + $0x10] sm:$0xff] }
 0x408   :  { %v2037_v43 = vpop.xlane.xlu0 %2036  ;;  %v1070_v2 = vpop.xlane.xlu1 %1069 }
 0x409   :  { %v2068_v52 = vadd.f32 1e-05, %v2060_v42  ;;  %v2045_v9 = vadd.f32 %v2037_v43, %v1091_v27  ;;  %v2067_v43 = vld [vmem:[%s10064_s4 + $0x18] sm:$0xff] }
 0x40b   :  { %6418 = vrsqrt.f32 %v2068_v52  ;;  %v2053_v37 = vmul.f32 0.005, %v2045_v9 }
 0x40c   :  { %v1073_v61 = vpop.xlane.xlu0 %1072  ;;  %v2016_v28 = vpop.xlane.xlu1 %2015 }
 0x40d   :  { %v2061_v49 = vsub.f32 %v2053_v37, %v2057_v60  ;;  %v2022_v24 = vadd.f32 %v2016_v28, %v1070_v2 }
 0x40f   :  { %v2069_v22 = vadd.f32 1e-05, %v2061_v49  ;;  %v2050_v5 = vmul.f32 0.005, %v2022_v24  ;;  %v2167_v49 = vshrl.u32 %v605_v0, 7 }
 0x410   :  { %v2019_v25 = vpop.xlane.xlu0 %2018  ;;  %v1094_v7 = vpop.xlane.xlu1 %1093 }
 0x411   :  { %6420 = vrsqrt.f32 %v2069_v22  ;;  %v2023_v47 = vadd.f32 %v2019_v25, %v1073_v61  ;;  %v2058_v29 = vmul.f32 %v2050_v5, %v2050_v5  ;;  %v2083_v61 = vld [vmem:[%s10065_s5 + $0x18] sm:$0xff]  ;;  %v2168_v24 = vsub.s32 0, %v2167_v49 }
 0x412   :  { %v2172_v25 = vsub.s32 1, %v2167_v49 }
 0x413   :  { %v2051_v39 = vmul.f32 0.005, %v2023_v47 }
 0x414   :  { %v1097_v23 = vpop.xlane.xlu0 %1096  ;;  %v2040_v55 = vpop.xlane.xlu1 %2039 }
 0x415   :  { %v6419_v16 = vpop.eup %6418  ;;  %v2046_v4 = vadd.f32 %v2040_v55, %v1094_v7  ;;  %v2059_v3 = vmul.f32 %v2051_v39, %v2051_v39  ;;  %v2092_v55 = vld [vmem:[%s10069_s9] sm:$0x3] }
 0x416   :  { %v2076_v53 = vmul.f32 %v6419_v16, %v2064_v45 }
 0x417   :  { %v2054_v46 = vmul.f32 0.005, %v2046_v4 }
 0x418   :  { %v2043_v35 = vpop.xlane.xlu0 %2042  ;;  %2103 = vperm.xlu1 %5894, %v2076_v53   ;;  %v2084_v40 = vmul.f32 %v2076_v53, %v2048_v38 }
 0x419   :  { %v2062_v13 = vsub.f32 %v2054_v46, %v2058_v29  ;;  %v2047_v41 = vadd.f32 %v2043_v35, %v1097_v23  ;;  %v8627_v46 = vrot.slane %v2092_v55, %v2172_v25 }
 0x41a   :  { %v2088_v56 = vsub.f32 %v2080_v19, %v2084_v40 }
 0x41b   :  { %v6421_v15 = vpop.eup %6420  ;;  %v2070_v10 = vadd.f32 1e-05, %v2062_v13  ;;  %v2055_v59 = vmul.f32 0.005, %v2047_v41 }
 0x41c   :  { %2131 = vperm.xlu1 %5894, %v2088_v56   ;;  %v2077_v44 = vmul.f32 %v6421_v15, %v2065_v63 }
 0x41d   :  { %6422 = vrsqrt.f32 %v2070_v10  ;;  %v2063_v31 = vsub.f32 %v2055_v59, %v2059_v3 }
 0x41e   :  { %2108 = vperm.xlu0 %5895, %v2077_v44   ;;  %v2085_v38 = vmul.f32 %v2077_v44, %v2049_v1  ;;  %v2082_v1 = vld [vmem:[%s10065_s5 + $0x10] sm:$0xff] }
 0x41f   :  { %v2071_v17 = vadd.f32 1e-05, %v2063_v31 }
 0x420   :  { %v2089_v27 = vsub.f32 %v2081_v34, %v2085_v38 }
 0x421   :  { %6424 = vrsqrt.f32 %v2071_v17 }
 0x422   :  { %2136 = vperm.xlu1 %5894, %v2089_v27  }
 0x427   :  { %v6423_v57 = vpop.eup %6422 }
 0x428   :  { %v2078_v42 = vmul.f32 %v6423_v57, %v2066_v26 }
 0x42a   :  { %2113 = vperm.xlu1 %5894, %v2078_v42   ;;  %v2086_v9 = vmul.f32 %v2078_v42, %v2050_v5 }
 0x42b   :  { %v6425_v2 = vpop.eup %6424 }
 0x42c   :  { %v2079_v52 = vmul.f32 %v6425_v2, %v2067_v43  ;;  %v2090_v60 = vsub.f32 %v2082_v1, %v2086_v9 }
 0x42e   :  { %2118 = vperm.xlu1 %5894, %v2079_v52   ;;  %v2087_v37 = vmul.f32 %v2079_v52, %v2051_v39  ;;  %v8625_v39 = vrot.slane %v2092_v55, %v2168_v24 }
 0x430   :  { %v2091_v28 = vsub.f32 %v2083_v61, %v2087_v37 }
 0x432   :  { %2141 = vperm.xlu1 %5894, %v2090_v60  }
 0x436   :  { %2146 = vperm.xlu1 %5894, %v2091_v28  }
 0x497   :  { %v2104_v22 = vpop.permute.xlu1 %2103 }
 0x498   :  { %v2121_v7 = vmul.f32 %v2104_v22, %v8413_v11  ;;  %v2122_v5 = vmul.f32 %v2104_v22, %v8415_v58  ;;  %v2457_v47 = vmul.f32 %v2104_v22, %v8433_v36  ;;  %v2458_v45 = vmul.f32 %v2104_v22, %v8435_v32 }
 0x49b   :  { %v2132_v23 = vpop.permute.xlu1 %2131 }
 0x49c   :  { %v2149_v16 = vadd.f32 %v2132_v23, %v2121_v7  ;;  %v2150_v4 = vadd.f32 %v2132_v23, %v2122_v5  ;;  %v2465_v53 = vadd.f32 %v2457_v47, %v2132_v23  ;;  %v2466_v0 = vadd.f32 %v2458_v45, %v2132_v23 }
 0x49d   :  { %v2109_v29 = vpop.permute.xlu0 %2108 }
 0x49e   :  { %v2123_v11 = vmul.f32 %v2109_v29, %v8421_v18  ;;  %v2124_v58 = vmul.f32 %v2109_v29, %v8423_v20  ;;  %v2459_v36 = vmul.f32 %v2109_v29, %v8449_v54  ;;  %v2460_v32 = vmul.f32 %v2109_v29, %v8451_v8 }
 0x49f   :  { %v2157_v19 = vmax.f32 %v2149_v16, 0.0  ;;  %v2158_v35 = vmax.f32 %v2150_v4, 0.0  ;;  %v2473_v40 = vmax.f32 %v2465_v53, 0.0  ;;  %v2474_v13 = vmax.f32 %v2466_v0, 0.0 }
 0x4a1   :  { %v2137_v41 = vpop.permute.xlu1 %2136  ;;  %v2176_v18 = vmul.f32 %v8625_v39, %v2157_v19  ;;  %v2177_v20 = vmul.f32 %v8627_v46, %v2158_v35  ;;  %v2481_v54 = vmul.f32 %v2473_v40, %v8625_v39  ;;  %v2482_v8 = vmul.f32 %v2474_v13, %v8627_v46 }
 0x4a2   :  { %v2151_v63 = vadd.f32 %v2137_v41, %v2123_v11  ;;  %v2152_v56 = vadd.f32 %v2137_v41, %v2124_v58  ;;  %v2467_v15 = vadd.f32 %v2459_v36, %v2137_v41  ;;  %v2468_v3 = vadd.f32 %v2460_v32, %v2137_v41 }
 0x4a4   :  { %v2159_v10 = vmax.f32 %v2151_v63, 0.0  ;;  %v2160_v59 = vmax.f32 %v2152_v56, 0.0  ;;  %v2475_v44 = vmax.f32 %v2467_v15, 0.0  ;;  %v2476_v31 = vmax.f32 %v2468_v3, 0.0 }
 0x4a6   :  { %v2178_v34 = vmul.f32 %v8625_v39, %v2159_v10  ;;  %v2179_v38 = vmul.f32 %v8627_v46, %v2160_v59  ;;  %v2483_v17 = vmul.f32 %v2475_v44, %v8625_v39  ;;  %v2484_v27 = vmul.f32 %v2476_v31, %v8627_v46 }
 0x4a8   :  { %v2185_v26 = vpack.c.bf16 %v2179_v38, %v2177_v20  ;;  %v5896_v57 = vpack.i.bf16 %v2178_v34, %v2176_v18  ;;  %v2490_v42 = vpack.c.bf16 %v2484_v27, %v2482_v8  ;;  %v5906_v43 = vpack.i.bf16 %v2483_v17, %v2481_v54 }
 0x4a9   :  { %v2114_v2 = vpop.permute.xlu1 %2113  ;;  %v2184_v52 = vpack.c.bf16 %v2178_v34, %v2176_v18  ;;  %v2489_v9 = vpack.c.bf16 %v2483_v17, %v2481_v54  ;;  %v5901_v60 = vpack.i.bf16 %v2179_v38, %v2177_v20  ;;  %v5911_v24 = vpack.i.bf16 %v2484_v27, %v2482_v8 }
 0x4aa   :  { %2304 = vmatprep.subr.bf16.mxu0 %v2185_v26  ;;  %5897 = vrot.lane.b32.xlu1 %v5896_v57, %s6682_s24  ;;  %v2125_v37 = vmul.f32 %v2114_v2, %v8533_v62  ;;  %v2126_v61 = vmul.f32 %v2114_v2, %v8535_v33  ;;  %v2462_v28 = vmul.f32 %v2114_v2, %v8557_v51 }
 0x4ab   :  { %2609 = vmatprep.subr.bf16.mxu1 %v2490_v42  ;;  %5907 = vrot.lane.b32.xlu0 %v5906_v43, %s6682_s24  ;;  %v2461_v49 = vmul.f32 %v2114_v2, %v8555_v50 }
 0x4ac   :  { %2305 = vmatpush1.bf16.msra.mxu0 %v2184_v52  ;;  %2610 = vmatpush1.bf16.msra.mxu1 %v2489_v9 }
 0x4ad   :  { %v2119_v1 = vpop.permute.xlu1 %2118 }
 0x4ae   :  { %5902 = vrot.lane.b32.xlu1 %v5901_v60, %s6682_s24  ;;  %v2127_v62 = vmul.f32 %v2119_v1, %v8545_v21  ;;  %v2128_v33 = vmul.f32 %v2119_v1, %v8547_v12  ;;  %v2463_v51 = vmul.f32 %v2119_v1, %v8567_v30  ;;  %v2464_v45 = vmul.f32 %v2119_v1, %v8569_v14 }
 0x4af   :  { %5917 = vrot.lane.b32.xlu0 %v5896_v57, %s6683_s25 }
 0x4b1   :  { %v2142_v22 = vpop.permute.xlu1 %2141 }
 0x4b2   :  { %v2153_v25 = vadd.f32 %v2142_v22, %v2125_v37  ;;  %v2154_v7 = vadd.f32 %v2142_v22, %v2126_v61  ;;  %v2470_v5 = vadd.f32 %v2462_v28, %v2142_v22  ;;  %5912 = vrot.lane.b32.xlu1 %v5911_v24, %s6682_s24  ;;  %v2469_v47 = vadd.f32 %v2461_v49, %v2142_v22 }
 0x4b3   :  { %5927 = vrot.lane.b32.xlu0 %v5906_v43, %s6683_s25 }
 0x4b4   :  { %v2161_v50 = vmax.f32 %v2153_v25, 0.0  ;;  %v2162_v55 = vmax.f32 %v2154_v7, 0.0  ;;  %v2478_v16 = vmax.f32 %v2470_v5, 0.0  ;;  %v2477_v11 = vmax.f32 %v2469_v47, 0.0 }
 0x4b5   :  { %v2147_v23 = vpop.permute.xlu1 %2146 }
 0x4b6   :  { %v2155_v4 = vadd.f32 %v2147_v23, %v2127_v62  ;;  %v2156_v53 = vadd.f32 %v2147_v23, %v2128_v33  ;;  %v2471_v0 = vadd.f32 %v2463_v51, %v2147_v23  ;;  %v2472_v29 = vadd.f32 %v2464_v45, %v2147_v23  ;;  %5922 = vrot.lane.b32.xlu1 %v5901_v60, %s6683_s25 }
 0x4b7   :  { %5937 = vrot.lane.b32.xlu0 %v5896_v57, %s6684_s6  ;;  %v2180_v30 = vmul.f32 %v8625_v39, %v2161_v50  ;;  %v2181_v14 = vmul.f32 %v8627_v46, %v2162_v55  ;;  %v2486_v32 = vmul.f32 %v2478_v16, %v8627_v46  ;;  %v2485_v41 = vmul.f32 %v2477_v11, %v8625_v39 }
 0x4b8   :  { %v2163_v21 = vmax.f32 %v2155_v4, 0.0  ;;  %v2164_v58 = vmax.f32 %v2156_v53, 0.0  ;;  %v2479_v12 = vmax.f32 %v2471_v0, 0.0  ;;  %v2480_v36 = vmax.f32 %v2472_v29, 0.0 }
 0x4ba   :  { %v2182_v19 = vmul.f32 %v8625_v39, %v2163_v21  ;;  %v2183_v35 = vmul.f32 %v8627_v46, %v2164_v58  ;;  %v2487_v40 = vmul.f32 %v2479_v12, %v8625_v39  ;;  %v2488_v13 = vmul.f32 %v2480_v36, %v8627_v46  ;;  %5932 = vrot.lane.b32.xlu1 %v5911_v24, %s6683_s25 }
 0x4bb   :  { %5947 = vrot.lane.b32.xlu0 %v5906_v43, %s6684_s6 }
 0x4bc   :  { %v2187_v63 = vpack.c.bf16 %v2183_v35, %v2181_v14  ;;  %v5956_v56 = vpack.i.bf16 %v2182_v19, %v2180_v30  ;;  %v2492_v15 = vpack.c.bf16 %v2488_v13, %v2486_v32  ;;  %v2186_v3 = vpack.c.bf16 %v2182_v19, %v2180_v30 }
 0x4bd   :  { %v2491_v10 = vpack.c.bf16 %v2487_v40, %v2485_v41  ;;  %v5966_v46 = vpack.i.bf16 %v2487_v40, %v2485_v41  ;;  %v5961_v39 = vpack.i.bf16 %v2183_v35, %v2181_v14  ;;  %v5971_v59 = vpack.i.bf16 %v2488_v13, %v2486_v32 }
 0x4be   :  { %5942 = vrot.lane.b32.xlu1 %v5901_v60, %s6684_s6  ;;  %2306 = vmatprep.subr.bf16.mxu0 %v2187_v63 }
 0x4bf   :  { %5957 = vrot.lane.b32.xlu0 %v5956_v56, %s6682_s24  ;;  %2611 = vmatprep.subr.bf16.mxu1 %v2492_v15 }
 0x4c0   :  { %2307 = vmatpush1.bf16.msra.mxu0 %v2186_v3  ;;  %2612 = vmatpush1.bf16.msra.mxu1 %v2491_v10 }
 0x4c2   :  { %5952 = vrot.lane.b32.xlu1 %v5911_v24, %s6684_s6 }
 0x4c3   :  { %5967 = vrot.lane.b32.xlu0 %v5966_v46, %s6682_s24 }
 0x4c6   :  { %5962 = vrot.lane.b32.xlu1 %v5961_v39, %s6682_s24 }
 0x4c7   :  { %5977 = vrot.lane.b32.xlu0 %v5956_v56, %s6683_s25 }
 0x4ca   :  { %5972 = vrot.lane.b32.xlu1 %v5971_v59, %s6682_s24 }
 0x4cb   :  { %5987 = vrot.lane.b32.xlu0 %v5966_v46, %s6683_s25 }
 0x4ce   :  { %5982 = vrot.lane.b32.xlu1 %v5961_v39, %s6683_s25 }
 0x4cf   :  { %5997 = vrot.lane.b32.xlu0 %v5956_v56, %s6684_s6 }
 0x4d2   :  { %5992 = vrot.lane.b32.xlu1 %v5971_v59, %s6683_s25 }
 0x4d3   :  { %6007 = vrot.lane.b32.xlu0 %v5966_v46, %s6684_s6 }
 0x4d6   :  { %6002 = vrot.lane.b32.xlu1 %v5961_v39, %s6684_s6 }
 0x4da   :  { %6012 = vrot.lane.b32.xlu1 %v5971_v59, %s6684_s6 }
 0x51c   :  { %v5898_v44 = vpop.permute.xlu1 %5897 }
 0x51d   :  { %v5908_v31 = vpop.permute.xlu0 %5907  ;;  %v5900_v20 = vunpack.i.h.bf16 %v5898_v44  ;;  %v5899_v54 = vunpack.i.l.bf16 %v5898_v44 }
 0x51e   :  { %v5910_v52 = vunpack.i.h.bf16 %v5908_v31  ;;  %v5909_v9 = vunpack.i.l.bf16 %v5908_v31 }
 0x520   :  { %v5903_v18 = vpop.permute.xlu1 %5902 }
 0x521   :  { %v5918_v8 = vpop.permute.xlu0 %5917  ;;  %v5905_v34 = vunpack.i.h.bf16 %v5903_v18  ;;  %v5904_v38 = vunpack.i.l.bf16 %v5903_v18 }
 0x522   :  { %v5920_v55 = vunpack.i.h.bf16 %v5918_v8  ;;  %v5919_v16 = vunpack.i.l.bf16 %v5918_v8 }
 0x523   :  { %v2208_v17 = vsel %vm607_vm0, %v5904_v38, %v5899_v54  ;;  %v2209_v27 = vsel %vm607_vm0, %v5905_v34, %v5900_v20  ;;  %v2204_v26 = vsel %vm607_vm0, %v5899_v54, %v5904_v38  ;;  %v2205_v57 = vsel %vm607_vm0, %v5900_v20, %v5905_v34 }
 0x524   :  { %v5913_v42 = vpop.permute.xlu1 %5912  ;;  %v2213_v43 = vpack.c.bf16 %v2205_v57, %v2204_v26  ;;  %v2212_v2 = vpack.c.bf16 %v2209_v27, %v2208_v17 }
 0x525   :  { %v5928_v1 = vpop.permute.xlu0 %5927  ;;  %v5915_v60 = vunpack.i.h.bf16 %v5913_v42  ;;  %v5914_v37 = vunpack.i.l.bf16 %v5913_v42 }
 0x526   :  { %2308 = vmatprep.subr.bf16.mxu0 %v2213_v43  ;;  %v5930_v29 = vunpack.i.h.bf16 %v5928_v1  ;;  %v5929_v58 = vunpack.i.l.bf16 %v5928_v1 }
 0x527   :  { %v2514_v61 = vsel %vm607_vm0, %v5915_v60, %v5910_v52  ;;  %v2513_v28 = vsel %vm607_vm0, %v5914_v37, %v5909_v9  ;;  %2309 = vmatpush1.bf16.msra.mxu0 %v2212_v2  ;;  %v2509_v49 = vsel %vm607_vm0, %v5909_v9, %v5914_v37  ;;  %v2510_v22 = vsel %vm607_vm0, %v5910_v52, %v5915_v60 }
 0x528   :  { %v5923_v24 = vpop.permute.xlu1 %5922  ;;  %v2518_v25 = vpack.c.bf16 %v2510_v22, %v2509_v49  ;;  %v2517_v7 = vpack.c.bf16 %v2514_v61, %v2513_v28 }
 0x529   :  { %v8697_v5 = vpop.permute.xlu0 %5937  ;;  %v5925_v45 = vunpack.i.h.bf16 %v5923_v24  ;;  %v5924_v23 = vunpack.i.l.bf16 %v5923_v24 }
 0x52a   :  { %2613 = vmatprep.subr.bf16.mxu1 %v2518_v25  ;;  %v5940_v12 = vunpack.i.h.bf16 %v8697_v5  ;;  %v5939_v36 = vunpack.i.l.bf16 %v8697_v5 }
 0x52b   :  { %2614 = vmatpush1.bf16.msra.mxu1 %v2517_v7  ;;  %v2232_v11 = vsel %vm664_vm1, %v5919_v16, %v5924_v23  ;;  %v2233_v21 = vsel %vm664_vm1, %v5920_v55, %v5925_v45  ;;  %v2237_v30 = vsel %vm664_vm1, %v5925_v45, %v5920_v55  ;;  %v2236_v41 = vsel %vm664_vm1, %v5924_v23, %v5919_v16 }
 0x52c   :  { %v5933_v47 = vpop.permute.xlu1 %5932  ;;  %v2241_v15 = vpack.c.bf16 %v2233_v21, %v2232_v11  ;;  %v2240_v42 = vpack.c.bf16 %v2237_v30, %v2236_v41 }
 0x52d   :  { %v8699_v62 = vpop.permute.xlu0 %5947  ;;  %v5935_v53 = vunpack.i.h.bf16 %v5933_v47  ;;  %v5934_v0 = vunpack.i.l.bf16 %v5933_v47 }
 0x52e   :  { %v5950_v17 = vunpack.i.h.bf16 %v8699_v62  ;;  %v5949_v45 = vunpack.i.l.bf16 %v8699_v62 }
 0x52f   :  { %v8717_v63 = vsel %vm664_vm1, %v5935_v53, %v5930_v29  ;;  %v8721_v56 = vsel %vm664_vm1, %v5934_v0, %v5929_v58  ;;  %v2537_v18 = vsel %vm664_vm1, %v5929_v58, %v5934_v0  ;;  %v2538_v20 = vsel %vm664_vm1, %v5930_v29, %v5935_v53 }
 0x530   :  { %v8701_v33 = vpop.permute.xlu1 %5942  ;;  %v2546_v61 = vpack.c.bf16 %v2538_v20, %v2537_v18  ;;  %v2545_v28 = vpack.c.bf16 %v8717_v63, %v8721_v56 }
 0x531   :  { %v5958_v51 = vpop.permute.xlu0 %5957  ;;  %v5945_v27 = vunpack.i.h.bf16 %v8701_v33  ;;  %v5944_v26 = vunpack.i.l.bf16 %v8701_v33 }
 0x532   :  { %v5960_v32 = vunpack.i.h.bf16 %v5958_v51  ;;  %v5959_v19 = vunpack.i.l.bf16 %v5958_v51 }
 0x533   :  { %v2260_v33 = vsel %vm721_vm2, %v5939_v36, %v5944_v26  ;;  %v2261_v51 = vsel %vm721_vm2, %v5940_v12, %v5945_v27  ;;  %v2265_v16 = vsel %vm721_vm2, %v5945_v27, %v5940_v12 }
 0x534   :  { %v8703_v50 = vpop.permute.xlu1 %5952 }
 0x535   :  { %v5968_v4 = vpop.permute.xlu0 %5967  ;;  %v5955_v7 = vunpack.i.h.bf16 %v8703_v50  ;;  %v5954_v47 = vunpack.i.l.bf16 %v8703_v50 }
 0x536   :  { %v5970_v54 = vunpack.i.h.bf16 %v5968_v4  ;;  %v5969_v8 = vunpack.i.l.bf16 %v5968_v4 }
 0x537   :  { %v2565_v12 = vsel %vm721_vm2, %v5949_v45, %v5954_v47 }
 0x538   :  { %v5963_v14 = vpop.permute.xlu1 %5962 }
 0x539   :  { %v5978_v35 = vpop.permute.xlu0 %5977  ;;  %v5965_v40 = vunpack.i.h.bf16 %v5963_v14  ;;  %v5964_v13 = vunpack.i.l.bf16 %v5963_v14 }
 0x53a   :  { %v5980_v49 = vunpack.i.h.bf16 %v5978_v35  ;;  %v5979_v22 = vunpack.i.l.bf16 %v5978_v35  ;;  %v2566_v35 = vsel %vm721_vm2, %v5950_v17, %v5955_v7 }
 0x53b   :  { %v2211_v3 = vsel %vm607_vm0, %v5965_v40, %v5960_v32  ;;  %v2210_v10 = vsel %vm607_vm0, %v5964_v13, %v5959_v19  ;;  %v2206_v46 = vsel %vm607_vm0, %v5959_v19, %v5964_v13  ;;  %v2207_v39 = vsel %vm607_vm0, %v5960_v32, %v5965_v40 }
 0x53c   :  { %v5973_v59 = vpop.permute.xlu1 %5972  ;;  %v2215_v44 = vpack.c.bf16 %v2207_v39, %v2206_v46  ;;  %v2214_v31 = vpack.c.bf16 %v2211_v3, %v2210_v10  ;;  %v2264_v32 = vsel %vm721_vm2, %v5944_v26, %v5939_v36  ;;  %v2269_v19 = vpack.c.bf16 %v2261_v51, %v2260_v33 }
 0x53d   :  { %v5975_v34 = vunpack.i.h.bf16 %v5973_v59  ;;  %v5974_v38 = vunpack.i.l.bf16 %v5973_v59  ;;  %v5988_v57 = vpop.permute.xlu0 %5987  ;;  %v2570_v39 = vsel %vm721_vm2, %v5955_v7, %v5950_v17  ;;  %v2569_v59 = vsel %vm721_vm2, %v5954_v47, %v5949_v45  ;;  %v6256_v7 = vld [vmem:[#allocation10 + $0x18] sm:$0xff]  }
 0x53e   :  { %2310 = vmatprep.subr.bf16.mxu0 %v2215_v44  ;;  %v5990_v4 = vunpack.i.h.bf16 %v5988_v57  ;;  %v5989_v21 = vunpack.i.l.bf16 %v5988_v57  ;;  %v2574_v18 = vpack.c.bf16 %v2566_v35, %v2565_v12  ;;  %v6257_v47 = vld [vmem:[#allocation10 + $0x18] sm:$0xff]  }
 0x53f   :  { %v2516_v43 = vsel %vm607_vm0, %v5975_v34, %v5970_v54  ;;  %v2515_v2 = vsel %vm607_vm0, %v5974_v38, %v5969_v8  ;;  %2311 = vmatpush1.bf16.msra.mxu0 %v2214_v31  ;;  %v2511_v52 = vsel %vm607_vm0, %v5969_v8, %v5974_v38  ;;  %v2512_v9 = vsel %vm607_vm0, %v5970_v54, %v5975_v34 }
 0x540   :  { %v5983_v1 = vpop.permute.xlu1 %5982  ;;  %2312 = vmatprep.subr.bf16.mxu0 %v2241_v15  ;;  %v2520_v60 = vpack.c.bf16 %v2512_v9, %v2511_v52  ;;  %v2519_v37 = vpack.c.bf16 %v2516_v43, %v2515_v2  ;;  %v2268_v31 = vpack.c.bf16 %v2265_v16, %v2264_v32  ;;  %v2573_v43 = vpack.c.bf16 %v2570_v39, %v2569_v59  ;;  %v6250_v9 = vld [vmem:[#allocation10] sm:$0xff]  }
 0x541   :  { %v5985_v24 = vunpack.i.h.bf16 %v5983_v1  ;;  %v5984_v25 = vunpack.i.l.bf16 %v5983_v1  ;;  %v5998_v53 = vpop.permute.xlu0 %5997 }
 0x542   :  { %2615 = vmatprep.subr.bf16.mxu1 %v2520_v60  ;;  %v6000_v36 = vunpack.i.h.bf16 %v5998_v53  ;;  %v5999_v15 = vunpack.i.l.bf16 %v5998_v53 }
 0x543   :  { %v2239_v23 = vsel %vm664_vm1, %v5985_v24, %v5980_v49  ;;  %v2238_v55 = vsel %vm664_vm1, %v5984_v25, %v5979_v22  ;;  %2313 = vmatpush1.bf16.msra.mxu0 %v2240_v42  ;;  %2616 = vmatpush1.bf16.msra.mxu1 %v2519_v37  ;;  %v2234_v50 = vsel %vm664_vm1, %v5979_v22, %v5984_v25  ;;  %v6253_v22 = vld [vmem:[#allocation10 + $0x8] sm:$0xff]   ;;  %v6255_v25 = vld [vmem:[#allocation10 + $0x10] sm:$0xff]  }
 0x544   :  { %v5993_v0 = vpop.permute.xlu1 %5992  ;;  %2617 = vmatprep.subr.bf16.mxu1 %v2546_v61  ;;  %v2235_v29 = vsel %vm664_vm1, %v5980_v49, %v5985_v24  ;;  %v2242_v11 = vpack.c.bf16 %v2239_v23, %v2238_v55  ;;  %v6252_v49 = vld [vmem:[#allocation10 + $0x8] sm:$0xff]   ;;  %v6254_v24 = vld [vmem:[#allocation10 + $0x10] sm:$0xff]  }
 0x545   :  { %v5995_v58 = vunpack.i.h.bf16 %v5993_v0  ;;  %v5994_v30 = vunpack.i.l.bf16 %v5993_v0  ;;  %v2243_v14 = vpack.c.bf16 %v2235_v29, %v2234_v50  ;;  %v6008_v44 = vpop.permute.xlu0 %6007 }
 0x546   :  { %v6010_v27 = vunpack.i.h.bf16 %v6008_v44  ;;  %v6009_v26 = vunpack.i.l.bf16 %v6008_v44 }
 0x547   :  { %v2544_v40 = vsel %vm664_vm1, %v5995_v58, %v5990_v4  ;;  %v2543_v13 = vsel %vm664_vm1, %v5994_v30, %v5989_v21  ;;  %2314 = vmatprep.subr.bf16.mxu0 %v2243_v14  ;;  %2618 = vmatpush1.bf16.msra.mxu1 %v2545_v28  ;;  %v2539_v5 = vsel %vm664_vm1, %v5989_v21, %v5994_v30  ;;  %v6251_v28 = vld [vmem:[#allocation10] sm:$0xff]  }
 0x548   :  { %2315 = vmatpush1.bf16.msra.mxu0 %v2242_v11  ;;  %v6003_v41 = vpop.permute.xlu1 %6002  ;;  %v2540_v63 = vsel %vm664_vm1, %v5990_v4, %v5995_v58  ;;  %v2547_v56 = vpack.c.bf16 %v2544_v40, %v2543_v13 }
 0x549   :  { %v6005_v3 = vunpack.i.h.bf16 %v6003_v41  ;;  %v6004_v10 = vunpack.i.l.bf16 %v6003_v41  ;;  %2316 = vmatprep.subr.bf16.mxu0 %v2269_v19  ;;  %v2548_v46 = vpack.c.bf16 %v2540_v63, %v2539_v5 }
 0x54b   :  { %v2267_v20 = vsel %vm721_vm2, %v6005_v3, %v6000_v36  ;;  %v2266_v54 = vsel %vm721_vm2, %v6004_v10, %v5999_v15  ;;  %2619 = vmatprep.subr.bf16.mxu1 %v2548_v46  ;;  %v2262_v8 = vsel %vm721_vm2, %v5999_v15, %v6004_v10  ;;  %v2263_v62 = vsel %vm721_vm2, %v6000_v36, %v6005_v3 }
 0x54c   :  { %2317 = vmatpush1.bf16.msra.mxu0 %v2268_v31  ;;  %2620 = vmatpush1.bf16.msra.mxu1 %v2547_v56  ;;  %v6013_v34 = vpop.permute.xlu1 %6012  ;;  %v2271_v38 = vpack.c.bf16 %v2263_v62, %v2262_v8  ;;  %v2270_v17 = vpack.c.bf16 %v2267_v20, %v2266_v54 }
 0x54d   :  { %v6015_v57 = vunpack.i.h.bf16 %v6013_v34  ;;  %v6014_v42 = vunpack.i.l.bf16 %v6013_v34  ;;  %2621 = vmatprep.subr.bf16.mxu1 %v2574_v18 }
 0x54e   :  { %2318 = vmatprep.subr.bf16.mxu0 %v2271_v38 }
 0x54f   :  { %v2572_v2 = vsel %vm721_vm2, %v6015_v57, %v6010_v27  ;;  %v2571_v52 = vsel %vm721_vm2, %v6014_v42, %v6009_v26  ;;  %v2567_v1 = vsel %vm721_vm2, %v6009_v26, %v6014_v42  ;;  %v2568_v60 = vsel %vm721_vm2, %v6010_v27, %v6015_v57 }
 0x550   :  { %2319 = vmatpush1.bf16.msra.mxu0 %v2270_v17  ;;  %2622 = vmatpush1.bf16.msra.mxu1 %v2573_v43  ;;  %v2576_v37 = vpack.c.bf16 %v2568_v60, %v2567_v1  ;;  %v2575_v61 = vpack.c.bf16 %v2572_v2, %v2571_v52 }
 0x552   :  { %2623 = vmatprep.subr.bf16.mxu1 %v2576_v37 }
 0x553   :  { %2337 = vmatmul.mubr.bf16.vlgmr.msra.gmra.mrb[32].mxu0 %v6250_v9 }
 0x554   :  { %2624 = vmatpush1.bf16.msra.mxu1 %v2575_v61  ;;  %2346 = vmatprep.mubr.bf16.mxu0 %v6688_v48 }
 0x557   :  { %2642 = vmatmul.mubr.bf16.vlgmr.msra.gmra.mrb[32].mxu1 %v6251_v28 }
 0x558   :  { %2651 = vmatprep.mubr.bf16.mxu1 %v6688_v48 }
 0x55b   :  { %2347 = vmatmul.mubr.bf16.gmra.mrb[36].mxu0 %v6252_v49 }
 0x55c   :  { %2356 = vmatprep.mubr.bf16.mxu0 %v6688_v48 }
 0x55f   :  { %2652 = vmatmul.mubr.bf16.gmra.mrb[36].mxu1 %v6253_v22 }
 0x560   :  { %2661 = vmatprep.mubr.bf16.mxu1 %v6688_v48 }
 0x563   :  { %2357 = vmatmul.mubr.bf16.gmra.mrb[40].mxu0 %v6254_v24 }
 0x564   :  { %2366 = vmatprep.mubr.bf16.mxu0 %v6688_v48 }
 0x567   :  { %2662 = vmatmul.mubr.bf16.gmra.mrb[40].mxu1 %v6255_v25 }
 0x568   :  { %2671 = vmatprep.mubr.bf16.mxu1 %v6688_v48 }
 0x56b   :  { %2367 = vmatmul.mubr.bf16.gmra.mrb[44].mxu0 %v6256_v7 }
 0x56f   :  { %2672 = vmatmul.mubr.bf16.gmra.mrb[44].mxu1 %v6257_v47 }
 0x626   :  { %v8813_v33 = vpop.f32.mrb[32].mxu0 }
 0x627   :  { %v8815_v51 = vpop.f32.mrb[33].mxu0 }
 0x628   :  { %v8817_v45 = vpop.f32.mrb[34].mxu0 }
 0x629   :  { %v8819_v23 = vpop.f32.mrb[35].mxu0 }
 0x62a   :  { %v8821_v55 = vpop.f32.mrb[32].mxu1 }
 0x62b   :  { %v8823_v50 = vpop.f32.mrb[33].mxu1 }
 0x62c   :  { %v8825_v16 = vpop.f32.mrb[34].mxu1 }
 0x62d   :  { %v8827_v4 = vpop.f32.mrb[35].mxu1 }
 0x62e   :  { %v2348_v48 = vpop.f32.mrb[36].mxu0 }
 0x62f   :  { %2377 = vrot.lane.b32.xlu0 %v2348_v48, %s6685_s3  ;;  %v2350_v53 = vpop.f32.mrb[37].mxu0 }
 0x630   :  { %v2352_v0 = vpop.f32.mrb[38].mxu0 }
 0x631   :  { %2379 = vrot.lane.b32.xlu1 %v2352_v0, %s6685_s3  ;;  %v2354_v29 = vpop.f32.mrb[39].mxu0 }
 0x632   :  { %v2653_v11 = vpop.f32.mrb[36].mxu1 }
 0x633   :  { %v2655_v21 = vpop.f32.mrb[37].mxu1  ;;  %2682 = vrot.lane.b32.xlu0 %v2653_v11, %s6685_s3 }
 0x634   :  { %v2657_v58 = vpop.f32.mrb[38].mxu1 }
 0x635   :  { %2684 = vrot.lane.b32.xlu1 %v2657_v58, %s6685_s3  ;;  %v2659_v30 = vpop.f32.mrb[39].mxu1 }
 0x636   :  { %v2358_v14 = vpop.f32.mrb[40].mxu0 }
 0x637   :  { %2381 = vrot.lane.b32.xlu0 %v2350_v53, %s6685_s3  ;;  %v2360_v32 = vpop.f32.mrb[41].mxu0 }
 0x638   :  { %v2362_v19 = vpop.f32.mrb[42].mxu0 }
 0x639   :  { %2383 = vrot.lane.b32.xlu1 %v2354_v29, %s6685_s3  ;;  %v2364_v12 = vpop.f32.mrb[43].mxu0 }
 0x63a   :  { %v2663_v35 = vpop.f32.mrb[40].mxu1 }
 0x63b   :  { %2686 = vrot.lane.b32.xlu0 %v2655_v21, %s6685_s3  ;;  %v2665_v40 = vpop.f32.mrb[41].mxu1 }
 0x63c   :  { %v2667_v13 = vpop.f32.mrb[42].mxu1 }
 0x63d   :  { %2688 = vrot.lane.b32.xlu1 %v2659_v30, %s6685_s3  ;;  %v2669_v5 = vpop.f32.mrb[43].mxu1 }
 0x63e   :  { %v2368_v36 = vpop.f32.mrb[44].mxu0 }
 0x63f   :  { %2393 = vrot.lane.b32.xlu0 %v2358_v14, %s6686_s2  ;;  %v2370_v41 = vpop.f32.mrb[45].mxu0 }
 0x640   :  { %v2372_v63 = vpop.f32.mrb[46].mxu0 }
 0x641   :  { %2395 = vrot.lane.b32.xlu1 %v2362_v19, %s6686_s2  ;;  %v2374_v56 = vpop.f32.mrb[47].mxu0 }
 0x642   :  { %v2673_v15 = vpop.f32.mrb[44].mxu1 }
 0x643   :  { %2698 = vrot.lane.b32.xlu0 %v2663_v35, %s6686_s2  ;;  %v2675_v3 = vpop.f32.mrb[45].mxu1 }
 0x644   :  { %v2677_v10 = vpop.f32.mrb[46].mxu1 }
 0x645   :  { %2700 = vrot.lane.b32.xlu1 %v2667_v13, %s6686_s2  ;;  %v2679_v46 = vpop.f32.mrb[47].mxu1 }
 0x647   :  { %2397 = vrot.lane.b32.xlu0 %v2360_v32, %s6686_s2 }
 0x649   :  { %2399 = vrot.lane.b32.xlu1 %v2364_v12, %s6686_s2 }
 0x64b   :  { %2702 = vrot.lane.b32.xlu0 %v2665_v40, %s6686_s2 }
 0x64d   :  { %2704 = vrot.lane.b32.xlu1 %v2669_v5, %s6686_s2 }
 0x64f   :  { %2409 = vrot.lane.b32.xlu0 %v2368_v36, %s6687_s17 }
 0x651   :  { %2411 = vrot.lane.b32.xlu1 %v2372_v63, %s6687_s17 }
 0x653   :  { %2714 = vrot.lane.b32.xlu0 %v2673_v15, %s6687_s17 }
 0x655   :  { %2716 = vrot.lane.b32.xlu1 %v2677_v10, %s6687_s17 }
 0x657   :  { %2413 = vrot.lane.b32.xlu0 %v2370_v41, %s6687_s17 }
 0x659   :  { %2415 = vrot.lane.b32.xlu1 %v2374_v56, %s6687_s17 }
 0x65b   :  { %2718 = vrot.lane.b32.xlu0 %v2675_v3, %s6687_s17 }
 0x65d   :  { %2720 = vrot.lane.b32.xlu1 %v2679_v46, %s6687_s17 }
 0x6a1   :  { %v2378_v39 = vpop.permute.xlu0 %2377 }
 0x6a3   :  { %v2380_v59 = vpop.permute.xlu1 %2379 }
 0x6a5   :  { %v2683_v44 = vpop.permute.xlu0 %2682 }
 0x6a7   :  { %v2685_v31 = vpop.permute.xlu1 %2684 }
 0x6a9   :  { %v2382_v18 = vpop.permute.xlu0 %2381 }
 0x6aa   :  { %v2385_v2 = vsel %vm971_vm3, %v2378_v39, %v2382_v18  ;;  %v2387_v52 = vsel %vm971_vm3, %v2382_v18, %v2378_v39 }
 0x6ab   :  { %v2384_v20 = vpop.permute.xlu1 %2383  ;;  %v2389_v24 = vadd.f32 %v2387_v52, %v8813_v33  ;;  %v2390_v25 = vadd.f32 %v2385_v2, %v8815_v51 }
 0x6ac   :  { %v2386_v1 = vsel %vm971_vm3, %v2380_v59, %v2384_v20  ;;  %v2388_v60 = vsel %vm971_vm3, %v2384_v20, %v2380_v59 }
 0x6ad   :  { %v2687_v54 = vpop.permute.xlu0 %2686  ;;  %v2391_v48 = vadd.f32 %v2388_v60, %v8817_v45  ;;  %v2392_v53 = vadd.f32 %v2386_v1, %v8819_v23 }
 0x6ae   :  { %v2692_v37 = vsel %vm971_vm3, %v2687_v54, %v2683_v44  ;;  %v2690_v61 = vsel %vm971_vm3, %v2683_v44, %v2687_v54 }
 0x6af   :  { %v2689_v8 = vpop.permute.xlu1 %2688  ;;  %v2694_v0 = vadd.f32 %v2692_v37, %v8821_v55  ;;  %v2695_v33 = vadd.f32 %v2690_v61, %v8823_v50 }
 0x6b0   :  { %v2691_v28 = vsel %vm971_vm3, %v2685_v31, %v2689_v8  ;;  %v2693_v49 = vsel %vm971_vm3, %v2689_v8, %v2685_v31 }
 0x6b1   :  { %v2394_v62 = vpop.permute.xlu0 %2393  ;;  %v2696_v51 = vadd.f32 %v2693_v49, %v8825_v16  ;;  %v2697_v21 = vadd.f32 %v2691_v28, %v8827_v4  ;;  %v6258_v49 = vld [vmem:[#allocation11] ss:$28 sps:$4 sm:$0xff]  }
 0x6b3   :  { %v2396_v34 = vpop.permute.xlu1 %2395 }
 0x6b5   :  { %v2699_v38 = vpop.permute.xlu0 %2698 }
 0x6b7   :  { %v2701_v17 = vpop.permute.xlu1 %2700 }
 0x6b9   :  { %v2398_v27 = vpop.permute.xlu0 %2397 }
 0x6ba   :  { %v2401_v7 = vsel %vm1004_vm4, %v2394_v62, %v2398_v27  ;;  %v2403_v47 = vsel %vm1004_vm4, %v2398_v27, %v2394_v62 }
 0x6bb   :  { %v2400_v26 = vpop.permute.xlu1 %2399  ;;  %v2405_v30 = vadd.f32 %v2403_v47, %v2389_v24  ;;  %v2406_v14 = vadd.f32 %v2401_v7, %v2390_v25  ;;  %v6261_v24 = vld [vmem:[#allocation11 + $0x8] ss:$28 sps:$4 sm:$0xff]   ;;  %v6266_v7 = vld [vmem:[#allocation11 + $0x3c] ss:$28 sps:$4 sm:$0xff]  }
 0x6bc   :  { %v2404_v29 = vsel %vm1004_vm4, %v2400_v26, %v2396_v34  ;;  %v2402_v58 = vsel %vm1004_vm4, %v2396_v34, %v2400_v26  ;;  %v6263_v25 = vld [vmem:[#allocation11 + $0xc] ss:$28 sps:$4 sm:$0xff]   ;;  %v6269_v47 = vld [vmem:[#allocation11 + $0x44] ss:$28 sps:$4 sm:$0xff]  }
 0x6bd   :  { %v2703_v57 = vpop.permute.xlu0 %2702  ;;  %v2407_v32 = vadd.f32 %v2404_v29, %v2391_v48  ;;  %v2408_v19 = vadd.f32 %v2402_v58, %v2392_v53  ;;  %3562 = vmatprep.subr.bf16.mxu1 %v6263_v25  ;;  %v6264_v48 = vld [vmem:[#allocation11 + $0x38] ss:$28 sps:$4 sm:$0xff]   ;;  %v6267_v53 = vld [vmem:[#allocation11 + $0x40] ss:$28 sps:$4 sm:$0xff]   ;;  %v6276_v58 = vld [vmem:[#allocation11 + $0xa8] ss:$28 sps:$4 sm:$0xff]  }
 0x6be   :  { %v2706_v45 = vsel %vm1004_vm4, %v2699_v38, %v2703_v57  ;;  %v2708_v23 = vsel %vm1004_vm4, %v2703_v57, %v2699_v38  ;;  %3563 = vmatpush1.bf16.msra.mxu1 %v6261_v24  ;;  %v6275_v29 = vld [vmem:[#allocation11 + $0x7c] ss:$28 sps:$4 sm:$0xff]  }
 0x6bf   :  { %v2705_v42 = vpop.permute.xlu1 %2704  ;;  %v2710_v5 = vadd.f32 %v2708_v23, %v2694_v0  ;;  %v2711_v36 = vadd.f32 %v2706_v45, %v2695_v33  ;;  %v6272_v0 = vld [vmem:[#allocation11 + $0x74] ss:$28 sps:$4 sm:$0xff]   ;;  %3564 = vmatprep.subr.bf16.mxu1 %v6269_v47  ;;  %v6287_v45 = vld [vmem:[#allocation11 + $0xec] ss:$28 sps:$4 sm:$0xff]   ;;  %v6282_v23 = vld [vmem:[#allocation11 + $0xe0] ss:$28 sps:$4 sm:$0xff]  }
 0x6c0   :  { %v2709_v50 = vsel %vm1004_vm4, %v2705_v42, %v2701_v17  ;;  %v2707_v12 = vsel %vm1004_vm4, %v2701_v17, %v2705_v42  ;;  %v6273_v33 = vld [vmem:[#allocation11 + $0x78] ss:$28 sps:$4 sm:$0xff]  }
 0x6c1   :  { %v2410_v43 = vpop.permute.xlu0 %2409  ;;  %v2712_v56 = vadd.f32 %v2709_v50, %v2696_v51  ;;  %v2713_v39 = vadd.f32 %v2707_v12, %v2697_v21  ;;  %v6278_v51 = vld [vmem:[#allocation11 + $0xac] ss:$28 sps:$4 sm:$0xff]   ;;  %v6281_v21 = vld [vmem:[#allocation11 + $0xb4] ss:$28 sps:$4 sm:$0xff]   ;;  %v6293_v50 = vld [vmem:[#allocation11 + $0x124] ss:$28 sps:$4 sm:$0xff]  }
 0x6c2   :  { %3565 = vmatpush1.bf16.msra.mxu1 %v6267_v53  ;;  %v6299_v12 = vld [vmem:[#allocation11 + $0x15c] ss:$28 sps:$4 sm:$0xff]  }
 0x6c3   :  { %v2412_v9 = vpop.permute.xlu1 %2411  ;;  %3566 = vmatprep.subr.bf16.mxu1 %v6275_v29 }
 0x6c5   :  { %v2715_v22 = vpop.permute.xlu0 %2714 }
 0x6c6   :  { %3567 = vmatpush1.bf16.msra.mxu1 %v6273_v33 }
 0x6c7   :  { %v2717_v11 = vpop.permute.xlu1 %2716  ;;  %3568 = vmatprep.subr.bf16.mxu1 %v6281_v21 }
 0x6c9   :  { %v2414_v55 = vpop.permute.xlu0 %2413 }
 0x6ca   :  { %v2417_v16 = vsel %vm1037_vm5, %v2410_v43, %v2414_v55  ;;  %v2419_v4 = vsel %vm1037_vm5, %v2414_v55, %v2410_v43  ;;  %v6285_v55 = vld [vmem:[#allocation11 + $0xe8] ss:$28 sps:$4 sm:$0xff]  }
 0x6cb   :  { %v8897_v35 = vadd.f32 %v2419_v4, %v2405_v30  ;;  %v8899_v40 = vadd.f32 %v2417_v16, %v2406_v14  ;;  %v2416_v13 = vpop.permute.xlu1 %2415  ;;  %v6279_v30 = vld [vmem:[#allocation11 + $0xb0] ss:$28 sps:$4 sm:$0xff]   ;;  %v6284_v14 = vld [vmem:[#allocation11 + $0xe4] ss:$28 sps:$4 sm:$0xff]   ;;  %v6288_v16 = vld [vmem:[#allocation11 + $0x118] ss:$28 sps:$4 sm:$0xff]  }
 0x6cc   :  { %v2418_v41 = vsel %vm1037_vm5, %v2412_v9, %v2416_v13  ;;  %v2420_v63 = vsel %vm1037_vm5, %v2416_v13, %v2412_v9  ;;  %3569 = vmatpush1.bf16.msra.mxu1 %v6279_v30  ;;  %v6291_v4 = vld [vmem:[#allocation11 + $0x120] ss:$28 sps:$4 sm:$0xff]   ;;  %v6294_v13 = vld [vmem:[#allocation11 + $0x150] ss:$28 sps:$4 sm:$0xff]  }
 0x6cd   :  { %v8905_v15 = vadd.f32 %v2420_v63, %v2407_v32  ;;  %v8907_v3 = vadd.f32 %v2418_v41, %v2408_v19  ;;  %v2719_v10 = vpop.permute.xlu0 %2718  ;;  %v2429_v46 = vadd.f32 %v8899_v40, %v8897_v35  ;;  %v2437_v31 = vmul.f32 %v8897_v35, %v8897_v35  ;;  %v6290_v32 = vld [vmem:[#allocation11 + $0x11c] ss:$28 sps:$4 sm:$0xff]   ;;  %3570 = vmatprep.subr.bf16.mxu1 %v6287_v45  ;;  %v6296_v19 = vld [vmem:[#allocation11 + $0x154] ss:$28 sps:$4 sm:$0xff]   ;;  %v6300_v63 = vld [vmem:[#allocation11 + $0x188] ss:$28 sps:$4 sm:$0xff]  }
 0x6ce   :  { %v2722_v59 = vsel %vm1037_vm5, %v2715_v22, %v2719_v10  ;;  %v2724_v44 = vsel %vm1037_vm5, %v2719_v10, %v2715_v22  ;;  %v2438_v62 = vmul.f32 %v8899_v40, %v8899_v40  ;;  %v6260_v22 = vld [vmem:[#allocation11 + $0x4] ss:$28 sps:$4 sm:$0xff]   ;;  %v6305_v41 = vld [vmem:[#allocation11 + $0x194] ss:$28 sps:$4 sm:$0xff]  }
 0x6cf   :  { %v8917_v18 = vadd.f32 %v2724_v44, %v2710_v5  ;;  %v8919_v20 = vadd.f32 %v2722_v59, %v2711_v36  ;;  %2430 = vadd.xlane.f32.xlu0 %v2429_v46  ;;  %v2721_v54 = vpop.permute.xlu1 %2720  ;;  %v2432_v8 = vadd.f32 %v8907_v3, %v8905_v15  ;;  %v2439_v52 = vmul.f32 %v8905_v15, %v8905_v15  ;;  %v6297_v5 = vld [vmem:[#allocation11 + $0x158] ss:$28 sps:$4 sm:$0xff]   ;;  %v6302_v36 = vld [vmem:[#allocation11 + $0x18c] ss:$28 sps:$4 sm:$0xff]   ;;  %v6308_v10 = vld [vmem:[#allocation11 + $0x1c4] ss:$28 sps:$4 sm:$0xff]  }
 0x6d0   :  { %v2723_v34 = vsel %vm1037_vm5, %v2717_v11, %v2721_v54  ;;  %v2725_v38 = vsel %vm1037_vm5, %v2721_v54, %v2717_v11  ;;  %v2441_v57 = vadd.f32 %v2438_v62, %v2437_v31  ;;  %v2440_v9 = vmul.f32 %v8907_v3, %v8907_v3  ;;  %3519 = vmatprep.subr.bf16.mxu0 %v6260_v22  ;;  %v6270_v11 = vld [vmem:[#allocation11 + $0x70] ss:$28 sps:$4 sm:$0xff]   ;;  %v6309_v59 = vld [vmem:[#allocation11 + $0x1c8] ss:$28 sps:$4 sm:$0xff]   ;;  %v6314_v44 = vld [vmem:[#allocation11 + $0x1fc] ss:$28 sps:$4 sm:$0xff]  }
 0x6d1   :  { %v8929_v17 = vadd.f32 %v2725_v38, %v2712_v56  ;;  %v8931_v27 = vadd.f32 %v2723_v34, %v2713_v39  ;;  %2433 = vadd.xlane.f32.xlu1 %v2432_v8  ;;  %v2735_v26 = vadd.f32 %v8919_v20, %v8917_v18  ;;  %v2743_v42 = vmul.f32 %v8917_v18, %v8917_v18  ;;  %v6303_v56 = vld [vmem:[#allocation11 + $0x190] ss:$28 sps:$4 sm:$0xff]   ;;  %v6306_v39 = vld [vmem:[#allocation11 + $0x1c0] ss:$28 sps:$4 sm:$0xff]   ;;  %v6312_v54 = vld [vmem:[#allocation11 + $0x1f8] ss:$28 sps:$4 sm:$0xff]  }
 0x6d2   :  { %v2744_v43 = vmul.f32 %v8919_v20, %v8919_v20  ;;  %v2444_v60 = vadd.f32 %v2440_v9, %v2439_v52  ;;  %3520 = vmatpush1.bf16.msra.mxu0 %v6258_v49  ;;  %3571 = vmatpush1.bf16.msra.mxu1 %v6285_v55  ;;  %v6311_v46 = vld [vmem:[#allocation11 + $0x1cc] ss:$28 sps:$4 sm:$0xff]   ;;  %v6317_v31 = vld [vmem:[#allocation11 + $0x204] ss:$28 sps:$4 sm:$0xff]   ;;  %v6320_v62 = vld [vmem:[#allocation11 + $0x234] ss:$28 sps:$4 sm:$0xff]  }
 0x6d3   :  { %2736 = vadd.xlane.f32.xlu0 %v2735_v26  ;;  %v2738_v2 = vadd.f32 %v8931_v27, %v8929_v17  ;;  %v2745_v37 = vmul.f32 %v8929_v17, %v8929_v17  ;;  %v2746_v61 = vmul.f32 %v8931_v27, %v8931_v27  ;;  %3521 = vmatprep.subr.bf16.mxu0 %v6266_v7  ;;  %v6315_v8 = vld [vmem:[#allocation11 + $0x200] ss:$28 sps:$4 sm:$0xff]   ;;  %v6318_v38 = vld [vmem:[#allocation11 + $0x230] ss:$28 sps:$4 sm:$0xff]   ;;  %v6321_v26 = vld [vmem:[#allocation11 + $0x238] ss:$28 sps:$4 sm:$0xff]  }
 0x6d4   :  { %v2747_v1 = vadd.f32 %v2744_v43, %v2743_v42  ;;  %3572 = vmatprep.subr.bf16.mxu1 %v6293_v50  ;;  %v6323_v34 = vld [vmem:[#allocation11 + $0x23c] ss:$28 sps:$4 sm:$0xff]   ;;  %v6329_v42 = vld [vmem:[#allocation11 + $0x274] ss:$28 sps:$4 sm:$0xff]   ;;  %v6324_v43 = vld [vmem:[#allocation11 + $0x268] ss:$28 sps:$4 sm:$0xff]  }
 0x6d5   :  { %2442 = vadd.xlane.f32.xlu1 %v2441_v57  ;;  %v2750_v28 = vadd.f32 %v2746_v61, %v2745_v37  ;;  %v6326_v57 = vld [vmem:[#allocation11 + $0x26c] ss:$28 sps:$4 sm:$0xff]   ;;  %v2763_v30 = vld [vmem:[%s10067_s7] sm:$0xff] }
 0x6d6   :  { %3522 = vmatpush1.bf16.msra.mxu0 %v6264_v48  ;;  %3573 = vmatpush1.bf16.msra.mxu1 %v6291_v4  ;;  %v8957_v50 = vld [vmem:[#allocation11 + $0x2a4] ss:$28 sps:$4 sm:$0xff]   ;;  %v2764_v4 = vld [vmem:[%s10067_s7 + $0x8] sm:$0xff]  ;;  %s6689_s7 = smov 56  }
 0x6d7   :  { %2739 = vadd.xlane.f32.xlu0 %v2738_v2  ;;  %3523 = vmatprep.subr.bf16.mxu0 %v6272_v0  ;;  %v6327_v2 = vld [vmem:[#allocation11 + $0x270] ss:$28 sps:$4 sm:$0xff]  }
 0x6d8   :  { %3574 = vmatprep.subr.bf16.mxu1 %v6299_v12 }
 0x6d9   :  { %2748 = vadd.xlane.f32.xlu1 %v2747_v1 }
 0x6da   :  { %3524 = vmatpush1.bf16.msra.mxu0 %v6270_v11  ;;  %3575 = vmatpush1.bf16.msra.mxu1 %v6297_v5 }
 0x6db   :  { %2445 = vadd.xlane.f32.xlu0 %v2444_v60  ;;  %3525 = vmatprep.subr.bf16.mxu0 %v6278_v51 }
 0x6dc   :  { %3576 = vmatprep.subr.bf16.mxu1 %v6305_v41  ;;  %v8973_v41 = vld [vmem:[#allocation11 + $0x2dc] ss:$28 sps:$4 sm:$0xff]  }
 0x6de   :  { %3526 = vmatpush1.bf16.msra.mxu0 %v6276_v58  ;;  %3577 = vmatpush1.bf16.msra.mxu1 %v6303_v56 }
 0x6df   :  { %2751 = vadd.xlane.f32.xlu0 %v2750_v28  ;;  %3527 = vmatprep.subr.bf16.mxu0 %v6284_v14 }
 0x6e0   :  { %3578 = vmatprep.subr.bf16.mxu1 %v6311_v46  ;;  %v8979_v46 = vld [vmem:[#allocation11 + $0x2e0] ss:$28 sps:$4 sm:$0xff]  }
 0x6e2   :  { %3528 = vmatpush1.bf16.msra.mxu0 %v6282_v23  ;;  %3579 = vmatpush1.bf16.msra.mxu1 %v6309_v59  ;;  %v2771_v23 = vld [vmem:[%s10068_s8] sm:$0xff] }
 0x6e3   :  { %3529 = vmatprep.subr.bf16.mxu0 %v6290_v32  ;;  %3580 = vmatprep.subr.bf16.mxu1 %v6317_v31  ;;  %v8955_v32 = vld [vmem:[#allocation11 + $0x2a0] ss:$28 sps:$4 sm:$0xff]   ;;  %v8989_v31 = vld [vmem:[#allocation11 + $0x318] ss:$28 sps:$4 sm:$0xff]  }
 0x6e6   :  { %3530 = vmatpush1.bf16.msra.mxu0 %v6288_v16  ;;  %3581 = vmatpush1.bf16.msra.mxu1 %v6315_v8  ;;  %v8959_v16 = vld [vmem:[#allocation11 + $0x2a8] ss:$28 sps:$4 sm:$0xff]  }
 0x6e7   :  { %3531 = vmatprep.subr.bf16.mxu0 %v6296_v19  ;;  %3582 = vmatprep.subr.bf16.mxu1 %v6323_v34  ;;  %v8964_v19 = vld [vmem:[#allocation11 + $0x2ac] ss:$28 sps:$4 sm:$0xff]  }
 0x6e8   :  { %v8997_v8 = vld [vmem:[#allocation11 + $0x34c] ss:$28 sps:$4 sm:$0xff]  }
 0x6e9   :  { %v9001_v34 = vld [vmem:[#allocation11 + $0x348] ss:$28 sps:$4 sm:$0xff]  }
 0x6ea   :  { %3532 = vmatpush1.bf16.msra.mxu0 %v6294_v13  ;;  %3583 = vmatpush1.bf16.msra.mxu1 %v6321_v26  ;;  %v9009_v26 = vld [vmem:[#allocation11 + $0x14] ss:$28 sps:$4 sm:$0xff]  }
 0x6eb   :  { %3533 = vmatprep.subr.bf16.mxu0 %v6302_v36  ;;  %3584 = vmatprep.subr.bf16.mxu1 %v6329_v42  ;;  %v2772_v36 = vld [vmem:[%s10068_s8 + $0x8] sm:$0xff]  ;;  %s6691_s8 = smov 84  }
 0x6ee   :  { %3534 = vmatpush1.bf16.msra.mxu0 %v6300_v63  ;;  %3585 = vmatpush1.bf16.msra.mxu1 %v6327_v2  ;;  %v8975_v63 = vld [vmem:[#allocation11 + $0x2e4] ss:$28 sps:$4 sm:$0xff]  }
 0x6ef   :  { %3535 = vmatprep.subr.bf16.mxu0 %v6308_v10  ;;  %3586 = vmatprep.subr.bf16.mxu1 %v8964_v19  ;;  %v8977_v10 = vld [vmem:[#allocation11 + $0x2d8] ss:$28 sps:$4 sm:$0xff]  }
 0x6f2   :  { %3536 = vmatpush1.bf16.msra.mxu0 %v6306_v39  ;;  %3587 = vmatpush1.bf16.msra.mxu1 %v8959_v16  ;;  %v8983_v39 = vld [vmem:[#allocation11 + $0x314] ss:$28 sps:$4 sm:$0xff]  }
 0x6f3   :  { %3537 = vmatprep.subr.bf16.mxu0 %v6314_v44  ;;  %3588 = vmatprep.subr.bf16.mxu1 %v8975_v63  ;;  %v8987_v44 = vld [vmem:[#allocation11 + $0x310] ss:$28 sps:$4 sm:$0xff]  }
 0x6f6   :  { %3538 = vmatpush1.bf16.msra.mxu0 %v6312_v54  ;;  %3589 = vmatpush1.bf16.msra.mxu1 %v8979_v46  ;;  %v8991_v54 = vld [vmem:[#allocation11 + $0x31c] ss:$28 sps:$4 sm:$0xff]  }
 0x6f7   :  { %3539 = vmatprep.subr.bf16.mxu0 %v6320_v62  ;;  %3590 = vmatprep.subr.bf16.mxu1 %v8991_v54  ;;  %v8999_v62 = vld [vmem:[#allocation11 + $0x354] ss:$28 sps:$4 sm:$0xff]  }
 0x6fa   :  { %3540 = vmatpush1.bf16.msra.mxu0 %v6318_v38  ;;  %3591 = vmatpush1.bf16.msra.mxu1 %v8989_v31  ;;  %v9003_v38 = vld [vmem:[#allocation11 + $0x350] ss:$28 sps:$4 sm:$0xff]  }
 0x6fb   :  { %3541 = vmatprep.subr.bf16.mxu0 %v6326_v57  ;;  %3592 = vmatprep.subr.bf16.mxu1 %v8999_v62  ;;  %v9011_v57 = vld [vmem:[#allocation11 + $0x1d8] ss:$28 sps:$4 sm:$0xff]  }
 0x6fe   :  { %3542 = vmatpush1.bf16.msra.mxu0 %v6324_v43  ;;  %3593 = vmatpush1.bf16.msra.mxu1 %v9003_v38 }
 0x6ff   :  { %3543 = vmatprep.subr.bf16.mxu0 %v8957_v50  ;;  %5390 = vmatprep.subr.bf16.mxu1 %v9011_v57 }
 0x702   :  { %3544 = vmatpush1.bf16.msra.mxu0 %v8955_v32 }
 0x703   :  { %3545 = vmatprep.subr.bf16.mxu0 %v8973_v41 }
 0x706   :  { %3546 = vmatpush1.bf16.msra.mxu0 %v8977_v10 }
 0x707   :  { %3547 = vmatprep.subr.bf16.mxu0 %v8983_v39 }
 0x70a   :  { %3548 = vmatpush1.bf16.msra.mxu0 %v8987_v44 }
 0x70b   :  { %3549 = vmatprep.subr.bf16.mxu0 %v8997_v8 }
 0x70e   :  { %3550 = vmatpush1.bf16.msra.mxu0 %v9001_v34 }
 0x70f   :  { %3605 = vmatprep.subr.bf16.mxu0 %v9009_v26 }
 0x75c   :  { %v2431_v52 = vpop.xlane.xlu0 %2430 }
 0x75e   :  { %v2434_v9 = vpop.xlane.xlu1 %2433 }
 0x760   :  { %v2737_v1 = vpop.xlane.xlu0 %2736 }
 0x761   :  { %v2741_v60 = vadd.f32 %v2737_v1, %v2431_v52 }
 0x762   :  { %v2443_v37 = vpop.xlane.xlu1 %2442 }
 0x763   :  { %v2755_v28 = vmul.f32 0.00295858, %v2741_v60 }
 0x764   :  { %v2740_v61 = vpop.xlane.xlu0 %2739 }
 0x765   :  { %v2742_v22 = vadd.f32 %v2740_v61, %v2434_v9  ;;  %v2759_v7 = vmul.f32 %v2755_v28, %v2755_v28 }
 0x766   :  { %v2749_v49 = vpop.xlane.xlu1 %2748 }
 0x767   :  { %v2753_v24 = vadd.f32 %v2749_v49, %v2443_v37  ;;  %v2756_v48 = vmul.f32 0.00295858, %v2742_v22 }
 0x768   :  { %v2446_v25 = vpop.xlane.xlu0 %2445 }
 0x769   :  { %v2757_v47 = vmul.f32 0.00295858, %v2753_v24  ;;  %v2760_v33 = vmul.f32 %v2756_v48, %v2756_v48 }
 0x76b   :  { %v2761_v53 = vsub.f32 %v2757_v47, %v2759_v7 }
 0x76c   :  { %v2752_v0 = vpop.xlane.xlu0 %2751 }
 0x76d   :  { %v2765_v29 = vadd.f32 1e-05, %v2761_v53  ;;  %v2754_v11 = vadd.f32 %v2752_v0, %v2446_v25  ;;  %v9035_v0 = vld [vmem:[#allocation11 + $0x10] ss:$28 sps:$4 sm:$0xff]  }
 0x76f   :  { %6426 = vrsqrt.f32 %v2765_v29  ;;  %v2758_v51 = vmul.f32 0.00295858, %v2754_v11  ;;  %v9037_v29 = vld [vmem:[#allocation11 + $0x18] ss:$28 sps:$4 sm:$0xff]   ;;  %v9047_v11 = vld [vmem:[#allocation11 + $0x48] ss:$28 sps:$4 sm:$0xff]  }
 0x771   :  { %v2762_v21 = vsub.f32 %v2758_v51, %v2760_v33  ;;  %v9049_v33 = vld [vmem:[#allocation11 + $0x50] ss:$28 sps:$4 sm:$0xff]   ;;  %v9051_v51 = vld [vmem:[#allocation11 + $0x84] ss:$28 sps:$4 sm:$0xff]  }
 0x773   :  { %v2766_v58 = vadd.f32 1e-05, %v2762_v21  ;;  %v9053_v21 = vld [vmem:[#allocation11 + $0x248] ss:$28 sps:$4 sm:$0xff]  }
 0x775   :  { %6428 = vrsqrt.f32 %v2766_v58  ;;  %v9059_v58 = vld [vmem:[#allocation11 + $0x80] ss:$28 sps:$4 sm:$0xff]  }
 0x776   :  { %10384 = vst [vmem:[#allocation34_spill] sm:$0xff] %v9059_v58 }
 0x779   :  { %v6427_v14 = vpop.eup %6426 }
 0x77a   :  { %v2769_v45 = vmul.f32 %v6427_v14, %v2763_v30  ;;  %v9061_v30 = vld [vmem:[#allocation11 + $0x88] ss:$28 sps:$4 sm:$0xff]   ;;  %v9065_v14 = vld [vmem:[#allocation11 + $0xbc] ss:$28 sps:$4 sm:$0xff]  }
 0x77b   :  { %10385 = vst [vmem:[#allocation49_spill] sm:$0xff] %v9061_v30  ;;  %10386 = vst [vmem:[#allocation47_spill] sm:$0xff] %v9065_v14 }
 0x77c   :  { %2911 = vperm.xlu1 %5894, %v2769_v45   ;;  %v2773_v55 = vmul.f32 %v2769_v45, %v2755_v28  ;;  %v9067_v45 = vld [vmem:[#allocation11 + $0x280] ss:$28 sps:$4 sm:$0xff]  }
 0x77d   :  { %10387 = vst [vmem:[#allocation19_spill] sm:$0xff] %v9067_v45 }
 0x77e   :  { %v2775_v12 = vsub.f32 %v2771_v23, %v2773_v55  ;;  %v9071_v23 = vld [vmem:[#allocation11 + $0xb8] ss:$28 sps:$4 sm:$0xff]   ;;  %v9073_v55 = vld [vmem:[#allocation11 + $0xc0] ss:$28 sps:$4 sm:$0xff]  }
 0x77f   :  { %v6429_v13 = vpop.eup %6428  ;;  %10388 = vst [vmem:[#allocation50_spill] sm:$0xff] %v9071_v23  ;;  %10389 = vst [vmem:[#allocation20_spill] sm:$0xff] %v9073_v55 }
 0x780   :  { %2925 = vperm.xlu1 %5894, %v2775_v12   ;;  %v2770_v5 = vmul.f32 %v6429_v13, %v2764_v4  ;;  %v9077_v4 = vld [vmem:[#allocation11 + $0xf4] ss:$28 sps:$4 sm:$0xff]  }
 0x781   :  { %10390 = vst [vmem:[#allocation38_spill] sm:$0xff] %v9077_v4  ;;  %v9079_v12 = vld [vmem:[#allocation11 + $0x2b8] ss:$28 sps:$4 sm:$0xff]   ;;  %v9083_v13 = vld [vmem:[#allocation11 + $0xf0] ss:$28 sps:$4 sm:$0xff]  }
 0x782   :  { %2916 = vperm.xlu0 %5895, %v2770_v5   ;;  %v2774_v56 = vmul.f32 %v2770_v5, %v2756_v48  ;;  %10391 = vst [vmem:[#allocation40_spill] sm:$0xff] %v9079_v12  ;;  %10392 = vst [vmem:[#allocation27_spill] sm:$0xff] %v9083_v13  ;;  %v9085_v5 = vld [vmem:[#allocation11 + $0xf8] ss:$28 sps:$4 sm:$0xff]  }
 0x783   :  { %10393 = vst [vmem:[#allocation28_spill] sm:$0xff] %v9085_v5 }
 0x784   :  { %v2776_v59 = vsub.f32 %v2772_v36, %v2774_v56  ;;  %v9089_v36 = vld [vmem:[#allocation11 + $0x12c] ss:$28 sps:$4 sm:$0xff]  }
 0x785   :  { %10394 = vst [vmem:[#allocation24_spill] sm:$0xff] %v9089_v36  ;;  %v9091_v56 = vld [vmem:[#allocation11 + $0x2f0] ss:$28 sps:$4 sm:$0xff]  }
 0x786   :  { %2930 = vperm.xlu1 %5894, %v2776_v59   ;;  %10395 = vst [vmem:[#allocation25_spill] sm:$0xff] %v9091_v56  ;;  %v9095_v59 = vld [vmem:[#allocation11 + $0x128] ss:$28 sps:$4 sm:$0xff]  }
 0x787   :  { %10396 = vst [vmem:[#allocation21_spill] sm:$0xff] %v9095_v59 }
 0x7fb   :  { %v2912_v42 = vpop.permute.xlu1 %2911 }
 0x7fc   :  { %v4337_v43 = vmul.f32 %v2912_v42, %v8917_v18  ;;  %v4338_v2 = vmul.f32 %v2912_v42, %v8919_v20  ;;  %v2919_v37 = vmul.f32 %v2912_v42, %v8897_v35  ;;  %v2920_v61 = vmul.f32 %v2912_v42, %v8899_v40  ;;  %v9097_v42 = vld [vmem:[#allocation11 + $0x130] ss:$28 sps:$4 sm:$0xff]  }
 0x7fd   :  { %10397 = vst [vmem:[#allocation22_spill] sm:$0xff] %v9097_v42 }
 0x7ff   :  { %v2926_v52 = vpop.permute.xlu1 %2925 }
 0x800   :  { %v9017_v9 = vadd.f32 %v4337_v43, %v2926_v52  ;;  %v9019_v1 = vadd.f32 %v4338_v2, %v2926_v52  ;;  %v2933_v28 = vadd.f32 %v2926_v52, %v2919_v37  ;;  %v2934_v49 = vadd.f32 %v2926_v52, %v2920_v61  ;;  %v9101_v43 = vld [vmem:[#allocation11 + $0x164] ss:$28 sps:$4 sm:$0xff]   ;;  %v9113_v61 = vld [vmem:[#allocation11 + $0x19c] ss:$28 sps:$4 sm:$0xff]  }
 0x801   :  { %v9021_v60 = vpop.permute.xlu0 %2916  ;;  %10398 = vst [vmem:[#allocation42_spill] sm:$0xff] %v9101_v43  ;;  %v9103_v2 = vld [vmem:[#allocation11 + $0x328] ss:$28 sps:$4 sm:$0xff]   ;;  %v9107_v52 = vld [vmem:[#allocation11 + $0x160] ss:$28 sps:$4 sm:$0xff]   ;;  %10402 = vst [vmem:[#allocation45_spill] sm:$0xff] %v9113_v61 }
 0x802   :  { %v2921_v22 = vmul.f32 %v9021_v60, %v8905_v15  ;;  %v2922_v18 = vmul.f32 %v9021_v60, %v8907_v3  ;;  %v2937_v7 = vmax.f32 %v2933_v28, 0.0  ;;  %v2938_v47 = vmax.f32 %v2934_v49, 0.0  ;;  %v9039_v15 = vld [vmem:[#allocation11 + $0x4c] ss:$28 sps:$4 sm:$0xff]   ;;  %10399 = vst [vmem:[#allocation43_spill] sm:$0xff] %v9103_v2  ;;  %10400 = vst [vmem:[#allocation31_spill] sm:$0xff] %v9107_v52 }
 0x803   :  { %v9041_v3 = vld [vmem:[#allocation11 + $0x210] ss:$28 sps:$4 sm:$0xff]   ;;  %v9109_v37 = vld [vmem:[#allocation11 + $0x168] ss:$28 sps:$4 sm:$0xff]   ;;  %v9115_v28 = vld [vmem:[#allocation11 + $0x360] ss:$28 sps:$4 sm:$0xff]  }
 0x804   :  { %10401 = vst [vmem:[#allocation32_spill] sm:$0xff] %v9109_v37  ;;  %10403 = vst [vmem:[#allocation46_spill] sm:$0xff] %v9115_v28  ;;  %v9119_v49 = vld [vmem:[#allocation11 + $0x198] ss:$28 sps:$4 sm:$0xff]  }
 0x805   :  { %v9029_v20 = vpop.permute.xlu1 %2930  ;;  %10404 = vst [vmem:[#allocation51_spill] sm:$0xff] %v9119_v49 }
 0x806   :  { %v2935_v24 = vadd.f32 %v9029_v20, %v2921_v22  ;;  %v2936_v25 = vadd.f32 %v9029_v20, %v2922_v18  ;;  %v9121_v22 = vld [vmem:[#allocation11 + $0x1a0] ss:$28 sps:$4 sm:$0xff]   ;;  %v9125_v18 = vld [vmem:[#allocation11 + $0x1d4] ss:$28 sps:$4 sm:$0xff]  }
 0x807   :  { %10405 = vst [vmem:[#allocation52_spill] sm:$0xff] %v9121_v22  ;;  %10406 = vst [vmem:[#allocation54_spill] sm:$0xff] %v9125_v18 }
 0x808   :  { %v2939_v48 = vmax.f32 %v2935_v24, 0.0  ;;  %v2940_v35 = vmax.f32 %v2936_v25, 0.0  ;;  %v9129_v24 = vld [vmem:[#allocation11 + $0x1d0] ss:$28 sps:$4 sm:$0xff]  }
 0x809   :  { %10407 = vst [vmem:[#allocation55_spill] sm:$0xff] %v9129_v24  ;;  %v9132_v25 = vld [vmem:[#allocation11 + $0x20c] ss:$28 sps:$4 sm:$0xff]  }
 0x80a   :  { %v9033_v53 = vpack.c.bf16 %v2939_v48, %v2937_v7  ;;  %v2942_v40 = vpack.c.bf16 %v2940_v35, %v2938_v47  ;;  %10408 = vst [vmem:[#allocation18_spill] sm:$0xff] %v9132_v25  ;;  %v9136_v7 = vld [vmem:[#allocation11 + $0x208] ss:$28 sps:$4 sm:$0xff]   ;;  %v9142_v48 = vld [vmem:[#allocation11 + $0x240] ss:$28 sps:$4 sm:$0xff]  }
 0x80b   :  { %10409 = vst [vmem:[#allocation33_spill] sm:$0xff] %v9136_v7  ;;  %v9139_v47 = vld [vmem:[#allocation11 + $0x244] ss:$28 sps:$4 sm:$0xff]   ;;  %10411 = vst [vmem:[#allocation57_spill] sm:$0xff] %v9142_v48  ;;  %v9145_v35 = vld [vmem:[#allocation11 + $0x27c] ss:$28 sps:$4 sm:$0xff]  }
 0x80c   :  { %3551 = vmatprep.mubr.bf16.mxu0 %v2942_v40  ;;  %3594 = vmatprep.mubr.bf16.mxu1 %v2942_v40  ;;  %10410 = vst [vmem:[#allocation41_spill] sm:$0xff] %v9139_v47  ;;  %10412 = vst [vmem:[#allocation58_spill] sm:$0xff] %v9145_v35 }
 0x80d   :  { %3552 = vmatmul.mubr.bf16.vlgmr.msra.gmra.mrb[48].mxu0 %v9033_v53  ;;  %3595 = vmatmul.mubr.bf16.vlgmr.msra.gmra.mrb[48].mxu1 %v9033_v53 }
 0x80e   :  { %3606 = vmatpush1.bf16.msra.mxu0 %v9035_v0  ;;  %5391 = vmatpush3.bf16.msra.mxu1 %v9037_v29 }
 0x80f   :  { %3637 = vmatprep.mubr.bf16.mxu0 %v2942_v40  ;;  %3680 = vmatprep.mubr.bf16.mxu1 %v2942_v40  ;;  %v9148_v40 = vld [vmem:[#allocation11 + $0x278] ss:$28 sps:$4 sm:$0xff]  }
 0x810   :  { %3607 = vmatprep.subr.bf16.mxu0 %v9039_v15  ;;  %5392 = vmatprep.subr.bf16.mxu1 %v9041_v3  ;;  %10413 = vst [vmem:[#allocation39_spill] sm:$0xff] %v9148_v40 }
 0x812   :  { %3608 = vmatpush1.bf16.msra.mxu0 %v9047_v11  ;;  %5393 = vmatpush3.bf16.msra.mxu1 %v9049_v33 }
 0x813   :  { %3609 = vmatprep.subr.bf16.mxu0 %v9051_v51  ;;  %5394 = vmatprep.subr.bf16.mxu1 %v9053_v21 }
 0x816   :  { %3610 = vmatpush1.bf16.msra.mxu0 %v9059_v58  ;;  %5395 = vmatpush3.bf16.msra.mxu1 %v9061_v30 }
 0x817   :  { %3611 = vmatprep.subr.bf16.mxu0 %v9065_v14  ;;  %5396 = vmatprep.subr.bf16.mxu1 %v9067_v45 }
 0x81a   :  { %3612 = vmatpush1.bf16.msra.mxu0 %v9071_v23  ;;  %5397 = vmatpush3.bf16.msra.mxu1 %v9073_v55 }
 0x81b   :  { %3613 = vmatprep.subr.bf16.mxu0 %v9077_v4  ;;  %5398 = vmatprep.subr.bf16.mxu1 %v9079_v12 }
 0x81e   :  { %3614 = vmatpush1.bf16.msra.mxu0 %v9083_v13  ;;  %5399 = vmatpush3.bf16.msra.mxu1 %v9085_v5 }
 0x81f   :  { %3615 = vmatprep.subr.bf16.mxu0 %v9089_v36  ;;  %5400 = vmatprep.subr.bf16.mxu1 %v9091_v56 }
 0x822   :  { %3616 = vmatpush1.bf16.msra.mxu0 %v9095_v59  ;;  %5401 = vmatpush3.bf16.msra.mxu1 %v9097_v42 }
 0x823   :  { %3617 = vmatprep.subr.bf16.mxu0 %v9101_v43  ;;  %5402 = vmatprep.subr.bf16.mxu1 %v9103_v2 }
 0x826   :  { %3618 = vmatpush1.bf16.msra.mxu0 %v9107_v52  ;;  %5403 = vmatpush3.bf16.msra.mxu1 %v9109_v37 }
 0x827   :  { %3619 = vmatprep.subr.bf16.mxu0 %v9113_v61  ;;  %5404 = vmatprep.subr.bf16.mxu1 %v9115_v28 }
 0x82a   :  { %3620 = vmatpush1.bf16.msra.mxu0 %v9119_v49  ;;  %5405 = vmatpush3.bf16.msra.mxu1 %v9121_v22 }
 0x82b   :  { %3621 = vmatprep.subr.bf16.mxu0 %v9125_v18 }
 0x82d   :  { %3681 = vmatmul.mubr.bf16.vlgmr.msra.gmra.mrb[52].mxu1 %v9033_v53 }
 0x82e   :  { %3622 = vmatpush1.bf16.msra.mxu0 %v9129_v24  ;;  %v9151_v24 = vld [vmem:[#allocation11 + $0x2b4] ss:$28 sps:$4 sm:$0xff]  }
 0x82f   :  { %3623 = vmatprep.subr.bf16.mxu0 %v9132_v25  ;;  %10414 = vst [vmem:[#allocation48_spill] sm:$0xff] %v9151_v24  ;;  %v9154_v25 = vld [vmem:[#allocation11 + $0x2b0] ss:$28 sps:$4 sm:$0xff]  }
 0x830   :  { %10415 = vst [vmem:[#allocation29_spill] sm:$0xff] %v9154_v25 }
 0x832   :  { %3624 = vmatpush1.bf16.msra.mxu0 %v9136_v7  ;;  %v9157_v7 = vld [vmem:[#allocation11 + $0x2ec] ss:$28 sps:$4 sm:$0xff]  }
 0x833   :  { %3625 = vmatprep.subr.bf16.mxu0 %v9139_v47  ;;  %10416 = vst [vmem:[#allocation44_spill] sm:$0xff] %v9157_v7  ;;  %v9160_v47 = vld [vmem:[#allocation11 + $0x2e8] ss:$28 sps:$4 sm:$0xff]  }
 0x834   :  { %10417 = vst [vmem:[#allocation26_spill] sm:$0xff] %v9160_v47 }
 0x836   :  { %3626 = vmatpush1.bf16.msra.mxu0 %v9142_v48  ;;  %v9163_v48 = vld [vmem:[#allocation11 + $0x324] ss:$28 sps:$4 sm:$0xff]  }
 0x837   :  { %3627 = vmatprep.subr.bf16.mxu0 %v9145_v35  ;;  %10418 = vst [vmem:[#allocation35_spill] sm:$0xff] %v9163_v48  ;;  %v9166_v35 = vld [vmem:[#allocation11 + $0x320] ss:$28 sps:$4 sm:$0xff]  }
 0x838   :  { %10419 = vst [vmem:[#allocation23_spill] sm:$0xff] %v9166_v35 }
 0x83a   :  { %3628 = vmatpush1.bf16.msra.mxu0 %v9148_v40  ;;  %v9169_v40 = vld [vmem:[#allocation11 + $0x35c] ss:$28 sps:$4 sm:$0xff]  }
 0x83b   :  { %3629 = vmatprep.subr.bf16.mxu0 %v9151_v24  ;;  %10420 = vst [vmem:[#allocation56_spill] sm:$0xff] %v9169_v40  ;;  %v9172_v24 = vld [vmem:[#allocation11 + $0x358] ss:$28 sps:$4 sm:$0xff]  }
 0x83c   :  { %10421 = vst [vmem:[#allocation30_spill] sm:$0xff] %v9172_v24 }
 0x83e   :  { %3630 = vmatpush1.bf16.msra.mxu0 %v9154_v25 }
 0x83f   :  { %3631 = vmatprep.subr.bf16.mxu0 %v9157_v7 }
 0x842   :  { %3632 = vmatpush1.bf16.msra.mxu0 %v9160_v47 }
 0x843   :  { %3633 = vmatprep.subr.bf16.mxu0 %v9163_v48 }
 0x846   :  { %3634 = vmatpush1.bf16.msra.mxu0 %v9166_v35 }
 0x847   :  { %3635 = vmatprep.subr.bf16.mxu0 %v9169_v40 }
 0x84a   :  { %3636 = vmatpush1.bf16.msra.mxu0 %v9172_v24 }
 0x84d   :  { %3638 = vmatmul.mubr.bf16.vlgmr.msra.gmra.mrb[52].mxu0 %v9033_v53 }
 0x8e0   :  { %v3553_v7 = vpop.f32.mrb[48].mxu0  ;;  %v9177_v25 = vpop.f32.mrb[48].mxu1 }
 0x8e1   :  { %v3555_v47 = vpop.f32.mrb[49].mxu0  ;;  %v9179_v18 = vpop.f32.mrb[49].mxu1 }
 0x8e2   :  { %v3557_v22 = vpop.f32.mrb[50].mxu0  ;;  %v9181_v48 = vpop.f32.mrb[50].mxu1 }
 0x8e3   :  { %v6041_v49 = vpack.i.bf16 %v3557_v22, %v3553_v7  ;;  %v5504_v28 = vpack.c.bf16 %v3557_v22, %v3553_v7  ;;  %v6081_v35 = vpack.i.bf16 %v9181_v48, %v9177_v25  ;;  %v3559_v61 = vpop.f32.mrb[51].mxu0  ;;  %v9185_v40 = vpop.f32.mrb[51].mxu1 }
 0x8e4   :  { %v6051_v24 = vpack.i.bf16 %v3559_v61, %v3555_v47  ;;  %v6086_v37 = vpack.i.bf16 %v9185_v40, %v9179_v18  ;;  %v5502_v52 = vpack.c.bf16 %v3559_v61, %v3555_v47  ;;  %v10199_v61 = vmov 0.0  }
 0x8e5   :  { %6022 = vrot.lane.b32.xlu1 %v6041_v49, %s6689_s7  ;;  %6017 = vrot.lane.b32.xlu0 %v6041_v49, %s6673_s26 }
 0x8e6   :  { %5503 = vmatprep.subr.bf16.mxu1 %v5502_v52  ;;  %3899 = vmatprep.mubr.f32.mxu1 %v10199_v61 }
 0x8e7   :  { %5505 = vmatpush1.bf16.msra.mxu1 %v5504_v28  ;;  %4077 = vmatprep.mubr.f32.mxu0 %v10199_v61 }
 0x8e9   :  { %6027 = vrot.lane.b32.xlu1 %v6051_v24, %s6673_s26  ;;  %6032 = vrot.lane.b32.xlu0 %v6051_v24, %s6689_s7 }
 0x900   :  { %v5406_v7 = vpop.f32.mrb[52].mxu1 }
 0x901   :  { %v5407_v53 = vpop.f32.mrb[53].mxu1 }
 0x902   :  { %v5408_v2 = vadd.f32 %v5407_v53, %v5406_v7  ;;  %v5409_v43 = vpop.f32.mrb[54].mxu1 }
 0x903   :  { %v5410_v42 = vpop.f32.mrb[55].mxu1 }
 0x904   :  { %v5411_v59 = vadd.f32 %v5410_v42, %v5409_v43 }
 0x906   :  { %v6036_v56 = vpack.i.bf16 %v5411_v59, %v5408_v2  ;;  %v9197_v36 = vpack.c.bf16 %v5411_v59, %v5408_v2 }
 0x908   :  { %6037 = vrot.lane.b32.xlu0 %v6036_v56, %s6673_s26  ;;  %6047 = vrot.lane.b32.xlu1 %v6036_v56, %s6689_s7 }
 0x90c   :  { %6042 = vrot.lane.b32.xlu0 %v6041_v49, %s6691_s8  ;;  %6052 = vrot.lane.b32.xlu1 %v6051_v24, %s6691_s8 }
 0x910   :  { %6057 = vrot.lane.b32.xlu0 %v6036_v56, %s6691_s8  ;;  %6062 = vrot.lane.b32.xlu1 %v6081_v35, %s6673_s26 }
 0x914   :  { %6067 = vrot.lane.b32.xlu0 %v6086_v37, %s6673_s26  ;;  %6072 = vrot.lane.b32.xlu1 %v6081_v35, %s6689_s7 }
 0x918   :  { %6077 = vrot.lane.b32.xlu0 %v6086_v37, %s6689_s7  ;;  %6082 = vrot.lane.b32.xlu1 %v6081_v35, %s6691_s8 }
 0x91c   :  { %6087 = vrot.lane.b32.xlu0 %v6086_v37, %s6691_s8 }
 0x920   :  { %v3639_v59 = vpop.f32.mrb[52].mxu0 }
 0x921   :  { %v3641_v42 = vpop.f32.mrb[53].mxu0 }
 0x922   :  { %v3643_v43 = vpop.f32.mrb[54].mxu0 }
 0x923   :  { %v6101_v2 = vpack.i.bf16 %v3643_v43, %v3639_v59  ;;  %v5536_v52 = vpack.c.bf16 %v3643_v43, %v3639_v59  ;;  %v3645_v28 = vpop.f32.mrb[55].mxu0 }
 0x924   :  { %v6116_v49 = vpack.i.bf16 %v3645_v28, %v3641_v42  ;;  %v5534_v56 = vpack.c.bf16 %v3645_v28, %v3641_v42 }
 0x925   :  { %6092 = vrot.lane.b32.xlu1 %v6101_v2, %s6673_s26 }
 0x926   :  { %6107 = vrot.lane.b32.xlu0 %v6116_v49, %s6673_s26  ;;  %5535 = vmatprep.subr.bf16.mxu0 %v5534_v56 }
 0x927   :  { %5537 = vmatpush1.bf16.msra.mxu0 %v5536_v52 }
 0x929   :  { %6097 = vrot.lane.b32.xlu1 %v6101_v2, %s6689_s7 }
 0x92a   :  { %6112 = vrot.lane.b32.xlu0 %v6116_v49, %s6689_s7 }
 0x92d   :  { %6102 = vrot.lane.b32.xlu1 %v6101_v2, %s6691_s8 }
 0x92e   :  { %6117 = vrot.lane.b32.xlu0 %v6116_v49, %s6691_s8 }
 0x957   :  { %v6023_v37 = vpop.permute.xlu1 %6022  ;;  %v6018_v24 = vpop.permute.xlu0 %6017 }
 0x958   :  { %v6020_v35 = vunpack.i.h.bf16 %v6018_v24  ;;  %v6019_v53 = vunpack.i.l.bf16 %v6018_v24  ;;  %v6025_v56 = vunpack.i.h.bf16 %v6023_v37  ;;  %v6024_v24 = vunpack.i.l.bf16 %v6023_v37 }
 0x95b   :  { %v9218_v47 = vpop.permute.xlu1 %6027  ;;  %v9231_v52 = vpop.permute.xlu0 %6032 }
 0x95c   :  { %v10202_v7 = vunpack.i.h.bf16 %v9218_v47  ;;  %v10201_v59 = vunpack.i.l.bf16 %v9218_v47  ;;  %v10205_v28 = vunpack.i.h.bf16 %v9231_v52  ;;  %v10204_v49 = vunpack.i.l.bf16 %v9231_v52 }
 0x95e   :  { %v3728_v42 = vsel %vm3717_vm6, %v6019_v53, %v10201_v59  ;;  %v3729_v43 = vsel %vm3717_vm6, %v6020_v35, %v10202_v7 }
 0x95f   :  { %v5506_v2 = vpack.c.bf16 %v3729_v43, %v3728_v42  ;;  %v3771_v42 = vsel %vm3760_vm7, %v6024_v24, %v10204_v49  ;;  %v3772_v43 = vsel %vm3760_vm7, %v6025_v56, %v10205_v28 }
 0x961   :  { %5507 = vmatprep.subr.bf16.mxu1 %v5506_v2 }
 0x97a   :  { %v9236_v61 = vpop.permute.xlu0 %6037  ;;  %v9238_v59 = vpop.permute.xlu1 %6047 }
 0x97b   :  { %v10209_v2 = vunpack.i.h.bf16 %v9236_v61  ;;  %v10214_v7 = vunpack.i.l.bf16 %v9236_v61  ;;  %v10212_v37 = vunpack.i.h.bf16 %v9238_v59  ;;  %v10213_v22 = vunpack.i.l.bf16 %v9238_v59 }
 0x97d   :  { %v3731_v5 = vsel %vm3717_vm6, %v10209_v2, %v6020_v35  ;;  %v3730_v49 = vsel %vm3717_vm6, %v10214_v7, %v6019_v53  ;;  %v3774_v13 = vsel %vm3760_vm7, %v10212_v37, %v6025_v56  ;;  %v3773_v12 = vsel %vm3760_vm7, %v10213_v22, %v6024_v24 }
 0x97e   :  { %v5508_v28 = vpack.c.bf16 %v3731_v5, %v3730_v49  ;;  %v6043_v4 = vpop.permute.xlu0 %6042  ;;  %v9269_v35 = vpop.permute.xlu1 %6052  ;;  %v5510_v2 = vpack.c.bf16 %v3772_v43, %v3771_v42  ;;  %v5512_v24 = vpack.c.bf16 %v3774_v13, %v3773_v12 }
 0x97f   :  { %v6045_v55 = vunpack.i.h.bf16 %v6043_v4  ;;  %v6044_v23 = vunpack.i.l.bf16 %v6043_v4  ;;  %v10215_v53 = vunpack.i.h.bf16 %v9269_v35  ;;  %v10216_v5 = vunpack.i.l.bf16 %v9269_v35 }
 0x980   :  { %5509 = vmatpush1.bf16.msra.mxu1 %v5508_v28 }
 0x981   :  { %5511 = vmatprep.subr.bf16.mxu1 %v5510_v2  ;;  %v3814_v49 = vsel %vm3803_vm8, %v6044_v23, %v10216_v5  ;;  %v3815_v56 = vsel %vm3803_vm8, %v6045_v55, %v10215_v53  ;;  %v9297_v5 = vld [vmem:[#allocation13] sm:$0xff] }
 0x982   :  { %v9281_v42 = vpop.permute.xlu0 %6057  ;;  %v6063_v4 = vpop.permute.xlu1 %6062  ;;  %v5514_v43 = vpack.c.bf16 %v3815_v56, %v3814_v49 }
 0x983   :  { %v10217_v37 = vunpack.i.h.bf16 %v9281_v42  ;;  %v10218_v28 = vunpack.i.l.bf16 %v9281_v42  ;;  %v6065_v56 = vunpack.i.h.bf16 %v6063_v4  ;;  %v6064_v7 = vunpack.i.l.bf16 %v6063_v4 }
 0x984   :  { %5513 = vmatpush1.bf16.msra.mxu1 %v5512_v24 }
 0x985   :  { %v3816_v2 = vsel %vm3803_vm8, %v10218_v28, %v6044_v23  ;;  %v3817_v22 = vsel %vm3803_vm8, %v10217_v37, %v6045_v55  ;;  %5515 = vmatprep.subr.bf16.mxu1 %v5514_v43  ;;  %v10422_v23 = vpack.c.bf16 %v9185_v40, %v9179_v18  ;;  %v10424_v28 = vunpack.i.h.bf16 %v9218_v47 }
 0x986   :  { %v5516_v12 = vpack.c.bf16 %v3817_v22, %v3816_v2  ;;  %v9293_v13 = vpop.permute.xlu0 %6067  ;;  %v6073_v49 = vpop.permute.xlu1 %6072 }
 0x987   :  { %v6070_v53 = vunpack.i.h.bf16 %v9293_v13  ;;  %v6069_v24 = vunpack.i.l.bf16 %v9293_v13  ;;  %v6075_v43 = vunpack.i.h.bf16 %v6073_v49  ;;  %v6074_v4 = vunpack.i.l.bf16 %v6073_v49 }
 0x988   :  { %5517 = vmatpush1.bf16.msra.mxu1 %v5516_v12  ;;  %v10423_v12 = vunpack.i.l.bf16 %v9218_v47  ;;  %v3727_v18 = vsel %vm3717_vm6, %v10424_v28, %v6065_v56 }
 0x989   :  { %5519 = vmatprep.subr.bf16.mxu1 %v10422_v23  ;;  %v3724_v55 = vsel %vm3717_vm6, %v6064_v7, %v6069_v24  ;;  %v3725_v22 = vsel %vm3717_vm6, %v6065_v56, %v6070_v53 }
 0x98a   :  { %v9306_v2 = vpop.permute.xlu0 %6077  ;;  %v5522_v37 = vpack.c.bf16 %v3725_v22, %v3724_v55  ;;  %v3726_v13 = vsel %vm3717_vm6, %v10423_v12, %v6064_v7  ;;  %v6083_v49 = vpop.permute.xlu1 %6082  ;;  %v10425_v55 = vpack.c.bf16 %v9181_v48, %v9177_v25  ;;  %v10426_v22 = vmov 0.0   ;;  %v9324_v7 = vld [vmem:[#allocation13 + $0x8] sm:$0xff] }
 0x98b   :  { %v10223_v40 = vunpack.i.h.bf16 %v9306_v2  ;;  %v10220_v23 = vunpack.i.l.bf16 %v9306_v2  ;;  %5337 = vmatmul.mubr.msk.f32.vlgmr.msra.gmra.mrb[56].mxu1 %vm3822_vm9, %v9297_v5  ;;  %v5524_v56 = vpack.c.bf16 %v3727_v18, %v3726_v13  ;;  %v10427_v12 = vunpack.i.h.bf16 %v9231_v52 }
 0x98c   :  { %5521 = vmatpush1.bf16.msra.mxu1 %v10425_v55  ;;  %3905 = vmatprep.mubr.f32.mxu1 %v10426_v22  ;;  %v10428_v48 = vunpack.i.l.bf16 %v9231_v52  ;;  %v6084_v14 = vunpack.i.l.bf16 %v6083_v49  ;;  %v10433_v58 = vunpack.i.h.bf16 %v9306_v2 }
 0x98d   :  { %5523 = vmatprep.subr.bf16.mxu1 %v5522_v37  ;;  %v3767_v47 = vsel %vm3760_vm7, %v6074_v4, %v10220_v23  ;;  %v3768_v28 = vsel %vm3760_vm7, %v6075_v43, %v10223_v40  ;;  %v3770_v25 = vsel %vm3760_vm7, %v10427_v12, %v6075_v43  ;;  %v6085_v23 = vunpack.i.h.bf16 %v6083_v49  ;;  %v9349_v43 = vld [vmem:[#allocation13 + $0x10] sm:$0xff] }
 0x98e   :  { %v3769_v37 = vsel %vm3760_vm7, %v10428_v48, %v6074_v4  ;;  %v9342_v55 = vpop.permute.xlu0 %6087  ;;  %v5526_v45 = vpack.c.bf16 %v3768_v28, %v3767_v47  ;;  %v10429_v49 = vunpack.i.l.bf16 %v9269_v35  ;;  %v10430_v28 = vunpack.i.h.bf16 %v9269_v35 }
 0x98f   :  { %v10225_v30 = vunpack.i.h.bf16 %v9342_v55  ;;  %v10224_v40 = vunpack.i.l.bf16 %v9342_v55  ;;  %5338 = vmatmul.mubr.msk.f32.gmra.mrb[58].mxu1 %vm3822_vm9, %v9324_v7  ;;  %v5528_v13 = vpack.c.bf16 %v3770_v25, %v3769_v37 }
 0x990   :  { %5525 = vmatpush1.bf16.msra.mxu1 %v5524_v56  ;;  %3911 = vmatprep.mubr.f32.mxu1 %v10426_v22  ;;  %v3812_v47 = vsel %vm3803_vm8, %v10429_v49, %v6084_v14  ;;  %v9370_v56 = vld [vmem:[#allocation13 + $0x18] sm:$0xff] }
 0x991   :  { %5527 = vmatprep.subr.bf16.mxu1 %v5526_v45  ;;  %v3810_v52 = vsel %vm3803_vm8, %v6084_v14, %v10224_v40  ;;  %v3811_v4 = vsel %vm3803_vm8, %v6085_v23, %v10225_v30  ;;  %v3813_v45 = vsel %vm3803_vm8, %v10430_v28, %v6085_v23 }
 0x992   :  { %v5530_v18 = vpack.c.bf16 %v3811_v4, %v3810_v52  ;;  %v5532_v12 = vpack.c.bf16 %v3813_v45, %v3812_v47  ;;  %v10431_v47 = vunpack.i.l.bf16 %v9236_v61 }
 0x993   :  { %5339 = vmatmul.mubr.msk.f32.gmra.mrb[60].mxu1 %vm3822_vm9, %v9349_v43 }
 0x994   :  { %5529 = vmatpush1.bf16.msra.mxu1 %v5528_v13  ;;  %3917 = vmatprep.mubr.f32.mxu1 %v10426_v22 }
 0x995   :  { %5531 = vmatprep.subr.bf16.mxu1 %v5530_v18 }
 0x997   :  { %5340 = vmatmul.mubr.msk.f32.gmra.mrb[62].mxu1 %vm3822_vm9, %v9370_v56  ;;  %v6093_v25 = vpop.permute.xlu1 %6092 }
 0x998   :  { %v6095_v14 = vunpack.i.h.bf16 %v6093_v25  ;;  %v6094_v48 = vunpack.i.l.bf16 %v6093_v25  ;;  %5533 = vmatpush1.bf16.msra.mxu1 %v5532_v12  ;;  %v6108_v35 = vpop.permute.xlu0 %6107  ;;  %3988 = vmatprep.mubr.f32.mxu1 %v10426_v22  ;;  %v10432_v25 = vunpack.i.h.bf16 %v9236_v61 }
 0x999   :  { %v6110_v23 = vunpack.i.h.bf16 %v6108_v35  ;;  %v6109_v37 = vunpack.i.l.bf16 %v6108_v35  ;;  %5551 = vmatprep.subr.bf16.mxu1 %v9197_v36 }
 0x99a   :  { %v3723_v52 = vsel %vm3717_vm6, %v6070_v53, %v6095_v14  ;;  %v3722_v4 = vsel %vm3717_vm6, %v6069_v24, %v6094_v48 }
 0x99b   :  { %5341 = vmatmul.mubr.msk.f32.vlgmr.msra.gmra.mrb[64].mxu1 %vm3822_vm9, %v9297_v5  ;;  %v6098_v13 = vpop.permute.xlu1 %6097  ;;  %v3720_v18 = vsel %vm3717_vm6, %v6094_v48, %v6109_v37  ;;  %v3721_v49 = vsel %vm3717_vm6, %v6095_v14, %v6110_v23  ;;  %v3718_v28 = vsel %vm3717_vm6, %v6109_v37, %v10431_v47  ;;  %v3719_v48 = vsel %vm3717_vm6, %v6110_v23, %v10432_v25 }
 0x99c   :  { %v6100_v45 = vunpack.i.h.bf16 %v6098_v13  ;;  %v6099_v53 = vunpack.i.l.bf16 %v6098_v13  ;;  %5553 = vmatpush3.bf16.msra.mxu1 %v9197_v36  ;;  %v6113_v24 = vpop.permute.xlu0 %6112  ;;  %3994 = vmatprep.mubr.f32.mxu1 %v10426_v22  ;;  %v5538_v12 = vpack.c.bf16 %v3721_v49, %v3720_v18  ;;  %v5554_v40 = vpack.c.bf16 %v3719_v48, %v3718_v28 }
 0x99d   :  { %v6115_v35 = vunpack.i.h.bf16 %v6113_v24  ;;  %v6114_v14 = vunpack.i.l.bf16 %v6113_v24  ;;  %v5540_v30 = vpack.c.bf16 %v3723_v52, %v3722_v4  ;;  %v10434_v36 = vunpack.i.l.bf16 %v9306_v2 }
 0x99e   :  { %v3766_v37 = vsel %vm3760_vm7, %v10433_v58, %v6100_v45  ;;  %5539 = vmatprep.subr.bf16.mxu0 %v5538_v12  ;;  %5555 = vmatprep.subr.bf16.mxu1 %v5554_v40  ;;  %v10435_v49 = vunpack.i.l.bf16 %v9238_v59  ;;  %v10438_v48 = vunpack.i.l.bf16 %v9342_v55 }
 0x99f   :  { %v3765_v13 = vsel %vm3760_vm7, %v10434_v36, %v6099_v53  ;;  %5342 = vmatmul.mubr.msk.f32.gmra.mrb[66].mxu1 %vm3822_vm9, %v9324_v7  ;;  %v6103_v61 = vpop.permute.xlu1 %6102  ;;  %v3763_v23 = vsel %vm3760_vm7, %v6099_v53, %v6114_v14  ;;  %v3764_v52 = vsel %vm3760_vm7, %v6100_v45, %v6115_v35  ;;  %5541 = vmatpush1.bf16.msra.mxu0 %v5540_v30  ;;  %v10436_v53 = vunpack.i.h.bf16 %v9238_v59 }
 0x9a0   :  { %v6105_v4 = vunpack.i.h.bf16 %v6103_v61  ;;  %v6104_v18 = vunpack.i.l.bf16 %v6103_v61  ;;  %v6118_v58 = vpop.permute.xlu0 %6117  ;;  %5557 = vmatpush3.bf16.msra.mxu1 %v5554_v40  ;;  %v5542_v2 = vpack.c.bf16 %v3764_v52, %v3763_v23  ;;  %v3761_v47 = vsel %vm3760_vm7, %v6114_v14, %v10435_v49  ;;  %4000 = vmatprep.mubr.f32.mxu1 %v10426_v22 }
 0x9a1   :  { %v6120_v28 = vunpack.i.h.bf16 %v6118_v58  ;;  %v6119_v24 = vunpack.i.l.bf16 %v6118_v58  ;;  %v3762_v45 = vsel %vm3760_vm7, %v6115_v35, %v10436_v53  ;;  %v5544_v12 = vpack.c.bf16 %v3766_v37, %v3765_v13 }
 0x9a2   :  { %v10437_v30 = vunpack.i.h.bf16 %v9342_v55  ;;  %5543 = vmatprep.subr.bf16.mxu0 %v5542_v2  ;;  %v5558_v25 = vpack.c.bf16 %v3762_v45, %v3761_v47  ;;  %v3808_v14 = vsel %vm3803_vm8, %v10438_v48, %v6104_v18  ;;  %v10439_v37 = vunpack.i.l.bf16 %v9281_v42  ;;  %v6488_v2 = vld [vmem:[#allocation11] ss:$28 sps:$4 sm:$0xff]   ;;  %v6489_v47 = vld [vmem:[#allocation11 + $0x8] ss:$28 sps:$4 sm:$0xff]  }
 0x9a3   :  { %5343 = vmatmul.mubr.msk.f32.gmra.mrb[68].mxu1 %vm3822_vm9, %v9349_v43  ;;  %v3806_v59 = vsel %vm3803_vm8, %v6104_v18, %v6119_v24  ;;  %v3807_v35 = vsel %vm3803_vm8, %v6105_v4, %v6120_v28  ;;  %5545 = vmatpush1.bf16.msra.mxu0 %v5544_v12  ;;  %v10440_v13 = vunpack.i.h.bf16 %v9281_v42  ;;  %v4340_v23 = vmul.f32 %v9021_v60, %v8931_v27  ;;  %v6486_v42 = vld [vmem:[#allocation11 + $0x4] ss:$28 sps:$4 sm:$0xff]   ;;  %v6487_v27 = vld [vmem:[#allocation11 + $0xc] ss:$28 sps:$4 sm:$0xff]   ;;  %v6494_v12 = vld [vmem:[#allocation11 + $0x74] ss:$28 sps:$4 sm:$0xff]  }
 0x9a4   :  { %v3809_v40 = vsel %vm3803_vm8, %v10437_v30, %v6105_v4  ;;  %v3804_v36 = vsel %vm3803_vm8, %v6119_v24, %v10439_v37  ;;  %5559 = vmatprep.subr.bf16.mxu1 %v5558_v25  ;;  %v5546_v55 = vpack.c.bf16 %v3807_v35, %v3806_v59  ;;  %4006 = vmatprep.mubr.f32.mxu1 %v10426_v22  ;;  %v4346_v49 = vmax.f32 %v9019_v1, 0.0  ;;  %v6491_v24 = vld [vmem:[#allocation11 + $0x44] ss:$28 sps:$4 sm:$0xff]   ;;  %v6492_v1 = vld [vmem:[#allocation11 + $0x38] ss:$28 sps:$4 sm:$0xff]  }
 0x9a5   :  { %v3805_v61 = vsel %vm3803_vm8, %v6120_v28, %v10440_v13  ;;  %5561 = vmatpush3.bf16.msra.mxu1 %v5558_v25  ;;  %v5548_v4 = vpack.c.bf16 %v3809_v40, %v3808_v14  ;;  %v4344_v18 = vadd.f32 %v4340_v23, %v9029_v20  ;;  %v6490_v28 = vld [vmem:[#allocation11 + $0x3c] ss:$28 sps:$4 sm:$0xff]   ;;  %v6496_v40 = vld [vmem:[#allocation11 + $0x70] ss:$28 sps:$4 sm:$0xff]   ;;  %v6500_v59 = vld [vmem:[#allocation11 + $0xa8] ss:$28 sps:$4 sm:$0xff]  }
 0x9a6   :  { %v5562_v52 = vpack.c.bf16 %v3805_v61, %v3804_v36  ;;  %5547 = vmatprep.subr.bf16.mxu0 %v5546_v55  ;;  %v6493_v45 = vld [vmem:[#allocation11 + $0x40] ss:$28 sps:$4 sm:$0xff]   ;;  %v6497_v25 = vld [vmem:[#allocation11 + $0x78] ss:$28 sps:$4 sm:$0xff]   ;;  %v6498_v48 = vld [vmem:[#allocation11 + $0xac] ss:$28 sps:$4 sm:$0xff]  }
 0x9a7   :  { %5344 = vmatmul.mubr.msk.f32.gmra.mrb[70].mxu1 %vm3822_vm9, %v9370_v56  ;;  %5549 = vmatpush1.bf16.msra.mxu0 %v5548_v4  ;;  %v4348_v58 = vmax.f32 %v4344_v18, 0.0  ;;  %v6495_v30 = vld [vmem:[#allocation11 + $0x7c] ss:$28 sps:$4 sm:$0xff]   ;;  %v6499_v14 = vld [vmem:[#allocation11 + $0xb4] ss:$28 sps:$4 sm:$0xff]  }
 0x9a8   :  { %5563 = vmatprep.subr.bf16.mxu1 %v5562_v52  ;;  %5474 = vmatprep.mubr.msk.f32.mxu1 %vm3822_vm9, %v9297_v5  ;;  %v6501_v35 = vld [vmem:[#allocation11 + $0xb0] ss:$28 sps:$4 sm:$0xff]   ;;  %v6502_v37 = vld [vmem:[#allocation11 + $0xe4] ss:$28 sps:$4 sm:$0xff]   ;;  %v6506_v61 = vld [vmem:[#allocation11 + $0x11c] ss:$28 sps:$4 sm:$0xff]  }
 0x9a9   :  { %5565 = vmatpush3.bf16.msra.mxu1 %v5562_v52  ;;  %4351 = vmatprep.subr.bf16.mxu0 %v6486_v42  ;;  %v9459_v53 = vpack.c.bf16 %v4348_v58, %v4346_v49  ;;  %v6503_v36 = vld [vmem:[#allocation11 + $0xec] ss:$28 sps:$4 sm:$0xff]   ;;  %v6504_v55 = vld [vmem:[#allocation11 + $0xe0] ss:$28 sps:$4 sm:$0xff]   ;;  %v6508_v52 = vld [vmem:[#allocation11 + $0x118] ss:$28 sps:$4 sm:$0xff]  }
 0x9aa   :  { %4394 = vmatprep.subr.bf16.mxu1 %v6487_v27  ;;  %5345 = vmatmul.mubr.msk.f32.vlgmr.msra.gmra.mrb[56].mxu0 %vm3822_vm9, %v9297_v5  ;;  %v6505_v13 = vld [vmem:[#allocation11 + $0xe8] ss:$28 sps:$4 sm:$0xff]   ;;  %v6509_v4 = vld [vmem:[#allocation11 + $0x120] ss:$28 sps:$4 sm:$0xff]   ;;  %v6510_v18 = vld [vmem:[#allocation11 + $0x154] ss:$28 sps:$4 sm:$0xff]  }
 0x9ab   :  { %4352 = vmatpush1.bf16.msra.mxu0 %v6488_v2  ;;  %4083 = vmatprep.mubr.f32.mxu0 %v10426_v22  ;;  %v6507_v23 = vld [vmem:[#allocation11 + $0x124] ss:$28 sps:$4 sm:$0xff]   ;;  %v6511_v42 = vld [vmem:[#allocation11 + $0x15c] ss:$28 sps:$4 sm:$0xff]   ;;  %v6512_v27 = vld [vmem:[#allocation11 + $0x150] ss:$28 sps:$4 sm:$0xff]  }
 0x9ac   :  { %5475 = vmatmul.mubr.msk.f32.vlgmr.msra.gmra.mrb[72].mxu1 %vm3822_vm9, %v9324_v7  ;;  %4353 = vmatprep.subr.bf16.mxu0 %v6490_v28  ;;  %v6513_v58 = vld [vmem:[#allocation11 + $0x158] ss:$28 sps:$4 sm:$0xff]   ;;  %v6514_v2 = vld [vmem:[#allocation11 + $0x18c] ss:$28 sps:$4 sm:$0xff]  }
 0x9ad   :  { %4395 = vmatpush1.bf16.msra.mxu1 %v6489_v47  ;;  %5477 = vmatprep.mubr.msk.f32.mxu1 %vm3822_vm9, %v9349_v43  ;;  %v6515_v49 = vld [vmem:[#allocation11 + $0x194] ss:$28 sps:$4 sm:$0xff]   ;;  %v6516_v47 = vld [vmem:[#allocation11 + $0x188] ss:$28 sps:$4 sm:$0xff]  }
 0x9ae   :  { %5346 = vmatmul.mubr.msk.f32.gmra.mrb[58].mxu0 %vm3822_vm9, %v9324_v7  ;;  %4396 = vmatprep.subr.bf16.mxu1 %v6491_v24  ;;  %v6517_v28 = vld [vmem:[#allocation11 + $0x190] ss:$28 sps:$4 sm:$0xff]   ;;  %v6518_v24 = vld [vmem:[#allocation11 + $0x1c4] ss:$28 sps:$4 sm:$0xff]  }
 0x9af   :  { %4354 = vmatpush1.bf16.msra.mxu0 %v6492_v1  ;;  %4089 = vmatprep.mubr.f32.mxu0 %v10426_v22  ;;  %v6519_v1 = vld [vmem:[#allocation11 + $0x1cc] ss:$28 sps:$4 sm:$0xff]  }
 0x9b0   :  { %5478 = vmatmul.mubr.msk.f32.gmra.mrb[74].mxu1 %vm3822_vm9, %v9370_v56  ;;  %4355 = vmatprep.subr.bf16.mxu0 %v6494_v12  ;;  %v6521_v12 = vld [vmem:[#allocation11 + $0x1c8] ss:$28 sps:$4 sm:$0xff]  }
 0x9b1   :  { %4397 = vmatpush1.bf16.msra.mxu1 %v6493_v45  ;;  %4426 = vmatprep.mubr.bf16.mxu1 %v9459_v53  ;;  %v6520_v45 = vld [vmem:[#allocation11 + $0x1c0] ss:$28 sps:$4 sm:$0xff]  }
 0x9b2   :  { %5347 = vmatmul.mubr.msk.f32.gmra.mrb[60].mxu0 %vm3822_vm9, %v9349_v43  ;;  %4398 = vmatprep.subr.bf16.mxu1 %v6495_v30  ;;  %v6522_v30 = vld [vmem:[#allocation11 + $0x1fc] ss:$28 sps:$4 sm:$0xff]  }
 0x9b3   :  { %4356 = vmatpush1.bf16.msra.mxu0 %v6496_v40  ;;  %4095 = vmatprep.mubr.f32.mxu0 %v10426_v22  ;;  %v6523_v40 = vld [vmem:[#allocation11 + $0x204] ss:$28 sps:$4 sm:$0xff]  }
 0x9b4   :  { %4357 = vmatprep.subr.bf16.mxu0 %v6498_v48  ;;  %v6525_v48 = vld [vmem:[#allocation11 + $0x200] ss:$28 sps:$4 sm:$0xff]  }
 0x9b5   :  { %4399 = vmatpush1.bf16.msra.mxu1 %v6497_v25  ;;  %v6524_v25 = vld [vmem:[#allocation11 + $0x1f8] ss:$28 sps:$4 sm:$0xff]  }
 0x9b6   :  { %4400 = vmatprep.subr.bf16.mxu1 %v6499_v14  ;;  %5348 = vmatmul.mubr.msk.f32.gmra.mrb[62].mxu0 %vm3822_vm9, %v9370_v56  ;;  %v6526_v14 = vld [vmem:[#allocation11 + $0x234] ss:$28 sps:$4 sm:$0xff]  }
 0x9b7   :  { %4358 = vmatpush1.bf16.msra.mxu0 %v6500_v59  ;;  %4383 = vmatprep.mubr.bf16.mxu0 %v9459_v53  ;;  %v6527_v59 = vld [vmem:[#allocation11 + $0x23c] ss:$28 sps:$4 sm:$0xff]  }
 0x9b8   :  { %4359 = vmatprep.subr.bf16.mxu0 %v6502_v37  ;;  %v6529_v37 = vld [vmem:[#allocation11 + $0x238] ss:$28 sps:$4 sm:$0xff]  }
 0x9b9   :  { %4401 = vmatpush1.bf16.msra.mxu1 %v6501_v35  ;;  %v6528_v35 = vld [vmem:[#allocation11 + $0x230] ss:$28 sps:$4 sm:$0xff]  }
 0x9ba   :  { %4402 = vmatprep.subr.bf16.mxu1 %v6503_v36  ;;  %v6530_v36 = vld [vmem:[#allocation11 + $0x26c] ss:$28 sps:$4 sm:$0xff]  }
 0x9bb   :  { %4360 = vmatpush1.bf16.msra.mxu0 %v6504_v55  ;;  %v6531_v55 = vld [vmem:[#allocation11 + $0x274] ss:$28 sps:$4 sm:$0xff]  }
 0x9bc   :  { %4361 = vmatprep.subr.bf16.mxu0 %v6506_v61  ;;  %v6533_v61 = vld [vmem:[#allocation11 + $0x270] ss:$28 sps:$4 sm:$0xff]  }
 0x9bd   :  { %4403 = vmatpush1.bf16.msra.mxu1 %v6505_v13  ;;  %v6532_v13 = vld [vmem:[#allocation11 + $0x268] ss:$28 sps:$4 sm:$0xff]  }
 0x9be   :  { %4404 = vmatprep.subr.bf16.mxu1 %v6507_v23  ;;  %v4339_v23 = vmul.f32 %v9021_v60, %v8929_v17  ;;  %v4345_v17 = vmax.f32 %v9017_v9, 0.0  ;;  %v10457_v9 = vld [vmem:[#allocation31_spill] sm:$0xff]  ;;  %v10458_v60 = vld [vmem:[#allocation32_spill] sm:$0xff] }
 0x9bf   :  { %4362 = vmatpush1.bf16.msra.mxu0 %v6508_v52 }
 0x9c0   :  { %4363 = vmatprep.subr.bf16.mxu0 %v6510_v18  ;;  %v4343_v52 = vadd.f32 %v4339_v23, %v9029_v20  ;;  %v10459_v20 = vld [vmem:[#allocation45_spill] sm:$0xff]  ;;  %v10470_v18 = vld [vmem:[#allocation39_spill] sm:$0xff] }
 0x9c1   :  { %4405 = vmatpush1.bf16.msra.mxu1 %v6509_v4  ;;  %v10469_v4 = vld [vmem:[#allocation58_spill] sm:$0xff] }
 0x9c2   :  { %4406 = vmatprep.subr.bf16.mxu1 %v6511_v42  ;;  %v10471_v42 = vld [vmem:[#allocation48_spill] sm:$0xff] }
 0x9c3   :  { %4364 = vmatpush1.bf16.msra.mxu0 %v6512_v27  ;;  %v10472_v27 = vld [vmem:[#allocation29_spill] sm:$0xff] }
 0x9c4   :  { %4365 = vmatprep.subr.bf16.mxu0 %v6514_v2  ;;  %v10474_v2 = vld [vmem:[#allocation26_spill] sm:$0xff] }
 0x9c5   :  { %4407 = vmatpush1.bf16.msra.mxu1 %v6513_v58  ;;  %v10473_v58 = vld [vmem:[#allocation44_spill] sm:$0xff] }
 0x9c6   :  { %4408 = vmatprep.subr.bf16.mxu1 %v6515_v49  ;;  %v10475_v49 = vld [vmem:[#allocation35_spill] sm:$0xff] }
 0x9c7   :  { %4366 = vmatpush1.bf16.msra.mxu0 %v6516_v47  ;;  %v10476_v47 = vld [vmem:[#allocation23_spill] sm:$0xff] }
 0x9c8   :  { %4367 = vmatprep.subr.bf16.mxu0 %v6518_v24  ;;  %v10478_v24 = vld [vmem:[#allocation30_spill] sm:$0xff] }
 0x9c9   :  { %4409 = vmatpush1.bf16.msra.mxu1 %v6517_v28  ;;  %v10477_v28 = vld [vmem:[#allocation56_spill] sm:$0xff] }
 0x9ca   :  { %4410 = vmatprep.subr.bf16.mxu1 %v6519_v1 }
 0x9cb   :  { %4368 = vmatpush1.bf16.msra.mxu0 %v6520_v45 }
 0x9cc   :  { %4369 = vmatprep.subr.bf16.mxu0 %v6522_v30 }
 0x9cd   :  { %4411 = vmatpush1.bf16.msra.mxu1 %v6521_v12 }
 0x9ce   :  { %4412 = vmatprep.subr.bf16.mxu1 %v6523_v40 }
 0x9cf   :  { %4370 = vmatpush1.bf16.msra.mxu0 %v6524_v25 }
 0x9d0   :  { %4371 = vmatprep.subr.bf16.mxu0 %v6526_v14 }
 0x9d1   :  { %4413 = vmatpush1.bf16.msra.mxu1 %v6525_v48 }
 0x9d2   :  { %4414 = vmatprep.subr.bf16.mxu1 %v6527_v59 }
 0x9d3   :  { %4372 = vmatpush1.bf16.msra.mxu0 %v6528_v35 }
 0x9d4   :  { %4373 = vmatprep.subr.bf16.mxu0 %v6530_v36 }
 0x9d5   :  { %4415 = vmatpush1.bf16.msra.mxu1 %v6529_v37 }
 0x9d6   :  { %4416 = vmatprep.subr.bf16.mxu1 %v6531_v55 }
 0x9d7   :  { %4374 = vmatpush1.bf16.msra.mxu0 %v6532_v13 }
 0x9d8   :  { %4375 = vmatprep.subr.bf16.mxu0 %v8957_v50 }
 0x9d9   :  { %4417 = vmatpush1.bf16.msra.mxu1 %v6533_v61 }
 0x9da   :  { %4418 = vmatprep.subr.bf16.mxu1 %v8964_v19  ;;  %v10442_v19 = vld [vmem:[#allocation49_spill] sm:$0xff] }
 0x9db   :  { %4376 = vmatpush1.bf16.msra.mxu0 %v8955_v32  ;;  %v4347_v32 = vmax.f32 %v4343_v52, 0.0 }
 0x9dc   :  { %4377 = vmatprep.subr.bf16.mxu0 %v8973_v41  ;;  %v10443_v41 = vld [vmem:[#allocation47_spill] sm:$0xff] }
 0x9dd   :  { %4419 = vmatpush1.bf16.msra.mxu1 %v8959_v16  ;;  %v4349_v50 = vpack.c.bf16 %v4347_v32, %v4345_v17  ;;  %v10441_v16 = vld [vmem:[#allocation34_spill] sm:$0xff] }
 0x9de   :  { %4420 = vmatprep.subr.bf16.mxu1 %v8975_v63  ;;  %v10444_v63 = vld [vmem:[#allocation19_spill] sm:$0xff] }
 0x9df   :  { %4378 = vmatpush1.bf16.msra.mxu0 %v8977_v10  ;;  %v10445_v10 = vld [vmem:[#allocation50_spill] sm:$0xff] }
 0x9e0   :  { %4379 = vmatprep.subr.bf16.mxu0 %v8983_v39  ;;  %v10447_v39 = vld [vmem:[#allocation38_spill] sm:$0xff] }
 0x9e1   :  { %4421 = vmatpush1.bf16.msra.mxu1 %v8979_v46  ;;  %v10446_v46 = vld [vmem:[#allocation20_spill] sm:$0xff] }
 0x9e2   :  { %4422 = vmatprep.subr.bf16.mxu1 %v8991_v54  ;;  %v10450_v54 = vld [vmem:[#allocation28_spill] sm:$0xff] }
 0x9e3   :  { %4380 = vmatpush1.bf16.msra.mxu0 %v8987_v44  ;;  %v10448_v44 = vld [vmem:[#allocation40_spill] sm:$0xff] }
 0x9e4   :  { %4381 = vmatprep.subr.bf16.mxu0 %v8997_v8  ;;  %v10451_v8 = vld [vmem:[#allocation24_spill] sm:$0xff] }
 0x9e5   :  { %4423 = vmatpush1.bf16.msra.mxu1 %v8989_v31  ;;  %v10449_v31 = vld [vmem:[#allocation27_spill] sm:$0xff] }
 0x9e6   :  { %4424 = vmatprep.subr.bf16.mxu1 %v8999_v62  ;;  %v10452_v62 = vld [vmem:[#allocation25_spill] sm:$0xff] }
 0x9e7   :  { %4382 = vmatpush1.bf16.msra.mxu0 %v9001_v34  ;;  %v10453_v34 = vld [vmem:[#allocation21_spill] sm:$0xff] }
 0x9e8   :  { %4437 = vmatprep.subr.bf16.mxu0 %v9009_v26  ;;  %v10455_v26 = vld [vmem:[#allocation42_spill] sm:$0xff] }
 0x9e9   :  { %4425 = vmatpush1.bf16.msra.mxu1 %v9003_v38  ;;  %v10454_v38 = vld [vmem:[#allocation22_spill] sm:$0xff] }
 0x9ea   :  { %5424 = vmatprep.subr.bf16.mxu1 %v9011_v57  ;;  %4384 = vmatmul.mubr.bf16.vlgmr.msra.gmra.mrb[64].mxu0 %v4349_v50  ;;  %v10456_v57 = vld [vmem:[#allocation43_spill] sm:$0xff] }
 0x9eb   :  { %4438 = vmatpush1.bf16.msra.mxu0 %v9035_v0  ;;  %4469 = vmatprep.mubr.bf16.mxu0 %v9459_v53  ;;  %v10460_v0 = vld [vmem:[#allocation46_spill] sm:$0xff] }
 0x9ec   :  { %4427 = vmatmul.mubr.bf16.vlgmr.msra.gmra.mrb[76].mxu1 %v4349_v50  ;;  %4439 = vmatprep.subr.bf16.mxu0 %v9039_v15  ;;  %v10462_v15 = vld [vmem:[#allocation52_spill] sm:$0xff] }
 0x9ed   :  { %5425 = vmatpush3.bf16.msra.mxu1 %v9037_v29  ;;  %4512 = vmatprep.mubr.bf16.mxu1 %v9459_v53  ;;  %v10461_v29 = vld [vmem:[#allocation51_spill] sm:$0xff]  ;;  %v10468_v53 = vld [vmem:[#allocation57_spill] sm:$0xff] }
 0x9ee   :  { %5426 = vmatprep.subr.bf16.mxu1 %v9041_v3  ;;  %v10463_v3 = vld [vmem:[#allocation54_spill] sm:$0xff] }
 0x9ef   :  { %4440 = vmatpush1.bf16.msra.mxu0 %v9047_v11  ;;  %v10464_v11 = vld [vmem:[#allocation55_spill] sm:$0xff] }
 0x9f0   :  { %4441 = vmatprep.subr.bf16.mxu0 %v9051_v51  ;;  %v10466_v51 = vld [vmem:[#allocation33_spill] sm:$0xff] }
 0x9f1   :  { %5427 = vmatpush3.bf16.msra.mxu1 %v9049_v33  ;;  %v10465_v33 = vld [vmem:[#allocation18_spill] sm:$0xff] }
 0x9f2   :  { %5428 = vmatprep.subr.bf16.mxu1 %v9053_v21  ;;  %v10467_v21 = vld [vmem:[#allocation41_spill] sm:$0xff] }
 0x9f3   :  { %4442 = vmatpush1.bf16.msra.mxu0 %v10441_v16 }
 0x9f4   :  { %4443 = vmatprep.subr.bf16.mxu0 %v10443_v41 }
 0x9f5   :  { %5429 = vmatpush3.bf16.msra.mxu1 %v10442_v19 }
 0x9f6   :  { %5430 = vmatprep.subr.bf16.mxu1 %v10444_v63 }
 0x9f7   :  { %4444 = vmatpush1.bf16.msra.mxu0 %v10445_v10 }
 0x9f8   :  { %4445 = vmatprep.subr.bf16.mxu0 %v10447_v39 }
 0x9f9   :  { %5431 = vmatpush3.bf16.msra.mxu1 %v10446_v46 }
 0x9fa   :  { %5432 = vmatprep.subr.bf16.mxu1 %v10448_v44 }
 0x9fb   :  { %4446 = vmatpush1.bf16.msra.mxu0 %v10449_v31 }
 0x9fc   :  { %4447 = vmatprep.subr.bf16.mxu0 %v10451_v8 }
 0x9fd   :  { %5433 = vmatpush3.bf16.msra.mxu1 %v10450_v54 }
 0x9fe   :  { %5434 = vmatprep.subr.bf16.mxu1 %v10452_v62 }
 0x9ff   :  { %4448 = vmatpush1.bf16.msra.mxu0 %v10453_v34 }
 0xa00   :  { %4449 = vmatprep.subr.bf16.mxu0 %v10455_v26 }
 0xa01   :  { %5435 = vmatpush3.bf16.msra.mxu1 %v10454_v38 }
 0xa02   :  { %5436 = vmatprep.subr.bf16.mxu1 %v10456_v57 }
 0xa03   :  { %4450 = vmatpush1.bf16.msra.mxu0 %v10457_v9 }
 0xa04   :  { %4451 = vmatprep.subr.bf16.mxu0 %v10459_v20 }
 0xa05   :  { %5437 = vmatpush3.bf16.msra.mxu1 %v10458_v60 }
 0xa06   :  { %5438 = vmatprep.subr.bf16.mxu1 %v10460_v0 }
 0xa07   :  { %4452 = vmatpush1.bf16.msra.mxu0 %v10461_v29 }
 0xa08   :  { %4453 = vmatprep.subr.bf16.mxu0 %v10463_v3 }
 0xa09   :  { %5439 = vmatpush3.bf16.msra.mxu1 %v10462_v15 }
 0xa0b   :  { %4454 = vmatpush1.bf16.msra.mxu0 %v10464_v11 }
 0xa0c   :  { %4513 = vmatmul.mubr.bf16.vlgmr.msra.gmra.mrb[80].mxu1 %v4349_v50  ;;  %4455 = vmatprep.subr.bf16.mxu0 %v10465_v33 }
 0xa0d   :  { %4727 = vmatprep.mubr.f32.mxu1 %v10426_v22 }
 0xa0f   :  { %4456 = vmatpush1.bf16.msra.mxu0 %v10466_v51 }
 0xa10   :  { %4457 = vmatprep.subr.bf16.mxu0 %v10467_v21 }
 0xa13   :  { %4458 = vmatpush1.bf16.msra.mxu0 %v10468_v53 }
 0xa14   :  { %4459 = vmatprep.subr.bf16.mxu0 %v10469_v4 }
 0xa17   :  { %4460 = vmatpush1.bf16.msra.mxu0 %v10470_v18 }
 0xa18   :  { %4461 = vmatprep.subr.bf16.mxu0 %v10471_v42 }
 0xa1b   :  { %4462 = vmatpush1.bf16.msra.mxu0 %v10472_v27 }
 0xa1c   :  { %4463 = vmatprep.subr.bf16.mxu0 %v10473_v58 }
 0xa1f   :  { %4464 = vmatpush1.bf16.msra.mxu0 %v10474_v2 }
 0xa20   :  { %4465 = vmatprep.subr.bf16.mxu0 %v10475_v49 }
 0xa23   :  { %4466 = vmatpush1.bf16.msra.mxu0 %v10476_v47 }
 0xa24   :  { %4467 = vmatprep.subr.bf16.mxu0 %v10477_v28 }
 0xa27   :  { %4468 = vmatpush1.bf16.msra.mxu0 %v10478_v24 }
 0xa2a   :  { %4470 = vmatmul.mubr.bf16.vlgmr.msra.gmra.mrb[68].mxu0 %v4349_v50 }
 0xa2b   :  { %4905 = vmatprep.mubr.f32.mxu0 %v10426_v22 }
 0xa5e   :  { %v9543_v1 = vpop.f32.mrb[56].mxu1 }
 0xa5f   :  { %v9545_v45 = vpop.f32.mrb[57].mxu1 }
 0xa62   :  { %v9547_v12 = vpop.f32.mrb[58].mxu1 }
 0xa63   :  { %v9549_v30 = vpop.f32.mrb[59].mxu1 }
 0xa66   :  { %v9551_v40 = vpop.f32.mrb[60].mxu1 }
 0xa67   :  { %v9553_v25 = vpop.f32.mrb[61].mxu1 }
 0xa6a   :  { %v9555_v48 = vpop.f32.mrb[62].mxu1 }
 0xa6b   :  { %v9557_v14 = vpop.f32.mrb[63].mxu1 }
 0xa6e   :  { %v9559_v59 = vpop.f32.mrb[64].mxu1 }
 0xa6f   :  { %v9561_v35 = vpop.f32.mrb[65].mxu1 }
 0xa72   :  { %v9563_v37 = vpop.f32.mrb[66].mxu1 }
 0xa73   :  { %v9565_v36 = vpop.f32.mrb[67].mxu1 }
 0xa76   :  { %v9567_v55 = vpop.f32.mrb[68].mxu1 }
 0xa77   :  { %v9569_v13 = vpop.f32.mrb[69].mxu1 }
 0xa7a   :  { %v9571_v61 = vpop.f32.mrb[70].mxu1 }
 0xa7b   :  { %v9573_v23 = vpop.f32.mrb[71].mxu1 }
 0xa7d   :  { %v9575_v52 = vpop.f32.mrb[56].mxu0 }
 0xa7e   :  { %v9579_v17 = vpop.f32.mrb[57].mxu0 }
 0xa7f   :  { %v9577_v32 = vpop.f32.mrb[72].mxu1 }
 0xa80   :  { %v9581_v50 = vpop.f32.mrb[73].mxu1 }
 0xa81   :  { %v9583_v16 = vpop.f32.mrb[58].mxu0 }
 0xa82   :  { %v9585_v19 = vpop.f32.mrb[59].mxu0 }
 0xa83   :  { %v9587_v41 = vpop.f32.mrb[74].mxu1 }
 0xa84   :  { %v9589_v63 = vpop.f32.mrb[75].mxu1 }
 0xa85   :  { %v9591_v10 = vpop.f32.mrb[60].mxu0 }
 0xa86   :  { %v9593_v46 = vpop.f32.mrb[61].mxu0 }
 0xa89   :  { %v9595_v39 = vpop.f32.mrb[62].mxu0 }
 0xa8a   :  { %v9597_v44 = vpop.f32.mrb[63].mxu0 }
 0xabd   :  { %v4385_v31 = vpop.f32.mrb[64].mxu0 }
 0xabe   :  { %v4387_v54 = vpop.f32.mrb[65].mxu0 }
 0xabf   :  { %v9599_v8 = vpop.f32.mrb[76].mxu1  ;;  %v4389_v62 = vpop.f32.mrb[66].mxu0 }
 0xac0   :  { %v9601_v34 = vpop.f32.mrb[77].mxu1  ;;  %v6146_v38 = vpack.i.bf16 %v4389_v62, %v4385_v31  ;;  %v5568_v26 = vpack.c.bf16 %v4389_v62, %v4385_v31  ;;  %v4391_v57 = vpop.f32.mrb[67].mxu0 }
 0xac1   :  { %v9603_v9 = vpop.f32.mrb[78].mxu1  ;;  %v6156_v60 = vpack.i.bf16 %v4391_v57, %v4387_v54  ;;  %v5566_v3 = vpack.c.bf16 %v4391_v57, %v4387_v54 }
 0xac2   :  { %v6186_v20 = vpack.i.bf16 %v9603_v9, %v9599_v8  ;;  %v9607_v0 = vpop.f32.mrb[79].mxu1  ;;  %v5584_v29 = vpack.c.bf16 %v9603_v9, %v9599_v8  ;;  %6127 = vrot.lane.b32.xlu0 %v6146_v38, %s6689_s7  ;;  %6122 = vrot.lane.b32.xlu1 %v6146_v38, %s6673_s26 }
 0xac3   :  { %v6191_v15 = vpack.i.bf16 %v9607_v0, %v9601_v34  ;;  %v5582_v11 = vpack.c.bf16 %v9607_v0, %v9601_v34  ;;  %5567 = vmatprep.subr.bf16.mxu1 %v5566_v3 }
 0xac4   :  { %5569 = vmatpush1.bf16.msra.mxu1 %v5568_v26 }
 0xac6   :  { %6137 = vrot.lane.b32.xlu1 %v6156_v60, %s6689_s7  ;;  %6132 = vrot.lane.b32.xlu0 %v6156_v60, %s6673_s26 }
 0xadf   :  { %v5440_v33 = vpop.f32.mrb[80].mxu1 }
 0xae0   :  { %v5441_v51 = vpop.f32.mrb[81].mxu1 }
 0xae1   :  { %v5442_v21 = vadd.f32 %v5441_v51, %v5440_v33  ;;  %v5443_v53 = vpop.f32.mrb[82].mxu1 }
 0xae2   :  { %v5444_v4 = vpop.f32.mrb[83].mxu1 }
 0xae3   :  { %v5445_v18 = vadd.f32 %v5444_v4, %v5443_v53 }
 0xae5   :  { %v6141_v42 = vpack.i.bf16 %v5445_v18, %v5442_v21  ;;  %v9619_v27 = vpack.c.bf16 %v5445_v18, %v5442_v21 }
 0xae7   :  { %6142 = vrot.lane.b32.xlu1 %v6141_v42, %s6673_s26  ;;  %6152 = vrot.lane.b32.xlu0 %v6141_v42, %s6689_s7 }
 0xaeb   :  { %6147 = vrot.lane.b32.xlu1 %v6146_v38, %s6691_s8  ;;  %6157 = vrot.lane.b32.xlu0 %v6156_v60, %s6691_s8 }
 0xaef   :  { %6162 = vrot.lane.b32.xlu1 %v6141_v42, %s6691_s8  ;;  %6167 = vrot.lane.b32.xlu0 %v6186_v20, %s6673_s26 }
 0xaf3   :  { %6172 = vrot.lane.b32.xlu1 %v6191_v15, %s6673_s26  ;;  %6177 = vrot.lane.b32.xlu0 %v6186_v20, %s6689_s7 }
 0xaf7   :  { %6182 = vrot.lane.b32.xlu1 %v6191_v15, %s6689_s7  ;;  %6187 = vrot.lane.b32.xlu0 %v6186_v20, %s6691_s8 }
 0xafb   :  { %6192 = vrot.lane.b32.xlu1 %v6191_v15, %s6691_s8 }
 0xafd   :  { %v4471_v58 = vpop.f32.mrb[68].mxu0 }
 0xafe   :  { %v4473_v2 = vpop.f32.mrb[69].mxu0 }
 0xaff   :  { %v4475_v49 = vpop.f32.mrb[70].mxu0 }
 0xb00   :  { %v6206_v47 = vpack.i.bf16 %v4475_v49, %v4471_v58  ;;  %v5600_v28 = vpack.c.bf16 %v4475_v49, %v4471_v58  ;;  %v4477_v24 = vpop.f32.mrb[71].mxu0 }
 0xb01   :  { %v6221_v31 = vpack.i.bf16 %v4477_v24, %v4473_v2  ;;  %v5598_v54 = vpack.c.bf16 %v4477_v24, %v4473_v2 }
 0xb02   :  { %6197 = vrot.lane.b32.xlu0 %v6206_v47, %s6673_s26 }
 0xb03   :  { %6212 = vrot.lane.b32.xlu1 %v6221_v31, %s6673_s26  ;;  %5599 = vmatprep.subr.bf16.mxu0 %v5598_v54 }
 0xb04   :  { %5601 = vmatpush1.bf16.msra.mxu0 %v5600_v28 }
 0xb06   :  { %6202 = vrot.lane.b32.xlu0 %v6206_v47, %s6689_s7 }
 0xb07   :  { %6217 = vrot.lane.b32.xlu1 %v6221_v31, %s6689_s7 }
 0xb0a   :  { %6207 = vrot.lane.b32.xlu0 %v6206_v47, %s6691_s8 }
 0xb0b   :  { %6222 = vrot.lane.b32.xlu1 %v6221_v31, %s6691_s8 }
 0xb0e   :  { %4187 = vrot.lane.b32.xlu0 %v9547_v12, %s6685_s3 }
 0xb0f   :  { %4189 = vrot.lane.b32.xlu1 %v9549_v30, %s6685_s3  ;;  %v4271_v30 = vld [vmem:[%s10072_s12] sm:$0xff] }
 0xb12   :  { %4191 = vrot.lane.b32.xlu0 %v9563_v37, %s6685_s3 }
 0xb13   :  { %4193 = vrot.lane.b32.xlu1 %v9565_v36, %s6685_s3 }
 0xb16   :  { %4195 = vrot.lane.b32.xlu0 %v9583_v16, %s6685_s3 }
 0xb17   :  { %4197 = vrot.lane.b32.xlu1 %v9585_v19, %s6685_s3 }
 0xb1a   :  { %4199 = vrot.lane.b32.xlu0 %v9577_v32, %s6685_s3 }
 0xb1b   :  { %4215 = vrot.lane.b32.xlu1 %v9551_v40, %s6686_s2 }
 0xb1e   :  { %4217 = vrot.lane.b32.xlu0 %v9553_v25, %s6686_s2 }
 0xb1f   :  { %4219 = vrot.lane.b32.xlu1 %v9567_v55, %s6686_s2 }
 0xb22   :  { %4221 = vrot.lane.b32.xlu0 %v9569_v13, %s6686_s2 }
 0xb23   :  { %4223 = vrot.lane.b32.xlu1 %v9591_v10, %s6686_s2 }
 0xb26   :  { %4225 = vrot.lane.b32.xlu0 %v9593_v46, %s6686_s2 }
 0xb27   :  { %4227 = vrot.lane.b32.xlu1 %v9589_v63, %s6686_s2 }
 0xb2a   :  { %4243 = vrot.lane.b32.xlu0 %v9555_v48, %s6687_s17 }
 0xb2b   :  { %4245 = vrot.lane.b32.xlu1 %v9557_v14, %s6687_s17 }
 0xb2e   :  { %4247 = vrot.lane.b32.xlu0 %v9571_v61, %s6687_s17 }
 0xb2f   :  { %4249 = vrot.lane.b32.xlu1 %v9573_v23, %s6687_s17 }
 0xb32   :  { %4251 = vrot.lane.b32.xlu0 %v9595_v39, %s6687_s17 }
 0xb33   :  { %4253 = vrot.lane.b32.xlu1 %v9597_v44, %s6687_s17 }
 0xb34   :  { %v6128_v12 = vpop.permute.xlu0 %6127  ;;  %v6123_v40 = vpop.permute.xlu1 %6122 }
 0xb35   :  { %v6125_v48 = vunpack.i.h.bf16 %v6123_v40  ;;  %v6124_v14 = vunpack.i.l.bf16 %v6123_v40  ;;  %v6130_v19 = vunpack.i.h.bf16 %v6128_v12 }
 0xb36   :  { %4255 = vrot.lane.b32.xlu0 %v9587_v41, %s6687_s17  ;;  %v6129_v41 = vunpack.i.l.bf16 %v6128_v12 }
 0xb37   :  { %4274 = vperm.xlu1 %5894, %v4271_v30  }
 0xb38   :  { %v9683_v25 = vpop.permute.xlu0 %6132  ;;  %v9693_v23 = vpop.permute.xlu1 %6137 }
 0xb39   :  { %v6135_v37 = vunpack.i.h.bf16 %v9683_v25  ;;  %v6134_v36 = vunpack.i.l.bf16 %v9683_v25  ;;  %v6140_v32 = vunpack.i.h.bf16 %v9693_v23  ;;  %v6139_v16 = vunpack.i.l.bf16 %v9693_v23 }
 0xb3b   :  { %5102 = vperm.xlu1 %5894, %v4271_v30   ;;  %v4559_v55 = vsel %vm3717_vm6, %v6124_v14, %v6134_v36  ;;  %v4560_v13 = vsel %vm3717_vm6, %v6125_v48, %v6135_v37  ;;  %v4601_v46 = vsel %vm3760_vm7, %v6129_v41, %v6139_v16  ;;  %v4602_v39 = vsel %vm3760_vm7, %v6130_v19, %v6140_v32 }
 0xb3c   :  { %v5570_v61 = vpack.c.bf16 %v4560_v13, %v4559_v55  ;;  %v5574_v21 = vpack.c.bf16 %v4602_v39, %v4601_v46 }
 0xb3e   :  { %5571 = vmatprep.subr.bf16.mxu1 %v5570_v61 }
 0xb59   :  { %v9697_v63 = vpop.permute.xlu1 %6142  ;;  %v9699_v10 = vpop.permute.xlu0 %6152 }
 0xb5a   :  { %v6145_v44 = vunpack.i.h.bf16 %v9697_v63  ;;  %v6144_v62 = vunpack.i.l.bf16 %v9697_v63  ;;  %v6155_v38 = vunpack.i.h.bf16 %v9699_v10  ;;  %v6154_v26 = vunpack.i.l.bf16 %v9699_v10 }
 0xb5c   :  { %v4562_v57 = vsel %vm3717_vm6, %v6145_v44, %v6125_v48  ;;  %v4561_v60 = vsel %vm3717_vm6, %v6144_v62, %v6124_v14  ;;  %v4604_v15 = vsel %vm3760_vm7, %v6155_v38, %v6130_v19  ;;  %v4603_v3 = vsel %vm3760_vm7, %v6154_v26, %v6129_v41 }
 0xb5d   :  { %v5572_v20 = vpack.c.bf16 %v4562_v57, %v4561_v60  ;;  %v6148_v33 = vpop.permute.xlu1 %6147  ;;  %v9729_v51 = vpop.permute.xlu0 %6157  ;;  %v5576_v49 = vpack.c.bf16 %v4604_v15, %v4603_v3 }
 0xb5e   :  { %v6150_v53 = vunpack.i.h.bf16 %v6148_v33  ;;  %v6149_v4 = vunpack.i.l.bf16 %v6148_v33  ;;  %v6160_v18 = vunpack.i.h.bf16 %v9729_v51  ;;  %v6159_v42 = vunpack.i.l.bf16 %v9729_v51 }
 0xb5f   :  { %5573 = vmatpush1.bf16.msra.mxu1 %v5572_v20 }
 0xb60   :  { %5575 = vmatprep.subr.bf16.mxu1 %v5574_v21  ;;  %v4643_v58 = vsel %vm3803_vm8, %v6149_v4, %v6159_v42  ;;  %v4644_v2 = vsel %vm3803_vm8, %v6150_v53, %v6160_v18 }
 0xb61   :  { %v9737_v47 = vpop.permute.xlu1 %6162  ;;  %v6168_v28 = vpop.permute.xlu0 %6167  ;;  %v5578_v24 = vpack.c.bf16 %v4644_v2, %v4643_v58 }
 0xb62   :  { %v6165_v31 = vunpack.i.h.bf16 %v9737_v47  ;;  %v6164_v54 = vunpack.i.l.bf16 %v9737_v47  ;;  %v6170_v55 = vunpack.i.h.bf16 %v6168_v28  ;;  %v6169_v13 = vunpack.i.l.bf16 %v6168_v28 }
 0xb63   :  { %5577 = vmatpush1.bf16.msra.mxu1 %v5576_v49 }
 0xb64   :  { %v4645_v12 = vsel %vm3803_vm8, %v6164_v54, %v6149_v4  ;;  %v4646_v30 = vsel %vm3803_vm8, %v6165_v31, %v6150_v53  ;;  %5579 = vmatprep.subr.bf16.mxu1 %v5578_v24  ;;  %v4557_v15 = vsel %vm3717_vm6, %v6134_v36, %v6169_v13  ;;  %v4558_v34 = vsel %vm3717_vm6, %v6135_v37, %v6170_v55 }
 0xb65   :  { %v5580_v40 = vpack.c.bf16 %v4646_v30, %v4645_v12  ;;  %v6173_v48 = vpop.permute.xlu1 %6172  ;;  %v6178_v14 = vpop.permute.xlu0 %6177  ;;  %v5588_v36 = vpack.c.bf16 %v4558_v34, %v4557_v15 }
 0xb66   :  { %v6175_v61 = vunpack.i.h.bf16 %v6173_v48  ;;  %v6174_v19 = vunpack.i.l.bf16 %v6173_v48  ;;  %v6180_v39 = vunpack.i.h.bf16 %v6178_v14  ;;  %v6179_v57 = vunpack.i.l.bf16 %v6178_v14 }
 0xb67   :  { %5581 = vmatpush1.bf16.msra.mxu1 %v5580_v40 }
 0xb68   :  { %5583 = vmatprep.subr.bf16.mxu1 %v5582_v11  ;;  %v4555_v41 = vsel %vm3717_vm6, %v6169_v13, %v6174_v19  ;;  %v4556_v46 = vsel %vm3717_vm6, %v6170_v55, %v6175_v61  ;;  %v4600_v33 = vsel %vm3760_vm7, %v6140_v32, %v6180_v39  ;;  %v4599_v8 = vsel %vm3760_vm7, %v6139_v16, %v6179_v57 }
 0xb69   :  { %v9756_v60 = vpop.permute.xlu1 %6182  ;;  %v5586_v20 = vpack.c.bf16 %v4556_v46, %v4555_v41  ;;  %v6188_v3 = vpop.permute.xlu0 %6187  ;;  %v5592_v16 = vpack.c.bf16 %v4600_v33, %v4599_v8 }
 0xb6a   :  { %v6185_v0 = vunpack.i.h.bf16 %v9756_v60  ;;  %v6184_v11 = vunpack.i.l.bf16 %v9756_v60  ;;  %5360 = vmatmul.mubr.msk.f32.vlgmr.msra.gmra.mrb[84].mxu1 %vm3822_vm9, %v9297_v5  ;;  %v6190_v51 = vunpack.i.h.bf16 %v6188_v3  ;;  %v6189_v21 = vunpack.i.l.bf16 %v6188_v3 }
 0xb6b   :  { %5585 = vmatpush1.bf16.msra.mxu1 %v5584_v29  ;;  %4733 = vmatprep.mubr.f32.mxu1 %v10426_v22 }
 0xb6c   :  { %5587 = vmatprep.subr.bf16.mxu1 %v5586_v20  ;;  %v4597_v25 = vsel %vm3760_vm7, %v6179_v57, %v6184_v11  ;;  %v4598_v37 = vsel %vm3760_vm7, %v6180_v39, %v6185_v0  ;;  %v4641_v2 = vsel %vm3803_vm8, %v6159_v42, %v6189_v21  ;;  %v4642_v49 = vsel %vm3803_vm8, %v6160_v18, %v6190_v51 }
 0xb6d   :  { %v9784_v9 = vpop.permute.xlu1 %6192  ;;  %v5590_v29 = vpack.c.bf16 %v4598_v37, %v4597_v25  ;;  %v5596_v28 = vpack.c.bf16 %v4642_v49, %v4641_v2  ;;  %v6535_v49 = vld [vmem:[#allocation13 + $0x8] sm:$0xff] }
 0xb6e   :  { %v6195_v53 = vunpack.i.h.bf16 %v9784_v9  ;;  %v6194_v4 = vunpack.i.l.bf16 %v9784_v9  ;;  %5361 = vmatmul.mubr.msk.f32.gmra.mrb[86].mxu1 %vm3822_vm9, %v9324_v7 }
 0xb6f   :  { %5589 = vmatpush1.bf16.msra.mxu1 %v5588_v36  ;;  %4739 = vmatprep.mubr.f32.mxu1 %v10426_v22 }
 0xb70   :  { %5591 = vmatprep.subr.bf16.mxu1 %v5590_v29  ;;  %v4639_v23 = vsel %vm3803_vm8, %v6189_v21, %v6194_v4  ;;  %v4640_v32 = vsel %vm3803_vm8, %v6190_v51, %v6195_v53 }
 0xb71   :  { %v5594_v58 = vpack.c.bf16 %v4640_v32, %v4639_v23 }
 0xb72   :  { %5362 = vmatmul.mubr.msk.f32.gmra.mrb[88].mxu1 %vm3822_vm9, %v9349_v43 }
 0xb73   :  { %5593 = vmatpush1.bf16.msra.mxu1 %v5592_v16  ;;  %4745 = vmatprep.mubr.f32.mxu1 %v10426_v22 }
 0xb74   :  { %5595 = vmatprep.subr.bf16.mxu1 %v5594_v58  ;;  %v6198_v24 = vpop.permute.xlu0 %6197 }
 0xb75   :  { %v6200_v12 = vunpack.i.h.bf16 %v6198_v24  ;;  %v6199_v30 = vunpack.i.l.bf16 %v6198_v24  ;;  %v6213_v40 = vpop.permute.xlu1 %6212 }
 0xb76   :  { %5363 = vmatmul.mubr.msk.f32.gmra.mrb[90].mxu1 %vm3822_vm9, %v9370_v56  ;;  %v6215_v48 = vunpack.i.h.bf16 %v6213_v40  ;;  %v6214_v42 = vunpack.i.l.bf16 %v6213_v40 }
 0xb77   :  { %5597 = vmatpush1.bf16.msra.mxu1 %v5596_v28  ;;  %4816 = vmatprep.mubr.f32.mxu1 %v10426_v22  ;;  %v4554_v18 = vsel %vm3717_vm6, %v6175_v61, %v6200_v12  ;;  %v4553_v14 = vsel %vm3717_vm6, %v6174_v19, %v6199_v30  ;;  %v6536_v28 = vld [vmem:[#allocation13 + $0x10] sm:$0xff] }
 0xb78   :  { %5615 = vmatprep.subr.bf16.mxu1 %v9619_v27  ;;  %v6203_v55 = vpop.permute.xlu0 %6202  ;;  %v4551_v13 = vsel %vm3717_vm6, %v6199_v30, %v6214_v42  ;;  %v4552_v41 = vsel %vm3717_vm6, %v6200_v12, %v6215_v48  ;;  %v4549_v46 = vsel %vm3717_vm6, %v6214_v42, %v6144_v62  ;;  %v4550_v60 = vsel %vm3717_vm6, %v6215_v48, %v6145_v44  ;;  %v6537_v12 = vld [vmem:[#allocation13 + $0x18] sm:$0xff] }
 0xb79   :  { %v6205_v39 = vunpack.i.h.bf16 %v6203_v55  ;;  %v6204_v57 = vunpack.i.l.bf16 %v6203_v55  ;;  %v6218_v61 = vpop.permute.xlu1 %6217  ;;  %v5602_v19 = vpack.c.bf16 %v4552_v41, %v4551_v13  ;;  %v5604_v20 = vpack.c.bf16 %v4554_v18, %v4553_v14 }
 0xb7a   :  { %5364 = vmatmul.mubr.msk.f32.vlgmr.msra.gmra.mrb[92].mxu1 %vm3822_vm9, %v9297_v5  ;;  %v6220_v15 = vunpack.i.h.bf16 %v6218_v61  ;;  %v6219_v34 = vunpack.i.l.bf16 %v6218_v61  ;;  %v5618_v3 = vpack.c.bf16 %v4550_v60, %v4549_v46 }
 0xb7b   :  { %5617 = vmatpush3.bf16.msra.mxu1 %v9619_v27  ;;  %4822 = vmatprep.mubr.f32.mxu1 %v10426_v22  ;;  %v4596_v62 = vsel %vm3760_vm7, %v6185_v0, %v6205_v39  ;;  %v4595_v5 = vsel %vm3760_vm7, %v6184_v11, %v6204_v57 }
 0xb7c   :  { %5603 = vmatprep.subr.bf16.mxu0 %v5602_v19  ;;  %5619 = vmatprep.subr.bf16.mxu1 %v5618_v3  ;;  %v6208_v63 = vpop.permute.xlu0 %6207  ;;  %v4593_v44 = vsel %vm3760_vm7, %v6204_v57, %v6219_v34  ;;  %v4594_v25 = vsel %vm3760_vm7, %v6205_v39, %v6220_v15  ;;  %v4591_v11 = vsel %vm3760_vm7, %v6219_v34, %v6154_v26 }
 0xb7d   :  { %5605 = vmatpush1.bf16.msra.mxu0 %v5604_v20  ;;  %v6210_v27 = vunpack.i.h.bf16 %v6208_v63  ;;  %v6209_v37 = vunpack.i.l.bf16 %v6208_v63  ;;  %v6223_v36 = vpop.permute.xlu1 %6222  ;;  %v5606_v0 = vpack.c.bf16 %v4594_v25, %v4593_v44  ;;  %v5608_v33 = vpack.c.bf16 %v4596_v62, %v4595_v5 }
 0xb7e   :  { %5365 = vmatmul.mubr.msk.f32.gmra.mrb[94].mxu1 %vm3822_vm9, %v9324_v7  ;;  %v6225_v8 = vunpack.i.h.bf16 %v6223_v36  ;;  %v6224_v29 = vunpack.i.l.bf16 %v6223_v36  ;;  %v4592_v51 = vsel %vm3760_vm7, %v6220_v15, %v6155_v38 }
 0xb7f   :  { %5621 = vmatpush3.bf16.msra.mxu1 %v5618_v3  ;;  %4828 = vmatprep.mubr.f32.mxu1 %v10426_v22  ;;  %v4638_v7 = vsel %vm3803_vm8, %v6195_v53, %v6210_v27  ;;  %v4637_v26 = vsel %vm3803_vm8, %v6194_v4, %v6209_v37  ;;  %v5622_v21 = vpack.c.bf16 %v4592_v51, %v4591_v11 }
 0xb80   :  { %5607 = vmatprep.subr.bf16.mxu0 %v5606_v0  ;;  %v4188_v23 = vpop.permute.xlu0 %4187  ;;  %v4635_v10 = vsel %vm3803_vm8, %v6209_v37, %v6224_v29  ;;  %v4636_v38 = vsel %vm3803_vm8, %v6210_v27, %v6225_v8  ;;  %v4633_v53 = vsel %vm3803_vm8, %v6224_v29, %v6164_v54  ;;  %v4634_v32 = vsel %vm3803_vm8, %v6225_v8, %v6165_v31  ;;  %v6534_v54 = vld [vmem:[#allocation13] sm:$0xff] }
 0xb81   :  { %5609 = vmatpush1.bf16.msra.mxu0 %v5608_v33  ;;  %5623 = vmatprep.subr.bf16.mxu1 %v5622_v21  ;;  %v4190_v9 = vpop.permute.xlu1 %4189  ;;  %v5610_v4 = vpack.c.bf16 %v4636_v38, %v4635_v10  ;;  %v5612_v16 = vpack.c.bf16 %v4638_v7, %v4637_v26  ;;  %v5626_v58 = vpack.c.bf16 %v4634_v32, %v4633_v53 }
 0xb82   :  { %5366 = vmatmul.mubr.msk.f32.gmra.mrb[96].mxu1 %vm3822_vm9, %v9349_v43  ;;  %v4206_v57 = vsel %vm971_vm3, %v4188_v23, %v4190_v9 }
 0xb83   :  { %5625 = vmatpush3.bf16.msra.mxu1 %v5622_v21  ;;  %4834 = vmatprep.mubr.f32.mxu1 %v10426_v22  ;;  %v4209_v62 = vadd.f32 %v4206_v57, %v9545_v45 }
 0xb84   :  { %5611 = vmatprep.subr.bf16.mxu0 %v5610_v4  ;;  %5627 = vmatprep.subr.bf16.mxu1 %v5626_v58  ;;  %v4192_v2 = vpop.permute.xlu0 %4191 }
 0xb85   :  { %5613 = vmatpush1.bf16.msra.mxu0 %v5612_v16  ;;  %v4194_v43 = vpop.permute.xlu1 %4193  ;;  %v4205_v61 = vsel %vm971_vm3, %v4190_v9, %v4192_v2 }
 0xb86   :  { %5367 = vmatmul.mubr.msk.f32.gmra.mrb[98].mxu1 %vm3822_vm9, %v9370_v56  ;;  %v4210_v5 = vadd.f32 %v4205_v61, %v9559_v59 }
 0xb87   :  { %5629 = vmatpush3.bf16.msra.mxu1 %v5626_v58  ;;  %5496 = vmatprep.mubr.msk.f32.mxu1 %vm3822_vm9, %v6534_v54 }
 0xb88   :  { %5368 = vmatmul.mubr.msk.f32.vlgmr.msra.gmra.mrb[72].mxu0 %vm3822_vm9, %v6534_v54  ;;  %v4196_v47 = vpop.permute.xlu0 %4195 }
 0xb89   :  { %4911 = vmatprep.mubr.f32.mxu0 %v10426_v22  ;;  %v4198_v31 = vpop.permute.xlu1 %4197  ;;  %v4203_v19 = vsel %vm971_vm3, %v4194_v43, %v4196_v47 }
 0xb8a   :  { %5497 = vmatmul.mubr.msk.f32.vlgmr.msra.gmra.mrb[100].mxu1 %vm3822_vm9, %v6535_v49  ;;  %v4202_v60 = vsel %vm971_vm3, %v4196_v47, %v4198_v31  ;;  %v4212_v25 = vadd.f32 %v4203_v19, %v9575_v52 }
 0xb8b   :  { %5499 = vmatprep.mubr.msk.f32.mxu1 %vm3822_vm9, %v6536_v28  ;;  %v4213_v27 = vadd.f32 %v4202_v60, %v9579_v17 }
 0xb8c   :  { %5369 = vmatmul.mubr.msk.f32.gmra.mrb[74].mxu0 %vm3822_vm9, %v6535_v49  ;;  %v4200_v56 = vpop.permute.xlu0 %4199 }
 0xb8d   :  { %4917 = vmatprep.mubr.f32.mxu0 %v10426_v22  ;;  %v4216_v24 = vpop.permute.xlu1 %4215  ;;  %v4207_v20 = vsel %vm971_vm3, %v4200_v56, %v4188_v23  ;;  %v4201_v15 = vsel %vm971_vm3, %v4198_v31, %v4200_v56 }
 0xb8e   :  { %5500 = vmatmul.mubr.msk.f32.gmra.mrb[102].mxu1 %vm3822_vm9, %v6537_v12  ;;  %v4208_v37 = vadd.f32 %v4207_v20, %v9543_v1  ;;  %v4214_v0 = vadd.f32 %v4201_v15, %v9581_v50 }
 0xb90   :  { %5370 = vmatmul.mubr.msk.f32.gmra.mrb[76].mxu0 %vm3822_vm9, %v6536_v28  ;;  %v4218_v30 = vpop.permute.xlu0 %4217 }
 0xb91   :  { %4923 = vmatprep.mubr.f32.mxu0 %v10426_v22  ;;  %v4220_v40 = vpop.permute.xlu1 %4219  ;;  %v4204_v22 = vsel %vm971_vm3, %v4192_v2, %v4194_v43  ;;  %v4234_v34 = vsel %vm1004_vm4, %v4216_v24, %v4218_v30 }
 0xb92   :  { %v4233_v3 = vsel %vm1004_vm4, %v4218_v30, %v4220_v40  ;;  %v4211_v44 = vadd.f32 %v4204_v22, %v9561_v35  ;;  %v4237_v11 = vadd.f32 %v4234_v34, %v4209_v62 }
 0xb93   :  { %v4238_v33 = vadd.f32 %v4233_v3, %v4210_v5 }
 0xb94   :  { %5371 = vmatmul.mubr.msk.f32.gmra.mrb[78].mxu0 %vm3822_vm9, %v6537_v12  ;;  %v4222_v48 = vpop.permute.xlu0 %4221 }
 0xb95   :  { %v4224_v42 = vpop.permute.xlu1 %4223  ;;  %v4232_v63 = vsel %vm1004_vm4, %v4220_v40, %v4222_v48 }
 0xb96   :  { %v4239_v8 = vadd.f32 %v4232_v63, %v4211_v44  ;;  %v4231_v29 = vsel %vm1004_vm4, %v4222_v48, %v4224_v42 }
 0xb97   :  { %v4240_v10 = vadd.f32 %v4231_v29, %v4212_v25 }
 0xb98   :  { %v4226_v18 = vpop.permute.xlu0 %4225 }
 0xb99   :  { %v4228_v55 = vpop.permute.xlu1 %4227  ;;  %v4230_v35 = vsel %vm1004_vm4, %v4224_v42, %v4226_v18 }
 0xb9a   :  { %v4235_v45 = vsel %vm1004_vm4, %v4228_v55, %v4216_v24  ;;  %v4229_v52 = vsel %vm1004_vm4, %v4226_v18, %v4228_v55  ;;  %v4241_v38 = vadd.f32 %v4230_v35, %v4213_v27 }
 0xb9b   :  { %v4236_v7 = vadd.f32 %v4235_v45, %v4208_v37  ;;  %v4242_v53 = vadd.f32 %v4229_v52, %v4214_v0 }
 0xb9c   :  { %v4244_v14 = vpop.permute.xlu0 %4243 }
 0xb9d   :  { %v4246_v41 = vpop.permute.xlu1 %4245 }
 0xb9e   :  { %v4262_v1 = vsel %vm1037_vm5, %v4244_v14, %v4246_v41 }
 0xb9f   :  { %v4265_v9 = vadd.f32 %v4262_v1, %v4237_v11 }
 0xba0   :  { %v4248_v13 = vpop.permute.xlu0 %4247 }
 0xba1   :  { %v4250_v39 = vpop.permute.xlu1 %4249  ;;  %v4261_v17 = vsel %vm1037_vm5, %v4246_v41, %v4248_v13 }
 0xba2   :  { %v4260_v50 = vsel %vm1037_vm5, %v4248_v13, %v4250_v39  ;;  %v4266_v4 = vadd.f32 %v4261_v17, %v4238_v33 }
 0xba3   :  { %v4267_v32 = vadd.f32 %v4260_v50, %v4239_v8 }
 0xba4   :  { %v4252_v46 = vpop.permute.xlu0 %4251 }
 0xba5   :  { %v4254_v59 = vpop.permute.xlu1 %4253  ;;  %v4259_v26 = vsel %vm1037_vm5, %v4250_v39, %v4252_v46 }
 0xba6   :  { %v4258_v21 = vsel %vm1037_vm5, %v4252_v46, %v4254_v59  ;;  %v4268_v58 = vadd.f32 %v4259_v26, %v4240_v10 }
 0xba7   :  { %v4269_v2 = vadd.f32 %v4258_v21, %v4241_v38 }
 0xba8   :  { %v4256_v36 = vpop.permute.xlu0 %4255 }
 0xba9   :  { %v4263_v51 = vsel %vm1037_vm5, %v4256_v36, %v4244_v14  ;;  %v4257_v23 = vsel %vm1037_vm5, %v4254_v59, %v4256_v36 }
 0xbaa   :  { %v4264_v16 = vadd.f32 %v4263_v51, %v4236_v7  ;;  %v4270_v43 = vadd.f32 %v4257_v23, %v4242_v53 }
 0xbb6   :  { %v4275_v54 = vpop.permute.xlu1 %4274 }
 0xbb7   :  { %v4277_v47 = vadd.f32 %v4275_v54, %v4264_v16  ;;  %v4278_v31 = vadd.f32 %v4275_v54, %v4265_v9  ;;  %v4279_v49 = vadd.f32 %v4275_v54, %v4266_v4  ;;  %v4280_v28 = vadd.f32 %v4275_v54, %v4267_v32 }
 0xbb8   :  { %v4281_v56 = vadd.f32 %v4275_v54, %v4268_v58  ;;  %v4282_v24 = vadd.f32 %v4275_v54, %v4269_v2  ;;  %v4283_v12 = vadd.f32 %v4275_v54, %v4270_v43 }
 0xbb9   :  { %v5353_v30 = vmul.f32 -1.442695, %v4277_v47  ;;  %v5354_v40 = vmul.f32 -1.442695, %v4278_v31  ;;  %v5355_v48 = vmul.f32 -1.442695, %v4279_v49 }
 0xbba   :  { %v5356_v42 = vmul.f32 -1.442695, %v4280_v28  ;;  %v5357_v18 = vmul.f32 -1.442695, %v4281_v56  ;;  %v5358_v14 = vmul.f32 -1.442695, %v4282_v24  ;;  %v9984_v47 = vpop.permute.xlu1 %5102 }
 0xbbb   :  { %6430 = vpow2.f32 %v5353_v30  ;;  %v5359_v55 = vmul.f32 -1.442695, %v4283_v12 }
 0xbbc   :  { %6432 = vpow2.f32 %v5354_v40 }
 0xbbd   :  { %6434 = vpow2.f32 %v5355_v48 }
 0xbbe   :  { %6436 = vpow2.f32 %v5356_v42 }
 0xbbf   :  { %6438 = vpow2.f32 %v5357_v18 }
 0xbc0   :  { %6440 = vpow2.f32 %v5358_v14 }
 0xbc1   :  { %6442 = vpow2.f32 %v5359_v55 }
 0xbc5   :  { %v6431_v13 = vpop.eup %6430 }
 0xbc6   :  { %v6433_v41 = vpop.eup %6432  ;;  %v4305_v46 = vadd.f32 1.0, %v6431_v13 }
 0xbc7   :  { %v6435_v39 = vpop.eup %6434  ;;  %v4306_v57 = vadd.f32 1.0, %v6433_v41 }
 0xbc8   :  { %v6437_v61 = vpop.eup %6436  ;;  %v4307_v22 = vadd.f32 1.0, %v6435_v39  ;;  %6444 = vrcp.f32 %v4305_v46 }
 0xbc9   :  { %v6439_v19 = vpop.eup %6438  ;;  %v4308_v60 = vadd.f32 1.0, %v6437_v61  ;;  %6446 = vrcp.f32 %v4306_v57 }
 0xbca   :  { %v6441_v20 = vpop.eup %6440  ;;  %v4309_v15 = vadd.f32 1.0, %v6439_v19  ;;  %6448 = vrcp.f32 %v4307_v22 }
 0xbcb   :  { %v6443_v34 = vpop.eup %6442  ;;  %v4310_v3 = vadd.f32 1.0, %v6441_v20  ;;  %6450 = vrcp.f32 %v4308_v60 }
 0xbcc   :  { %v4311_v62 = vadd.f32 1.0, %v6443_v34  ;;  %6452 = vrcp.f32 %v4309_v15 }
 0xbcd   :  { %6454 = vrcp.f32 %v4310_v3 }
 0xbce   :  { %6456 = vrcp.f32 %v4311_v62 }
 0xbd2   :  { %v6445_v5 = vpop.eup %6444 }
 0xbd3   :  { %v6447_v63 = vpop.eup %6446  ;;  %4326 = vst [vmem:[%s10073_s13] sm:$0xff] %v6445_v5 }
 0xbd4   :  { %v6449_v44 = vpop.eup %6448  ;;  %4327 = vst [vmem:[%s10073_s13 + $0x8] sm:$0xff] %v6447_v63 }
 0xbd5   :  { %v6451_v25 = vpop.eup %6450  ;;  %4328 = vst [vmem:[%s10073_s13 + $0x10] sm:$0xff] %v6449_v44 }
 0xbd6   :  { %v6453_v27 = vpop.eup %6452  ;;  %4329 = vst [vmem:[%s10073_s13 + $0x18] sm:$0xff] %v6451_v25 }
 0xbd7   :  { %v6455_v37 = vpop.eup %6454  ;;  %4330 = vst [vmem:[%s10073_s13 + $0x20] sm:$0xff] %v6453_v27 }
 0xbd8   :  { %v6457_v36 = vpop.eup %6456  ;;  %4331 = vst [vmem:[%s10073_s13 + $0x28] sm:$0xff] %v6455_v37 }
 0xbd9   :  { %4332 = vst [vmem:[%s10073_s13 + $0x30] sm:$0xff] %v6457_v36 }
 0xc3d   :  { %v9955_v0 = vpop.f32.mrb[84].mxu1 }
 0xc3e   :  { %v4731_v11 = vpop.f32.mrb[85].mxu1 }
 0xc41   :  { %v4735_v33 = vpop.f32.mrb[86].mxu1 }
 0xc42   :  { %v4737_v45 = vpop.f32.mrb[87].mxu1  ;;  %5015 = vrot.lane.b32.xlu0 %v4735_v33, %s6685_s3 }
 0xc43   :  { %5017 = vrot.lane.b32.xlu1 %v4737_v45, %s6685_s3 }
 0xc45   :  { %v4741_v59 = vpop.f32.mrb[88].mxu1 }
 0xc46   :  { %v4743_v8 = vpop.f32.mrb[89].mxu1  ;;  %5043 = vrot.lane.b32.xlu0 %v4741_v59, %s6686_s2 }
 0xc47   :  { %5045 = vrot.lane.b32.xlu1 %v4743_v8, %s6686_s2 }
 0xc49   :  { %v4747_v29 = vpop.f32.mrb[90].mxu1 }
 0xc4a   :  { %v4749_v35 = vpop.f32.mrb[91].mxu1 }
 0xc4b   :  { %5073 = vrot.lane.b32.xlu0 %v4749_v35, %s6687_s17  ;;  %5071 = vrot.lane.b32.xlu1 %v4747_v29, %s6687_s17 }
 0xc4d   :  { %v4818_v52 = vpop.f32.mrb[92].mxu1 }
 0xc4e   :  { %v4820_v1 = vpop.f32.mrb[93].mxu1 }
 0xc51   :  { %v4824_v17 = vpop.f32.mrb[94].mxu1 }
 0xc52   :  { %v4826_v50 = vpop.f32.mrb[95].mxu1  ;;  %5019 = vrot.lane.b32.xlu0 %v4824_v17, %s6685_s3 }
 0xc53   :  { %5021 = vrot.lane.b32.xlu1 %v4826_v50, %s6685_s3 }
 0xc55   :  { %v4830_v51 = vpop.f32.mrb[96].mxu1 }
 0xc56   :  { %v4832_v7 = vpop.f32.mrb[97].mxu1  ;;  %5047 = vrot.lane.b32.xlu0 %v4830_v51, %s6686_s2 }
 0xc57   :  { %5049 = vrot.lane.b32.xlu1 %v4832_v7, %s6686_s2 }
 0xc59   :  { %v4836_v26 = vpop.f32.mrb[98].mxu1 }
 0xc5a   :  { %v4838_v21 = vpop.f32.mrb[99].mxu1 }
 0xc5b   :  { %5077 = vrot.lane.b32.xlu0 %v4838_v21, %s6687_s17  ;;  %5075 = vrot.lane.b32.xlu1 %v4836_v26, %s6687_s17  ;;  %v9969_v23 = vpop.f32.mrb[72].mxu0 }
 0xc5c   :  { %v9971_v10 = vpop.f32.mrb[73].mxu0 }
 0xc5d   :  { %v5498_v38 = vpop.f32.mrb[100].mxu1 }
 0xc5e   :  { %v9973_v53 = vpop.f32.mrb[101].mxu1 }
 0xc5f   :  { %5027 = vrot.lane.b32.xlu0 %v5498_v38, %s6685_s3  ;;  %v4913_v9 = vpop.f32.mrb[74].mxu0 }
 0xc60   :  { %v4915_v4 = vpop.f32.mrb[75].mxu0 }
 0xc61   :  { %5025 = vrot.lane.b32.xlu1 %v4915_v4, %s6685_s3  ;;  %v5501_v32 = vpop.f32.mrb[102].mxu1 }
 0xc62   :  { %v5006_v16 = vpop.f32.mrb[103].mxu1 }
 0xc63   :  { %5023 = vrot.lane.b32.xlu0 %v4913_v9, %s6685_s3  ;;  %v4919_v58 = vpop.f32.mrb[76].mxu0 }
 0xc64   :  { %v4921_v2 = vpop.f32.mrb[77].mxu0 }
 0xc65   :  { %5053 = vrot.lane.b32.xlu1 %v4921_v2, %s6686_s2 }
 0xc67   :  { %5055 = vrot.lane.b32.xlu0 %v5006_v16, %s6686_s2  ;;  %v4925_v43 = vpop.f32.mrb[78].mxu0 }
 0xc68   :  { %v4927_v54 = vpop.f32.mrb[79].mxu0 }
 0xc69   :  { %5079 = vrot.lane.b32.xlu1 %v4925_v43, %s6687_s17 }
 0xc6b   :  { %5051 = vrot.lane.b32.xlu0 %v4919_v58, %s6686_s2 }
 0xc6d   :  { %5083 = vrot.lane.b32.xlu1 %v5501_v32, %s6687_s17 }
 0xc6f   :  { %5081 = vrot.lane.b32.xlu0 %v4927_v54, %s6687_s17 }
 0xcb4   :  { %v5016_v31 = vpop.permute.xlu0 %5015 }
 0xcb5   :  { %v5018_v49 = vpop.permute.xlu1 %5017 }
 0xcb6   :  { %v5034_v28 = vsel %vm971_vm3, %v5016_v31, %v5018_v49 }
 0xcb7   :  { %v5037_v30 = vadd.f32 %v5034_v28, %v4731_v11 }
 0xcb8   :  { %v5044_v56 = vpop.permute.xlu0 %5043 }
 0xcb9   :  { %v5046_v24 = vpop.permute.xlu1 %5045 }
 0xcba   :  { %v5062_v12 = vsel %vm1004_vm4, %v5044_v56, %v5046_v24 }
 0xcbb   :  { %v5065_v40 = vadd.f32 %v5062_v12, %v5037_v30 }
 0xcbd   :  { %v5074_v48 = vpop.permute.xlu0 %5073  ;;  %v5072_v42 = vpop.permute.xlu1 %5071 }
 0xcbe   :  { %v5090_v18 = vsel %vm1037_vm5, %v5072_v42, %v5074_v48 }
 0xcbf   :  { %v5093_v14 = vadd.f32 %v5090_v18, %v5065_v40 }
 0xcc1   :  { %v5106_v55 = vadd.f32 %v9984_v47, %v5093_v14 }
 0xcc3   :  { %v5377_v13 = vmul.f32 -1.442695, %v5106_v55 }
 0xcc4   :  { %v5020_v41 = vpop.permute.xlu0 %5019 }
 0xcc5   :  { %6458 = vpow2.f32 %v5377_v13  ;;  %v5022_v46 = vpop.permute.xlu1 %5021  ;;  %v5033_v39 = vsel %vm971_vm3, %v5018_v49, %v5020_v41 }
 0xcc6   :  { %v5032_v57 = vsel %vm971_vm3, %v5020_v41, %v5022_v46  ;;  %v5038_v20 = vadd.f32 %v5033_v39, %v4818_v52 }
 0xcc7   :  { %v5039_v15 = vadd.f32 %v5032_v57, %v4820_v1 }
 0xcc8   :  { %v5048_v61 = vpop.permute.xlu0 %5047 }
 0xcc9   :  { %v5050_v22 = vpop.permute.xlu1 %5049  ;;  %v5061_v19 = vsel %vm1004_vm4, %v5046_v24, %v5048_v61 }
 0xcca   :  { %v5060_v60 = vsel %vm1004_vm4, %v5048_v61, %v5050_v22  ;;  %v5066_v34 = vadd.f32 %v5061_v19, %v5038_v20 }
 0xccb   :  { %v5067_v3 = vadd.f32 %v5060_v60, %v5039_v15 }
 0xccd   :  { %v5078_v62 = vpop.permute.xlu0 %5077  ;;  %v5076_v5 = vpop.permute.xlu1 %5075 }
 0xcce   :  { %v5088_v63 = vsel %vm1037_vm5, %v5076_v5, %v5078_v62  ;;  %v5089_v44 = vsel %vm1037_vm5, %v5074_v48, %v5076_v5 }
 0xccf   :  { %v6459_v25 = vpop.eup %6458  ;;  %v5094_v27 = vadd.f32 %v5089_v44, %v5066_v34  ;;  %v5095_v37 = vadd.f32 %v5088_v63, %v5067_v3 }
 0xcd0   :  { %v5134_v36 = vadd.f32 1.0, %v6459_v25 }
 0xcd1   :  { %v5107_v11 = vadd.f32 %v9984_v47, %v5094_v27  ;;  %v5108_v33 = vadd.f32 %v9984_v47, %v5095_v37  ;;  %v5028_v45 = vpop.permute.xlu0 %5027 }
 0xcd2   :  { %6460 = vrcp.f32 %v5134_v36  ;;  %v5035_v17 = vsel %vm971_vm3, %v5028_v45, %v5016_v31 }
 0xcd3   :  { %v5378_v59 = vmul.f32 -1.442695, %v5107_v11  ;;  %v5379_v8 = vmul.f32 -1.442695, %v5108_v33  ;;  %v5026_v29 = vpop.permute.xlu1 %5025  ;;  %v5036_v38 = vadd.f32 %v5035_v17, %v9955_v0 }
 0xcd4   :  { %v5029_v9 = vsel %vm971_vm3, %v5026_v29, %v5028_v45 }
 0xcd5   :  { %6462 = vpow2.f32 %v5378_v59  ;;  %v5024_v35 = vpop.permute.xlu0 %5023 }
 0xcd6   :  { %6464 = vpow2.f32 %v5379_v8  ;;  %v5031_v50 = vsel %vm971_vm3, %v5022_v46, %v5024_v35  ;;  %v5030_v26 = vsel %vm971_vm3, %v5024_v35, %v5026_v29 }
 0xcd7   :  { %v5054_v52 = vpop.permute.xlu1 %5053  ;;  %v5040_v4 = vadd.f32 %v5031_v50, %v9969_v23  ;;  %v5041_v43 = vadd.f32 %v5030_v26, %v9971_v10  ;;  %v5042_v23 = vadd.f32 %v5029_v9, %v9973_v53 }
 0xcd9   :  { %v5056_v1 = vpop.permute.xlu0 %5055 }
 0xcda   :  { %v5063_v21 = vsel %vm1004_vm4, %v5056_v1, %v5044_v56  ;;  %v5057_v54 = vsel %vm1004_vm4, %v5054_v52, %v5056_v1 }
 0xcdb   :  { %v5080_v51 = vpop.permute.xlu1 %5079  ;;  %v5064_v31 = vadd.f32 %v5063_v21, %v5036_v38  ;;  %v5070_v14 = vadd.f32 %v5057_v54, %v5042_v23 }
 0xcdc   :  { %v6461_v7 = vpop.eup %6460  ;;  %v5087_v24 = vsel %vm1037_vm5, %v5078_v62, %v5080_v51 }
 0xcdd   :  { %5384 = vst [vmem:[%s10073_s13 + $0x40] sm:$0xff] %v6461_v7  ;;  %v5052_v32 = vpop.permute.xlu0 %5051 }
 0xcde   :  { %v5058_v16 = vsel %vm1004_vm4, %v5052_v32, %v5054_v52  ;;  %v5059_v58 = vsel %vm1004_vm4, %v5050_v22, %v5052_v32 }
 0xcdf   :  { %v6463_v2 = vpop.eup %6462  ;;  %v5068_v0 = vadd.f32 %v5059_v58, %v5040_v4  ;;  %v5084_v49 = vpop.permute.xlu1 %5083  ;;  %v5069_v40 = vadd.f32 %v5058_v16, %v5041_v43 }
 0xce0   :  { %v6465_v28 = vpop.eup %6464  ;;  %v5135_v56 = vadd.f32 1.0, %v6463_v2  ;;  %v5091_v12 = vsel %vm1037_vm5, %v5084_v49, %v5072_v42 }
 0xce1   :  { %v5136_v30 = vadd.f32 1.0, %v6465_v28  ;;  %v5096_v48 = vadd.f32 %v5087_v24, %v5068_v0  ;;  %v5092_v10 = vadd.f32 %v5091_v12, %v5064_v31  ;;  %v5082_v18 = vpop.permute.xlu0 %5081 }
 0xce2   :  { %6466 = vrcp.f32 %v5135_v56  ;;  %v5085_v55 = vsel %vm1037_vm5, %v5082_v18, %v5084_v49  ;;  %v5086_v13 = vsel %vm1037_vm5, %v5080_v51, %v5082_v18 }
 0xce3   :  { %6468 = vrcp.f32 %v5136_v30  ;;  %v5109_v53 = vadd.f32 %v9984_v47, %v5096_v48  ;;  %v5105_v41 = vadd.f32 %v9984_v47, %v5092_v10  ;;  %v5097_v46 = vadd.f32 %v5086_v13, %v5069_v40 }
 0xce4   :  { %v5098_v42 = vadd.f32 %v5085_v55, %v5070_v14 }
 0xce5   :  { %v5380_v39 = vmul.f32 -1.442695, %v5109_v53  ;;  %v5376_v57 = vmul.f32 -1.442695, %v5105_v41  ;;  %v5110_v61 = vadd.f32 %v9984_v47, %v5097_v46 }
 0xce6   :  { %v5111_v22 = vadd.f32 %v9984_v47, %v5098_v42 }
 0xce7   :  { %6470 = vpow2.f32 %v5380_v39  ;;  %v5381_v19 = vmul.f32 -1.442695, %v5110_v61 }
 0xce8   :  { %6472 = vpow2.f32 %v5376_v57  ;;  %v5382_v60 = vmul.f32 -1.442695, %v5111_v22 }
 0xce9   :  { %6474 = vpow2.f32 %v5381_v19 }
 0xcea   :  { %6476 = vpow2.f32 %v5382_v60 }
 0xcec   :  { %v6467_v6 = vpop.eup %6466 }
 0xced   :  { %v6469_v20 = vpop.eup %6468  ;;  %5385 = vst [vmem:[%s10073_s13 + $0x48] sm:$0xff] %v6467_v6 }
 0xcee   :  { %5386 = vst [vmem:[%s10073_s13 + $0x50] sm:$0xff] %v6469_v20 }
 0xcf1   :  { %v6471_v15 = vpop.eup %6470 }
 0xcf2   :  { %v6473_v34 = vpop.eup %6472  ;;  %v5137_v3 = vadd.f32 1.0, %v6471_v15 }
 0xcf3   :  { %v6475_v47 = vpop.eup %6474  ;;  %v5133_v62 = vadd.f32 1.0, %v6473_v34 }
 0xcf4   :  { %v6477_v5 = vpop.eup %6476  ;;  %6478 = vrcp.f32 %v5137_v3  ;;  %v5138_v63 = vadd.f32 1.0, %v6475_v47 }
 0xcf5   :  { %6480 = vrcp.f32 %v5133_v62  ;;  %v5139_v44 = vadd.f32 1.0, %v6477_v5 }
 0xcf6   :  { %6482 = vrcp.f32 %v5138_v63 }
 0xcf7   :  { %6484 = vrcp.f32 %v5139_v44 }
 0xcfe   :  { %v6479_v25 = vpop.eup %6478 }
 0xcff   :  { %v6481_v27 = vpop.eup %6480  ;;  %5387 = vst [vmem:[%s10073_s13 + $0x58] sm:$0xff] %v6479_v25 }
 0xd00   :  { %v6483_v37 = vpop.eup %6482  ;;  %5383 = vst [vmem:[%s10073_s13 + $0x38] sm:$0xff] %v6481_v27 }
 0xd01   :  { %v6485_v36 = vpop.eup %6484  ;;  %5388 = vst [vmem:[%s10073_s13 + $0x60] sm:$0xff] %v6483_v37 }
 0xd02   :  { %5389 = vst [vmem:[%s10073_s13 + $0x68] sm:$0xff] %v6485_v36 }
 0xd03   :  { %5166 = vsyncpa [#allocation5], 1 }
 0xd04   :  { %5167 = vsyncpa [#allocation9], 1 }
 0xd05   :  { %5168 = vsyncpa [#allocation12], 1 }
 0xd06   :  { %5169 = vsyncpa [#allocation6], 1 }

</bundles_post_ra>
